<compile_context>
chip_gen: v6e
topology: v6e:2x2x1
jax: 0.10.0
libtpu: 0.0.40
codegen_flags: <defaults>
</compile_context>

<pallas_src>
import math

import jax
import jax.numpy as jnp
from jax.experimental import pallas as pl
from jax.experimental.pallas import tpu as pltpu

PATCH = 4
PATCH_NUM = 7                       # 28 // 4
SEQ = PATCH_NUM * PATCH_NUM + 1     # 50 (49 patches + cls token)
SEQP = 56                           # padded to a sublane multiple of 8
PDIM = PATCH * PATCH                # 16 (flattened patch / conv out channels)
EMB = 16
NHEAD = 2
HEAD_DIM = EMB // NHEAD             # 8
FF = 2048                           # nn.TransformerEncoderLayer default
FF_TILE = 512                       # feed-forward hidden-dim chunk (4 chunks)
NLAYERS = 3
NCLS = 10
OUT_PAD = 128                       # lane-dense padded classifier width
EPS = 1e-5
NEG = -1e9                          # additive mask for padded key rows
BTILE = 32                          # max batch tile (VMEM-safe on v5e/v6e/v7x)

BF16 = jnp.bfloat16
F32 = jnp.float32

# order of the (pre-fused) weight arguments passed to the kernel
ORDER = ["proj_w", "add", "wqkv", "bqkv", "wo", "bo",
         "g1", "be1", "g2", "be2", "w1", "b1", "w2", "b2",
         "fc_w", "fc_b"]


def _layernorm(x, g, b):
    mu = jnp.mean(x, axis=-1, keepdims=True)
    xc = x - mu
    var = jnp.mean(xc * xc, axis=-1, keepdims=True)
    return xc * jax.lax.rsqrt(var + EPS) * g + b


def vit_kernel(patch_ref, proj_w, add_r, wqkv, bqkv, wo, bo,
               g1, be1, g2, be2, w1, b1, w2, b2, fc_w, fc_b, o_ref):
    bt = patch_ref.shape[0]                    # batch tile size
    m = bt * SEQP                              # flattened row count

    # fused conv + patch embedding (bf16 MXU), then add cls/pos/bias table (f32).
    patches = patch_ref[...].reshape(m, PDIM).astype(BF16)          # [bt*56,16]
    x = jnp.dot(patches, proj_w[...], preferred_element_type=F32)
    x = (x.reshape(bt, SEQP, EMB) + add_r[...]).reshape(m, EMB)     # f32

    # additive bias that masks out padded key rows (index >= SEQ).
    key_bias = jnp.where(
        jax.lax.broadcasted_iota(jnp.int32, (1, 1, SEQP), 2) >= SEQ,
        NEG, 0.0).astype(F32)                                       # [1,1,56]

    for l in range(NLAYERS):
        last = (l == NLAYERS - 1)

        # --- multi-head self-attention (post-norm encoder layer) ---
        xb = x.astype(BF16)
        qkv = jnp.dot(xb, wqkv[l], preferred_element_type=F32) + bqkv[l]
        qkv3 = qkv.reshape(bt, SEQP, 3 * EMB)                       # [bt,56,48]
        if last:
            # only the cls row is ever read by the classifier -> carry just it
            q3 = qkv3[:, 0:1, :EMB]                                 # [bt,1,16]
            res = x.reshape(bt, SEQP, EMB)[:, 0, :]                 # [bt,16]
        else:
            q3 = qkv3[:, :, :EMB]                                   # [bt,56,16]
            res = x                                                 # [m,16]
        heads = []
        for h in range(NHEAD):
            lo = h * HEAD_DIM
            qh = q3[:, :, lo:lo + HEAD_DIM].astype(BF16)            # [bt,q,8]
            kh = qkv3[:, :, EMB + lo:EMB + lo + HEAD_DIM].astype(BF16)
            vh = qkv3[:, :, 2 * EMB + lo:2 * EMB + lo + HEAD_DIM].astype(BF16)
            # 1/sqrt(head_dim) is pre-folded into the Q projection weights.
            s = jnp.einsum("bqd,bkd->bqk", qh, kh,
                           preferred_element_type=F32)              # f32 scores
            s = s + key_bias
            s = s - jnp.max(s, axis=-1, keepdims=True)
            p = jnp.exp(s)
            p = p * pl.reciprocal(jnp.sum(p, axis=-1, keepdims=True), approx=True)
            heads.append(jnp.einsum("bqk,bkd->bqd", p.astype(BF16), vh,
                                    preferred_element_type=F32))
        cat = jnp.concatenate(heads, axis=-1)                       # [bt,q,16]
        cat2 = cat.reshape(cat.shape[0] * cat.shape[1], EMB)
        attn = jnp.dot(cat2.astype(BF16), wo[l],
                       preferred_element_type=F32) + bo[l]
        x = _layernorm(res + attn, g1[l], be1[l])                   # f32

        # --- feed-forward: Linear(16->2048) -> ReLU -> Linear(2048->16),
        #     chunked along the 2048 hidden dim to cap the live intermediate ---
        xb2 = x.astype(BF16)
        ffo = jnp.zeros_like(x)                                     # f32 acc
        for c in range(FF // FF_TILE):
            clo, chi = c * FF_TILE, (c + 1) * FF_TILE
            hdn = jnp.dot(xb2, w1[l, :, clo:chi],
                          preferred_element_type=F32) + b1[l, :, clo:chi]
            hdn = jnp.maximum(hdn, 0.0).astype(BF16)
            ffo = ffo + jnp.dot(hdn, w2[l, clo:chi, :],
                                preferred_element_type=F32)
        ffo = ffo + b2[l]
        x = _layernorm(x + ffo, g2[l], be2[l])

    # classification head; after the last layer x is already the cls row [bt,16].
    logits = jnp.dot(x.astype(BF16), fc_w[...],
                     preferred_element_type=F32) + fc_b[...]
    o_ref[...] = logits.reshape(bt, 1, OUT_PAD)


def make_params(key):
    ks = list(jax.random.split(key, 24))
    nxt = iter(ks)

    def nrm(shape, scale=0.02):
        return (scale * jax.random.normal(next(nxt), shape)).astype(F32)

    def unif(shape):
        return jax.random.uniform(next(nxt), shape, dtype=F32)

    p = {}
    p["conv_w"] = nrm((PDIM, PDIM))                # flattened conv kernel, [in, out]
    p["conv_b"] = nrm((1, PDIM))
    p["pe_w"] = nrm((PDIM, EMB))
    p["pe_b"] = nrm((1, EMB))
    p["cls"] = unif((1, EMB))                      # torch.rand init
    p["pos"] = unif((SEQ, EMB))                    # torch.rand init
    p["wq"] = nrm((NLAYERS, EMB, EMB))
    p["bq"] = nrm((NLAYERS, 1, EMB))
    p["wk"] = nrm((NLAYERS, EMB, EMB))
    p["bk"] = nrm((NLAYERS, 1, EMB))
    p["wv"] = nrm((NLAYERS, EMB, EMB))
    p["bv"] = nrm((NLAYERS, 1, EMB))
    p["wo"] = nrm((NLAYERS, EMB, EMB))
    p["bo"] = nrm((NLAYERS, 1, EMB))
    p["g1"] = jnp.ones((NLAYERS, 1, EMB), F32)
    p["be1"] = jnp.zeros((NLAYERS, 1, EMB), F32)
    p["g2"] = jnp.ones((NLAYERS, 1, EMB), F32)
    p["be2"] = jnp.zeros((NLAYERS, 1, EMB), F32)
    p["w1"] = nrm((NLAYERS, EMB, FF))
    p["b1"] = nrm((NLAYERS, 1, FF))
    p["w2"] = nrm((NLAYERS, FF, EMB))
    p["b2"] = nrm((NLAYERS, 1, EMB))
    p["fc_w"] = nrm((EMB, NCLS))
    p["fc_b"] = nrm((1, NCLS))
    return p


def _prepare(p):
    """Fuse/repack the raw PyTorch-style params into kernel-ready tensors."""
    scale = 1.0 / math.sqrt(HEAD_DIM)
    # fold conv + patch embedding into one linear: x@Wc@Wp + (bc@Wp + bp)
    proj_w = (p["conv_w"] @ p["pe_w"]).astype(BF16)                 # [16,16] bf16
    proj_b = p["conv_b"] @ p["pe_w"] + p["pe_b"]                    # [1,16]
    # additive table: row 0 -> cls + pos[0]; rows 1..49 -> bias + pos; pad -> 0
    add = jnp.zeros((SEQP, EMB), F32)
    add = add.at[0].set(p["cls"][0] + p["pos"][0])
    add = add.at[1:SEQ].set(proj_b + p["pos"][1:SEQ])
    # fused QKV projection; fold 1/sqrt(head_dim) into the Q weights & bias
    wqkv = jnp.concatenate([p["wq"] * scale, p["wk"], p["wv"]],
                           axis=-1).astype(BF16)                    # [L,16,48]
    bqkv = jnp.concatenate([p["bq"] * scale, p["bk"], p["bv"]], axis=-1)
    # lane-dense (zero-padded) classifier head
    fc_w = jnp.zeros((EMB, OUT_PAD), F32).at[:, :NCLS].set(p["fc_w"]).astype(BF16)
    fc_b = jnp.zeros((1, OUT_PAD), F32).at[:, :NCLS].set(p["fc_b"])
    return dict(proj_w=proj_w, add=add, wqkv=wqkv, bqkv=bqkv,
                wo=p["wo"].astype(BF16), bo=p["bo"],
                g1=p["g1"], be1=p["be1"], g2=p["g2"], be2=p["be2"],
                w1=p["w1"].astype(BF16), b1=p["b1"],
                w2=p["w2"].astype(BF16), b2=p["b2"],
                fc_w=fc_w, fc_b=fc_b)


@jax.jit
def vit_forward(x, params):
    B = x.shape[0]
    # batch tile: >=2 grid steps whenever B > 1 (v7x has 2 TensorCores that the
    # "parallel" grid axis shards across); capped at BTILE for VMEM.
    bt = 1 if B <= 1 else min(BTILE, -(-B // 2))
    bp = -(-B // bt) * bt                   # padded batch
    grid_n = bp // bt

    # patchify NCHW [B,1,28,28] -> [B,49,16]; prepend cls slot row (zeros) and
    # pad seq to 56 and batch to bp.
    pt = x.astype(F32).reshape(B, 1, PATCH_NUM, PATCH, PATCH_NUM, PATCH)
    pt = pt.transpose(0, 2, 4, 1, 3, 5).reshape(B, PATCH_NUM * PATCH_NUM, PDIM)
    pt = jnp.pad(pt, ((0, bp - B), (1, SEQP - SEQ), (0, 0)))        # [bp,56,16]

    w = _prepare(params)
    weights = [w[name] for name in ORDER]

    def const_spec(a):
        nd = a.ndim
        return pl.BlockSpec(a.shape, lambda b, _nd=nd: (0,) * _nd)

    in_specs = [pl.BlockSpec((bt, SEQP, PDIM), lambda b: (b, 0, 0))]
    in_specs += [const_spec(a) for a in weights]

    # advisory cost estimate (FF matmuls dominate; last layer is cls-row only)
    m = bt * SEQP
    fl_full = (2 * m * EMB * 3 * EMB
               + 2 * 2 * bt * NHEAD * SEQP * SEQP * HEAD_DIM
               + 2 * m * EMB * EMB
               + 2 * 2 * m * EMB * FF)
    fl_last = (2 * m * EMB * 3 * EMB
               + 2 * 2 * bt * NHEAD * SEQP * HEAD_DIM
               + 2 * bt * EMB * EMB
               + 2 * 2 * bt * EMB * FF)
    fl_step = (2 * m * PDIM * EMB + (NLAYERS - 1) * fl_full + fl_last
               + 2 * bt * EMB * OUT_PAD)
    tr_step = NHEAD * ((NLAYERS - 1) * bt * SEQP * SEQP + bt * SEQP)
    wbytes = sum(int(a.size) * a.dtype.itemsize for a in weights)
    cost = pl.CostEstimate(
        flops=int(grid_n * fl_step),
        transcendentals=int(grid_n * tr_step),
        bytes_accessed=int(bp * SEQP * PDIM * 4 + wbytes + bp * OUT_PAD * 4))

    out = pl.pallas_call(
        vit_kernel,
        out_shape=jax.ShapeDtypeStruct((bp, 1, OUT_PAD), F32),
        grid=(grid_n,),
        in_specs=in_specs,
        out_specs=pl.BlockSpec((bt, 1, OUT_PAD), lambda b: (b, 0, 0)),
        compiler_params=pltpu.CompilerParams(
            dimension_semantics=("parallel",),
            vmem_limit_bytes=40 * 1024 * 1024),
        cost_estimate=cost,
    )(pt, *weights)
    return out[:B, 0, :NCLS]


if __name__ == "__main__":
    key = jax.random.PRNGKey(0)
    kx, kp = jax.random.split(key)
    x = jax.random.normal(kx, (2, 1, 28, 28), dtype=jnp.float32)
    params = make_params(kp)

    out = jax.block_until_ready(vit_forward(x, params))
    assert out.shape == (2, NCLS) and bool(jnp.all(jnp.isfinite(out)))
    print("KERNEL_OK")
</pallas_src>

<mosaic_0001>
module attributes {stable_mosaic.version = 11 : i64} {
  func.func @vit_kernel(%arg0: i32, %arg1: memref<1x56x16xf32, #tpu.memory_space<vmem>>, %arg2: memref<16x16xbf16, #tpu.memory_space<vmem>>, %arg3: memref<56x16xf32, #tpu.memory_space<vmem>>, %arg4: memref<3x16x48xbf16, #tpu.memory_space<vmem>>, %arg5: memref<3x1x48xf32, #tpu.memory_space<vmem>>, %arg6: memref<3x16x16xbf16, #tpu.memory_space<vmem>>, %arg7: memref<3x1x16xf32, #tpu.memory_space<vmem>>, %arg8: memref<3x1x16xf32, #tpu.memory_space<vmem>>, %arg9: memref<3x1x16xf32, #tpu.memory_space<vmem>>, %arg10: memref<3x1x16xf32, #tpu.memory_space<vmem>>, %arg11: memref<3x1x16xf32, #tpu.memory_space<vmem>>, %arg12: memref<3x16x2048xbf16, #tpu.memory_space<vmem>>, %arg13: memref<3x1x2048xf32, #tpu.memory_space<vmem>>, %arg14: memref<3x2048x16xbf16, #tpu.memory_space<vmem>>, %arg15: memref<3x1x16xf32, #tpu.memory_space<vmem>>, %arg16: memref<16x128xbf16, #tpu.memory_space<vmem>>, %arg17: memref<1x128xf32, #tpu.memory_space<vmem>>, %arg18: memref<1x1x128xf32, #tpu.memory_space<vmem>>) attributes {dimension_semantics = [#tpu.dimension_semantics<parallel>], iteration_bounds = array<i64: 2>, scalar_prefetch = 0 : i64, scratch_operands = 0 : i64, tpu.core_type = #tpu.core_type<tc>, window_params = [{transform_indices = @transform_0, window_bounds = array<i64: 1, 56, 16>}, {pipeline_mode = #tpu.pipeline_mode<synchronous>, transform_indices = @transform_1, window_bounds = array<i64: 16, 16>}, {pipeline_mode = #tpu.pipeline_mode<synchronous>, transform_indices = @transform_2, window_bounds = array<i64: 56, 16>}, {pipeline_mode = #tpu.pipeline_mode<synchronous>, transform_indices = @transform_3, window_bounds = array<i64: 3, 16, 48>}, {pipeline_mode = #tpu.pipeline_mode<synchronous>, transform_indices = @transform_4, window_bounds = array<i64: 3, 1, 48>}, {pipeline_mode = #tpu.pipeline_mode<synchronous>, transform_indices = @transform_5, window_bounds = array<i64: 3, 16, 16>}, {pipeline_mode = #tpu.pipeline_mode<synchronous>, transform_indices = @transform_6, window_bounds = array<i64: 3, 1, 16>}, {pipeline_mode = #tpu.pipeline_mode<synchronous>, transform_indices = @transform_7, window_bounds = array<i64: 3, 1, 16>}, {pipeline_mode = #tpu.pipeline_mode<synchronous>, transform_indices = @transform_8, window_bounds = array<i64: 3, 1, 16>}, {pipeline_mode = #tpu.pipeline_mode<synchronous>, transform_indices = @transform_9, window_bounds = array<i64: 3, 1, 16>}, {pipeline_mode = #tpu.pipeline_mode<synchronous>, transform_indices = @transform_10, window_bounds = array<i64: 3, 1, 16>}, {pipeline_mode = #tpu.pipeline_mode<synchronous>, transform_indices = @transform_11, window_bounds = array<i64: 3, 16, 2048>}, {pipeline_mode = #tpu.pipeline_mode<synchronous>, transform_indices = @transform_12, window_bounds = array<i64: 3, 1, 2048>}, {pipeline_mode = #tpu.pipeline_mode<synchronous>, transform_indices = @transform_13, window_bounds = array<i64: 3, 2048, 16>}, {pipeline_mode = #tpu.pipeline_mode<synchronous>, transform_indices = @transform_14, window_bounds = array<i64: 3, 1, 16>}, {pipeline_mode = #tpu.pipeline_mode<synchronous>, transform_indices = @transform_15, window_bounds = array<i64: 16, 128>}, {pipeline_mode = #tpu.pipeline_mode<synchronous>, transform_indices = @transform_16, window_bounds = array<i64: 1, 128>}, {transform_indices = @transform_17, window_bounds = array<i64: 1, 1, 128>}]} {
    %c0 = arith.constant 0 : index
    %c0_0 = arith.constant 0 : index
    %c0_1 = arith.constant 0 : index
    %0 = vector.load %arg1[%c0, %c0_0, %c0_1] : memref<1x56x16xf32, #tpu.memory_space<vmem>>, vector<1x56x16xf32>
    %1 = vector.shape_cast %0 : vector<1x56x16xf32> to vector<56x16xf32>
    %2 = arith.truncf %1 : vector<56x16xf32> to vector<56x16xbf16>
    %c0_2 = arith.constant 0 : index
    %c0_3 = arith.constant 0 : index
    %3 = vector.load %arg2[%c0_2, %c0_3] : memref<16x16xbf16, #tpu.memory_space<vmem>>, vector<16x16xbf16>
    %cst = arith.constant dense<0.000000e+00> : vector<56x16xf32>
    %4 = tpu.matmul %2, %3, %cst {dimension_numbers = #tpu.dot_dimension_numbers<[1], [0], [0], [1], [0, 0, 1, 1], [], []>} : vector<56x16xbf16>, vector<16x16xbf16>, vector<56x16xf32> -> vector<56x16xf32>
    %5 = vector.shape_cast %4 : vector<56x16xf32> to vector<1x56x16xf32>
    %c0_4 = arith.constant 0 : index
    %c0_5 = arith.constant 0 : index
    %6 = vector.load %arg3[%c0_4, %c0_5] : memref<56x16xf32, #tpu.memory_space<vmem>>, vector<56x16xf32>
    %7 = vector.shape_cast %6 : vector<56x16xf32> to vector<1x56x16xf32>
    %8 = arith.addf %5, %7 : vector<1x56x16xf32>
    %9 = vector.shape_cast %8 : vector<1x56x16xf32> to vector<56x16xf32>
    %10 = tpu.iota {dimensions = array<i32: 2>} : vector<1x1x56xi32>
    %c50_i32 = arith.constant 50 : i32
    %11 = vector.broadcast %c50_i32 : i32 to vector<1x1x56xi32>
    %12 = arith.cmpi sge, %10, %11 : vector<1x1x56xi32>
    %cst_6 = arith.constant -1.000000e+09 : f32
    %cst_7 = arith.constant 0.000000e+00 : f32
    %13 = vector.broadcast %cst_6 : f32 to vector<1x1x56xf32>
    %14 = vector.broadcast %cst_7 : f32 to vector<1x1x56xf32>
    %15 = arith.select %12, %13, %14 : vector<1x1x56xi1>, vector<1x1x56xf32>
    %16 = arith.truncf %9 : vector<56x16xf32> to vector<56x16xbf16>
    %c0_8 = arith.constant 0 : index
    %c0_9 = arith.constant 0 : index
    %c0_10 = arith.constant 0 : index
    %17 = vector.load %arg4[%c0_8, %c0_9, %c0_10] : memref<3x16x48xbf16, #tpu.memory_space<vmem>>, vector<1x16x48xbf16>
    %18 = vector.shape_cast %17 : vector<1x16x48xbf16> to vector<16x48xbf16>
    %cst_11 = arith.constant dense<0.000000e+00> : vector<56x48xf32>
    %19 = tpu.matmul %16, %18, %cst_11 {dimension_numbers = #tpu.dot_dimension_numbers<[1], [0], [0], [1], [0, 0, 1, 1], [], []>} : vector<56x16xbf16>, vector<16x48xbf16>, vector<56x48xf32> -> vector<56x48xf32>
    %c0_12 = arith.constant 0 : index
    %c0_13 = arith.constant 0 : index
    %c0_14 = arith.constant 0 : index
    %20 = vector.load %arg5[%c0_12, %c0_13, %c0_14] : memref<3x1x48xf32, #tpu.memory_space<vmem>>, vector<1x1x48xf32>
    %21 = vector.shape_cast %20 : vector<1x1x48xf32> to vector<1x48xf32>
    %22 = vector.broadcast %21 : vector<1x48xf32> to vector<56x48xf32>
    %23 = arith.addf %19, %22 : vector<56x48xf32>
    %24 = vector.shape_cast %23 : vector<56x48xf32> to vector<1x56x48xf32>
    %25 = vector.extract_strided_slice %24 {offsets = [0, 0, 0], sizes = [1, 56, 16], strides = [1, 1, 1]} : vector<1x56x48xf32> to vector<1x56x16xf32>
    %26 = vector.extract_strided_slice %25 {offsets = [0, 0, 0], sizes = [1, 56, 8], strides = [1, 1, 1]} : vector<1x56x16xf32> to vector<1x56x8xf32>
    %27 = arith.truncf %26 : vector<1x56x8xf32> to vector<1x56x8xbf16>
    %28 = vector.extract_strided_slice %24 {offsets = [0, 0, 16], sizes = [1, 56, 8], strides = [1, 1, 1]} : vector<1x56x48xf32> to vector<1x56x8xf32>
    %29 = arith.truncf %28 : vector<1x56x8xf32> to vector<1x56x8xbf16>
    %30 = vector.extract_strided_slice %24 {offsets = [0, 0, 32], sizes = [1, 56, 8], strides = [1, 1, 1]} : vector<1x56x48xf32> to vector<1x56x8xf32>
    %31 = arith.truncf %30 : vector<1x56x8xf32> to vector<1x56x8xbf16>
    "tpu.trace_start"() <{level = 10 : i32, message = "bqd,bkd->bqk"}> : () -> ()
    %cst_15 = arith.constant dense<0.000000e+00> : vector<1x56x56xf32>
    %32 = tpu.matmul %27, %29, %cst_15 {dimension_numbers = #tpu.dot_dimension_numbers<[2], [2], [1], [1], [0, 0, 0, 1, 1, 1], [0], [0]>} : vector<1x56x8xbf16>, vector<1x56x8xbf16>, vector<1x56x56xf32> -> vector<1x56x56xf32>
    "tpu.trace_stop"() : () -> ()
    %33 = vector.broadcast %15 : vector<1x1x56xf32> to vector<1x56x56xf32>
    %34 = arith.addf %32, %33 : vector<1x56x56xf32>
    %cst_16 = arith.constant dense<0xFF800000> : vector<1x56xf32>
    %35 = vector.multi_reduction <maximumf>, %34, %cst_16 [2] : vector<1x56x56xf32> to vector<1x56xf32>
    %36 = vector.shape_cast %35 : vector<1x56xf32> to vector<1x56x1xf32>
    %37 = vector.broadcast %36 : vector<1x56x1xf32> to vector<1x56x56xf32>
    %38 = arith.subf %34, %37 : vector<1x56x56xf32>
    %39 = math.exp %38 : vector<1x56x56xf32>
    %cst_17 = arith.constant dense<0.000000e+00> : vector<1x56xf32>
    %40 = vector.multi_reduction <add>, %39, %cst_17 [2] : vector<1x56x56xf32> to vector<1x56xf32>
    %41 = vector.shape_cast %40 : vector<1x56xf32> to vector<1x56x1xf32>
    %42 = tpu.reciprocal %41 {approx = true} : vector<1x56x1xf32> -> vector<1x56x1xf32>
    %43 = vector.broadcast %42 : vector<1x56x1xf32> to vector<1x56x56xf32>
    %44 = arith.mulf %39, %43 : vector<1x56x56xf32>
    %45 = arith.truncf %44 : vector<1x56x56xf32> to vector<1x56x56xbf16>
    "tpu.trace_start"() <{level = 10 : i32, message = "bqk,bkd->bqd"}> : () -> ()
    %cst_18 = arith.constant dense<0.000000e+00> : vector<1x56x8xf32>
    %46 = tpu.matmul %45, %31, %cst_18 {dimension_numbers = #tpu.dot_dimension_numbers<[2], [1], [1], [2], [0, 0, 0, 1, 1, 2], [0], [0]>} : vector<1x56x56xbf16>, vector<1x56x8xbf16>, vector<1x56x8xf32> -> vector<1x56x8xf32>
    "tpu.trace_stop"() : () -> ()
    %47 = vector.extract_strided_slice %25 {offsets = [0, 0, 8], sizes = [1, 56, 8], strides = [1, 1, 1]} : vector<1x56x16xf32> to vector<1x56x8xf32>
    %48 = arith.truncf %47 : vector<1x56x8xf32> to vector<1x56x8xbf16>
    %49 = vector.extract_strided_slice %24 {offsets = [0, 0, 24], sizes = [1, 56, 8], strides = [1, 1, 1]} : vector<1x56x48xf32> to vector<1x56x8xf32>
    %50 = arith.truncf %49 : vector<1x56x8xf32> to vector<1x56x8xbf16>
    %51 = vector.extract_strided_slice %24 {offsets = [0, 0, 40], sizes = [1, 56, 8], strides = [1, 1, 1]} : vector<1x56x48xf32> to vector<1x56x8xf32>
    %52 = arith.truncf %51 : vector<1x56x8xf32> to vector<1x56x8xbf16>
    "tpu.trace_start"() <{level = 10 : i32, message = "bqd,bkd->bqk"}> : () -> ()
    %cst_19 = arith.constant dense<0.000000e+00> : vector<1x56x56xf32>
    %53 = tpu.matmul %48, %50, %cst_19 {dimension_numbers = #tpu.dot_dimension_numbers<[2], [2], [1], [1], [0, 0, 0, 1, 1, 1], [0], [0]>} : vector<1x56x8xbf16>, vector<1x56x8xbf16>, vector<1x56x56xf32> -> vector<1x56x56xf32>
    "tpu.trace_stop"() : () -> ()
    %54 = vector.broadcast %15 : vector<1x1x56xf32> to vector<1x56x56xf32>
    %55 = arith.addf %53, %54 : vector<1x56x56xf32>
    %cst_20 = arith.constant dense<0xFF800000> : vector<1x56xf32>
    %56 = vector.multi_reduction <maximumf>, %55, %cst_20 [2] : vector<1x56x56xf32> to vector<1x56xf32>
    %57 = vector.shape_cast %56 : vector<1x56xf32> to vector<1x56x1xf32>
    %58 = vector.broadcast %57 : vector<1x56x1xf32> to vector<1x56x56xf32>
    %59 = arith.subf %55, %58 : vector<1x56x56xf32>
    %60 = math.exp %59 : vector<1x56x56xf32>
    %cst_21 = arith.constant dense<0.000000e+00> : vector<1x56xf32>
    %61 = vector.multi_reduction <add>, %60, %cst_21 [2] : vector<1x56x56xf32> to vector<1x56xf32>
    %62 = vector.shape_cast %61 : vector<1x56xf32> to vector<1x56x1xf32>
    %63 = tpu.reciprocal %62 {approx = true} : vector<1x56x1xf32> -> vector<1x56x1xf32>
    %64 = vector.broadcast %63 : vector<1x56x1xf32> to vector<1x56x56xf32>
    %65 = arith.mulf %60, %64 : vector<1x56x56xf32>
    %66 = arith.truncf %65 : vector<1x56x56xf32> to vector<1x56x56xbf16>
    "tpu.trace_start"() <{level = 10 : i32, message = "bqk,bkd->bqd"}> : () -> ()
    %cst_22 = arith.constant dense<0.000000e+00> : vector<1x56x8xf32>
    %67 = tpu.matmul %66, %52, %cst_22 {dimension_numbers = #tpu.dot_dimension_numbers<[2], [1], [1], [2], [0, 0, 0, 1, 1, 2], [0], [0]>} : vector<1x56x56xbf16>, vector<1x56x8xbf16>, vector<1x56x8xf32> -> vector<1x56x8xf32>
    "tpu.trace_stop"() : () -> ()
    %68 = tpu.concatenate %46, %67 in 2 : vector<1x56x8xf32>, vector<1x56x8xf32> -> vector<1x56x16xf32>
    %69 = vector.shape_cast %68 : vector<1x56x16xf32> to vector<56x16xf32>
    %70 = arith.truncf %69 : vector<56x16xf32> to vector<56x16xbf16>
    %c0_23 = arith.constant 0 : index
    %c0_24 = arith.constant 0 : index
    %c0_25 = arith.constant 0 : index
    %71 = vector.load %arg6[%c0_23, %c0_24, %c0_25] : memref<3x16x16xbf16, #tpu.memory_space<vmem>>, vector<1x16x16xbf16>
    %72 = vector.shape_cast %71 : vector<1x16x16xbf16> to vector<16x16xbf16>
    %cst_26 = arith.constant dense<0.000000e+00> : vector<56x16xf32>
    %73 = tpu.matmul %70, %72, %cst_26 {dimension_numbers = #tpu.dot_dimension_numbers<[1], [0], [0], [1], [0, 0, 1, 1], [], []>} : vector<56x16xbf16>, vector<16x16xbf16>, vector<56x16xf32> -> vector<56x16xf32>
    %c0_27 = arith.constant 0 : index
    %c0_28 = arith.constant 0 : index
    %c0_29 = arith.constant 0 : index
    %74 = vector.load %arg7[%c0_27, %c0_28, %c0_29] : memref<3x1x16xf32, #tpu.memory_space<vmem>>, vector<1x1x16xf32>
    %75 = vector.shape_cast %74 : vector<1x1x16xf32> to vector<1x16xf32>
    %76 = vector.broadcast %75 : vector<1x16xf32> to vector<56x16xf32>
    %77 = arith.addf %73, %76 : vector<56x16xf32>
    %78 = arith.addf %9, %77 : vector<56x16xf32>
    %c0_30 = arith.constant 0 : index
    %c0_31 = arith.constant 0 : index
    %c0_32 = arith.constant 0 : index
    %79 = vector.load %arg8[%c0_30, %c0_31, %c0_32] : memref<3x1x16xf32, #tpu.memory_space<vmem>>, vector<1x1x16xf32>
    %80 = vector.shape_cast %79 : vector<1x1x16xf32> to vector<1x16xf32>
    %c0_33 = arith.constant 0 : index
    %c0_34 = arith.constant 0 : index
    %c0_35 = arith.constant 0 : index
    %81 = vector.load %arg9[%c0_33, %c0_34, %c0_35] : memref<3x1x16xf32, #tpu.memory_space<vmem>>, vector<1x1x16xf32>
    %82 = vector.shape_cast %81 : vector<1x1x16xf32> to vector<1x16xf32>
    %cst_36 = arith.constant dense<0.000000e+00> : vector<56xf32>
    %83 = vector.multi_reduction <add>, %78, %cst_36 [1] : vector<56x16xf32> to vector<56xf32>
    %84 = vector.shape_cast %83 : vector<56xf32> to vector<56x1xf32>
    %cst_37 = arith.constant 1.600000e+01 : f32
    %85 = vector.broadcast %cst_37 : f32 to vector<56x1xf32>
    %86 = arith.divf %84, %85 : vector<56x1xf32>
    %87 = vector.broadcast %86 : vector<56x1xf32> to vector<56x16xf32>
    %88 = arith.subf %78, %87 : vector<56x16xf32>
    %89 = arith.mulf %88, %88 : vector<56x16xf32>
    %cst_38 = arith.constant dense<0.000000e+00> : vector<56xf32>
    %90 = vector.multi_reduction <add>, %89, %cst_38 [1] : vector<56x16xf32> to vector<56xf32>
    %91 = vector.shape_cast %90 : vector<56xf32> to vector<56x1xf32>
    %cst_39 = arith.constant 1.600000e+01 : f32
    %92 = vector.broadcast %cst_39 : f32 to vector<56x1xf32>
    %93 = arith.divf %91, %92 : vector<56x1xf32>
    %cst_40 = arith.constant 9.99999974E-6 : f32
    %94 = vector.broadcast %cst_40 : f32 to vector<56x1xf32>
    %95 = arith.addf %93, %94 : vector<56x1xf32>
    %96 = math.rsqrt %95 : vector<56x1xf32>
    %97 = vector.broadcast %96 : vector<56x1xf32> to vector<56x16xf32>
    %98 = arith.mulf %88, %97 : vector<56x16xf32>
    %99 = vector.broadcast %80 : vector<1x16xf32> to vector<56x16xf32>
    %100 = arith.mulf %98, %99 : vector<56x16xf32>
    %101 = vector.broadcast %82 : vector<1x16xf32> to vector<56x16xf32>
    %102 = arith.addf %100, %101 : vector<56x16xf32>
    %103 = arith.truncf %102 : vector<56x16xf32> to vector<56x16xbf16>
    %cst_41 = arith.constant 0.000000e+00 : f32
    %104 = vector.broadcast %cst_41 : f32 to vector<56x16xf32>
    %c0_42 = arith.constant 0 : index
    %c0_43 = arith.constant 0 : index
    %c0_44 = arith.constant 0 : index
    %105 = vector.load %arg12[%c0_42, %c0_43, %c0_44] : memref<3x16x2048xbf16, #tpu.memory_space<vmem>>, vector<1x16x512xbf16>
    %106 = vector.shape_cast %105 : vector<1x16x512xbf16> to vector<16x512xbf16>
    %cst_45 = arith.constant dense<0.000000e+00> : vector<56x512xf32>
    %107 = tpu.matmul %103, %106, %cst_45 {dimension_numbers = #tpu.dot_dimension_numbers<[1], [0], [0], [1], [0, 0, 1, 1], [], []>} : vector<56x16xbf16>, vector<16x512xbf16>, vector<56x512xf32> -> vector<56x512xf32>
    %c0_46 = arith.constant 0 : index
    %c0_47 = arith.constant 0 : index
    %c0_48 = arith.constant 0 : index
    %108 = vector.load %arg13[%c0_46, %c0_47, %c0_48] : memref<3x1x2048xf32, #tpu.memory_space<vmem>>, vector<1x1x512xf32>
    %109 = vector.shape_cast %108 : vector<1x1x512xf32> to vector<1x512xf32>
    %110 = vector.broadcast %109 : vector<1x512xf32> to vector<56x512xf32>
    %111 = arith.addf %107, %110 : vector<56x512xf32>
    %cst_49 = arith.constant 0.000000e+00 : f32
    %112 = vector.broadcast %cst_49 : f32 to vector<56x512xf32>
    %113 = arith.maximumf %111, %112 : vector<56x512xf32>
    %114 = arith.truncf %113 : vector<56x512xf32> to vector<56x512xbf16>
    %c0_50 = arith.constant 0 : index
    %c0_51 = arith.constant 0 : index
    %c0_52 = arith.constant 0 : index
    %115 = vector.load %arg14[%c0_50, %c0_51, %c0_52] : memref<3x2048x16xbf16, #tpu.memory_space<vmem>>, vector<1x512x16xbf16>
    %116 = vector.shape_cast %115 : vector<1x512x16xbf16> to vector<512x16xbf16>
    %cst_53 = arith.constant dense<0.000000e+00> : vector<56x16xf32>
    %117 = tpu.matmul %114, %116, %cst_53 {dimension_numbers = #tpu.dot_dimension_numbers<[1], [0], [0], [1], [0, 0, 1, 1], [], []>} : vector<56x512xbf16>, vector<512x16xbf16>, vector<56x16xf32> -> vector<56x16xf32>
    %118 = arith.addf %104, %117 : vector<56x16xf32>
    %c0_54 = arith.constant 0 : index
    %c0_55 = arith.constant 0 : index
    %c512 = arith.constant 512 : index
    %119 = vector.load %arg12[%c0_54, %c0_55, %c512] : memref<3x16x2048xbf16, #tpu.memory_space<vmem>>, vector<1x16x512xbf16>
    %120 = vector.shape_cast %119 : vector<1x16x512xbf16> to vector<16x512xbf16>
    %cst_56 = arith.constant dense<0.000000e+00> : vector<56x512xf32>
    %121 = tpu.matmul %103, %120, %cst_56 {dimension_numbers = #tpu.dot_dimension_numbers<[1], [0], [0], [1], [0, 0, 1, 1], [], []>} : vector<56x16xbf16>, vector<16x512xbf16>, vector<56x512xf32> -> vector<56x512xf32>
    %c0_57 = arith.constant 0 : index
    %c0_58 = arith.constant 0 : index
    %c512_59 = arith.constant 512 : index
    %122 = vector.load %arg13[%c0_57, %c0_58, %c512_59] : memref<3x1x2048xf32, #tpu.memory_space<vmem>>, vector<1x1x512xf32>
    %123 = vector.shape_cast %122 : vector<1x1x512xf32> to vector<1x512xf32>
    %124 = vector.broadcast %123 : vector<1x512xf32> to vector<56x512xf32>
    %125 = arith.addf %121, %124 : vector<56x512xf32>
    %cst_60 = arith.constant 0.000000e+00 : f32
    %126 = vector.broadcast %cst_60 : f32 to vector<56x512xf32>
    %127 = arith.maximumf %125, %126 : vector<56x512xf32>
    %128 = arith.truncf %127 : vector<56x512xf32> to vector<56x512xbf16>
    %c0_61 = arith.constant 0 : index
    %c512_62 = arith.constant 512 : index
    %c0_63 = arith.constant 0 : index
    %129 = vector.load %arg14[%c0_61, %c512_62, %c0_63] : memref<3x2048x16xbf16, #tpu.memory_space<vmem>>, vector<1x512x16xbf16>
    %130 = vector.shape_cast %129 : vector<1x512x16xbf16> to vector<512x16xbf16>
    %cst_64 = arith.constant dense<0.000000e+00> : vector<56x16xf32>
    %131 = tpu.matmul %128, %130, %cst_64 {dimension_numbers = #tpu.dot_dimension_numbers<[1], [0], [0], [1], [0, 0, 1, 1], [], []>} : vector<56x512xbf16>, vector<512x16xbf16>, vector<56x16xf32> -> vector<56x16xf32>
    %132 = arith.addf %118, %131 : vector<56x16xf32>
    %c0_65 = arith.constant 0 : index
    %c0_66 = arith.constant 0 : index
    %c1024 = arith.constant 1024 : index
    %133 = vector.load %arg12[%c0_65, %c0_66, %c1024] : memref<3x16x2048xbf16, #tpu.memory_space<vmem>>, vector<1x16x512xbf16>
    %134 = vector.shape_cast %133 : vector<1x16x512xbf16> to vector<16x512xbf16>
    %cst_67 = arith.constant dense<0.000000e+00> : vector<56x512xf32>
    %135 = tpu.matmul %103, %134, %cst_67 {dimension_numbers = #tpu.dot_dimension_numbers<[1], [0], [0], [1], [0, 0, 1, 1], [], []>} : vector<56x16xbf16>, vector<16x512xbf16>, vector<56x512xf32> -> vector<56x512xf32>
    %c0_68 = arith.constant 0 : index
    %c0_69 = arith.constant 0 : index
    %c1024_70 = arith.constant 1024 : index
    %136 = vector.load %arg13[%c0_68, %c0_69, %c1024_70] : memref<3x1x2048xf32, #tpu.memory_space<vmem>>, vector<1x1x512xf32>
    %137 = vector.shape_cast %136 : vector<1x1x512xf32> to vector<1x512xf32>
    %138 = vector.broadcast %137 : vector<1x512xf32> to vector<56x512xf32>
    %139 = arith.addf %135, %138 : vector<56x512xf32>
    %cst_71 = arith.constant 0.000000e+00 : f32
    %140 = vector.broadcast %cst_71 : f32 to vector<56x512xf32>
    %141 = arith.maximumf %139, %140 : vector<56x512xf32>
    %142 = arith.truncf %141 : vector<56x512xf32> to vector<56x512xbf16>
    %c0_72 = arith.constant 0 : index
    %c1024_73 = arith.constant 1024 : index
    %c0_74 = arith.constant 0 : index
    %143 = vector.load %arg14[%c0_72, %c1024_73, %c0_74] : memref<3x2048x16xbf16, #tpu.memory_space<vmem>>, vector<1x512x16xbf16>
    %144 = vector.shape_cast %143 : vector<1x512x16xbf16> to vector<512x16xbf16>
    %cst_75 = arith.constant dense<0.000000e+00> : vector<56x16xf32>
    %145 = tpu.matmul %142, %144, %cst_75 {dimension_numbers = #tpu.dot_dimension_numbers<[1], [0], [0], [1], [0, 0, 1, 1], [], []>} : vector<56x512xbf16>, vector<512x16xbf16>, vector<56x16xf32> -> vector<56x16xf32>
    %146 = arith.addf %132, %145 : vector<56x16xf32>
    %c0_76 = arith.constant 0 : index
    %c0_77 = arith.constant 0 : index
    %c1536 = arith.constant 1536 : index
    %147 = vector.load %arg12[%c0_76, %c0_77, %c1536] : memref<3x16x2048xbf16, #tpu.memory_space<vmem>>, vector<1x16x512xbf16>
    %148 = vector.shape_cast %147 : vector<1x16x512xbf16> to vector<16x512xbf16>
    %cst_78 = arith.constant dense<0.000000e+00> : vector<56x512xf32>
    %149 = tpu.matmul %103, %148, %cst_78 {dimension_numbers = #tpu.dot_dimension_numbers<[1], [0], [0], [1], [0, 0, 1, 1], [], []>} : vector<56x16xbf16>, vector<16x512xbf16>, vector<56x512xf32> -> vector<56x512xf32>
    %c0_79 = arith.constant 0 : index
    %c0_80 = arith.constant 0 : index
    %c1536_81 = arith.constant 1536 : index
    %150 = vector.load %arg13[%c0_79, %c0_80, %c1536_81] : memref<3x1x2048xf32, #tpu.memory_space<vmem>>, vector<1x1x512xf32>
    %151 = vector.shape_cast %150 : vector<1x1x512xf32> to vector<1x512xf32>
    %152 = vector.broadcast %151 : vector<1x512xf32> to vector<56x512xf32>
    %153 = arith.addf %149, %152 : vector<56x512xf32>
    %cst_82 = arith.constant 0.000000e+00 : f32
    %154 = vector.broadcast %cst_82 : f32 to vector<56x512xf32>
    %155 = arith.maximumf %153, %154 : vector<56x512xf32>
    %156 = arith.truncf %155 : vector<56x512xf32> to vector<56x512xbf16>
    %c0_83 = arith.constant 0 : index
    %c1536_84 = arith.constant 1536 : index
    %c0_85 = arith.constant 0 : index
    %157 = vector.load %arg14[%c0_83, %c1536_84, %c0_85] : memref<3x2048x16xbf16, #tpu.memory_space<vmem>>, vector<1x512x16xbf16>
    %158 = vector.shape_cast %157 : vector<1x512x16xbf16> to vector<512x16xbf16>
    %cst_86 = arith.constant dense<0.000000e+00> : vector<56x16xf32>
    %159 = tpu.matmul %156, %158, %cst_86 {dimension_numbers = #tpu.dot_dimension_numbers<[1], [0], [0], [1], [0, 0, 1, 1], [], []>} : vector<56x512xbf16>, vector<512x16xbf16>, vector<56x16xf32> -> vector<56x16xf32>
    %160 = arith.addf %146, %159 : vector<56x16xf32>
    %c0_87 = arith.constant 0 : index
    %c0_88 = arith.constant 0 : index
    %c0_89 = arith.constant 0 : index
    %161 = vector.load %arg15[%c0_87, %c0_88, %c0_89] : memref<3x1x16xf32, #tpu.memory_space<vmem>>, vector<1x1x16xf32>
    %162 = vector.shape_cast %161 : vector<1x1x16xf32> to vector<1x16xf32>
    %163 = vector.broadcast %162 : vector<1x16xf32> to vector<56x16xf32>
    %164 = arith.addf %160, %163 : vector<56x16xf32>
    %165 = arith.addf %102, %164 : vector<56x16xf32>
    %c0_90 = arith.constant 0 : index
    %c0_91 = arith.constant 0 : index
    %c0_92 = arith.constant 0 : index
    %166 = vector.load %arg10[%c0_90, %c0_91, %c0_92] : memref<3x1x16xf32, #tpu.memory_space<vmem>>, vector<1x1x16xf32>
    %167 = vector.shape_cast %166 : vector<1x1x16xf32> to vector<1x16xf32>
    %c0_93 = arith.constant 0 : index
    %c0_94 = arith.constant 0 : index
    %c0_95 = arith.constant 0 : index
    %168 = vector.load %arg11[%c0_93, %c0_94, %c0_95] : memref<3x1x16xf32, #tpu.memory_space<vmem>>, vector<1x1x16xf32>
    %169 = vector.shape_cast %168 : vector<1x1x16xf32> to vector<1x16xf32>
    %cst_96 = arith.constant dense<0.000000e+00> : vector<56xf32>
    %170 = vector.multi_reduction <add>, %165, %cst_96 [1] : vector<56x16xf32> to vector<56xf32>
    %171 = vector.shape_cast %170 : vector<56xf32> to vector<56x1xf32>
    %cst_97 = arith.constant 1.600000e+01 : f32
    %172 = vector.broadcast %cst_97 : f32 to vector<56x1xf32>
    %173 = arith.divf %171, %172 : vector<56x1xf32>
    %174 = vector.broadcast %173 : vector<56x1xf32> to vector<56x16xf32>
    %175 = arith.subf %165, %174 : vector<56x16xf32>
    %176 = arith.mulf %175, %175 : vector<56x16xf32>
    %cst_98 = arith.constant dense<0.000000e+00> : vector<56xf32>
    %177 = vector.multi_reduction <add>, %176, %cst_98 [1] : vector<56x16xf32> to vector<56xf32>
    %178 = vector.shape_cast %177 : vector<56xf32> to vector<56x1xf32>
    %cst_99 = arith.constant 1.600000e+01 : f32
    %179 = vector.broadcast %cst_99 : f32 to vector<56x1xf32>
    %180 = arith.divf %178, %179 : vector<56x1xf32>
    %cst_100 = arith.constant 9.99999974E-6 : f32
    %181 = vector.broadcast %cst_100 : f32 to vector<56x1xf32>
    %182 = arith.addf %180, %181 : vector<56x1xf32>
    %183 = math.rsqrt %182 : vector<56x1xf32>
    %184 = vector.broadcast %183 : vector<56x1xf32> to vector<56x16xf32>
    %185 = arith.mulf %175, %184 : vector<56x16xf32>
    %186 = vector.broadcast %167 : vector<1x16xf32> to vector<56x16xf32>
    %187 = arith.mulf %185, %186 : vector<56x16xf32>
    %188 = vector.broadcast %169 : vector<1x16xf32> to vector<56x16xf32>
    %189 = arith.addf %187, %188 : vector<56x16xf32>
    %190 = arith.truncf %189 : vector<56x16xf32> to vector<56x16xbf16>
    %c1 = arith.constant 1 : index
    %c0_101 = arith.constant 0 : index
    %c0_102 = arith.constant 0 : index
    %191 = vector.load %arg4[%c1, %c0_101, %c0_102] : memref<3x16x48xbf16, #tpu.memory_space<vmem>>, vector<1x16x48xbf16>
    %192 = vector.shape_cast %191 : vector<1x16x48xbf16> to vector<16x48xbf16>
    %cst_103 = arith.constant dense<0.000000e+00> : vector<56x48xf32>
    %193 = tpu.matmul %190, %192, %cst_103 {dimension_numbers = #tpu.dot_dimension_numbers<[1], [0], [0], [1], [0, 0, 1, 1], [], []>} : vector<56x16xbf16>, vector<16x48xbf16>, vector<56x48xf32> -> vector<56x48xf32>
    %c1_104 = arith.constant 1 : index
    %c0_105 = arith.constant 0 : index
    %c0_106 = arith.constant 0 : index
    %194 = vector.load %arg5[%c1_104, %c0_105, %c0_106] : memref<3x1x48xf32, #tpu.memory_space<vmem>>, vector<1x1x48xf32>
    %195 = vector.shape_cast %194 : vector<1x1x48xf32> to vector<1x48xf32>
    %196 = vector.broadcast %195 : vector<1x48xf32> to vector<56x48xf32>
    %197 = arith.addf %193, %196 : vector<56x48xf32>
    %198 = vector.shape_cast %197 : vector<56x48xf32> to vector<1x56x48xf32>
    %199 = vector.extract_strided_slice %198 {offsets = [0, 0, 0], sizes = [1, 56, 16], strides = [1, 1, 1]} : vector<1x56x48xf32> to vector<1x56x16xf32>
    %200 = vector.extract_strided_slice %199 {offsets = [0, 0, 0], sizes = [1, 56, 8], strides = [1, 1, 1]} : vector<1x56x16xf32> to vector<1x56x8xf32>
    %201 = arith.truncf %200 : vector<1x56x8xf32> to vector<1x56x8xbf16>
    %202 = vector.extract_strided_slice %198 {offsets = [0, 0, 16], sizes = [1, 56, 8], strides = [1, 1, 1]} : vector<1x56x48xf32> to vector<1x56x8xf32>
    %203 = arith.truncf %202 : vector<1x56x8xf32> to vector<1x56x8xbf16>
    %204 = vector.extract_strided_slice %198 {offsets = [0, 0, 32], sizes = [1, 56, 8], strides = [1, 1, 1]} : vector<1x56x48xf32> to vector<1x56x8xf32>
    %205 = arith.truncf %204 : vector<1x56x8xf32> to vector<1x56x8xbf16>
    "tpu.trace_start"() <{level = 10 : i32, message = "bqd,bkd->bqk"}> : () -> ()
    %cst_107 = arith.constant dense<0.000000e+00> : vector<1x56x56xf32>
    %206 = tpu.matmul %201, %203, %cst_107 {dimension_numbers = #tpu.dot_dimension_numbers<[2], [2], [1], [1], [0, 0, 0, 1, 1, 1], [0], [0]>} : vector<1x56x8xbf16>, vector<1x56x8xbf16>, vector<1x56x56xf32> -> vector<1x56x56xf32>
    "tpu.trace_stop"() : () -> ()
    %207 = vector.broadcast %15 : vector<1x1x56xf32> to vector<1x56x56xf32>
    %208 = arith.addf %206, %207 : vector<1x56x56xf32>
    %cst_108 = arith.constant dense<0xFF800000> : vector<1x56xf32>
    %209 = vector.multi_reduction <maximumf>, %208, %cst_108 [2] : vector<1x56x56xf32> to vector<1x56xf32>
    %210 = vector.shape_cast %209 : vector<1x56xf32> to vector<1x56x1xf32>
    %211 = vector.broadcast %210 : vector<1x56x1xf32> to vector<1x56x56xf32>
    %212 = arith.subf %208, %211 : vector<1x56x56xf32>
    %213 = math.exp %212 : vector<1x56x56xf32>
    %cst_109 = arith.constant dense<0.000000e+00> : vector<1x56xf32>
    %214 = vector.multi_reduction <add>, %213, %cst_109 [2] : vector<1x56x56xf32> to vector<1x56xf32>
    %215 = vector.shape_cast %214 : vector<1x56xf32> to vector<1x56x1xf32>
    %216 = tpu.reciprocal %215 {approx = true} : vector<1x56x1xf32> -> vector<1x56x1xf32>
    %217 = vector.broadcast %216 : vector<1x56x1xf32> to vector<1x56x56xf32>
    %218 = arith.mulf %213, %217 : vector<1x56x56xf32>
    %219 = arith.truncf %218 : vector<1x56x56xf32> to vector<1x56x56xbf16>
    "tpu.trace_start"() <{level = 10 : i32, message = "bqk,bkd->bqd"}> : () -> ()
    %cst_110 = arith.constant dense<0.000000e+00> : vector<1x56x8xf32>
    %220 = tpu.matmul %219, %205, %cst_110 {dimension_numbers = #tpu.dot_dimension_numbers<[2], [1], [1], [2], [0, 0, 0, 1, 1, 2], [0], [0]>} : vector<1x56x56xbf16>, vector<1x56x8xbf16>, vector<1x56x8xf32> -> vector<1x56x8xf32>
    "tpu.trace_stop"() : () -> ()
    %221 = vector.extract_strided_slice %199 {offsets = [0, 0, 8], sizes = [1, 56, 8], strides = [1, 1, 1]} : vector<1x56x16xf32> to vector<1x56x8xf32>
    %222 = arith.truncf %221 : vector<1x56x8xf32> to vector<1x56x8xbf16>
    %223 = vector.extract_strided_slice %198 {offsets = [0, 0, 24], sizes = [1, 56, 8], strides = [1, 1, 1]} : vector<1x56x48xf32> to vector<1x56x8xf32>
    %224 = arith.truncf %223 : vector<1x56x8xf32> to vector<1x56x8xbf16>
    %225 = vector.extract_strided_slice %198 {offsets = [0, 0, 40], sizes = [1, 56, 8], strides = [1, 1, 1]} : vector<1x56x48xf32> to vector<1x56x8xf32>
    %226 = arith.truncf %225 : vector<1x56x8xf32> to vector<1x56x8xbf16>
    "tpu.trace_start"() <{level = 10 : i32, message = "bqd,bkd->bqk"}> : () -> ()
    %cst_111 = arith.constant dense<0.000000e+00> : vector<1x56x56xf32>
    %227 = tpu.matmul %222, %224, %cst_111 {dimension_numbers = #tpu.dot_dimension_numbers<[2], [2], [1], [1], [0, 0, 0, 1, 1, 1], [0], [0]>} : vector<1x56x8xbf16>, vector<1x56x8xbf16>, vector<1x56x56xf32> -> vector<1x56x56xf32>
    "tpu.trace_stop"() : () -> ()
    %228 = vector.broadcast %15 : vector<1x1x56xf32> to vector<1x56x56xf32>
    %229 = arith.addf %227, %228 : vector<1x56x56xf32>
    %cst_112 = arith.constant dense<0xFF800000> : vector<1x56xf32>
    %230 = vector.multi_reduction <maximumf>, %229, %cst_112 [2] : vector<1x56x56xf32> to vector<1x56xf32>
    %231 = vector.shape_cast %230 : vector<1x56xf32> to vector<1x56x1xf32>
    %232 = vector.broadcast %231 : vector<1x56x1xf32> to vector<1x56x56xf32>
    %233 = arith.subf %229, %232 : vector<1x56x56xf32>
    %234 = math.exp %233 : vector<1x56x56xf32>
    %cst_113 = arith.constant dense<0.000000e+00> : vector<1x56xf32>
    %235 = vector.multi_reduction <add>, %234, %cst_113 [2] : vector<1x56x56xf32> to vector<1x56xf32>
    %236 = vector.shape_cast %235 : vector<1x56xf32> to vector<1x56x1xf32>
    %237 = tpu.reciprocal %236 {approx = true} : vector<1x56x1xf32> -> vector<1x56x1xf32>
    %238 = vector.broadcast %237 : vector<1x56x1xf32> to vector<1x56x56xf32>
    %239 = arith.mulf %234, %238 : vector<1x56x56xf32>
    %240 = arith.truncf %239 : vector<1x56x56xf32> to vector<1x56x56xbf16>
    "tpu.trace_start"() <{level = 10 : i32, message = "bqk,bkd->bqd"}> : () -> ()
    %cst_114 = arith.constant dense<0.000000e+00> : vector<1x56x8xf32>
    %241 = tpu.matmul %240, %226, %cst_114 {dimension_numbers = #tpu.dot_dimension_numbers<[2], [1], [1], [2], [0, 0, 0, 1, 1, 2], [0], [0]>} : vector<1x56x56xbf16>, vector<1x56x8xbf16>, vector<1x56x8xf32> -> vector<1x56x8xf32>
    "tpu.trace_stop"() : () -> ()
    %242 = tpu.concatenate %220, %241 in 2 : vector<1x56x8xf32>, vector<1x56x8xf32> -> vector<1x56x16xf32>
    %243 = vector.shape_cast %242 : vector<1x56x16xf32> to vector<56x16xf32>
    %244 = arith.truncf %243 : vector<56x16xf32> to vector<56x16xbf16>
    %c1_115 = arith.constant 1 : index
    %c0_116 = arith.constant 0 : index
    %c0_117 = arith.constant 0 : index
    %245 = vector.load %arg6[%c1_115, %c0_116, %c0_117] : memref<3x16x16xbf16, #tpu.memory_space<vmem>>, vector<1x16x16xbf16>
    %246 = vector.shape_cast %245 : vector<1x16x16xbf16> to vector<16x16xbf16>
    %cst_118 = arith.constant dense<0.000000e+00> : vector<56x16xf32>
    %247 = tpu.matmul %244, %246, %cst_118 {dimension_numbers = #tpu.dot_dimension_numbers<[1], [0], [0], [1], [0, 0, 1, 1], [], []>} : vector<56x16xbf16>, vector<16x16xbf16>, vector<56x16xf32> -> vector<56x16xf32>
    %c1_119 = arith.constant 1 : index
    %c0_120 = arith.constant 0 : index
    %c0_121 = arith.constant 0 : index
    %248 = vector.load %arg7[%c1_119, %c0_120, %c0_121] : memref<3x1x16xf32, #tpu.memory_space<vmem>>, vector<1x1x16xf32>
    %249 = vector.shape_cast %248 : vector<1x1x16xf32> to vector<1x16xf32>
    %250 = vector.broadcast %249 : vector<1x16xf32> to vector<56x16xf32>
    %251 = arith.addf %247, %250 : vector<56x16xf32>
    %252 = arith.addf %189, %251 : vector<56x16xf32>
    %c1_122 = arith.constant 1 : index
    %c0_123 = arith.constant 0 : index
    %c0_124 = arith.constant 0 : index
    %253 = vector.load %arg8[%c1_122, %c0_123, %c0_124] : memref<3x1x16xf32, #tpu.memory_space<vmem>>, vector<1x1x16xf32>
    %254 = vector.shape_cast %253 : vector<1x1x16xf32> to vector<1x16xf32>
    %c1_125 = arith.constant 1 : index
    %c0_126 = arith.constant 0 : index
    %c0_127 = arith.constant 0 : index
    %255 = vector.load %arg9[%c1_125, %c0_126, %c0_127] : memref<3x1x16xf32, #tpu.memory_space<vmem>>, vector<1x1x16xf32>
    %256 = vector.shape_cast %255 : vector<1x1x16xf32> to vector<1x16xf32>
    %cst_128 = arith.constant dense<0.000000e+00> : vector<56xf32>
    %257 = vector.multi_reduction <add>, %252, %cst_128 [1] : vector<56x16xf32> to vector<56xf32>
    %258 = vector.shape_cast %257 : vector<56xf32> to vector<56x1xf32>
    %cst_129 = arith.constant 1.600000e+01 : f32
    %259 = vector.broadcast %cst_129 : f32 to vector<56x1xf32>
    %260 = arith.divf %258, %259 : vector<56x1xf32>
    %261 = vector.broadcast %260 : vector<56x1xf32> to vector<56x16xf32>
    %262 = arith.subf %252, %261 : vector<56x16xf32>
    %263 = arith.mulf %262, %262 : vector<56x16xf32>
    %cst_130 = arith.constant dense<0.000000e+00> : vector<56xf32>
    %264 = vector.multi_reduction <add>, %263, %cst_130 [1] : vector<56x16xf32> to vector<56xf32>
    %265 = vector.shape_cast %264 : vector<56xf32> to vector<56x1xf32>
    %cst_131 = arith.constant 1.600000e+01 : f32
    %266 = vector.broadcast %cst_131 : f32 to vector<56x1xf32>
    %267 = arith.divf %265, %266 : vector<56x1xf32>
    %cst_132 = arith.constant 9.99999974E-6 : f32
    %268 = vector.broadcast %cst_132 : f32 to vector<56x1xf32>
    %269 = arith.addf %267, %268 : vector<56x1xf32>
    %270 = math.rsqrt %269 : vector<56x1xf32>
    %271 = vector.broadcast %270 : vector<56x1xf32> to vector<56x16xf32>
    %272 = arith.mulf %262, %271 : vector<56x16xf32>
    %273 = vector.broadcast %254 : vector<1x16xf32> to vector<56x16xf32>
    %274 = arith.mulf %272, %273 : vector<56x16xf32>
    %275 = vector.broadcast %256 : vector<1x16xf32> to vector<56x16xf32>
    %276 = arith.addf %274, %275 : vector<56x16xf32>
    %277 = arith.truncf %276 : vector<56x16xf32> to vector<56x16xbf16>
    %cst_133 = arith.constant 0.000000e+00 : f32
    %278 = vector.broadcast %cst_133 : f32 to vector<56x16xf32>
    %c1_134 = arith.constant 1 : index
    %c0_135 = arith.constant 0 : index
    %c0_136 = arith.constant 0 : index
    %279 = vector.load %arg12[%c1_134, %c0_135, %c0_136] : memref<3x16x2048xbf16, #tpu.memory_space<vmem>>, vector<1x16x512xbf16>
    %280 = vector.shape_cast %279 : vector<1x16x512xbf16> to vector<16x512xbf16>
    %cst_137 = arith.constant dense<0.000000e+00> : vector<56x512xf32>
    %281 = tpu.matmul %277, %280, %cst_137 {dimension_numbers = #tpu.dot_dimension_numbers<[1], [0], [0], [1], [0, 0, 1, 1], [], []>} : vector<56x16xbf16>, vector<16x512xbf16>, vector<56x512xf32> -> vector<56x512xf32>
    %c1_138 = arith.constant 1 : index
    %c0_139 = arith.constant 0 : index
    %c0_140 = arith.constant 0 : index
    %282 = vector.load %arg13[%c1_138, %c0_139, %c0_140] : memref<3x1x2048xf32, #tpu.memory_space<vmem>>, vector<1x1x512xf32>
    %283 = vector.shape_cast %282 : vector<1x1x512xf32> to vector<1x512xf32>
    %284 = vector.broadcast %283 : vector<1x512xf32> to vector<56x512xf32>
    %285 = arith.addf %281, %284 : vector<56x512xf32>
    %cst_141 = arith.constant 0.000000e+00 : f32
    %286 = vector.broadcast %cst_141 : f32 to vector<56x512xf32>
    %287 = arith.maximumf %285, %286 : vector<56x512xf32>
    %288 = arith.truncf %287 : vector<56x512xf32> to vector<56x512xbf16>
    %c1_142 = arith.constant 1 : index
    %c0_143 = arith.constant 0 : index
    %c0_144 = arith.constant 0 : index
    %289 = vector.load %arg14[%c1_142, %c0_143, %c0_144] : memref<3x2048x16xbf16, #tpu.memory_space<vmem>>, vector<1x512x16xbf16>
    %290 = vector.shape_cast %289 : vector<1x512x16xbf16> to vector<512x16xbf16>
    %cst_145 = arith.constant dense<0.000000e+00> : vector<56x16xf32>
    %291 = tpu.matmul %288, %290, %cst_145 {dimension_numbers = #tpu.dot_dimension_numbers<[1], [0], [0], [1], [0, 0, 1, 1], [], []>} : vector<56x512xbf16>, vector<512x16xbf16>, vector<56x16xf32> -> vector<56x16xf32>
    %292 = arith.addf %278, %291 : vector<56x16xf32>
    %c1_146 = arith.constant 1 : index
    %c0_147 = arith.constant 0 : index
    %c512_148 = arith.constant 512 : index
    %293 = vector.load %arg12[%c1_146, %c0_147, %c512_148] : memref<3x16x2048xbf16, #tpu.memory_space<vmem>>, vector<1x16x512xbf16>
    %294 = vector.shape_cast %293 : vector<1x16x512xbf16> to vector<16x512xbf16>
    %cst_149 = arith.constant dense<0.000000e+00> : vector<56x512xf32>
    %295 = tpu.matmul %277, %294, %cst_149 {dimension_numbers = #tpu.dot_dimension_numbers<[1], [0], [0], [1], [0, 0, 1, 1], [], []>} : vector<56x16xbf16>, vector<16x512xbf16>, vector<56x512xf32> -> vector<56x512xf32>
    %c1_150 = arith.constant 1 : index
    %c0_151 = arith.constant 0 : index
    %c512_152 = arith.constant 512 : index
    %296 = vector.load %arg13[%c1_150, %c0_151, %c512_152] : memref<3x1x2048xf32, #tpu.memory_space<vmem>>, vector<1x1x512xf32>
    %297 = vector.shape_cast %296 : vector<1x1x512xf32> to vector<1x512xf32>
    %298 = vector.broadcast %297 : vector<1x512xf32> to vector<56x512xf32>
    %299 = arith.addf %295, %298 : vector<56x512xf32>
    %cst_153 = arith.constant 0.000000e+00 : f32
    %300 = vector.broadcast %cst_153 : f32 to vector<56x512xf32>
    %301 = arith.maximumf %299, %300 : vector<56x512xf32>
    %302 = arith.truncf %301 : vector<56x512xf32> to vector<56x512xbf16>
    %c1_154 = arith.constant 1 : index
    %c512_155 = arith.constant 512 : index
    %c0_156 = arith.constant 0 : index
    %303 = vector.load %arg14[%c1_154, %c512_155, %c0_156] : memref<3x2048x16xbf16, #tpu.memory_space<vmem>>, vector<1x512x16xbf16>
    %304 = vector.shape_cast %303 : vector<1x512x16xbf16> to vector<512x16xbf16>
    %cst_157 = arith.constant dense<0.000000e+00> : vector<56x16xf32>
    %305 = tpu.matmul %302, %304, %cst_157 {dimension_numbers = #tpu.dot_dimension_numbers<[1], [0], [0], [1], [0, 0, 1, 1], [], []>} : vector<56x512xbf16>, vector<512x16xbf16>, vector<56x16xf32> -> vector<56x16xf32>
    %306 = arith.addf %292, %305 : vector<56x16xf32>
    %c1_158 = arith.constant 1 : index
    %c0_159 = arith.constant 0 : index
    %c1024_160 = arith.constant 1024 : index
    %307 = vector.load %arg12[%c1_158, %c0_159, %c1024_160] : memref<3x16x2048xbf16, #tpu.memory_space<vmem>>, vector<1x16x512xbf16>
    %308 = vector.shape_cast %307 : vector<1x16x512xbf16> to vector<16x512xbf16>
    %cst_161 = arith.constant dense<0.000000e+00> : vector<56x512xf32>
    %309 = tpu.matmul %277, %308, %cst_161 {dimension_numbers = #tpu.dot_dimension_numbers<[1], [0], [0], [1], [0, 0, 1, 1], [], []>} : vector<56x16xbf16>, vector<16x512xbf16>, vector<56x512xf32> -> vector<56x512xf32>
    %c1_162 = arith.constant 1 : index
    %c0_163 = arith.constant 0 : index
    %c1024_164 = arith.constant 1024 : index
    %310 = vector.load %arg13[%c1_162, %c0_163, %c1024_164] : memref<3x1x2048xf32, #tpu.memory_space<vmem>>, vector<1x1x512xf32>
    %311 = vector.shape_cast %310 : vector<1x1x512xf32> to vector<1x512xf32>
    %312 = vector.broadcast %311 : vector<1x512xf32> to vector<56x512xf32>
    %313 = arith.addf %309, %312 : vector<56x512xf32>
    %cst_165 = arith.constant 0.000000e+00 : f32
    %314 = vector.broadcast %cst_165 : f32 to vector<56x512xf32>
    %315 = arith.maximumf %313, %314 : vector<56x512xf32>
    %316 = arith.truncf %315 : vector<56x512xf32> to vector<56x512xbf16>
    %c1_166 = arith.constant 1 : index
    %c1024_167 = arith.constant 1024 : index
    %c0_168 = arith.constant 0 : index
    %317 = vector.load %arg14[%c1_166, %c1024_167, %c0_168] : memref<3x2048x16xbf16, #tpu.memory_space<vmem>>, vector<1x512x16xbf16>
    %318 = vector.shape_cast %317 : vector<1x512x16xbf16> to vector<512x16xbf16>
    %cst_169 = arith.constant dense<0.000000e+00> : vector<56x16xf32>
    %319 = tpu.matmul %316, %318, %cst_169 {dimension_numbers = #tpu.dot_dimension_numbers<[1], [0], [0], [1], [0, 0, 1, 1], [], []>} : vector<56x512xbf16>, vector<512x16xbf16>, vector<56x16xf32> -> vector<56x16xf32>
    %320 = arith.addf %306, %319 : vector<56x16xf32>
    %c1_170 = arith.constant 1 : index
    %c0_171 = arith.constant 0 : index
    %c1536_172 = arith.constant 1536 : index
    %321 = vector.load %arg12[%c1_170, %c0_171, %c1536_172] : memref<3x16x2048xbf16, #tpu.memory_space<vmem>>, vector<1x16x512xbf16>
    %322 = vector.shape_cast %321 : vector<1x16x512xbf16> to vector<16x512xbf16>
    %cst_173 = arith.constant dense<0.000000e+00> : vector<56x512xf32>
    %323 = tpu.matmul %277, %322, %cst_173 {dimension_numbers = #tpu.dot_dimension_numbers<[1], [0], [0], [1], [0, 0, 1, 1], [], []>} : vector<56x16xbf16>, vector<16x512xbf16>, vector<56x512xf32> -> vector<56x512xf32>
    %c1_174 = arith.constant 1 : index
    %c0_175 = arith.constant 0 : index
    %c1536_176 = arith.constant 1536 : index
    %324 = vector.load %arg13[%c1_174, %c0_175, %c1536_176] : memref<3x1x2048xf32, #tpu.memory_space<vmem>>, vector<1x1x512xf32>
    %325 = vector.shape_cast %324 : vector<1x1x512xf32> to vector<1x512xf32>
    %326 = vector.broadcast %325 : vector<1x512xf32> to vector<56x512xf32>
    %327 = arith.addf %323, %326 : vector<56x512xf32>
    %cst_177 = arith.constant 0.000000e+00 : f32
    %328 = vector.broadcast %cst_177 : f32 to vector<56x512xf32>
    %329 = arith.maximumf %327, %328 : vector<56x512xf32>
    %330 = arith.truncf %329 : vector<56x512xf32> to vector<56x512xbf16>
    %c1_178 = arith.constant 1 : index
    %c1536_179 = arith.constant 1536 : index
    %c0_180 = arith.constant 0 : index
    %331 = vector.load %arg14[%c1_178, %c1536_179, %c0_180] : memref<3x2048x16xbf16, #tpu.memory_space<vmem>>, vector<1x512x16xbf16>
    %332 = vector.shape_cast %331 : vector<1x512x16xbf16> to vector<512x16xbf16>
    %cst_181 = arith.constant dense<0.000000e+00> : vector<56x16xf32>
    %333 = tpu.matmul %330, %332, %cst_181 {dimension_numbers = #tpu.dot_dimension_numbers<[1], [0], [0], [1], [0, 0, 1, 1], [], []>} : vector<56x512xbf16>, vector<512x16xbf16>, vector<56x16xf32> -> vector<56x16xf32>
    %334 = arith.addf %320, %333 : vector<56x16xf32>
    %c1_182 = arith.constant 1 : index
    %c0_183 = arith.constant 0 : index
    %c0_184 = arith.constant 0 : index
    %335 = vector.load %arg15[%c1_182, %c0_183, %c0_184] : memref<3x1x16xf32, #tpu.memory_space<vmem>>, vector<1x1x16xf32>
    %336 = vector.shape_cast %335 : vector<1x1x16xf32> to vector<1x16xf32>
    %337 = vector.broadcast %336 : vector<1x16xf32> to vector<56x16xf32>
    %338 = arith.addf %334, %337 : vector<56x16xf32>
    %339 = arith.addf %276, %338 : vector<56x16xf32>
    %c1_185 = arith.constant 1 : index
    %c0_186 = arith.constant 0 : index
    %c0_187 = arith.constant 0 : index
    %340 = vector.load %arg10[%c1_185, %c0_186, %c0_187] : memref<3x1x16xf32, #tpu.memory_space<vmem>>, vector<1x1x16xf32>
    %341 = vector.shape_cast %340 : vector<1x1x16xf32> to vector<1x16xf32>
    %c1_188 = arith.constant 1 : index
    %c0_189 = arith.constant 0 : index
    %c0_190 = arith.constant 0 : index
    %342 = vector.load %arg11[%c1_188, %c0_189, %c0_190] : memref<3x1x16xf32, #tpu.memory_space<vmem>>, vector<1x1x16xf32>
    %343 = vector.shape_cast %342 : vector<1x1x16xf32> to vector<1x16xf32>
    %cst_191 = arith.constant dense<0.000000e+00> : vector<56xf32>
    %344 = vector.multi_reduction <add>, %339, %cst_191 [1] : vector<56x16xf32> to vector<56xf32>
    %345 = vector.shape_cast %344 : vector<56xf32> to vector<56x1xf32>
    %cst_192 = arith.constant 1.600000e+01 : f32
    %346 = vector.broadcast %cst_192 : f32 to vector<56x1xf32>
    %347 = arith.divf %345, %346 : vector<56x1xf32>
    %348 = vector.broadcast %347 : vector<56x1xf32> to vector<56x16xf32>
    %349 = arith.subf %339, %348 : vector<56x16xf32>
    %350 = arith.mulf %349, %349 : vector<56x16xf32>
    %cst_193 = arith.constant dense<0.000000e+00> : vector<56xf32>
    %351 = vector.multi_reduction <add>, %350, %cst_193 [1] : vector<56x16xf32> to vector<56xf32>
    %352 = vector.shape_cast %351 : vector<56xf32> to vector<56x1xf32>
    %cst_194 = arith.constant 1.600000e+01 : f32
    %353 = vector.broadcast %cst_194 : f32 to vector<56x1xf32>
    %354 = arith.divf %352, %353 : vector<56x1xf32>
    %cst_195 = arith.constant 9.99999974E-6 : f32
    %355 = vector.broadcast %cst_195 : f32 to vector<56x1xf32>
    %356 = arith.addf %354, %355 : vector<56x1xf32>
    %357 = math.rsqrt %356 : vector<56x1xf32>
    %358 = vector.broadcast %357 : vector<56x1xf32> to vector<56x16xf32>
    %359 = arith.mulf %349, %358 : vector<56x16xf32>
    %360 = vector.broadcast %341 : vector<1x16xf32> to vector<56x16xf32>
    %361 = arith.mulf %359, %360 : vector<56x16xf32>
    %362 = vector.broadcast %343 : vector<1x16xf32> to vector<56x16xf32>
    %363 = arith.addf %361, %362 : vector<56x16xf32>
    %364 = arith.truncf %363 : vector<56x16xf32> to vector<56x16xbf16>
    %c2 = arith.constant 2 : index
    %c0_196 = arith.constant 0 : index
    %c0_197 = arith.constant 0 : index
    %365 = vector.load %arg4[%c2, %c0_196, %c0_197] : memref<3x16x48xbf16, #tpu.memory_space<vmem>>, vector<1x16x48xbf16>
    %366 = vector.shape_cast %365 : vector<1x16x48xbf16> to vector<16x48xbf16>
    %cst_198 = arith.constant dense<0.000000e+00> : vector<56x48xf32>
    %367 = tpu.matmul %364, %366, %cst_198 {dimension_numbers = #tpu.dot_dimension_numbers<[1], [0], [0], [1], [0, 0, 1, 1], [], []>} : vector<56x16xbf16>, vector<16x48xbf16>, vector<56x48xf32> -> vector<56x48xf32>
    %c2_199 = arith.constant 2 : index
    %c0_200 = arith.constant 0 : index
    %c0_201 = arith.constant 0 : index
    %368 = vector.load %arg5[%c2_199, %c0_200, %c0_201] : memref<3x1x48xf32, #tpu.memory_space<vmem>>, vector<1x1x48xf32>
    %369 = vector.shape_cast %368 : vector<1x1x48xf32> to vector<1x48xf32>
    %370 = vector.broadcast %369 : vector<1x48xf32> to vector<56x48xf32>
    %371 = arith.addf %367, %370 : vector<56x48xf32>
    %372 = vector.shape_cast %371 : vector<56x48xf32> to vector<1x56x48xf32>
    %373 = vector.extract_strided_slice %372 {offsets = [0, 0, 0], sizes = [1, 1, 16], strides = [1, 1, 1]} : vector<1x56x48xf32> to vector<1x1x16xf32>
    %374 = vector.shape_cast %363 : vector<56x16xf32> to vector<1x56x16xf32>
    %375 = vector.extract_strided_slice %374 {offsets = [0, 0, 0], sizes = [1, 1, 16], strides = [1, 1, 1]} : vector<1x56x16xf32> to vector<1x1x16xf32>
    %376 = vector.shape_cast %375 : vector<1x1x16xf32> to vector<1x16xf32>
    %377 = vector.extract_strided_slice %373 {offsets = [0, 0, 0], sizes = [1, 1, 8], strides = [1, 1, 1]} : vector<1x1x16xf32> to vector<1x1x8xf32>
    %378 = arith.truncf %377 : vector<1x1x8xf32> to vector<1x1x8xbf16>
    %379 = vector.extract_strided_slice %372 {offsets = [0, 0, 16], sizes = [1, 56, 8], strides = [1, 1, 1]} : vector<1x56x48xf32> to vector<1x56x8xf32>
    %380 = arith.truncf %379 : vector<1x56x8xf32> to vector<1x56x8xbf16>
    %381 = vector.extract_strided_slice %372 {offsets = [0, 0, 32], sizes = [1, 56, 8], strides = [1, 1, 1]} : vector<1x56x48xf32> to vector<1x56x8xf32>
    %382 = arith.truncf %381 : vector<1x56x8xf32> to vector<1x56x8xbf16>
    "tpu.trace_start"() <{level = 10 : i32, message = "bqd,bkd->bqk"}> : () -> ()
    %cst_202 = arith.constant dense<0.000000e+00> : vector<1x1x56xf32>
    %383 = tpu.matmul %378, %380, %cst_202 {dimension_numbers = #tpu.dot_dimension_numbers<[2], [2], [1], [1], [0, 0, 0, 1, 1, 1], [0], [0]>} : vector<1x1x8xbf16>, vector<1x56x8xbf16>, vector<1x1x56xf32> -> vector<1x1x56xf32>
    "tpu.trace_stop"() : () -> ()
    %384 = arith.addf %383, %15 : vector<1x1x56xf32>
    %cst_203 = arith.constant dense<0xFF800000> : vector<1x1xf32>
    %385 = vector.multi_reduction <maximumf>, %384, %cst_203 [2] : vector<1x1x56xf32> to vector<1x1xf32>
    %386 = vector.shape_cast %385 : vector<1x1xf32> to vector<1x1x1xf32>
    %387 = vector.broadcast %386 : vector<1x1x1xf32> to vector<1x1x56xf32>
    %388 = arith.subf %384, %387 : vector<1x1x56xf32>
    %389 = math.exp %388 : vector<1x1x56xf32>
    %cst_204 = arith.constant dense<0.000000e+00> : vector<1x1xf32>
    %390 = vector.multi_reduction <add>, %389, %cst_204 [2] : vector<1x1x56xf32> to vector<1x1xf32>
    %391 = vector.shape_cast %390 : vector<1x1xf32> to vector<1x1x1xf32>
    %392 = tpu.reciprocal %391 {approx = true} : vector<1x1x1xf32> -> vector<1x1x1xf32>
    %393 = vector.broadcast %392 : vector<1x1x1xf32> to vector<1x1x56xf32>
    %394 = arith.mulf %389, %393 : vector<1x1x56xf32>
    %395 = arith.truncf %394 : vector<1x1x56xf32> to vector<1x1x56xbf16>
    "tpu.trace_start"() <{level = 10 : i32, message = "bqk,bkd->bqd"}> : () -> ()
    %cst_205 = arith.constant dense<0.000000e+00> : vector<1x1x8xf32>
    %396 = tpu.matmul %395, %382, %cst_205 {dimension_numbers = #tpu.dot_dimension_numbers<[2], [1], [1], [2], [0, 0, 0, 1, 1, 2], [0], [0]>} : vector<1x1x56xbf16>, vector<1x56x8xbf16>, vector<1x1x8xf32> -> vector<1x1x8xf32>
    "tpu.trace_stop"() : () -> ()
    %397 = vector.extract_strided_slice %373 {offsets = [0, 0, 8], sizes = [1, 1, 8], strides = [1, 1, 1]} : vector<1x1x16xf32> to vector<1x1x8xf32>
    %398 = arith.truncf %397 : vector<1x1x8xf32> to vector<1x1x8xbf16>
    %399 = vector.extract_strided_slice %372 {offsets = [0, 0, 24], sizes = [1, 56, 8], strides = [1, 1, 1]} : vector<1x56x48xf32> to vector<1x56x8xf32>
    %400 = arith.truncf %399 : vector<1x56x8xf32> to vector<1x56x8xbf16>
    %401 = vector.extract_strided_slice %372 {offsets = [0, 0, 40], sizes = [1, 56, 8], strides = [1, 1, 1]} : vector<1x56x48xf32> to vector<1x56x8xf32>
    %402 = arith.truncf %401 : vector<1x56x8xf32> to vector<1x56x8xbf16>
    "tpu.trace_start"() <{level = 10 : i32, message = "bqd,bkd->bqk"}> : () -> ()
    %cst_206 = arith.constant dense<0.000000e+00> : vector<1x1x56xf32>
    %403 = tpu.matmul %398, %400, %cst_206 {dimension_numbers = #tpu.dot_dimension_numbers<[2], [2], [1], [1], [0, 0, 0, 1, 1, 1], [0], [0]>} : vector<1x1x8xbf16>, vector<1x56x8xbf16>, vector<1x1x56xf32> -> vector<1x1x56xf32>
    "tpu.trace_stop"() : () -> ()
    %404 = arith.addf %403, %15 : vector<1x1x56xf32>
    %cst_207 = arith.constant dense<0xFF800000> : vector<1x1xf32>
    %405 = vector.multi_reduction <maximumf>, %404, %cst_207 [2] : vector<1x1x56xf32> to vector<1x1xf32>
    %406 = vector.shape_cast %405 : vector<1x1xf32> to vector<1x1x1xf32>
    %407 = vector.broadcast %406 : vector<1x1x1xf32> to vector<1x1x56xf32>
    %408 = arith.subf %404, %407 : vector<1x1x56xf32>
    %409 = math.exp %408 : vector<1x1x56xf32>
    %cst_208 = arith.constant dense<0.000000e+00> : vector<1x1xf32>
    %410 = vector.multi_reduction <add>, %409, %cst_208 [2] : vector<1x1x56xf32> to vector<1x1xf32>
    %411 = vector.shape_cast %410 : vector<1x1xf32> to vector<1x1x1xf32>
    %412 = tpu.reciprocal %411 {approx = true} : vector<1x1x1xf32> -> vector<1x1x1xf32>
    %413 = vector.broadcast %412 : vector<1x1x1xf32> to vector<1x1x56xf32>
    %414 = arith.mulf %409, %413 : vector<1x1x56xf32>
    %415 = arith.truncf %414 : vector<1x1x56xf32> to vector<1x1x56xbf16>
    "tpu.trace_start"() <{level = 10 : i32, message = "bqk,bkd->bqd"}> : () -> ()
    %cst_209 = arith.constant dense<0.000000e+00> : vector<1x1x8xf32>
    %416 = tpu.matmul %415, %402, %cst_209 {dimension_numbers = #tpu.dot_dimension_numbers<[2], [1], [1], [2], [0, 0, 0, 1, 1, 2], [0], [0]>} : vector<1x1x56xbf16>, vector<1x56x8xbf16>, vector<1x1x8xf32> -> vector<1x1x8xf32>
    "tpu.trace_stop"() : () -> ()
    %417 = tpu.concatenate %396, %416 in 2 : vector<1x1x8xf32>, vector<1x1x8xf32> -> vector<1x1x16xf32>
    %418 = vector.shape_cast %417 : vector<1x1x16xf32> to vector<1x16xf32>
    %419 = arith.truncf %418 : vector<1x16xf32> to vector<1x16xbf16>
    %c2_210 = arith.constant 2 : index
    %c0_211 = arith.constant 0 : index
    %c0_212 = arith.constant 0 : index
    %420 = vector.load %arg6[%c2_210, %c0_211, %c0_212] : memref<3x16x16xbf16, #tpu.memory_space<vmem>>, vector<1x16x16xbf16>
    %421 = vector.shape_cast %420 : vector<1x16x16xbf16> to vector<16x16xbf16>
    %cst_213 = arith.constant dense<0.000000e+00> : vector<1x16xf32>
    %422 = tpu.matmul %419, %421, %cst_213 {dimension_numbers = #tpu.dot_dimension_numbers<[1], [0], [0], [1], [0, 0, 1, 1], [], []>} : vector<1x16xbf16>, vector<16x16xbf16>, vector<1x16xf32> -> vector<1x16xf32>
    %c2_214 = arith.constant 2 : index
    %c0_215 = arith.constant 0 : index
    %c0_216 = arith.constant 0 : index
    %423 = vector.load %arg7[%c2_214, %c0_215, %c0_216] : memref<3x1x16xf32, #tpu.memory_space<vmem>>, vector<1x1x16xf32>
    %424 = vector.shape_cast %423 : vector<1x1x16xf32> to vector<1x16xf32>
    %425 = arith.addf %422, %424 : vector<1x16xf32>
    %426 = arith.addf %376, %425 : vector<1x16xf32>
    %c2_217 = arith.constant 2 : index
    %c0_218 = arith.constant 0 : index
    %c0_219 = arith.constant 0 : index
    %427 = vector.load %arg8[%c2_217, %c0_218, %c0_219] : memref<3x1x16xf32, #tpu.memory_space<vmem>>, vector<1x1x16xf32>
    %428 = vector.shape_cast %427 : vector<1x1x16xf32> to vector<1x16xf32>
    %c2_220 = arith.constant 2 : index
    %c0_221 = arith.constant 0 : index
    %c0_222 = arith.constant 0 : index
    %429 = vector.load %arg9[%c2_220, %c0_221, %c0_222] : memref<3x1x16xf32, #tpu.memory_space<vmem>>, vector<1x1x16xf32>
    %430 = vector.shape_cast %429 : vector<1x1x16xf32> to vector<1x16xf32>
    %cst_223 = arith.constant dense<0.000000e+00> : vector<1xf32>
    %431 = vector.multi_reduction <add>, %426, %cst_223 [1] : vector<1x16xf32> to vector<1xf32>
    %432 = vector.shape_cast %431 : vector<1xf32> to vector<1x1xf32>
    %cst_224 = arith.constant 1.600000e+01 : f32
    %433 = vector.broadcast %cst_224 : f32 to vector<1x1xf32>
    %434 = arith.divf %432, %433 : vector<1x1xf32>
    %435 = vector.broadcast %434 : vector<1x1xf32> to vector<1x16xf32>
    %436 = arith.subf %426, %435 : vector<1x16xf32>
    %437 = arith.mulf %436, %436 : vector<1x16xf32>
    %cst_225 = arith.constant dense<0.000000e+00> : vector<1xf32>
    %438 = vector.multi_reduction <add>, %437, %cst_225 [1] : vector<1x16xf32> to vector<1xf32>
    %439 = vector.shape_cast %438 : vector<1xf32> to vector<1x1xf32>
    %cst_226 = arith.constant 1.600000e+01 : f32
    %440 = vector.broadcast %cst_226 : f32 to vector<1x1xf32>
    %441 = arith.divf %439, %440 : vector<1x1xf32>
    %cst_227 = arith.constant 9.99999974E-6 : f32
    %442 = vector.broadcast %cst_227 : f32 to vector<1x1xf32>
    %443 = arith.addf %441, %442 : vector<1x1xf32>
    %444 = math.rsqrt %443 : vector<1x1xf32>
    %445 = vector.broadcast %444 : vector<1x1xf32> to vector<1x16xf32>
    %446 = arith.mulf %436, %445 : vector<1x16xf32>
    %447 = arith.mulf %446, %428 : vector<1x16xf32>
    %448 = arith.addf %447, %430 : vector<1x16xf32>
    %449 = arith.truncf %448 : vector<1x16xf32> to vector<1x16xbf16>
    %cst_228 = arith.constant 0.000000e+00 : f32
    %450 = vector.broadcast %cst_228 : f32 to vector<1x16xf32>
    %c2_229 = arith.constant 2 : index
    %c0_230 = arith.constant 0 : index
    %c0_231 = arith.constant 0 : index
    %451 = vector.load %arg12[%c2_229, %c0_230, %c0_231] : memref<3x16x2048xbf16, #tpu.memory_space<vmem>>, vector<1x16x512xbf16>
    %452 = vector.shape_cast %451 : vector<1x16x512xbf16> to vector<16x512xbf16>
    %cst_232 = arith.constant dense<0.000000e+00> : vector<1x512xf32>
    %453 = tpu.matmul %449, %452, %cst_232 {dimension_numbers = #tpu.dot_dimension_numbers<[1], [0], [0], [1], [0, 0, 1, 1], [], []>} : vector<1x16xbf16>, vector<16x512xbf16>, vector<1x512xf32> -> vector<1x512xf32>
    %c2_233 = arith.constant 2 : index
    %c0_234 = arith.constant 0 : index
    %c0_235 = arith.constant 0 : index
    %454 = vector.load %arg13[%c2_233, %c0_234, %c0_235] : memref<3x1x2048xf32, #tpu.memory_space<vmem>>, vector<1x1x512xf32>
    %455 = vector.shape_cast %454 : vector<1x1x512xf32> to vector<1x512xf32>
    %456 = arith.addf %453, %455 : vector<1x512xf32>
    %cst_236 = arith.constant 0.000000e+00 : f32
    %457 = vector.broadcast %cst_236 : f32 to vector<1x512xf32>
    %458 = arith.maximumf %456, %457 : vector<1x512xf32>
    %459 = arith.truncf %458 : vector<1x512xf32> to vector<1x512xbf16>
    %c2_237 = arith.constant 2 : index
    %c0_238 = arith.constant 0 : index
    %c0_239 = arith.constant 0 : index
    %460 = vector.load %arg14[%c2_237, %c0_238, %c0_239] : memref<3x2048x16xbf16, #tpu.memory_space<vmem>>, vector<1x512x16xbf16>
    %461 = vector.shape_cast %460 : vector<1x512x16xbf16> to vector<512x16xbf16>
    %cst_240 = arith.constant dense<0.000000e+00> : vector<1x16xf32>
    %462 = tpu.matmul %459, %461, %cst_240 {dimension_numbers = #tpu.dot_dimension_numbers<[1], [0], [0], [1], [0, 0, 1, 1], [], []>} : vector<1x512xbf16>, vector<512x16xbf16>, vector<1x16xf32> -> vector<1x16xf32>
    %463 = arith.addf %450, %462 : vector<1x16xf32>
    %c2_241 = arith.constant 2 : index
    %c0_242 = arith.constant 0 : index
    %c512_243 = arith.constant 512 : index
    %464 = vector.load %arg12[%c2_241, %c0_242, %c512_243] : memref<3x16x2048xbf16, #tpu.memory_space<vmem>>, vector<1x16x512xbf16>
    %465 = vector.shape_cast %464 : vector<1x16x512xbf16> to vector<16x512xbf16>
    %cst_244 = arith.constant dense<0.000000e+00> : vector<1x512xf32>
    %466 = tpu.matmul %449, %465, %cst_244 {dimension_numbers = #tpu.dot_dimension_numbers<[1], [0], [0], [1], [0, 0, 1, 1], [], []>} : vector<1x16xbf16>, vector<16x512xbf16>, vector<1x512xf32> -> vector<1x512xf32>
    %c2_245 = arith.constant 2 : index
    %c0_246 = arith.constant 0 : index
    %c512_247 = arith.constant 512 : index
    %467 = vector.load %arg13[%c2_245, %c0_246, %c512_247] : memref<3x1x2048xf32, #tpu.memory_space<vmem>>, vector<1x1x512xf32>
    %468 = vector.shape_cast %467 : vector<1x1x512xf32> to vector<1x512xf32>
    %469 = arith.addf %466, %468 : vector<1x512xf32>
    %cst_248 = arith.constant 0.000000e+00 : f32
    %470 = vector.broadcast %cst_248 : f32 to vector<1x512xf32>
    %471 = arith.maximumf %469, %470 : vector<1x512xf32>
    %472 = arith.truncf %471 : vector<1x512xf32> to vector<1x512xbf16>
    %c2_249 = arith.constant 2 : index
    %c512_250 = arith.constant 512 : index
    %c0_251 = arith.constant 0 : index
    %473 = vector.load %arg14[%c2_249, %c512_250, %c0_251] : memref<3x2048x16xbf16, #tpu.memory_space<vmem>>, vector<1x512x16xbf16>
    %474 = vector.shape_cast %473 : vector<1x512x16xbf16> to vector<512x16xbf16>
    %cst_252 = arith.constant dense<0.000000e+00> : vector<1x16xf32>
    %475 = tpu.matmul %472, %474, %cst_252 {dimension_numbers = #tpu.dot_dimension_numbers<[1], [0], [0], [1], [0, 0, 1, 1], [], []>} : vector<1x512xbf16>, vector<512x16xbf16>, vector<1x16xf32> -> vector<1x16xf32>
    %476 = arith.addf %463, %475 : vector<1x16xf32>
    %c2_253 = arith.constant 2 : index
    %c0_254 = arith.constant 0 : index
    %c1024_255 = arith.constant 1024 : index
    %477 = vector.load %arg12[%c2_253, %c0_254, %c1024_255] : memref<3x16x2048xbf16, #tpu.memory_space<vmem>>, vector<1x16x512xbf16>
    %478 = vector.shape_cast %477 : vector<1x16x512xbf16> to vector<16x512xbf16>
    %cst_256 = arith.constant dense<0.000000e+00> : vector<1x512xf32>
    %479 = tpu.matmul %449, %478, %cst_256 {dimension_numbers = #tpu.dot_dimension_numbers<[1], [0], [0], [1], [0, 0, 1, 1], [], []>} : vector<1x16xbf16>, vector<16x512xbf16>, vector<1x512xf32> -> vector<1x512xf32>
    %c2_257 = arith.constant 2 : index
    %c0_258 = arith.constant 0 : index
    %c1024_259 = arith.constant 1024 : index
    %480 = vector.load %arg13[%c2_257, %c0_258, %c1024_259] : memref<3x1x2048xf32, #tpu.memory_space<vmem>>, vector<1x1x512xf32>
    %481 = vector.shape_cast %480 : vector<1x1x512xf32> to vector<1x512xf32>
    %482 = arith.addf %479, %481 : vector<1x512xf32>
    %cst_260 = arith.constant 0.000000e+00 : f32
    %483 = vector.broadcast %cst_260 : f32 to vector<1x512xf32>
    %484 = arith.maximumf %482, %483 : vector<1x512xf32>
    %485 = arith.truncf %484 : vector<1x512xf32> to vector<1x512xbf16>
    %c2_261 = arith.constant 2 : index
    %c1024_262 = arith.constant 1024 : index
    %c0_263 = arith.constant 0 : index
    %486 = vector.load %arg14[%c2_261, %c1024_262, %c0_263] : memref<3x2048x16xbf16, #tpu.memory_space<vmem>>, vector<1x512x16xbf16>
    %487 = vector.shape_cast %486 : vector<1x512x16xbf16> to vector<512x16xbf16>
    %cst_264 = arith.constant dense<0.000000e+00> : vector<1x16xf32>
    %488 = tpu.matmul %485, %487, %cst_264 {dimension_numbers = #tpu.dot_dimension_numbers<[1], [0], [0], [1], [0, 0, 1, 1], [], []>} : vector<1x512xbf16>, vector<512x16xbf16>, vector<1x16xf32> -> vector<1x16xf32>
    %489 = arith.addf %476, %488 : vector<1x16xf32>
    %c2_265 = arith.constant 2 : index
    %c0_266 = arith.constant 0 : index
    %c1536_267 = arith.constant 1536 : index
    %490 = vector.load %arg12[%c2_265, %c0_266, %c1536_267] : memref<3x16x2048xbf16, #tpu.memory_space<vmem>>, vector<1x16x512xbf16>
    %491 = vector.shape_cast %490 : vector<1x16x512xbf16> to vector<16x512xbf16>
    %cst_268 = arith.constant dense<0.000000e+00> : vector<1x512xf32>
    %492 = tpu.matmul %449, %491, %cst_268 {dimension_numbers = #tpu.dot_dimension_numbers<[1], [0], [0], [1], [0, 0, 1, 1], [], []>} : vector<1x16xbf16>, vector<16x512xbf16>, vector<1x512xf32> -> vector<1x512xf32>
    %c2_269 = arith.constant 2 : index
    %c0_270 = arith.constant 0 : index
    %c1536_271 = arith.constant 1536 : index
    %493 = vector.load %arg13[%c2_269, %c0_270, %c1536_271] : memref<3x1x2048xf32, #tpu.memory_space<vmem>>, vector<1x1x512xf32>
    %494 = vector.shape_cast %493 : vector<1x1x512xf32> to vector<1x512xf32>
    %495 = arith.addf %492, %494 : vector<1x512xf32>
    %cst_272 = arith.constant 0.000000e+00 : f32
    %496 = vector.broadcast %cst_272 : f32 to vector<1x512xf32>
    %497 = arith.maximumf %495, %496 : vector<1x512xf32>
    %498 = arith.truncf %497 : vector<1x512xf32> to vector<1x512xbf16>
    %c2_273 = arith.constant 2 : index
    %c1536_274 = arith.constant 1536 : index
    %c0_275 = arith.constant 0 : index
    %499 = vector.load %arg14[%c2_273, %c1536_274, %c0_275] : memref<3x2048x16xbf16, #tpu.memory_space<vmem>>, vector<1x512x16xbf16>
    %500 = vector.shape_cast %499 : vector<1x512x16xbf16> to vector<512x16xbf16>
    %cst_276 = arith.constant dense<0.000000e+00> : vector<1x16xf32>
    %501 = tpu.matmul %498, %500, %cst_276 {dimension_numbers = #tpu.dot_dimension_numbers<[1], [0], [0], [1], [0, 0, 1, 1], [], []>} : vector<1x512xbf16>, vector<512x16xbf16>, vector<1x16xf32> -> vector<1x16xf32>
    %502 = arith.addf %489, %501 : vector<1x16xf32>
    %c2_277 = arith.constant 2 : index
    %c0_278 = arith.constant 0 : index
    %c0_279 = arith.constant 0 : index
    %503 = vector.load %arg15[%c2_277, %c0_278, %c0_279] : memref<3x1x16xf32, #tpu.memory_space<vmem>>, vector<1x1x16xf32>
    %504 = vector.shape_cast %503 : vector<1x1x16xf32> to vector<1x16xf32>
    %505 = arith.addf %502, %504 : vector<1x16xf32>
    %506 = arith.addf %448, %505 : vector<1x16xf32>
    %c2_280 = arith.constant 2 : index
    %c0_281 = arith.constant 0 : index
    %c0_282 = arith.constant 0 : index
    %507 = vector.load %arg10[%c2_280, %c0_281, %c0_282] : memref<3x1x16xf32, #tpu.memory_space<vmem>>, vector<1x1x16xf32>
    %508 = vector.shape_cast %507 : vector<1x1x16xf32> to vector<1x16xf32>
    %c2_283 = arith.constant 2 : index
    %c0_284 = arith.constant 0 : index
    %c0_285 = arith.constant 0 : index
    %509 = vector.load %arg11[%c2_283, %c0_284, %c0_285] : memref<3x1x16xf32, #tpu.memory_space<vmem>>, vector<1x1x16xf32>
    %510 = vector.shape_cast %509 : vector<1x1x16xf32> to vector<1x16xf32>
    %cst_286 = arith.constant dense<0.000000e+00> : vector<1xf32>
    %511 = vector.multi_reduction <add>, %506, %cst_286 [1] : vector<1x16xf32> to vector<1xf32>
    %512 = vector.shape_cast %511 : vector<1xf32> to vector<1x1xf32>
    %cst_287 = arith.constant 1.600000e+01 : f32
    %513 = vector.broadcast %cst_287 : f32 to vector<1x1xf32>
    %514 = arith.divf %512, %513 : vector<1x1xf32>
    %515 = vector.broadcast %514 : vector<1x1xf32> to vector<1x16xf32>
    %516 = arith.subf %506, %515 : vector<1x16xf32>
    %517 = arith.mulf %516, %516 : vector<1x16xf32>
    %cst_288 = arith.constant dense<0.000000e+00> : vector<1xf32>
    %518 = vector.multi_reduction <add>, %517, %cst_288 [1] : vector<1x16xf32> to vector<1xf32>
    %519 = vector.shape_cast %518 : vector<1xf32> to vector<1x1xf32>
    %cst_289 = arith.constant 1.600000e+01 : f32
    %520 = vector.broadcast %cst_289 : f32 to vector<1x1xf32>
    %521 = arith.divf %519, %520 : vector<1x1xf32>
    %cst_290 = arith.constant 9.99999974E-6 : f32
    %522 = vector.broadcast %cst_290 : f32 to vector<1x1xf32>
    %523 = arith.addf %521, %522 : vector<1x1xf32>
    %524 = math.rsqrt %523 : vector<1x1xf32>
    %525 = vector.broadcast %524 : vector<1x1xf32> to vector<1x16xf32>
    %526 = arith.mulf %516, %525 : vector<1x16xf32>
    %527 = arith.mulf %526, %508 : vector<1x16xf32>
    %528 = arith.addf %527, %510 : vector<1x16xf32>
    %529 = arith.truncf %528 : vector<1x16xf32> to vector<1x16xbf16>
    %c0_291 = arith.constant 0 : index
    %c0_292 = arith.constant 0 : index
    %530 = vector.load %arg16[%c0_291, %c0_292] : memref<16x128xbf16, #tpu.memory_space<vmem>>, vector<16x128xbf16>
    %cst_293 = arith.constant dense<0.000000e+00> : vector<1x128xf32>
    %531 = tpu.matmul %529, %530, %cst_293 {dimension_numbers = #tpu.dot_dimension_numbers<[1], [0], [0], [1], [0, 0, 1, 1], [], []>} : vector<1x16xbf16>, vector<16x128xbf16>, vector<1x128xf32> -> vector<1x128xf32>
    %c0_294 = arith.constant 0 : index
    %c0_295 = arith.constant 0 : index
    %532 = vector.load %arg17[%c0_294, %c0_295] : memref<1x128xf32, #tpu.memory_space<vmem>>, vector<1x128xf32>
    %533 = arith.addf %531, %532 : vector<1x128xf32>
    %534 = vector.shape_cast %533 : vector<1x128xf32> to vector<1x1x128xf32>
    %c0_296 = arith.constant 0 : index
    %c0_297 = arith.constant 0 : index
    %c0_298 = arith.constant 0 : index
    %535 = vector.load %arg18[%c0_296, %c0_297, %c0_298] : memref<1x1x128xf32, #tpu.memory_space<vmem>>, vector<1x1x128xf32>
    tpu.vector_store %arg18[%c0_296, %c0_297, %c0_298], %534 {strides = array<i32>} : memref<1x1x128xf32, #tpu.memory_space<vmem>>, vector<1x1x128xf32>,
    return
  }
  func.func @transform_0(%arg0: i32) -> (i32, i32, i32) {
    %c0_i32 = arith.constant 0 : i32
    %c0_i32_0 = arith.constant 0 : i32
    %c0_i32_1 = arith.constant 0 : i32
    return %arg0, %c0_i32, %c0_i32_0 : i32, i32, i32
  }
  func.func @transform_1(%arg0: i32) -> (i32, i32) {
    %c0_i32 = arith.constant 0 : i32
    %c0_i32_0 = arith.constant 0 : i32
    %c0_i32_1 = arith.constant 0 : i32
    return %c0_i32, %c0_i32_0 : i32, i32
  }
  func.func @transform_2(%arg0: i32) -> (i32, i32) {
    %c0_i32 = arith.constant 0 : i32
    %c0_i32_0 = arith.constant 0 : i32
    %c0_i32_1 = arith.constant 0 : i32
    return %c0_i32, %c0_i32_0 : i32, i32
  }
  func.func @transform_3(%arg0: i32) -> (i32, i32, i32) {
    %c0_i32 = arith.constant 0 : i32
    %c0_i32_0 = arith.constant 0 : i32
    %c0_i32_1 = arith.constant 0 : i32
    %c0_i32_2 = arith.constant 0 : i32
    return %c0_i32, %c0_i32_0, %c0_i32_1 : i32, i32, i32
  }
  func.func @transform_4(%arg0: i32) -> (i32, i32, i32) {
    %c0_i32 = arith.constant 0 : i32
    %c0_i32_0 = arith.constant 0 : i32
    %c0_i32_1 = arith.constant 0 : i32
    %c0_i32_2 = arith.constant 0 : i32
    return %c0_i32, %c0_i32_0, %c0_i32_1 : i32, i32, i32
  }
  func.func @transform_5(%arg0: i32) -> (i32, i32, i32) {
    %c0_i32 = arith.constant 0 : i32
    %c0_i32_0 = arith.constant 0 : i32
    %c0_i32_1 = arith.constant 0 : i32
    %c0_i32_2 = arith.constant 0 : i32
    return %c0_i32, %c0_i32_0, %c0_i32_1 : i32, i32, i32
  }
  func.func @transform_6(%arg0: i32) -> (i32, i32, i32) {
    %c0_i32 = arith.constant 0 : i32
    %c0_i32_0 = arith.constant 0 : i32
    %c0_i32_1 = arith.constant 0 : i32
    %c0_i32_2 = arith.constant 0 : i32
    return %c0_i32, %c0_i32_0, %c0_i32_1 : i32, i32, i32
  }
  func.func @transform_7(%arg0: i32) -> (i32, i32, i32) {
    %c0_i32 = arith.constant 0 : i32
    %c0_i32_0 = arith.constant 0 : i32
    %c0_i32_1 = arith.constant 0 : i32
    %c0_i32_2 = arith.constant 0 : i32
    return %c0_i32, %c0_i32_0, %c0_i32_1 : i32, i32, i32
  }
  func.func @transform_8(%arg0: i32) -> (i32, i32, i32) {
    %c0_i32 = arith.constant 0 : i32
    %c0_i32_0 = arith.constant 0 : i32
    %c0_i32_1 = arith.constant 0 : i32
    %c0_i32_2 = arith.constant 0 : i32
    return %c0_i32, %c0_i32_0, %c0_i32_1 : i32, i32, i32
  }
  func.func @transform_9(%arg0: i32) -> (i32, i32, i32) {
    %c0_i32 = arith.constant 0 : i32
    %c0_i32_0 = arith.constant 0 : i32
    %c0_i32_1 = arith.constant 0 : i32
    %c0_i32_2 = arith.constant 0 : i32
    return %c0_i32, %c0_i32_0, %c0_i32_1 : i32, i32, i32
  }
  func.func @transform_10(%arg0: i32) -> (i32, i32, i32) {
    %c0_i32 = arith.constant 0 : i32
    %c0_i32_0 = arith.constant 0 : i32
    %c0_i32_1 = arith.constant 0 : i32
    %c0_i32_2 = arith.constant 0 : i32
    return %c0_i32, %c0_i32_0, %c0_i32_1 : i32, i32, i32
  }
  func.func @transform_11(%arg0: i32) -> (i32, i32, i32) {
    %c0_i32 = arith.constant 0 : i32
    %c0_i32_0 = arith.constant 0 : i32
    %c0_i32_1 = arith.constant 0 : i32
    %c0_i32_2 = arith.constant 0 : i32
    return %c0_i32, %c0_i32_0, %c0_i32_1 : i32, i32, i32
  }
  func.func @transform_12(%arg0: i32) -> (i32, i32, i32) {
    %c0_i32 = arith.constant 0 : i32
    %c0_i32_0 = arith.constant 0 : i32
    %c0_i32_1 = arith.constant 0 : i32
    %c0_i32_2 = arith.constant 0 : i32
    return %c0_i32, %c0_i32_0, %c0_i32_1 : i32, i32, i32
  }
  func.func @transform_13(%arg0: i32) -> (i32, i32, i32) {
    %c0_i32 = arith.constant 0 : i32
    %c0_i32_0 = arith.constant 0 : i32
    %c0_i32_1 = arith.constant 0 : i32
    %c0_i32_2 = arith.constant 0 : i32
    return %c0_i32, %c0_i32_0, %c0_i32_1 : i32, i32, i32
  }
  func.func @transform_14(%arg0: i32) -> (i32, i32, i32) {
    %c0_i32 = arith.constant 0 : i32
    %c0_i32_0 = arith.constant 0 : i32
    %c0_i32_1 = arith.constant 0 : i32
    %c0_i32_2 = arith.constant 0 : i32
    return %c0_i32, %c0_i32_0, %c0_i32_1 : i32, i32, i32
  }
  func.func @transform_15(%arg0: i32) -> (i32, i32) {
    %c0_i32 = arith.constant 0 : i32
    %c0_i32_0 = arith.constant 0 : i32
    %c0_i32_1 = arith.constant 0 : i32
    return %c0_i32, %c0_i32_0 : i32, i32
  }
  func.func @transform_16(%arg0: i32) -> (i32, i32) {
    %c0_i32 = arith.constant 0 : i32
    %c0_i32_0 = arith.constant 0 : i32
    %c0_i32_1 = arith.constant 0 : i32
    return %c0_i32, %c0_i32_0 : i32, i32
  }
  func.func @transform_17(%arg0: i32) -> (i32, i32, i32) {
    %c0_i32 = arith.constant 0 : i32
    %c0_i32_0 = arith.constant 0 : i32
    %c0_i32_1 = arith.constant 0 : i32
    return %arg0, %c0_i32, %c0_i32_0 : i32, i32, i32
  }
}

</mosaic_0001>

<bundles_post_ra>
// kernel: vit_forward.1
= control target key start
LH: loop header
LB: loop body
LE: loop exit
PB: predicated region body
PF: predicated region fallthrough
CT: control target
= control target key end

     0   :  { %s16761_s0 = inlined_call_operand.vmem [shape: f32[2,56,16], index: 0, kind: input, shape index: {}]   ;;  %s16762_s1 = inlined_call_operand.vmem [shape: bf16[16,16], index: 1, kind: input, shape index: {}]   ;;  %s16763_s2 = inlined_call_operand.vmem [shape: f32[56,16], index: 2, kind: input, shape index: {}]   ;;  %s16764_s3 = inlined_call_operand.vmem [shape: bf16[3,16,48], index: 3, kind: input, shape index: {}]   ;;  %s16765_s4 = inlined_call_operand.vmem [shape: f32[3,1,48], index: 4, kind: input, shape index: {}]   ;;  %s16766_s5 = inlined_call_operand.vmem [shape: bf16[3,16,16], index: 5, kind: input, shape index: {}]   ;;  %s16767_s6 = inlined_call_operand.vmem [shape: f32[3,1,16], index: 6, kind: input, shape index: {}]   ;;  %s16768_s7 = inlined_call_operand.vmem [shape: f32[3,1,16], index: 7, kind: input, shape index: {}]   ;;  %s16769_s8 = inlined_call_operand.vmem [shape: f32[3,1,16], index: 8, kind: input, shape index: {}]   ;;  %s16770_s9 = inlined_call_operand.vmem [shape: f32[3,1,16], index: 9, kind: input, shape index: {}]   ;;  %s16771_s10 = inlined_call_operand.vmem [shape: f32[3,1,16], index: 10, kind: input, shape index: {}]   ;;  %s16772_s11 = inlined_call_operand.vmem [shape: bf16[3,16,2048], index: 11, kind: input, shape index: {}]   ;;  %s16773_s12 = inlined_call_operand.vmem [shape: f32[3,1,2048], index: 12, kind: input, shape index: {}]   ;;  %s16774_s13 = inlined_call_operand.vmem [shape: bf16[3,2048,16], index: 13, kind: input, shape index: {}]   ;;  %s16775_s14 = inlined_call_operand.vmem [shape: f32[3,1,16], index: 14, kind: input, shape index: {}]   ;;  %s16776_s15 = inlined_call_operand.vmem [shape: bf16[16,128], index: 15, kind: input, shape index: {}]   ;;  %s16777_s16 = inlined_call_operand.vmem [shape: f32[1,128], index: 16, kind: input, shape index: {}]   ;;  %s16778_s17 = inlined_call_operand.hbm [shape: f32[2,1,128], index: 17, kind: output, shape index: {}]  }
   0x1   :  { %16826 = sst [smem:[#allocation22_spill]] %s16761_s0 }
   0x2   :  { %16827 = sst [smem:[#allocation23_spill]] %s16762_s1 }
   0x3   :  { %16828 = sst [smem:[#allocation24_spill]] %s16763_s2 }
   0x4   :  { %16829 = sst [smem:[#allocation25_spill]] %s16777_s16 }
   0x5   :  { %16830 = sst [smem:[#allocation26_spill]] %s16778_s17 }
   0x6   :  { %22 = vsyncpa [#allocation3], 0 }
   0x7   :  { %24 = vsyncpa [#allocation3 + $0x1], 0  ;;  %s13430_s24 = smov 0   ;;  %s13432_s25 = smov 0  }
   0x8   :  { %s13434_s26 = smov 0   ;;  %s13436_s27 = smov 0  }
   0x9 LB: > { %16831 = sst [smem:[#allocation5_spill]] %s13316_s24  ;;  %s13451_s28 = sadd.s32 4294967295, %s13328_s27   ;;  %s13328_s27 = sphi %s13436_s27, %s16893_s27   ;;  %s13324_s26 = sphi %s13434_s26, %s16895_s26   ;;  %s13320_s25 = sphi %s13432_s25, %s16897_s25   ;;  %s13316_s24 = sphi %s13430_s24, %s16896_s24  }
   0xa   : > { %16832 = sst [smem:[#allocation6_spill]] %s13324_s26  ;;  %s10244_s29 = sadd.s32 4294967294, %s13328_s27  }
   0xb   : > { %16833 = sst [smem:[#allocation7_spill]] %s13328_s27  ;;  %s13455_s0 = sadd.s32 1, %s13328_s27  }
   0xc   : > { %16834 = sst [smem:[#allocation8_spill]] %s13455_s0  ;;  %s399_s30 = sadd.s32 1, %s13324_s26 }
   0xd   : > { %s396_s18 = ssub.s32 %s13328_s27, %s13455_s0  ;;  %p409_p0 = scmp.ne.s32.totalorder %s13324_s26, %s13320_s25 }
   0xe   : > { %p397_p1 = scmp.eq.s32.totalorder %s396_s18, 0  ;;  %p410_p2 = scmp.eq.s32.totalorder %s13451_s28, 1 }
   0xf   : > { %p415_p3 = scmp.ne.s32.totalorder %s13320_s25, %s13316_s24  ;;  %p416_p4 = scmp.eq.s32.totalorder %s10244_s29, 1 }
  0x10   : > { %s13466_s19 = scalar_select %p397_p1, %s13324_s26, %s399_s30  }
  0x11   : > { %p13468_p5 = por %p410_p2, %p409_p0  ;;  %p13472_p6 = por %p416_p4, %p415_p3 }
  0x12   : > { %16835 = sst [smem:[#allocation9_spill]] %s13466_s19  ;;  %p10247_p7 = scmp.ge.s32.totalorder %s13328_s27, 1 }
  0x13   : > { %s16836_s1 = scalar_select %p13468_p5, 1, 0 }
  0x14   : > { %s16838_s20 = scalar_select %p13472_p6, 1, 0 }
  0x15   : > { %16837 = sst [smem:[#allocation10_spill]] %s16836_s1  ;;  %p490_p8 = scmp.lt.s32.totalorder %s13328_s27, 3 }
  0x16   : > { %16839 = sst [smem:[#allocation11_spill]] %s16838_s20 }
  0x17   : > { %p491_p9 = pnand %p10247_p7, %p490_p8 }
  0x19   : > { %494 = sbr.rel (%p491_p9) target bundleno = 10039 (0x2737), region = 88 }
  0x1e   : > { %s16840_s23 = sld [smem:[#allocation23_spill]]  ;;  %p541_p10 = scmp.lt.s32.totalorder %s13451_s28, 1  ;;  %vm566_vm0 = vcmask 130048   ;;  %v12697_v12 = vld [vmem:[%s16764_s3] sm:$0xff]   ;;  %vm772_vm1 = vcmask 64512   ;;  %vm861_vm3 = vcmask 457728  }
  0x1f   : > { %s16841_s26 = sld [smem:[#allocation22_spill]]  ;;  %12359 = vmatprep.subr.bf16.mxu1 %v12697_v12  ;;  %v10254_v40 = vld [vmem:[%s16765_s4] ss:$0 sm:$0xff]  ;;  %s16787_s18 = smov 96   ;;  %vm966_vm4 = vcmask 1043456   ;;  %vm13338_vm5 = vmmov 0  }
  0x20   : > { %s542_s29 = scalar_select %p541_p10, %s13451_s28, 1  ;;  %12360 = vmatpush3.bf16.msra.mxu1 %v12697_v12  ;;  %vm7916_vm6 = vcmask 450560   ;;  %vm8186_vm7 = vcmask 122880  }
  0x21   : > { %s16842_s2 = sld [smem:[#allocation24_spill]]  ;;  %s16789_s19 = smov 120  }
  0x22   : > { %s12617_s30 = smul.u32 56, %s542_s29  ;;  %s16785_s20 = smov 88  }
  0x23   : > { %s16865_s29 = smov 96   ;;  %s16867_s21 = smov 88  }
  0x24   : > { %v12696_v0 = vld [vmem:[%s16840_s23] sm:$0xff]   ;;  %s16864_s23 = smov 120   ;;  %s16868_s22 = smov 8  }
  0x25   : > { %12349 = vmatprep.subr.bf16.mxu0 %v12696_v0  ;;  %s545_s0 = scalar_lea.vmem %s16841_s26, %s12617_s30  ;;  %s16793_s30 = smov 112  }
  0x26   : > { %12350 = vmatpush3.bf16.msra.mxu0 %v12696_v0  ;;  %v547_v1 = vld [vmem:[%s545_s0] sm:$0xff]  ;;  %v548_v2 = vld [vmem:[%s545_s0 + $0x8] sm:$0xff]  ;;  %v549_v3 = vld [vmem:[%s545_s0 + $0x10] sm:$0xff]  ;;  %s16791_s26 = smov 104   ;;  %s539_s27 = sand.u32 1, %s13320_s25  }
  0x27   : > { %v554_v4 = vpack.c.bf16 %v548_v2, %v547_v1  ;;  %v550_v5 = vld [vmem:[%s545_s0 + $0x18] sm:$0xff]  ;;  %v551_v6 = vld [vmem:[%s545_s0 + $0x20] sm:$0xff]  ;;  %v552_v7 = vld [vmem:[%s545_s0 + $0x28] sm:$0xff]  ;;  %s540_s16 = scalar_lea.vmem [#allocation2], %s539_s27 }
  0x28   : > { %v555_v8 = vpack.c.bf16 %v550_v5, %v549_v3  ;;  %v556_v9 = vpack.c.bf16 %v552_v7, %v551_v6  ;;  %v553_v10 = vld [vmem:[%s545_s0 + $0x30] sm:$0xff]  ;;  %v646_v14 = vld [vmem:[%s16842_s2 + $0x18] sm:$0xff]  ;;  %v643_v16 = vld [vmem:[%s16842_s2] sm:$0xff]  ;;  %v657_v3 = vlaneseq  ;;  %v16795_v5 = vmov 0.0   ;;  %s16783_s0 = smov 8   ;;  %s10189_s1 = sshll.u32 %s540_s16, 4  ;;  %s16722_s1 = int_to_ptr.vmem [resolvable:$true] %s10189_s1 }
  0x29   : > { %12351 = vmatprep.mubr.msk.bf16.mxu0 %vm566_vm0, %v554_v4  ;;  %v557_v11 = vpack.c.bf16 %v553_v10, %v553_v10  ;;  %v644_v17 = vld [vmem:[%s16842_s2 + $0x8] sm:$0xff]  ;;  %v645_v18 = vld [vmem:[%s16842_s2 + $0x10] sm:$0xff]  ;;  %v647_v30 = vld [vmem:[%s16842_s2 + $0x20] sm:$0xff] }
  0x2a   : > { %12352 = vmatmul.mubr.msk.bf16.vlgmr.msra.gmra.mxu0 %vm566_vm0, %v555_v8  ;;  %v649_v26 = vld [vmem:[%s16842_s2 + $0x30] sm:$0xff]  ;;  %v648_v31 = vld [vmem:[%s16842_s2 + $0x28] sm:$0xff]  ;;  %v658_v4 = vand.u32 127, %v657_v3 }
  0x2b   : > { %12355 = vmatprep.mubr.msk.bf16.mxu0 %vm566_vm0, %v556_v9 }
  0x2c   : > { %vm659_vm2 = vcmp.ge.s32.totalorder %v658_v4, 50 }
  0x2d   : > { %v13577_v6 = vsel %vm659_vm2, -1e+09, %v16795_v5 }
  0x2e   : > { %16843 = vst [vmem:[#allocation12_spill] sm:$0xff] %v13577_v6 }
  0x32   : > { %12356 = vmatmul.mubr.msk.bf16.gmra.mxu0 %vm566_vm0, %v557_v11 }
  0xea   : > { %v12353_v13 = vpop.f32.mrf.mxu0 }
  0xeb   : > { %v13511_v24 = vadd.f32 %v12353_v13, %v645_v18 }
  0xec   : > { %v613_v15 = vpop.f32.mrf.mxu0 }
  0xed   : > { %v13507_v22 = vadd.f32 %v643_v16, %v613_v15 }
  0xee   : > { %v12354_v19 = vpop.f32.mrf.mxu0 }
  0xef   : > { %v13505_v20 = vadd.f32 %v12354_v19, %v646_v14 }
  0xf0   : > { %v616_v21 = vpop.f32.mrf.mxu0 }
  0xf1   : > { %v13509_v23 = vadd.f32 %v644_v17, %v616_v21  ;;  %v662_v28 = vpack.c.bf16 %v13505_v20, %v13511_v24 }
  0xf2   : > { %v12357_v25 = vpop.f32.mrf.mxu0 }
  0xf3   : > { %v661_v27 = vpack.c.bf16 %v13509_v23, %v13507_v22  ;;  %v13528_v33 = vadd.f32 %v12357_v25, %v649_v26 }
  0xf4   : > { %v629_v29 = vpop.f32.mrf.mxu0 }
  0xf5   : > { %12361 = vmatprep.mubr.msk.bf16.mxu1 %vm566_vm0, %v661_v27  ;;  %v13530_v35 = vadd.f32 %v647_v30, %v629_v29  ;;  %v664_v38 = vpack.c.bf16 %v13528_v33, %v13528_v33 }
  0xf6   : > { %v12358_v32 = vpop.f32.mrf.mxu0  ;;  %12362 = vmatmul.mubr.msk.bf16.vlgmr.msra.gmra.mxu1 %vm566_vm0, %v662_v28 }
  0xf8   : > { %v632_v34 = vpop.f32.mrf.mxu0 }
  0xf9   : > { %v13532_v36 = vadd.f32 %v648_v31, %v632_v34 }
  0xfb   : > { %v663_v37 = vpack.c.bf16 %v13532_v36, %v13530_v35 }
  0xfd   : > { %12365 = vmatprep.mubr.msk.bf16.mxu1 %vm566_vm0, %v663_v37 }
  0xfe   : > { %12366 = vmatmul.mubr.msk.bf16.gmra.mxu1 %vm566_vm0, %v664_v38 }
 0x1b6   : > { %v12363_v39 = vpop.f32.mrf.mxu1 }
 0x1b7   : > { %v735_v43 = vadd.f32 %v12363_v39, %v10254_v40 }
 0x1b8   : > { %v726_v41 = vpop.f32.mrf.mxu1 }
 0x1b9   : > { %v727_v46 = vadd.f32 %v10254_v40, %v726_v41 }
 0x1ba   : > { %v12364_v42 = vpop.f32.mrf.mxu1 }
 0x1bb   : > { %v738_v44 = vadd.f32 %v12364_v42, %v10254_v40 }
 0x1bc   : > { %v729_v45 = vpop.f32.mrf.mxu1 }
 0x1bd   : > { %v13543_v47 = vpack.c.bf16 %v738_v44, %v735_v43  ;;  %v730_v48 = vadd.f32 %v10254_v40, %v729_v45 }
 0x1be   : > { %v12367_v49 = vpop.f32.mrf.mxu1 }
 0x1bf   : > { %v13545_v50 = vpack.c.bf16 %v730_v48, %v727_v46  ;;  %v751_v51 = vadd.f32 %v12367_v49, %v10254_v40  ;;  %766 = vrot.lane.b32.xlu1 %v13543_v47, %s16793_s30 }
 0x1c0   : > { %v742_v52 = vpop.f32.mrf.mxu1 }
 0x1c1   : > { %v13549_v53 = vpack.c.bf16 %v751_v51, %v751_v51  ;;  %12377 = vmatprep.mubr.msk.bf16.mxu0 %vm772_vm1, %v13545_v50  ;;  %v743_v56 = vadd.f32 %v10254_v40, %v742_v52 }
 0x1c2   : > { %v12368_v54 = vpop.f32.mrf.mxu1 }
 0x1c3   : > { %764 = vrot.lane.b32.xlu1 %v13545_v50, %s16793_s30  ;;  %770 = vrot.lane.b32.xlu0 %v13549_v53, %s16793_s30 }
 0x1c4   : > { %v745_v55 = vpop.f32.mrf.mxu1 }
 0x1c5   : > { %v746_v57 = vadd.f32 %v10254_v40, %v745_v55 }
 0x1c7   : > { %v13557_v58 = vpack.c.bf16 %v746_v57, %v743_v56 }
 0x1c9   : > { %768 = vrot.lane.b32.xlu0 %v13557_v58, %s16793_s30  ;;  %s16888_s30 = sld [smem:[#allocation25_spill]] }
 0x231   : > { %v767_v63 = vpop.permute.xlu1 %766 }
 0x232   : > { %v789_v0 = vsel %vm772_vm1, %v767_v63, 0 }
 0x235   : > { %v771_v59 = vpop.permute.xlu0 %770  ;;  %v765_v1 = vpop.permute.xlu1 %764 }
 0x236   : > { %12597 = vmatprep.subr.msk.bf16.mxu0 %vm772_vm1, %v771_v59  ;;  %v795_v60 = vsel %vm772_vm1, %v771_v59, 0  ;;  %v786_v2 = vsel %vm772_vm1, %v765_v1, 0 }
 0x237   : > { %12370 = vmatpush3.bf16.xpose.msra.mxu0 %v795_v60 }
 0x23b   : > { %v769_v61 = vpop.permute.xlu0 %768 }
 0x23c   : > { %12598 = vmatprep.subr.msk.bf16.mxu0 %vm772_vm1, %v769_v61  ;;  %v792_v62 = vsel %vm772_vm1, %v769_v61, 0 }
 0x23f   : > { %12372 = vmatpush3.bf16.xpose.msra.mxu0 %v792_v62 }
 0x240   : > { %12599 = vmatprep.subr.msk.bf16.mxu0 %vm772_vm1, %v767_v63 }
 0x247   : > { %12374 = vmatpush3.bf16.xpose.msra.mxu0 %v789_v0 }
 0x248   : > { %12600 = vmatprep.subr.msk.bf16.mxu0 %vm772_vm1, %v765_v1 }
 0x24f   : > { %12376 = vmatpush3.bf16.xpose.msra.mxu0 %v786_v2 }
 0x256   : > { %12378 = vmatmul.mubr.msk.bf16.vlgmr.msra.gmra.mxu0 %vm772_vm1, %v13543_v47 }
 0x257   : > { %12381 = vmatprep.mubr.msk.bf16.mxu0 %vm772_vm1, %v13557_v58 }
 0x25e   : > { %12382 = vmatmul.mubr.msk.bf16.gmra.mxu0 %vm772_vm1, %v13549_v53 }
 0x316   : > { %v12379_v7 = vpop.f32.mrf.mxu0 }
 0x317   : > { %v840_v8 = vadd.f32 %v12379_v7, %v13577_v6 }
 0x318   : > { %v831_v9 = vpop.f32.mrf.mxu0 }
 0x319   : > { %v832_v10 = vadd.f32 %v831_v9, %v13577_v6  ;;  %v868_v11 = vsel %vm861_vm3, %v840_v8, -inf }
 0x31a   : > { %869 = vmax.xlane.f32.xlu0 %v868_v11  ;;  %v12380_v12 = vpop.f32.mrf.mxu0 }
 0x31b   : > { %v843_v14 = vadd.f32 %v12380_v12, %v13577_v6  ;;  %v862_v16 = vsel %vm861_vm3, %v832_v10, -inf }
 0x31c   : > { %v834_v13 = vpop.f32.mrf.mxu0 }
 0x31d   : > { %v835_v15 = vadd.f32 %v834_v13, %v13577_v6  ;;  %v871_v25 = vsel %vm861_vm3, %v843_v14, -inf }
 0x31e   : > { %v12383_v17 = vpop.f32.mrf.mxu0  ;;  %863 = vmax.xlane.f32.xlu0 %v862_v16 }
 0x31f   : > { %v13586_v18 = vadd.f32 %v12383_v17, %v13577_v6  ;;  %v865_v19 = vsel %vm861_vm3, %v835_v15, -inf }
 0x320   : > { %v847_v21 = vpop.f32.mrf.mxu0  ;;  %866 = vmax.xlane.f32.xlu1 %v865_v19 }
 0x321   : > { %v13591_v27 = vadd.f32 %v847_v21, %v13577_v6  ;;  %v880_v28 = vsel %vm861_vm3, %v13586_v18, -inf }
 0x322   : > { %v12384_v26 = vpop.f32.mrf.mxu0  ;;  %872 = vmax.xlane.f32.xlu0 %v871_v25 }
 0x323   : > { %v874_v31 = vsel %vm861_vm3, %v13591_v27, -inf }
 0x324   : > { %v850_v29 = vpop.f32.mrf.mxu0  ;;  %881 = vmax.xlane.f32.xlu1 %v880_v28 }
 0x325   : > { %v851_v30 = vadd.f32 %v850_v29, %v13577_v6 }
 0x327   : > { %v877_v32 = vsel %vm861_vm3, %v851_v30, -inf }
 0x328   : > { %875 = vmax.xlane.f32.xlu1 %v874_v31  ;;  %878 = vmax.xlane.f32.xlu0 %v877_v32 }
 0x339   : > { %947 = vrot.lane.b32.xlu1 %v13557_v58, %s16787_s18 }
 0x33d   : > { %945 = vrot.lane.b32.xlu1 %v13543_v47, %s16787_s18 }
 0x33e   : > { %949 = vrot.lane.b32.xlu0 %v13549_v53, %s16787_s18 }
 0x341   : > { %1048 = vrot.lane.b32.xlu1 %v13549_v53, %s16791_s26 }
 0x3a3   : > { %v870_v34 = vpop.xlane.xlu0 %869 }
 0x3a4   : > { %v885_v37 = vsub.f32 %v840_v8, %v870_v34 }
 0x3a6   : > { %v894_v38 = vmul.f32 1.442695, %v885_v37 }
 0x3a7   : > { %v864_v39 = vpop.xlane.xlu0 %863 }
 0x3a8   : > { %13088 = vpow2.f32 %v894_v38  ;;  %v883_v40 = vsub.f32 %v832_v10, %v864_v39 }
 0x3a9   : > { %v867_v41 = vpop.xlane.xlu1 %866 }
 0x3aa   : > { %v890_v42 = vmul.f32 1.442695, %v883_v40  ;;  %v884_v43 = vsub.f32 %v835_v15, %v867_v41 }
 0x3ab   : > { %v873_v44 = vpop.xlane.xlu0 %872 }
 0x3ac   : > { %13090 = vpow2.f32 %v890_v42  ;;  %v886_v45 = vsub.f32 %v843_v14, %v873_v44  ;;  %v892_v48 = vmul.f32 1.442695, %v884_v43 }
 0x3ad   : > { %v882_v46 = vpop.xlane.xlu1 %881 }
 0x3ae   : > { %v896_v49 = vmul.f32 1.442695, %v886_v45  ;;  %v889_v4 = vsub.f32 %v13586_v18, %v882_v46 }
 0x3b0   : > { %13092 = vpow2.f32 %v896_v49  ;;  %v902_v7 = vmul.f32 1.442695, %v889_v4 }
 0x3b1   : > { %v876_v51 = vpop.xlane.xlu1 %875  ;;  %v879_v52 = vpop.xlane.xlu0 %878  ;;  %13094 = vpow2.f32 %v892_v48 }
 0x3b2   : > { %v887_v8 = vsub.f32 %v13591_v27, %v876_v51  ;;  %13096 = vpow2.f32 %v902_v7  ;;  %v888_v10 = vsub.f32 %v851_v30, %v879_v52 }
 0x3b4   : > { %v898_v9 = vmul.f32 1.442695, %v887_v8  ;;  %v900_v11 = vmul.f32 1.442695, %v888_v10 }
 0x3b5   : > { %v13607_v54 = vpop.eup %13088  ;;  %v948_v55 = vpop.permute.xlu1 %947 }
 0x3b6   : > { %v950_v56 = vpop.permute.xlu0 %949  ;;  %v910_v57 = vsel %vm861_vm3, %v13607_v54, 0.0  ;;  %13098 = vpow2.f32 %v898_v9 }
 0x3b7   : > { %12601 = vmatprep.subr.msk.bf16.mxu1 %vm966_vm4, %v950_v56  ;;  %v968_v59 = vsel %vm966_vm4, %v950_v56, 0  ;;  %911 = vadd.xlane.f32.xlu0 %v910_v57  ;;  %13100 = vpow2.f32 %v900_v11 }
 0x3b8   : > { %12386 = vmatpush3.bf16.msra.mxu1 %v968_v59 }
 0x3b9   : > { %12387 = vmatprep.subr.bf16.mxu1 %v948_v55  ;;  %v13091_v60 = vpop.eup %13090  ;;  %v946_v62 = vpop.permute.xlu1 %945 }
 0x3ba   : > { %v904_v61 = vsel %vm861_vm3, %v13091_v60, 0.0 }
 0x3bb   : > { %905 = vadd.xlane.f32.xlu0 %v904_v61 }
 0x3bc   : > { %12388 = vmatpush3.bf16.msra.mxu1 %v948_v55 }
 0x3bd   : > { %12389 = vmatprep.subr.bf16.mxu1 %v946_v62  ;;  %v13093_v63 = vpop.eup %13092  ;;  %v1049_v19 = vpop.permute.xlu1 %1048 }
 0x3be   : > { %v913_v0 = vsel %vm861_vm3, %v13093_v63, 0.0  ;;  %v13095_v1 = vpop.eup %13094  ;;  %v1072_v41 = vsel %vm772_vm1, %v1049_v19, 0 }
 0x3bf   : > { %914 = vadd.xlane.f32.xlu1 %v913_v0  ;;  %v907_v2 = vsel %vm861_vm3, %v13095_v1, 0.0  ;;  %v13622_v12 = vpop.eup %13096 }
 0x3c0   : > { %12390 = vmatpush3.bf16.msra.mxu1 %v946_v62  ;;  %v922_v13 = vsel %vm861_vm3, %v13622_v12, 0.0 }
 0x3c3   : > { %908 = vadd.xlane.f32.xlu1 %v907_v2  ;;  %v13626_v14 = vpop.eup %13098 }
 0x3c4   : > { %v916_v15 = vsel %vm861_vm3, %v13626_v14, 0.0  ;;  %v13101_v16 = vpop.eup %13100 }
 0x3c5   : > { %v919_v17 = vsel %vm861_vm3, %v13101_v16, 0.0 }
 0x3d1   : > { %943 = vrot.lane.b32.xlu0 %v13545_v50, %s16787_s18  ;;  %s16862_s18 = smov 112  }
 0x3d4   : > { %1046 = vrot.lane.b32.xlu1 %v13557_v58, %s16791_s26 }
 0x3f0   : > { %923 = vadd.xlane.f32.xlu0 %v922_v13 }
 0x3f4   : > { %917 = vadd.xlane.f32.xlu0 %v916_v15 }
 0x3f8   : > { %920 = vadd.xlane.f32.xlu1 %v919_v17 }
 0x409   : > { %1042 = vrot.lane.b32.xlu1 %v13545_v50, %s16791_s26 }
 0x40a   : > { %1044 = vrot.lane.b32.xlu0 %v13543_v47, %s16791_s26  ;;  %s11412_s26 = sshll.u32 %s13451_s28, 4  ;;  %s13339_s28 = smov [#allocation2]  }
 0x40b   : > { %s13272_s2 = sshll.u32 %s13339_s28, 4  ;;  %s13273_s2 = int_to_ptr.vmem [resolvable:$false] %s13272_s2 }
 0x40c   : > { %s13274_s24 = scalar_lea.vmem %s13273_s2, 32  ;;  %p13275_p0 = scmp.lt.s32.totalorder %s16722_s1, %s13273_s2 }
 0x40d   : > { %1036 = vrot.lane.b32.xlu1 %v13543_v47, %s16789_s19 }
 0x40e   : > { %1034 = vrot.lane.b32.xlu0 %v13545_v50, %s16789_s19 }
 0x411   : > { %1040 = vrot.lane.b32.xlu1 %v13549_v53, %s16789_s19 }
 0x412   : > { %1038 = vrot.lane.b32.xlu0 %v13557_v58, %s16789_s19  ;;  %s16863_s19 = smov 104  }
 0x440   : > { %v912_v18 = vpop.xlane.xlu0 %911 }
 0x444   : > { %v906_v21 = vpop.xlane.xlu0 %905 }
 0x448   : > { %v915_v25 = vpop.xlane.xlu1 %914  ;;  %v944_v26 = vpop.permute.xlu0 %943 }
 0x449   : > { %12391 = vmatprep.subr.bf16.mxu1 %v944_v26  ;;  %13102 = vrcp.f32 %v915_v25 }
 0x44a   : > { %12392 = vmatpush3.bf16.msra.mxu1 %v944_v26  ;;  %13104 = vrcp.f32 %v906_v21 }
 0x44b   : > { %12602 = vmatprep.subr.msk.bf16.mxu1 %vm772_vm1, %v1049_v19  ;;  %13106 = vrcp.f32 %v912_v18 }
 0x44c   : > { %v909_v27 = vpop.xlane.xlu1 %908 }
 0x44d   : > { %13108 = vrcp.f32 %v909_v27 }
 0x450   : > { %v1047_v42 = vpop.permute.xlu1 %1046 }
 0x451   : > { %v1069_v43 = vsel %vm772_vm1, %v1047_v42, 0 }
 0x456   : > { %v13103_v28 = vpop.eup %13102 }
 0x457   : > { %v13105_v29 = vpop.eup %13104  ;;  %v935_v32 = vmul.f32 %v13103_v28, %v13093_v63 }
 0x458   : > { %v13107_v30 = vpop.eup %13106  ;;  %v932_v34 = vmul.f32 %v13105_v29, %v13091_v60 }
 0x459   : > { %v934_v38 = vmul.f32 %v13107_v30, %v13607_v54 }
 0x45a   : > { %v13109_v31 = vpop.eup %13108 }
 0x45b   : > { %v933_v37 = vmul.f32 %v13109_v31, %v13095_v1  ;;  %v940_v40 = vpack.c.bf16 %v935_v32, %v934_v38 }
 0x45d   : > { %v939_v39 = vpack.c.bf16 %v933_v37, %v932_v34 }
 0x45f   : > { %12393 = vmatprep.mubr.msk.bf16.mxu1 %vm861_vm3, %v939_v39 }
 0x460   : > { %12394 = vmatmul.mubr.msk.bf16.vlgmr.msra.gmra.mxu1 %vm861_vm3, %v940_v40 }
 0x461   : > { %12402 = vmatpush3.bf16.xpose.msra.mxu1 %v1072_v41 }
 0x462   : > { %12603 = vmatprep.subr.msk.bf16.mxu1 %vm772_vm1, %v1047_v42 }
 0x469   : > { %12404 = vmatpush3.bf16.xpose.msra.mxu1 %v1069_v43 }
 0x479   : > { %v924_v44 = vpop.xlane.xlu0 %923 }
 0x47a   : > { %13110 = vrcp.f32 %v924_v44 }
 0x47d   : > { %v918_v45 = vpop.xlane.xlu0 %917 }
 0x47e   : > { %13112 = vrcp.f32 %v918_v45 }
 0x481   : > { %v921_v46 = vpop.xlane.xlu1 %920  ;;  %v1045_v48 = vpop.permute.xlu0 %1044 }
 0x482   : > { %13114 = vrcp.f32 %v921_v46  ;;  %12604 = vmatprep.subr.msk.bf16.mxu1 %vm772_vm1, %v1045_v48  ;;  %v1066_v49 = vsel %vm772_vm1, %v1045_v48, 0 }
 0x483   : > { %12406 = vmatpush3.bf16.xpose.msra.mxu1 %v1066_v49 }
 0x485   : > { %v1043_v51 = vpop.permute.xlu1 %1042  ;;  %v1035_v63 = vpop.permute.xlu0 %1034 }
 0x486   : > { %12605 = vmatprep.subr.msk.bf16.mxu1 %vm772_vm1, %v1043_v51  ;;  %v1063_v52 = vsel %vm772_vm1, %v1043_v51, 0 }
 0x487   : > { %v13111_v54 = vpop.eup %13110 }
 0x488   : > { %v938_v57 = vmul.f32 %v13111_v54, %v13622_v12 }
 0x489   : > { %v1037_v0 = vpop.permute.xlu1 %1036  ;;  %v1039_v1 = vpop.permute.xlu0 %1038 }
 0x48a   : > { %v942_v62 = vpack.c.bf16 %v938_v57, %v938_v57 }
 0x48b   : > { %12408 = vmatpush3.bf16.xpose.msra.mxu1 %v1063_v52  ;;  %v13113_v55 = vpop.eup %13112 }
 0x48c   : > { %v936_v59 = vmul.f32 %v13113_v55, %v13626_v14 }
 0x48d   : > { %v1041_v2 = vpop.permute.xlu1 %1040 }
 0x48f   : > { %v13115_v56 = vpop.eup %13114 }
 0x490   : > { %v937_v60 = vmul.f32 %v13115_v56, %v13101_v16 }
 0x492   : > { %v941_v61 = vpack.c.bf16 %v937_v60, %v936_v59 }
 0x494   : > { %12397 = vmatprep.mubr.msk.bf16.mxu1 %vm861_vm3, %v941_v61 }
 0x495   : > { %12398 = vmatmul.mubr.msk.bf16.gmra.mxu1 %vm861_vm3, %v942_v62 }
 0x496   : > { %12409 = vmatprep.mubr.msk.bf16.mxu1 %vm772_vm1, %v1035_v63 }
 0x49d   : > { %12410 = vmatmul.mubr.msk.bf16.vlgmr.msra.gmra.mxu1 %vm772_vm1, %v1037_v0 }
 0x49e   : > { %12413 = vmatprep.mubr.msk.bf16.mxu1 %vm772_vm1, %v1039_v1 }
 0x4a5   : > { %12414 = vmatmul.mubr.msk.bf16.gmra.mxu1 %vm772_vm1, %v1041_v2 }
 0x520   : > { %v13662_v4 = vpop.f32.mrf.mxu1 }
 0x522   : > { %v13664_v7 = vpop.f32.mrf.mxu1 }
 0x524   : > { %v13666_v8 = vpop.f32.mrf.mxu1 }
 0x526   : > { %v13668_v9 = vpop.f32.mrf.mxu1 }
 0x555   : > { %v13670_v10 = vpop.f32.mrf.mxu1 }
 0x557   : > { %v13672_v11 = vpop.f32.mrf.mxu1 }
 0x559   : > { %v12400_v12 = vpop.f32.mrf.mxu1 }
 0x55b   : > { %v13674_v13 = vpop.f32.mrf.mxu1 }
 0x55d   : > { %v12411_v14 = vpop.f32.mrf.mxu1 }
 0x55e   : > { %v1117_v18 = vadd.f32 %v12411_v14, %v13577_v6 }
 0x55f   : > { %v1108_v15 = vpop.f32.mrf.mxu1 }
 0x560   : > { %v1109_v16 = vadd.f32 %v1108_v15, %v13577_v6  ;;  %v1144_v29 = vsel %vm861_vm3, %v1117_v18, -inf }
 0x561   : > { %v12412_v17 = vpop.f32.mrf.mxu1 }
 0x562   : > { %v1138_v19 = vsel %vm861_vm3, %v1109_v16, -inf  ;;  %v1120_v27 = vadd.f32 %v12412_v17, %v13577_v6 }
 0x563   : > { %v1111_v21 = vpop.f32.mrf.mxu1  ;;  %1139 = vmax.xlane.f32.xlu0 %v1138_v19 }
 0x564   : > { %v1112_v25 = vadd.f32 %v1111_v21, %v13577_v6  ;;  %v1147_v37 = vsel %vm861_vm3, %v1120_v27, -inf }
 0x565   : > { %v12415_v26 = vpop.f32.mrf.mxu1 }
 0x566   : > { %v1141_v28 = vsel %vm861_vm3, %v1112_v25, -inf  ;;  %v1133_v34 = vadd.f32 %v12415_v26, %v13577_v6 }
 0x567   : > { %1142 = vmax.xlane.f32.xlu1 %v1141_v28  ;;  %1145 = vmax.xlane.f32.xlu0 %v1144_v29  ;;  %v1124_v30 = vpop.f32.mrf.mxu1 }
 0x568   : > { %v1125_v31 = vadd.f32 %v1124_v30, %v13577_v6  ;;  %v1156_v42 = vsel %vm861_vm3, %v1133_v34, -inf }
 0x569   : > { %v12416_v32 = vpop.f32.mrf.mxu1 }
 0x56a   : > { %v1150_v38 = vsel %vm861_vm3, %v1125_v31, -inf }
 0x56b   : > { %1148 = vmax.xlane.f32.xlu0 %v1147_v37  ;;  %v1127_v39 = vpop.f32.mrf.mxu1  ;;  %1151 = vmax.xlane.f32.xlu1 %v1150_v38 }
 0x56c   : > { %v1128_v40 = vadd.f32 %v1127_v39, %v13577_v6 }
 0x56e   : > { %v1153_v41 = vsel %vm861_vm3, %v1128_v40, -inf }
 0x56f   : > { %1154 = vmax.xlane.f32.xlu0 %v1153_v41  ;;  %1157 = vmax.xlane.f32.xlu1 %v1156_v42 }
 0x585   : > { %1225 = vrot.lane.b32.xlu0 %v13549_v53, %s16785_s20 }
 0x5ec   : > { %v1140_v43 = vpop.xlane.xlu0 %1139 }
 0x5ed   : > { %v1159_v44 = vsub.f32 %v1109_v16, %v1140_v43 }
 0x5ef   : > { %v1166_v51 = vmul.f32 1.442695, %v1159_v44 }
 0x5f0   : > { %v1143_v45 = vpop.xlane.xlu1 %1142  ;;  %v1146_v46 = vpop.xlane.xlu0 %1145 }
 0x5f1   : > { %v1161_v48 = vsub.f32 %v1117_v18, %v1146_v46  ;;  %v1160_v52 = vsub.f32 %v1112_v25, %v1143_v45 }
 0x5f3   : > { %v1170_v49 = vmul.f32 1.442695, %v1161_v48  ;;  %v1168_v59 = vmul.f32 1.442695, %v1160_v52 }
 0x5f4   : > { %v1152_v54 = vpop.xlane.xlu1 %1151  ;;  %v1149_v55 = vpop.xlane.xlu0 %1148 }
 0x5f5   : > { %v1162_v56 = vsub.f32 %v1120_v27, %v1149_v55  ;;  %13116 = vpow2.f32 %v1170_v49  ;;  %v1163_v53 = vsub.f32 %v1125_v31, %v1152_v54 }
 0x5f6   : > { %13118 = vpow2.f32 %v1166_v51 }
 0x5f7   : > { %v1172_v57 = vmul.f32 1.442695, %v1162_v56  ;;  %v1174_v2 = vmul.f32 1.442695, %v1163_v53 }
 0x5f8   : > { %v1158_v60 = vpop.xlane.xlu1 %1157  ;;  %v1155_v61 = vpop.xlane.xlu0 %1154 }
 0x5f9   : > { %v1165_v62 = vsub.f32 %v1133_v34, %v1158_v60  ;;  %13120 = vpow2.f32 %v1172_v57  ;;  %v1164_v12 = vsub.f32 %v1128_v40, %v1155_v61 }
 0x5fa   : > { %13122 = vpow2.f32 %v1168_v59 }
 0x5fb   : > { %v1178_v63 = vmul.f32 1.442695, %v1165_v62  ;;  %v1176_v15 = vmul.f32 1.442695, %v1164_v12 }
 0x5fc   : > { %v1226_v0 = vpop.permute.xlu0 %1225 }
 0x5fd   : > { %12606 = vmatprep.subr.msk.bf16.mxu0 %vm966_vm4, %v1226_v0  ;;  %v1243_v1 = vsel %vm966_vm4, %v1226_v0, 0  ;;  %13124 = vpow2.f32 %v1178_v63  ;;  %v12698_v0 = vld [vmem:[%s16766_s5] sm:$0xff]  }
 0x5fe   : > { %12418 = vmatpush3.bf16.msra.mxu0 %v1243_v1  ;;  %13126 = vpow2.f32 %v1174_v2 }
 0x5ff   : > { %13128 = vpow2.f32 %v1176_v15 }
 0x602   : > { %v13117_v14 = vpop.eup %13116 }
 0x603   : > { %v1186_v16 = vsel %vm861_vm3, %v13117_v14, 0.0  ;;  %v13119_v17 = vpop.eup %13118 }
 0x604   : > { %1187 = vadd.xlane.f32.xlu0 %v1186_v16  ;;  %v1180_v19 = vsel %vm861_vm3, %v13119_v17, 0.0 }
 0x606   : > { %v13121_v18 = vpop.eup %13120 }
 0x607   : > { %v1189_v21 = vsel %vm861_vm3, %v13121_v18, 0.0  ;;  %v13123_v25 = vpop.eup %13122 }
 0x608   : > { %1181 = vadd.xlane.f32.xlu0 %v1180_v19  ;;  %1190 = vadd.xlane.f32.xlu1 %v1189_v21  ;;  %v1183_v26 = vsel %vm861_vm3, %v13123_v25, 0.0 }
 0x60a   : > { %v13125_v27 = vpop.eup %13124 }
 0x60b   : > { %v1198_v28 = vsel %vm861_vm3, %v13125_v27, 0.0  ;;  %v13127_v29 = vpop.eup %13126 }
 0x60c   : > { %1184 = vadd.xlane.f32.xlu1 %v1183_v26  ;;  %v1192_v30 = vsel %vm861_vm3, %v13127_v29, 0.0  ;;  %v13129_v31 = vpop.eup %13128 }
 0x60d   : > { %v1195_v32 = vsel %vm861_vm3, %v13129_v31, 0.0 }
 0x610   : > { %1199 = vadd.xlane.f32.xlu1 %v1198_v28 }
 0x614   : > { %1193 = vadd.xlane.f32.xlu1 %v1192_v30 }
 0x618   : > { %1196 = vadd.xlane.f32.xlu1 %v1195_v32 }
 0x61e   : > { %1221 = vrot.lane.b32.xlu0 %v13543_v47, %s16785_s20 }
 0x622   : > { %1219 = vrot.lane.b32.xlu0 %v13545_v50, %s16785_s20 }
 0x629   : > { %1223 = vrot.lane.b32.xlu1 %v13557_v58, %s16785_s20 }
 0x68d   : > { %v1188_v34 = vpop.xlane.xlu0 %1187 }
 0x691   : > { %v1191_v37 = vpop.xlane.xlu1 %1190  ;;  %v1182_v38 = vpop.xlane.xlu0 %1181 }
 0x692   : > { %13130 = vrcp.f32 %v1182_v38 }
 0x695   : > { %v1185_v39 = vpop.xlane.xlu1 %1184  ;;  %v1222_v45 = vpop.permute.xlu0 %1221 }
 0x696   : > { %13132 = vrcp.f32 %v1185_v39 }
 0x697   : > { %13134 = vrcp.f32 %v1191_v37 }
 0x698   : > { %13136 = vrcp.f32 %v1188_v34 }
 0x699   : > { %v1200_v40 = vpop.xlane.xlu1 %1199  ;;  %v1220_v51 = vpop.permute.xlu0 %1219 }
 0x69d   : > { %v1194_v41 = vpop.xlane.xlu1 %1193 }
 0x69e   : > { %13138 = vrcp.f32 %v1194_v41 }
 0x69f   : > { %v13131_v42 = vpop.eup %13130 }
 0x6a0   : > { %v1208_v50 = vmul.f32 %v13131_v42, %v13119_v17 }
 0x6a1   : > { %v1197_v43 = vpop.xlane.xlu1 %1196 }
 0x6a2   : > { %13140 = vrcp.f32 %v1197_v43 }
 0x6a3   : > { %v13133_v47 = vpop.eup %13132  ;;  %13142 = vrcp.f32 %v1200_v40 }
 0x6a4   : > { %v1209_v44 = vmul.f32 %v13133_v47, %v13123_v25  ;;  %v13135_v48 = vpop.eup %13134 }
 0x6a5   : > { %v1224_v58 = vpop.permute.xlu1 %1223  ;;  %v13137_v49 = vpop.eup %13136  ;;  %v1211_v52 = vmul.f32 %v13135_v48, %v13121_v18 }
 0x6a6   : > { %12419 = vmatprep.subr.bf16.mxu0 %v1224_v58  ;;  %v1215_v46 = vpack.c.bf16 %v1209_v44, %v1208_v50  ;;  %v1210_v55 = vmul.f32 %v13137_v49, %v13117_v14  ;;  %v10276_v44 = vld [vmem:[%s16767_s6] ss:$0 sm:$0xff] }
 0x6a7   : > { %12420 = vmatpush3.bf16.msra.mxu0 %v1224_v58 }
 0x6a8   : > { %12421 = vmatprep.subr.bf16.mxu0 %v1222_v45  ;;  %12425 = vmatprep.mubr.msk.bf16.mxu0 %vm861_vm3, %v1215_v46  ;;  %v1216_v57 = vpack.c.bf16 %v1211_v52, %v1210_v55 }
 0x6ab   : > { %12422 = vmatpush3.bf16.msra.mxu0 %v1222_v45  ;;  %v13139_v54 = vpop.eup %13138 }
 0x6ac   : > { %12423 = vmatprep.subr.bf16.mxu0 %v1220_v51  ;;  %v1212_v59 = vmul.f32 %v13139_v54, %v13127_v29 }
 0x6af   : > { %v13141_v56 = vpop.eup %13140  ;;  %12424 = vmatpush3.bf16.msra.mxu0 %v1220_v51 }
 0x6b0   : > { %v1213_v60 = vmul.f32 %v13141_v56, %v13129_v31  ;;  %v13143_v61 = vpop.eup %13142  ;;  %12433 = vmatprep.subr.bf16.mxu0 %v12698_v0 }
 0x6b1   : > { %v1214_v53 = vmul.f32 %v13143_v61, %v13125_v27 }
 0x6b2   : > { %12426 = vmatmul.mubr.msk.bf16.vlgmr.msra.gmra.mxu0 %vm861_vm3, %v1216_v57  ;;  %v1217_v62 = vpack.c.bf16 %v1213_v60, %v1212_v59 }
 0x6b3   : > { %v1218_v63 = vpack.c.bf16 %v1214_v53, %v1214_v53  ;;  %12434 = vmatpush3.bf16.msra.mxu0 %v12698_v0 }
 0x6b4   : > { %12429 = vmatprep.mubr.msk.bf16.mxu0 %vm861_vm3, %v1217_v62 }
 0x6ba   : > { %12430 = vmatmul.mubr.msk.bf16.gmra.mxu0 %vm861_vm3, %v1218_v63 }
 0x772   : > { %v12427_v1 = vpop.f32.mrf.mxu0 }
 0x774   : > { %v1279_v2 = vpop.f32.mrf.mxu0 }
 0x776   : > { %v12428_v12 = vpop.f32.mrf.mxu0 }
 0x777   : > { %v12671_v14 = vpack.i.bf16 %v12428_v12, %v12427_v1 }
 0x778   : > { %v1282_v15 = vpop.f32.mrf.mxu0 }
 0x779   : > { %v12666_v16 = vpack.i.bf16 %v1282_v15, %v1279_v2  ;;  %12672 = vrot.lane.b32.xlu1 %v12671_v14, %s16783_s0 }
 0x77a   : > { %v12431_v17 = vpop.f32.mrf.mxu0 }
 0x77b   : > { %12667 = vrot.lane.b32.xlu0 %v12666_v16, %s16783_s0 }
 0x77c   : > { %v1295_v18 = vpop.f32.mrf.mxu0 }
 0x77d   : > { %1328 = vrot.lane.b32.xlu1 %v12431_v17, %s16783_s0 }
 0x77e   : > { %v12432_v19 = vpop.f32.mrf.mxu0 }
 0x780   : > { %v1298_v21 = vpop.f32.mrf.mxu0 }
 0x781   : > { %v12676_v25 = vpack.i.bf16 %v1298_v21, %v1295_v18 }
 0x783   : > { %12677 = vrot.lane.b32.xlu0 %v12676_v25, %s16783_s0 }
 0x7eb   : > { %v12673_v26 = vpop.permute.xlu1 %12672 }
 0x7ec   : > { %v12675_v27 = vunpack.i.h.bf16 %v12673_v26  ;;  %v12674_v28 = vunpack.i.l.bf16 %v12673_v26 }
 0x7ed   : > { %v12668_v29 = vpop.permute.xlu0 %12667 }
 0x7ee   : > { %v12670_v30 = vunpack.i.h.bf16 %v12668_v29  ;;  %v12669_v31 = vunpack.i.l.bf16 %v12668_v29  ;;  %v1340_v32 = vsel %vm772_vm1, %v13666_v8, %v12675_v27  ;;  %v1339_v34 = vsel %vm772_vm1, %v13662_v4, %v12674_v28 }
 0x7ef   : > { %v1345_v40 = vpack.c.bf16 %v1340_v32, %v1339_v34  ;;  %v1329_v41 = vpop.permute.xlu1 %1328 }
 0x7f0   : > { %v1338_v37 = vsel %vm772_vm1, %v13668_v9, %v12670_v30  ;;  %v1337_v38 = vsel %vm772_vm1, %v13664_v7, %v12669_v31  ;;  %v1343_v8 = vsel %vm772_vm1, %v13670_v10, %v1329_v41 }
 0x7f1   : > { %v1344_v39 = vpack.c.bf16 %v1338_v37, %v1337_v38  ;;  %v1347_v50 = vpack.c.bf16 %v1343_v8, %v1343_v8 }
 0x7f3   : > { %12435 = vmatprep.mubr.msk.bf16.mxu0 %vm566_vm0, %v1344_v39 }
 0x7f4   : > { %12436 = vmatmul.mubr.msk.bf16.vlgmr.msra.gmra.mxu0 %vm566_vm0, %v1345_v40 }
 0x7f5   : > { %v12678_v42 = vpop.permute.xlu0 %12677 }
 0x7f6   : > { %v12680_v43 = vunpack.i.h.bf16 %v12678_v42  ;;  %v12679_v47 = vunpack.i.l.bf16 %v12678_v42 }
 0x7f8   : > { %v1342_v4 = vsel %vm772_vm1, %v13674_v13, %v12680_v43  ;;  %v1341_v9 = vsel %vm772_vm1, %v13672_v11, %v12679_v47 }
 0x7f9   : > { %v1346_v7 = vpack.c.bf16 %v1342_v4, %v1341_v9 }
 0x7fb   : > { %12439 = vmatprep.mubr.msk.bf16.mxu0 %vm566_vm0, %v1346_v7 }
 0x7fc   : > { %12440 = vmatmul.mubr.msk.bf16.gmra.mxu0 %vm566_vm0, %v1347_v50 }
 0x8b4   : > { %v12437_v45 = vpop.f32.mrf.mxu0 }
 0x8b5   : > { %v1418_v58 = vadd.f32 %v12437_v45, %v10276_v44 }
 0x8b6   : > { %v1409_v46 = vpop.f32.mrf.mxu0 }
 0x8b7   : > { %v1410_v10 = vadd.f32 %v10276_v44, %v1409_v46  ;;  %v1441_v11 = vadd.f32 %v1418_v58, %v13511_v24 }
 0x8b8   : > { %v12438_v48 = vpop.f32.mrf.mxu0 }
 0x8b9   : > { %v1439_v13 = vadd.f32 %v1410_v10, %v13507_v22  ;;  %v1421_v51 = vadd.f32 %v12438_v48, %v10276_v44  ;;  %v1454_v59 = vsel %vm566_vm0, %v1441_v11, 0.0  ;;  %v1570_v10 = vld [vmem:[%s16772_s11] sm:$0xff] }
 0x8ba   : > { %v1412_v49 = vpop.f32.mrf.mxu0  ;;  %v1572_v48 = vld [vmem:[%s16772_s11 + $0x40] sm:$0xff] }
 0x8bb   : > { %v1413_v52 = vadd.f32 %v10276_v44, %v1412_v49  ;;  %v1448_v54 = vsel %vm566_vm0, %v1439_v13, 0.0  ;;  %v1442_v22 = vadd.f32 %v1421_v51, %v13505_v20  ;;  %v10285_v49 = vcombine.high %v1570_v10, %v1572_v48 }
 0x8bc   : > { %v12441_v55 = vpop.f32.mrf.mxu0  ;;  %1449 = vadd.xlane.f32.xlu0 %v1448_v54  ;;  %v10284_v51 = vcombine.low %v1570_v10, %v1572_v48 }
 0x8bd   : > { %v1440_v56 = vadd.f32 %v1413_v52, %v13509_v23  ;;  %v1434_v60 = vadd.f32 %v12441_v55, %v10276_v44  ;;  %v1457_v23 = vsel %vm566_vm0, %v1442_v22, 0.0  ;;  %1642 = vmatprep.subr.bf16.mxu1 %v10285_v49  ;;  %v16797_v55 = vmov 0  }
 0x8be   : > { %v1425_v57 = vpop.f32.mrf.mxu0  ;;  %1643 = vmatpush1.bf16.msra.mxu1 %v10284_v51  ;;  %1660 = vmatprep.mubr.bf16.mxu1 %v16797_v55 }
 0x8bf   : > { %v1426_v61 = vadd.f32 %v10276_v44, %v1425_v57  ;;  %v1451_v62 = vsel %vm566_vm0, %v1440_v56, 0.0  ;;  %v1445_v2 = vadd.f32 %v1434_v60, %v13528_v33  ;;  %1731 = vmatprep.mubr.bf16.mxu0 %v16797_v55  ;;  %v1880_v57 = vld [vmem:[%s16772_s11 + $0x50] sm:$0xff] }
 0x8c0   : > { %v12442_v53 = vpop.f32.mrf.mxu0  ;;  %1452 = vadd.xlane.f32.xlu1 %v1451_v62  ;;  %1455 = vadd.xlane.f32.xlu0 %v1454_v59  ;;  %v1879_v59 = vld [vmem:[%s16772_s11 + $0x18] sm:$0xff] }
 0x8c1   : > { %v1443_v24 = vadd.f32 %v1426_v61, %v13530_v35  ;;  %v1466_v14 = vsel %vm566_vm0, %v1445_v2, 0.0  ;;  %v1881_v62 = vld [vmem:[%s16772_s11 + $0x58] sm:$0xff] }
 0x8c2   : > { %v1428_v63 = vpop.f32.mrf.mxu0  ;;  %v10299_v53 = vcombine.high %v1879_v59, %v1881_v62 }
 0x8c3   : > { %v1429_v0 = vadd.f32 %v10276_v44, %v1428_v63  ;;  %v1460_v1 = vsel %vm566_vm0, %v1443_v24, 0.0 }
 0x8c4   : > { %1461 = vadd.xlane.f32.xlu1 %v1460_v1  ;;  %1458 = vadd.xlane.f32.xlu0 %v1457_v23 }
 0x8c5   : > { %v1444_v12 = vadd.f32 %v1429_v0, %v13532_v36 }
 0x8c7   : > { %v1463_v20 = vsel %vm566_vm0, %v1444_v12, 0.0 }
 0x8c8   : > { %1467 = vadd.xlane.f32.xlu1 %v1466_v14  ;;  %1464 = vadd.xlane.f32.xlu0 %v1463_v20 }
 0x945   : > { %v1450_v15 = vpop.xlane.xlu0 %1449 }
 0x946   : > { %v1470_v35 = vmul.f32 0.0625, %v1450_v15 }
 0x948   : > { %v13753_v16 = vsub.f32 %v1439_v13, %v1470_v35  ;;  %v1571_v13 = vld [vmem:[%s16772_s11 + $0x8] sm:$0xff] }
 0x949   : > { %v1453_v17 = vpop.xlane.xlu1 %1452  ;;  %v1456_v18 = vpop.xlane.xlu0 %1455 }
 0x94a   : > { %v1471_v19 = vmul.f32 0.0625, %v1453_v17  ;;  %v1472_v21 = vmul.f32 0.0625, %v1456_v18  ;;  %v1484_v33 = vmul.f32 %v13753_v16, %v13753_v16 }
 0x94c   : > { %v13757_v25 = vsub.f32 %v1440_v56, %v1471_v19  ;;  %v13759_v36 = vsub.f32 %v1441_v11, %v1472_v21  ;;  %v1491_v26 = vsel %vm566_vm0, %v1484_v33, 0.0  ;;  %v1573_v11 = vld [vmem:[%s16772_s11 + $0x48] sm:$0xff]  ;;  %v1878_v56 = vld [vmem:[%s16772_s11 + $0x10] sm:$0xff] }
 0x94d   : > { %v1462_v27 = vpop.xlane.xlu1 %1461  ;;  %1492 = vadd.xlane.f32.xlu0 %v1491_v26  ;;  %v1459_v28 = vpop.xlane.xlu0 %1458  ;;  %v10286_v52 = vcombine.low %v1571_v13, %v1573_v11  ;;  %v10287_v54 = vcombine.high %v1571_v13, %v1573_v11  ;;  %v10296_v60 = vcombine.low %v1878_v56, %v1880_v57  ;;  %v10297_v61 = vcombine.high %v1878_v56, %v1880_v57 }
 0x94e   : > { %v1474_v29 = vmul.f32 0.0625, %v1462_v27  ;;  %v1473_v30 = vmul.f32 0.0625, %v1459_v28  ;;  %v1485_v31 = vmul.f32 %v13757_v25, %v13757_v25  ;;  %v1486_v32 = vmul.f32 %v13759_v36, %v13759_v36 }
 0x94f   : > { %1713 = vmatprep.subr.bf16.mxu0 %v10287_v54  ;;  %1938 = vmatprep.subr.bf16.mxu1 %v10297_v61  ;;  %v12700_v61 = vld [vmem:[%s16774_s13 + $0x1f8] sm:$0xff]  }
 0x950   : > { %v13766_v34 = vsub.f32 %v1443_v24, %v1474_v29  ;;  %v13768_v37 = vsub.f32 %v1442_v22, %v1473_v30  ;;  %v1494_v38 = vsel %vm566_vm0, %v1485_v31, 0.0  ;;  %v1497_v39 = vsel %vm566_vm0, %v1486_v32, 0.0  ;;  %1714 = vmatpush1.bf16.msra.mxu0 %v10286_v52  ;;  %v10282_v32 = vld [vmem:[%s16768_s7] ss:$0 sm:$0xff] }
 0x951   : > { %1495 = vadd.xlane.f32.xlu1 %v1494_v38  ;;  %v1468_v40 = vpop.xlane.xlu1 %1467  ;;  %1498 = vadd.xlane.f32.xlu0 %v1497_v39  ;;  %v1465_v41 = vpop.xlane.xlu0 %1464  ;;  %v10298_v22 = vcombine.low %v1879_v59, %v1881_v62  ;;  %v12701_v62 = vld [vmem:[%s16774_s13 + $0x138] sm:$0xff]  }
 0x952   : > { %v1476_v42 = vmul.f32 0.0625, %v1468_v40  ;;  %v1475_v43 = vmul.f32 0.0625, %v1465_v41  ;;  %v1488_v47 = vmul.f32 %v13766_v34, %v13766_v34  ;;  %v1487_v8 = vmul.f32 %v13768_v37, %v13768_v37  ;;  %2009 = vmatprep.subr.bf16.mxu0 %v10299_v53  ;;  %v12703_v53 = vld [vmem:[%s16774_s13 + $0x170] sm:$0xff]  }
 0x954   : > { %v13776_v4 = vsub.f32 %v1445_v2, %v1476_v42  ;;  %v13778_v9 = vsub.f32 %v1444_v12, %v1475_v43  ;;  %v1503_v7 = vsel %vm566_vm0, %v1488_v47, 0.0  ;;  %v1500_v50 = vsel %vm566_vm0, %v1487_v8, 0.0  ;;  %v10283_v43 = vld [vmem:[%s16769_s8] ss:$0 sm:$0xff] }
 0x955   : > { %1504 = vadd.xlane.f32.xlu0 %v1503_v7  ;;  %1501 = vadd.xlane.f32.xlu1 %v1500_v50 }
 0x956   : > { %v1490_v44 = vmul.f32 %v13776_v4, %v13776_v4  ;;  %v1489_v45 = vmul.f32 %v13778_v9, %v13778_v9 }
 0x958   : > { %v1509_v58 = vsel %vm566_vm0, %v1490_v44, 0.0  ;;  %v1506_v46 = vsel %vm566_vm0, %v1489_v45, 0.0 }
 0x959   : > { %1510 = vadd.xlane.f32.xlu0 %v1509_v58  ;;  %1507 = vadd.xlane.f32.xlu1 %v1506_v46 }
 0x9d6   : > { %v1493_v24 = vpop.xlane.xlu0 %1492 }
 0x9d7   : > { %v1512_v63 = vmul.f32 0.0625, %v1493_v24  ;;  %v12704_v24 = vld [vmem:[%s16774_s13 + $0x1f0] sm:$0xff]  }
 0x9d9   : > { %v1519_v0 = vadd.f32 1e-05, %v1512_v63  ;;  %v12705_v63 = vld [vmem:[%s16774_s13 + $0x130] sm:$0xff]  }
 0x9da   : > { %v1496_v1 = vpop.xlane.xlu1 %1495  ;;  %v1499_v23 = vpop.xlane.xlu0 %1498 }
 0x9db   : > { %13144 = vrsqrt.f32 %v1519_v0  ;;  %v1513_v2 = vmul.f32 0.0625, %v1496_v1  ;;  %v1514_v12 = vmul.f32 0.0625, %v1499_v23  ;;  %v12706_v0 = vld [vmem:[%s16774_s13 + $0x1b0] sm:$0xff]   ;;  %v12707_v1 = vld [vmem:[%s16774_s13 + $0x168] sm:$0xff]  }
 0x9dc   : > { %v12708_v23 = vld [vmem:[%s16774_s13 + $0x1e8] sm:$0xff]  }
 0x9dd   : > { %v1520_v14 = vadd.f32 1e-05, %v1513_v2  ;;  %v1521_v20 = vadd.f32 1e-05, %v1514_v12  ;;  %v12709_v2 = vld [vmem:[%s16774_s13 + $0x128] sm:$0xff]  }
 0x9de   : > { %v1502_v15 = vpop.xlane.xlu1 %1501  ;;  %v1505_v35 = vpop.xlane.xlu0 %1504  ;;  %v12710_v12 = vld [vmem:[%s16774_s13 + $0x1a8] sm:$0xff]  }
 0x9df   : > { %13146 = vrsqrt.f32 %v1520_v14  ;;  %v1515_v17 = vmul.f32 0.0625, %v1502_v15  ;;  %v1516_v19 = vmul.f32 0.0625, %v1505_v35  ;;  %v12711_v14 = vld [vmem:[%s16774_s13 + $0x160] sm:$0xff]  }
 0x9e0   : > { %13148 = vrsqrt.f32 %v1521_v20  ;;  %v12712_v20 = vld [vmem:[%s16774_s13 + $0x1e0] sm:$0xff]  }
 0x9e1   : > { %v1522_v18 = vadd.f32 1e-05, %v1515_v17  ;;  %v1523_v27 = vadd.f32 1e-05, %v1516_v19  ;;  %v12713_v15 = vld [vmem:[%s16774_s13 + $0x120] sm:$0xff]   ;;  %v12715_v17 = vld [vmem:[%s16774_s13 + $0x158] sm:$0xff]  }
 0x9e2   : > { %v1508_v21 = vpop.xlane.xlu1 %1507  ;;  %v1511_v26 = vpop.xlane.xlu0 %1510  ;;  %v12714_v35 = vld [vmem:[%s16774_s13 + $0x1a0] sm:$0xff]   ;;  %v12717_v19 = vld [vmem:[%s16774_s13 + $0x118] sm:$0xff]  }
 0x9e3   : > { %13150 = vrsqrt.f32 %v1522_v18  ;;  %v1517_v33 = vmul.f32 0.0625, %v1508_v21  ;;  %v1518_v29 = vmul.f32 0.0625, %v1511_v26  ;;  %v12716_v18 = vld [vmem:[%s16774_s13 + $0x1d8] sm:$0xff]   ;;  %v12720_v26 = vld [vmem:[%s16774_s13 + $0x1d0] sm:$0xff]  }
 0x9e4   : > { %v12718_v21 = vld [vmem:[%s16774_s13 + $0x198] sm:$0xff]  }
 0x9e5   : > { %v1524_v28 = vadd.f32 1e-05, %v1517_v33  ;;  %v1525_v38 = vadd.f32 1e-05, %v1518_v29  ;;  %v12719_v33 = vld [vmem:[%s16774_s13 + $0x150] sm:$0xff]   ;;  %v12723_v29 = vld [vmem:[%s16774_s13 + $0x148] sm:$0xff]  }
 0x9e7   : > { %13152 = vrsqrt.f32 %v1524_v28  ;;  %v12722_v28 = vld [vmem:[%s16774_s13 + $0x190] sm:$0xff]  }
 0x9e8   : > { %v13145_v30 = vpop.eup %13144  ;;  %13154 = vrsqrt.f32 %v1523_v27  ;;  %v12721_v27 = vld [vmem:[%s16774_s13 + $0x110] sm:$0xff]  }
 0x9e9   : > { %v1533_v31 = vmul.f32 %v13145_v30, %v13753_v16  ;;  %13156 = vrsqrt.f32 %v1525_v38  ;;  %v12724_v30 = vld [vmem:[%s16774_s13 + $0x1c8] sm:$0xff]   ;;  %v12727_v38 = vld [vmem:[%s16774_s13 + $0x140] sm:$0xff]  }
 0x9eb   : > { %v1546_v40 = vmul.f32 %v10282_v32, %v1533_v31  ;;  %v12725_v31 = vld [vmem:[%s16774_s13 + $0x108] sm:$0xff]  }
 0x9ec   : > { %v13147_v39 = vpop.eup %13146 }
 0x9ed   : > { %v1534_v41 = vmul.f32 %v13147_v39, %v13757_v25  ;;  %v13149_v42 = vpop.eup %13148  ;;  %v13822_v7 = vadd.f32 %v10283_v43, %v1546_v40  ;;  %v12728_v39 = vld [vmem:[%s16774_s13 + $0x1c0] sm:$0xff]  }
 0x9ee   : > { %v1535_v50 = vmul.f32 %v13149_v42, %v13759_v36  ;;  %v12729_v40 = vld [vmem:[%s16774_s13 + $0x100] sm:$0xff]   ;;  %v12731_v42 = vld [vmem:[%s16774_s13 + $0x78] sm:$0xff]  }
 0x9ef   : > { %v1547_v47 = vmul.f32 %v10282_v32, %v1534_v41  ;;  %16844 = vst [vmem:[#allocation13_spill] sm:$0xff] %v13822_v7  ;;  %v12730_v41 = vld [vmem:[%s16774_s13 + $0x180] sm:$0xff]  }
 0x9f0   : > { %v13151_v8 = vpop.eup %13150  ;;  %v1548_v46 = vmul.f32 %v10282_v32, %v1535_v50 }
 0x9f1   : > { %v13824_v16 = vadd.f32 %v10283_v43, %v1547_v47  ;;  %v1536_v44 = vmul.f32 %v13151_v8, %v13768_v37  ;;  %v14006_v47 = vshrl.u32 %v657_v3, 7 }
 0x9f2   : > { %v13841_v37 = vadd.f32 %v10283_v43, %v1548_v46 }
 0x9f3   : > { %16845 = vst [vmem:[#allocation14_spill] sm:$0xff] %v13824_v16  ;;  %v13830_v45 = vpack.c.bf16 %v13824_v16, %v13822_v7  ;;  %v1549_v25 = vmul.f32 %v10282_v32, %v1536_v44  ;;  %v14009_v8 = vsub.s32 0, %v14006_v47  ;;  %v14012_v50 = vsub.s32 2, %v14006_v47  ;;  %v14017_v44 = vld [vmem:[%s16773_s12] sm:$0xf] }
 0x9f4   : > { %v13153_v58 = vpop.eup %13152  ;;  %16847 = vst [vmem:[#allocation16_spill] sm:$0xff] %v13841_v37 }
 0x9f5   : > { %10288 = vmatmul.mubr.msk.bf16.vlgmr.msra.gmra.mxu1 %vm566_vm0, %v13830_v45  ;;  %10292 = vmatmul.mubr.msk.bf16.vlgmr.msra.gmra.mxu0 %vm566_vm0, %v13830_v45  ;;  %v13155_v10 = vpop.eup %13154  ;;  %v13836_v48 = vadd.f32 %v10283_v43, %v1549_v25  ;;  %v1538_v36 = vmul.f32 %v13153_v58, %v13778_v9  ;;  %16851 = vst [vmem:[#allocation20_spill] sm:$0xff] %v14009_v8  ;;  %16852 = vst [vmem:[#allocation21_spill] sm:$0xff] %v14012_v50 }
 0x9f6   : > { %1939 = vmatpush1.bf16.msra.mxu1 %v10296_v60  ;;  %2010 = vmatpush1.bf16.msra.mxu0 %v10298_v22  ;;  %v1537_v13 = vmul.f32 %v13155_v10, %v13766_v34  ;;  %v13157_v51 = vpop.eup %13156  ;;  %v12699_v60 = vld [vmem:[%s16774_s13 + $0x178] sm:$0xff]   ;;  %v14021_v25 = vrot.slane %v14017_v44, %v14009_v8  ;;  %v14025_v58 = vrot.slane %v14017_v44, %v14012_v50 }
 0x9f7   : > { %16846 = vst [vmem:[#allocation15_spill] sm:$0xff] %v13836_v48  ;;  %1670 = vmatprep.mubr.bf16.mxu1 %v16797_v55  ;;  %1741 = vmatprep.mubr.bf16.mxu0 %v16797_v55  ;;  %v13846_v49 = vpack.c.bf16 %v13836_v48, %v13841_v37  ;;  %v1551_v11 = vmul.f32 %v10282_v32, %v1538_v36  ;;  %v12702_v22 = vld [vmem:[%s16774_s13 + $0x1b8] sm:$0xff]  }
 0x9f8   : > { %v1550_v52 = vmul.f32 %v10282_v32, %v1537_v13  ;;  %v1539_v34 = vmul.f32 %v13157_v51, %v13776_v4  ;;  %11462 = vmatprep.subr.bf16.mxu1 %v12699_v60  ;;  %11502 = vmatprep.subr.bf16.mxu0 %v12700_v61 }
 0x9f9   : > { %v13854_v9 = vadd.f32 %v10283_v43, %v1551_v11 }
 0x9fa   : > { %v13857_v54 = vadd.f32 %v10283_v43, %v1550_v52  ;;  %v1552_v57 = vmul.f32 %v10282_v32, %v1539_v34  ;;  %v12726_v32 = vld [vmem:[%s16774_s13 + $0x188] sm:$0xff]  }
 0x9fb   : > { %16848 = vst [vmem:[#allocation17_spill] sm:$0xff] %v13854_v9 }
 0x9fc   : > { %16849 = vst [vmem:[#allocation18_spill] sm:$0xff] %v13857_v54  ;;  %v13861_v56 = vpack.c.bf16 %v13854_v9, %v13857_v54  ;;  %v13869_v59 = vadd.f32 %v10283_v43, %v1552_v57  ;;  %v12732_v43 = vld [vmem:[%s16774_s13 + $0xf8] sm:$0xff]  }
 0x9fd   : > { %10289 = vmatmul.mubr.msk.bf16.gmra.mxu1 %vm566_vm0, %v13846_v49  ;;  %10293 = vmatmul.mubr.msk.bf16.gmra.mxu0 %vm566_vm0, %v13846_v49 }
 0x9fe   : > { %1680 = vmatprep.mubr.bf16.mxu1 %v16797_v55  ;;  %1751 = vmatprep.mubr.bf16.mxu0 %v16797_v55  ;;  %16850 = vst [vmem:[#allocation19_spill] sm:$0xff] %v13869_v59  ;;  %v13873_v4 = vpack.c.bf16 %v13869_v59, %v13869_v59 }
 0xa05   : > { %10290 = vmatmul.mubr.msk.bf16.gmra.mxu1 %vm566_vm0, %v13861_v56  ;;  %10294 = vmatmul.mubr.msk.bf16.gmra.mxu0 %vm566_vm0, %v13861_v56 }
 0xa06   : > { %1690 = vmatprep.mubr.bf16.mxu1 %v16797_v55  ;;  %1761 = vmatprep.mubr.bf16.mxu0 %v16797_v55 }
 0xa0d   : > { %10291 = vmatmul.mubr.msk.bf16.gmra.mxu1 %vm566_vm0, %v13873_v4  ;;  %10295 = vmatmul.mubr.msk.bf16.gmra.mxu0 %vm566_vm0, %v13873_v4 }
 0xa0e   : > { %1956 = vmatprep.mubr.bf16.mxu1 %v16797_v55  ;;  %2027 = vmatprep.mubr.bf16.mxu0 %v16797_v55 }
 0xa15   : > { %10300 = vmatmul.mubr.msk.bf16.vlgmr.msra.gmra.mxu1 %vm566_vm0, %v13830_v45  ;;  %10304 = vmatmul.mubr.msk.bf16.vlgmr.msra.gmra.mxu0 %vm566_vm0, %v13830_v45 }
 0xa16   : > { %1966 = vmatprep.mubr.bf16.mxu1 %v16797_v55  ;;  %2037 = vmatprep.mubr.bf16.mxu0 %v16797_v55 }
 0xa17   : > { %11463 = vmatpush3.bf16.msra.mxu1 %v12701_v62  ;;  %11503 = vmatpush3.bf16.msra.mxu0 %v12702_v22 }
 0xa18   : > { %11464 = vmatprep.subr.bf16.mxu1 %v12703_v53  ;;  %11504 = vmatprep.subr.bf16.mxu0 %v12704_v24 }
 0xa1b   : > { %11465 = vmatpush3.bf16.msra.mxu1 %v12705_v63  ;;  %11505 = vmatpush3.bf16.msra.mxu0 %v12706_v0 }
 0xa1c   : > { %11466 = vmatprep.subr.bf16.mxu1 %v12707_v1  ;;  %11506 = vmatprep.subr.bf16.mxu0 %v12708_v23 }
 0xa1d   : > { %10301 = vmatmul.mubr.msk.bf16.gmra.mxu1 %vm566_vm0, %v13846_v49  ;;  %10305 = vmatmul.mubr.msk.bf16.gmra.mxu0 %vm566_vm0, %v13846_v49 }
 0xa1e   : > { %1976 = vmatprep.mubr.bf16.mxu1 %v16797_v55  ;;  %2047 = vmatprep.mubr.bf16.mxu0 %v16797_v55 }
 0xa1f   : > { %11467 = vmatpush3.bf16.msra.mxu1 %v12709_v2  ;;  %11507 = vmatpush3.bf16.msra.mxu0 %v12710_v12 }
 0xa20   : > { %11468 = vmatprep.subr.bf16.mxu1 %v12711_v14  ;;  %11508 = vmatprep.subr.bf16.mxu0 %v12712_v20 }
 0xa23   : > { %11469 = vmatpush3.bf16.msra.mxu1 %v12713_v15  ;;  %11509 = vmatpush3.bf16.msra.mxu0 %v12714_v35 }
 0xa24   : > { %11470 = vmatprep.subr.bf16.mxu1 %v12715_v17  ;;  %11510 = vmatprep.subr.bf16.mxu0 %v12716_v18 }
 0xa25   : > { %10302 = vmatmul.mubr.msk.bf16.gmra.mxu1 %vm566_vm0, %v13861_v56  ;;  %10306 = vmatmul.mubr.msk.bf16.gmra.mxu0 %vm566_vm0, %v13861_v56 }
 0xa26   : > { %1986 = vmatprep.mubr.bf16.mxu1 %v16797_v55  ;;  %2057 = vmatprep.mubr.bf16.mxu0 %v16797_v55 }
 0xa27   : > { %11471 = vmatpush3.bf16.msra.mxu1 %v12717_v19  ;;  %11511 = vmatpush3.bf16.msra.mxu0 %v12718_v21 }
 0xa28   : > { %11472 = vmatprep.subr.bf16.mxu1 %v12719_v33  ;;  %11512 = vmatprep.subr.bf16.mxu0 %v12720_v26 }
 0xa2b   : > { %11473 = vmatpush3.bf16.msra.mxu1 %v12721_v27  ;;  %11513 = vmatpush3.bf16.msra.mxu0 %v12722_v28 }
 0xa2c   : > { %11474 = vmatprep.subr.bf16.mxu1 %v12723_v29  ;;  %11514 = vmatprep.subr.bf16.mxu0 %v12724_v30 }
 0xa2d   : > { %10303 = vmatmul.mubr.msk.bf16.gmra.mxu1 %vm566_vm0, %v13873_v4  ;;  %10307 = vmatmul.mubr.msk.bf16.gmra.mxu0 %vm566_vm0, %v13873_v4 }
 0xa2f   : > { %11475 = vmatpush3.bf16.msra.mxu1 %v12725_v31  ;;  %11515 = vmatpush3.bf16.msra.mxu0 %v12726_v32 }
 0xa30   : > { %11476 = vmatprep.subr.bf16.mxu1 %v12727_v38  ;;  %11516 = vmatprep.subr.bf16.mxu0 %v12728_v39 }
 0xa33   : > { %11477 = vmatpush3.bf16.msra.mxu1 %v12729_v40  ;;  %11517 = vmatpush3.bf16.msra.mxu0 %v12730_v41 }
 0xa34   : > { %11542 = vmatprep.subr.bf16.mxu1 %v12731_v42  ;;  %11582 = vmatprep.subr.bf16.mxu0 %v12732_v43 }
 0xab5   : > { %v1662_v3 = vpop.f32.mrf.mxu1  ;;  %v1733_v46 = vpop.f32.mrf.mxu0 }
 0xab6   : > { %v1663_v13 = vadd.f32 %v1662_v3, %v14021_v25  ;;  %v1734_v11 = vadd.f32 %v1733_v46, %v14025_v58 }
 0xab7   : > { %v14027_v10 = vpop.f32.mrf.mxu1  ;;  %v14029_v36 = vpop.f32.mrf.mxu0 }
 0xab8   : > { %v1770_v62 = vmax.f32 %v1663_v13, 0.0  ;;  %v1772_v22 = vmax.f32 %v1734_v11, 0.0 }
 0xab9   : > { %v1666_v51 = vpop.f32.mrf.mxu1  ;;  %v1737_v52 = vpop.f32.mrf.mxu0 }
 0xaba   : > { %v1667_v34 = vadd.f32 %v1666_v51, %v14021_v25  ;;  %v1738_v57 = vadd.f32 %v1737_v52, %v14025_v58 }
 0xabb   : > { %v14035_v60 = vpop.f32.mrf.mxu1  ;;  %v14037_v61 = vpop.f32.mrf.mxu0 }
 0xabc   : > { %v1774_v53 = vmax.f32 %v1667_v34, 0.0  ;;  %v1776_v24 = vmax.f32 %v1738_v57, 0.0 }
 0xabd   : > { %v1672_v63 = vpop.f32.mrf.mxu1  ;;  %v1743_v0 = vpop.f32.mrf.mxu0 }
 0xabe   : > { %v14039_v1 = vpack.c.bf16 %v1774_v53, %v1770_v62  ;;  %v14041_v23 = vpack.c.bf16 %v1776_v24, %v1772_v22  ;;  %v1673_v14 = vadd.f32 %v1672_v63, %v14021_v25  ;;  %v1744_v20 = vadd.f32 %v1743_v0, %v14025_v58 }
 0xabf   : > { %v14043_v2 = vpop.f32.mrf.mxu1  ;;  %v14045_v12 = vpop.f32.mrf.mxu0 }
 0xac0   : > { %v1778_v33 = vmax.f32 %v1673_v14, 0.0  ;;  %v1780_v26 = vmax.f32 %v1744_v20, 0.0 }
 0xac1   : > { %v1676_v15 = vpop.f32.mrf.mxu1  ;;  %v1747_v35 = vpop.f32.mrf.mxu0 }
 0xac2   : > { %v1677_v17 = vadd.f32 %v1676_v15, %v14021_v25  ;;  %v1748_v18 = vadd.f32 %v1747_v35, %v14025_v58 }
 0xac3   : > { %v14051_v19 = vpop.f32.mrf.mxu1  ;;  %v14053_v21 = vpop.f32.mrf.mxu0 }
 0xac4   : > { %v1782_v27 = vmax.f32 %v1677_v17, 0.0  ;;  %v1784_v28 = vmax.f32 %v1748_v18, 0.0  ;;  %v14084_v17 = vsub.s32 1, %v14006_v47  ;;  %v14087_v18 = vsub.s32 3, %v14006_v47 }
 0xac5   : > { %v1682_v29 = vpop.f32.mrf.mxu1  ;;  %v1753_v30 = vpop.f32.mrf.mxu0 }
 0xac6   : > { %v14055_v31 = vpack.c.bf16 %v1782_v27, %v1778_v33  ;;  %v14057_v32 = vpack.c.bf16 %v1784_v28, %v1780_v26  ;;  %v1683_v40 = vadd.f32 %v1682_v29, %v14021_v25  ;;  %v1754_v41 = vadd.f32 %v1753_v30, %v14025_v58  ;;  %v1882_v33 = vld [vmem:[%s16773_s12 + $0x4] sm:$0xf] }
 0xac7   : > { %v14059_v38 = vpop.f32.mrf.mxu1  ;;  %v14061_v39 = vpop.f32.mrf.mxu0  ;;  %v14093_v28 = vrot.slane %v1882_v33, %v14084_v17  ;;  %v14096_v29 = vrot.slane %v1882_v33, %v14087_v18  ;;  %v14099_v30 = vrot.slane %v1882_v33, %v14009_v8 }
 0xac8   : > { %v1786_v51 = vmax.f32 %v1683_v40, 0.0  ;;  %v1788_v52 = vmax.f32 %v1754_v41, 0.0  ;;  %v14102_v40 = vrot.slane %v1882_v33, %v14012_v50 }
 0xac9   : > { %v1686_v42 = vpop.f32.mrf.mxu1  ;;  %v1757_v43 = vpop.f32.mrf.mxu0 }
 0xaca   : > { %v1687_v3 = vadd.f32 %v1686_v42, %v14021_v25  ;;  %v1758_v46 = vadd.f32 %v1757_v43, %v14025_v58 }
 0xacb   : > { %v14067_v13 = vpop.f32.mrf.mxu1  ;;  %v14069_v11 = vpop.f32.mrf.mxu0 }
 0xacc   : > { %v1790_v34 = vmax.f32 %v1687_v3, 0.0  ;;  %v1792_v57 = vmax.f32 %v1758_v46, 0.0 }
 0xacd   : > { %v14071_v62 = vpop.f32.mrf.mxu1  ;;  %v14073_v22 = vpop.f32.mrf.mxu0 }
 0xace   : > { %v14075_v53 = vpack.c.bf16 %v1790_v34, %v1786_v51  ;;  %v14077_v24 = vpack.c.bf16 %v1792_v57, %v1788_v52 }
 0xacf   : > { %v14079_v63 = vpop.f32.mrf.mxu1  ;;  %v14081_v0 = vpop.f32.mrf.mxu0 }
 0xad1   : > { %v1696_v14 = vpop.f32.mrf.mxu1  ;;  %v1767_v20 = vpop.f32.mrf.mxu0 }
 0xad3   : > { %v1697_v15 = vpop.f32.mrf.mxu1  ;;  %v1768_v35 = vpop.f32.mrf.mxu0 }
 0xad5   : > { %v1958_v26 = vpop.f32.mrf.mxu1  ;;  %v2029_v27 = vpop.f32.mrf.mxu0 }
 0xad6   : > { %v1959_v34 = vadd.f32 %v1958_v26, %v14099_v30  ;;  %v2030_v57 = vadd.f32 %v2029_v27, %v14102_v40 }
 0xad7   : > { %v1960_v47 = vpop.f32.mrf.mxu1  ;;  %v2031_v41 = vpop.f32.mrf.mxu0 }
 0xad8   : > { %v1961_v3 = vadd.f32 %v1960_v47, %v14093_v28  ;;  %v2032_v46 = vadd.f32 %v2031_v41, %v14096_v29  ;;  %v2066_v9 = vmax.f32 %v1959_v34, 0.0  ;;  %v12735_v34 = vld [vmem:[%s16774_s13 + $0x70] sm:$0xff]  }
 0xad9   : > { %v1962_v42 = vpop.f32.mrf.mxu1  ;;  %v2033_v43 = vpop.f32.mrf.mxu0 }
 0xada   : > { %v1963_v51 = vadd.f32 %v1962_v42, %v14099_v30  ;;  %v2034_v52 = vadd.f32 %v2033_v43, %v14102_v40  ;;  %v2067_v6 = vmax.f32 %v1961_v3, 0.0  ;;  %v2069_v41 = vmax.f32 %v2032_v46, 0.0 }
 0xadb   : > { %v1964_v14 = vpop.f32.mrf.mxu1  ;;  %v2035_v20 = vpop.f32.mrf.mxu0  ;;  %v2068_v43 = vmax.f32 %v2030_v57, 0.0 }
 0xadc   : > { %v1965_v15 = vadd.f32 %v1964_v14, %v14093_v28  ;;  %v2036_v35 = vadd.f32 %v2035_v20, %v14096_v29  ;;  %v2070_v33 = vmax.f32 %v1963_v51, 0.0  ;;  %v2072_v5 = vmax.f32 %v2034_v52, 0.0  ;;  %v12733_v14 = vld [vmem:[%s16774_s13 + $0x38] sm:$0xff]  }
 0xadd   : > { %v1968_v55 = vpop.f32.mrf.mxu1  ;;  %v2039_v47 = vpop.f32.mrf.mxu0  ;;  %v12734_v51 = vld [vmem:[%s16774_s13 + $0xb8] sm:$0xff]  }
 0xade   : > { %v2071_v59 = vmax.f32 %v1965_v15, 0.0  ;;  %v2073_v42 = vmax.f32 %v2036_v35, 0.0  ;;  %v2094_v52 = vpack.c.bf16 %v2070_v33, %v2066_v9  ;;  %v2096_v20 = vpack.c.bf16 %v2072_v5, %v2068_v43 }
 0xadf   : > { %v1970_v54 = vpop.f32.mrf.mxu1  ;;  %v2041_v26 = vpop.f32.mrf.mxu0  ;;  %v1969_v5 = vadd.f32 %v1968_v55, %v14099_v30  ;;  %v12738_v55 = vld [vmem:[%s16774_s13 + $0xb0] sm:$0xff]  }
 0xae0   : > { %v2095_v48 = vpack.c.bf16 %v2071_v59, %v2067_v6  ;;  %v2097_v27 = vpack.c.bf16 %v2073_v42, %v2069_v41  ;;  %v12736_v6 = vld [vmem:[%s16774_s13 + $0xf0] sm:$0xff]   ;;  %v1971_v59 = vadd.f32 %v1970_v54, %v14093_v28  ;;  %v2042_v9 = vadd.f32 %v2041_v26, %v14096_v29 }
 0xae1   : > { %v1972_v3 = vpop.f32.mrf.mxu1  ;;  %v2043_v46 = vpop.f32.mrf.mxu0  ;;  %v2040_v41 = vadd.f32 %v2039_v47, %v14102_v40  ;;  %v12739_v47 = vld [vmem:[%s16774_s13 + $0x68] sm:$0xff]  }
 0xae2   : > { %v1973_v57 = vadd.f32 %v1972_v3, %v14099_v30  ;;  %v2044_v15 = vadd.f32 %v2043_v46, %v14102_v40  ;;  %2398 = vmatprep.mubr.bf16.mxu1 %v2095_v48  ;;  %2462 = vmatprep.mubr.bf16.mxu0 %v2097_v27  ;;  %v12737_v48 = vld [vmem:[%s16774_s13 + $0x30] sm:$0xff]   ;;  %v2074_v46 = vmax.f32 %v1969_v5, 0.0  ;;  %v12742_v5 = vld [vmem:[%s16774_s13 + $0xa8] sm:$0xff]  }
 0xae3   : > { %v1974_v35 = vpop.f32.mrf.mxu1  ;;  %v2045_v33 = vpop.f32.mrf.mxu0  ;;  %2399 = vmatmul.mubr.bf16.vlgmr.msra.gmra.mxu1 %v2094_v52  ;;  %2463 = vmatmul.mubr.bf16.vlgmr.msra.gmra.mxu0 %v2096_v20  ;;  %v2076_v37 = vmax.f32 %v2040_v41, 0.0 }
 0xae4   : > { %v1975_v42 = vadd.f32 %v1974_v35, %v14093_v28  ;;  %v2046_v54 = vadd.f32 %v2045_v33, %v14096_v29  ;;  %11543 = vmatpush3.bf16.msra.mxu1 %v12733_v14  ;;  %11583 = vmatpush3.bf16.msra.mxu0 %v12734_v51  ;;  %v2078_v43 = vmax.f32 %v1973_v57, 0.0  ;;  %v12740_v14 = vld [vmem:[%s16774_s13 + $0xe8] sm:$0xff]   ;;  %v2075_v51 = vmax.f32 %v1971_v59, 0.0 }
 0xae5   : > { %v1978_v26 = vpop.f32.mrf.mxu1  ;;  %v2049_v27 = vpop.f32.mrf.mxu0  ;;  %11544 = vmatprep.subr.bf16.mxu1 %v12735_v34  ;;  %11584 = vmatprep.subr.bf16.mxu0 %v12736_v6  ;;  %v2080_v52 = vmax.f32 %v2044_v15, 0.0  ;;  %v2077_v35 = vmax.f32 %v2042_v9, 0.0  ;;  %v12741_v6 = vld [vmem:[%s16774_s13 + $0x28] sm:$0xff]   ;;  %v12743_v9 = vld [vmem:[%s16774_s13 + $0x60] sm:$0xff]  }
 0xae6   : > { %v2079_v20 = vmax.f32 %v1975_v42, 0.0  ;;  %v2081_v3 = vmax.f32 %v2046_v54, 0.0  ;;  %v2098_v16 = vpack.c.bf16 %v2078_v43, %v2074_v46  ;;  %v1979_v43 = vadd.f32 %v1978_v26, %v14099_v30 }
 0xae7   : > { %v1980_v33 = vpop.f32.mrf.mxu1  ;;  %v2051_v57 = vpop.f32.mrf.mxu0  ;;  %v2100_v41 = vpack.c.bf16 %v2080_v52, %v2076_v37 }
 0xae8   : > { %11545 = vmatpush3.bf16.msra.mxu1 %v12737_v48  ;;  %11585 = vmatpush3.bf16.msra.mxu0 %v12738_v55  ;;  %v2099_v34 = vpack.c.bf16 %v2079_v20, %v2075_v51  ;;  %v1981_v7 = vadd.f32 %v1980_v33, %v14093_v28  ;;  %v2101_v15 = vpack.c.bf16 %v2081_v3, %v2077_v35  ;;  %v12744_v55 = vld [vmem:[%s16774_s13 + $0xe0] sm:$0xff]  }
 0xae9   : > { %v1982_v50 = vpop.f32.mrf.mxu1  ;;  %v2053_v59 = vpop.f32.mrf.mxu0  ;;  %11546 = vmatprep.subr.bf16.mxu1 %v12739_v47  ;;  %11586 = vmatprep.subr.bf16.mxu0 %v12740_v14  ;;  %v2052_v42 = vadd.f32 %v2051_v57, %v14096_v29  ;;  %v2050_v47 = vadd.f32 %v2049_v27, %v14102_v40  ;;  %v12747_v27 = vld [vmem:[%s16774_s13 + $0x58] sm:$0xff]  }
 0xaea   : > { %v1983_v54 = vadd.f32 %v1982_v50, %v14099_v30  ;;  %v2054_v48 = vadd.f32 %v2053_v59, %v14102_v40  ;;  %2406 = vmatprep.mubr.bf16.mxu1 %v2099_v34  ;;  %2470 = vmatprep.mubr.bf16.mxu0 %v2101_v15  ;;  %v12745_v50 = vld [vmem:[%s16774_s13 + $0x20] sm:$0xff]   ;;  %v2083_v20 = vmax.f32 %v1981_v7, 0.0  ;;  %v14175_v7 = vrot.slane %v14017_v44, %v14084_v17 }
 0xaeb   : > { %v1984_v14 = vpop.f32.mrf.mxu1  ;;  %v2055_v51 = vpop.f32.mrf.mxu0  ;;  %2407 = vmatmul.mubr.bf16.gmra.mxu1 %v2098_v16  ;;  %2471 = vmatmul.mubr.bf16.gmra.mxu0 %v2100_v41  ;;  %v12746_v16 = vld [vmem:[%s16774_s13 + $0xa0] sm:$0xff]   ;;  %v2085_v35 = vmax.f32 %v2052_v42, 0.0  ;;  %v2084_v59 = vmax.f32 %v2050_v47, 0.0 }
 0xaec   : > { %v1985_v37 = vadd.f32 %v1984_v14, %v14093_v28  ;;  %v2056_v52 = vadd.f32 %v2055_v51, %v14096_v29  ;;  %11547 = vmatpush3.bf16.msra.mxu1 %v12741_v6  ;;  %v2086_v3 = vmax.f32 %v1983_v54, 0.0  ;;  %11587 = vmatpush3.bf16.msra.mxu0 %v12742_v5  ;;  %v2088_v33 = vmax.f32 %v2054_v48, 0.0 }
 0xaed   : > { %v1988_v26 = vpop.f32.mrf.mxu1  ;;  %v2059_v46 = vpop.f32.mrf.mxu0  ;;  %11548 = vmatprep.subr.bf16.mxu1 %v12743_v9  ;;  %11588 = vmatprep.subr.bf16.mxu0 %v12744_v55  ;;  %v2082_v6 = vmax.f32 %v1979_v43, 0.0  ;;  %v12748_v9 = vld [vmem:[%s16774_s13 + $0xd8] sm:$0xff]   ;;  %v14187_v43 = vrot.slane %v14017_v44, %v14087_v18 }
 0xaee   : > { %v2087_v57 = vmax.f32 %v1985_v37, 0.0  ;;  %v2089_v34 = vmax.f32 %v2056_v52, 0.0  ;;  %v12749_v55 = vld [vmem:[%s16774_s13 + $0x18] sm:$0xff]   ;;  %v1989_v14 = vadd.f32 %v1988_v26, %v14099_v30  ;;  %v2104_v52 = vpack.c.bf16 %v2088_v33, %v2084_v59 }
 0xaef   : > { %v1990_v15 = vpop.f32.mrf.mxu1  ;;  %v2061_v5 = vpop.f32.mrf.mxu0  ;;  %v2102_v47 = vpack.c.bf16 %v2086_v3, %v2082_v6  ;;  %v1669_v30 = vadd.f32 %v14035_v60, %v14175_v7  ;;  %v1665_v60 = vadd.f32 %v14027_v10, %v14175_v7  ;;  %v12756_v10 = vld [vmem:[%s16774_s13 + $0xc8] sm:$0xff]  }
 0xaf0   : > { %v1991_v41 = vadd.f32 %v1990_v15, %v14093_v28  ;;  %v2062_v42 = vadd.f32 %v2061_v5, %v14096_v29  ;;  %11549 = vmatpush3.bf16.msra.mxu1 %v12745_v50  ;;  %v2103_v54 = vpack.c.bf16 %v2087_v57, %v2083_v20  ;;  %v2105_v48 = vpack.c.bf16 %v2089_v34, %v2085_v35  ;;  %v12750_v28 = vld [vmem:[%s16774_s13 + $0x98] sm:$0xff]   ;;  %v12751_v29 = vld [vmem:[%s16774_s13 + $0x50] sm:$0xff]   ;;  %v12757_v5 = vld [vmem:[%s16774_s13 + $0x8] sm:$0xff]  }
 0xaf1   : > { %11589 = vmatpush3.bf16.msra.mxu0 %v12746_v16  ;;  %v1992_v51 = vpop.f32.mrf.mxu1  ;;  %v2063_v37 = vpop.f32.mrf.mxu0  ;;  %11550 = vmatprep.subr.bf16.mxu1 %v12747_v27  ;;  %v2060_v50 = vadd.f32 %v2059_v46, %v14102_v40  ;;  %v12752_v16 = vld [vmem:[%s16774_s13 + $0xd0] sm:$0xff]   ;;  %v1740_v27 = vadd.f32 %v14037_v61, %v14187_v43  ;;  %v2090_v33 = vmax.f32 %v1989_v14, 0.0  ;;  %v12755_v61 = vld [vmem:[%s16774_s13 + $0x48] sm:$0xff]   ;;  %v1736_v34 = vadd.f32 %v14029_v36, %v14187_v43  ;;  %v2816_v14 = vld [vmem:[%s16772_s11 + $0x60] sm:$0xff] }
 0xaf2   : > { %v2091_v44 = vmax.f32 %v1991_v41, 0.0  ;;  %v2093_v20 = vmax.f32 %v2062_v42, 0.0  ;;  %2414 = vmatprep.mubr.bf16.mxu1 %v2103_v54  ;;  %2478 = vmatprep.mubr.bf16.mxu0 %v2105_v48  ;;  %v12753_v46 = vld [vmem:[%s16774_s13 + $0x10] sm:$0xff]   ;;  %v1775_v59 = vmax.f32 %v1669_v30, 0.0  ;;  %v12758_v36 = vld [vmem:[%s16774_s13 + $0x88] sm:$0xff]   ;;  %v1679_v54 = vadd.f32 %v14051_v19, %v14175_v7  ;;  %v12760_v19 = vld [vmem:[%s16774_s13 + $0xc0] sm:$0xff]  }
 0xaf3   : > { %v1993_v3 = vpop.f32.mrf.mxu1  ;;  %v2064_v26 = vpop.f32.mrf.mxu0  ;;  %2415 = vmatmul.mubr.bf16.gmra.mxu1 %v2102_v47  ;;  %11590 = vmatprep.subr.bf16.mxu0 %v12748_v9  ;;  %v12754_v57 = vld [vmem:[%s16774_s13 + $0x90] sm:$0xff]   ;;  %v2092_v6 = vmax.f32 %v2060_v50, 0.0  ;;  %v1777_v15 = vmax.f32 %v1740_v27, 0.0  ;;  %v1771_v9 = vmax.f32 %v1665_v60, 0.0  ;;  %v2106_v41 = vpack.c.bf16 %v2090_v33, %v2090_v33  ;;  %v2814_v47 = vld [vmem:[%s16772_s11 + $0x20] sm:$0xff] }
 0xaf4   : > { %v2107_v35 = vpack.c.bf16 %v2091_v44, %v2091_v44  ;;  %v2109_v40 = vpack.c.bf16 %v2093_v20, %v2093_v20  ;;  %2479 = vmatmul.mubr.bf16.gmra.mxu0 %v2104_v52  ;;  %11551 = vmatpush3.bf16.msra.mxu1 %v12749_v55  ;;  %v1773_v42 = vmax.f32 %v1736_v34, 0.0  ;;  %v12759_v55 = vld [vmem:[%s16774_s13 + $0x40] sm:$0xff]   ;;  %v1750_v51 = vadd.f32 %v14053_v21, %v14187_v43 }
 0xaf5   : > { %11591 = vmatpush3.bf16.msra.mxu0 %v12750_v28  ;;  %11552 = vmatprep.subr.bf16.mxu1 %v12751_v29  ;;  %v2108_v48 = vpack.c.bf16 %v2092_v6, %v2092_v6  ;;  %v1799_v37 = vpack.c.bf16 %v1775_v59, %v1771_v9  ;;  %v2815_v28 = vld [vmem:[%s16772_s11 + $0x28] sm:$0xff]  ;;  %v1675_v52 = vadd.f32 %v14043_v2, %v14175_v7  ;;  %v12761_v50 = vld [vmem:[%s16774_s13] sm:$0xff]   ;;  %v1783_v3 = vmax.f32 %v1679_v54, 0.0 }
 0xaf6   : > { %2422 = vmatprep.mubr.bf16.mxu1 %v2107_v35  ;;  %2486 = vmatprep.mubr.bf16.mxu0 %v2109_v40  ;;  %v2817_v29 = vld [vmem:[%s16772_s11 + $0x68] sm:$0xff]  ;;  %v1801_v21 = vpack.c.bf16 %v1777_v15, %v1773_v42  ;;  %v1746_v44 = vadd.f32 %v14045_v12, %v14187_v43  ;;  %v12762_v20 = vld [vmem:[%s16774_s13 + $0x80] sm:$0xff]   ;;  %v10373_v30 = vcombine.high %v2814_v47, %v2816_v14  ;;  %v1785_v26 = vmax.f32 %v1750_v51, 0.0 }
 0xaf7   : > { %11592 = vmatprep.subr.bf16.mxu0 %v12752_v16  ;;  %v10375_v2 = vcombine.high %v2815_v28, %v2817_v29  ;;  %v1779_v16 = vmax.f32 %v1675_v52, 0.0  ;;  %v10372_v35 = vcombine.low %v2814_v47, %v2816_v14  ;;  %v1689_v12 = vadd.f32 %v14067_v13, %v14175_v7  ;;  %v12771_v42 = vld [vmem:[%s16774_s13 + $0x268] sm:$0xff]   ;;  %v12775_v47 = vld [vmem:[%s16774_s13 + $0x260] sm:$0xff]   ;;  %v12782_v52 = vld [vmem:[%s16774_s13 + $0x298] sm:$0xff]  }
 0xaf8   : > { %11553 = vmatpush3.bf16.msra.mxu1 %v12753_v46  ;;  %v1781_v27 = vmax.f32 %v1746_v44, 0.0  ;;  %v10374_v40 = vcombine.low %v2815_v28, %v2817_v29  ;;  %v1760_v60 = vadd.f32 %v14069_v11, %v14187_v43  ;;  %v1693_v15 = vadd.f32 %v14071_v62, %v14021_v25  ;;  %v12763_v25 = vld [vmem:[%s16774_s13 + $0x278] sm:$0xff]   ;;  %v12772_v54 = vld [vmem:[%s16774_s13 + $0x2e8] sm:$0xff]   ;;  %v12776_v14 = vld [vmem:[%s16774_s13 + $0x2e0] sm:$0xff]  }
 0xaf9   : > { %11593 = vmatpush3.bf16.msra.mxu0 %v12754_v57  ;;  %11554 = vmatprep.subr.bf16.mxu1 %v12755_v61  ;;  %v1803_v46 = vpack.c.bf16 %v1783_v3, %v1779_v16  ;;  %v1685_v57 = vadd.f32 %v14059_v38, %v14175_v7  ;;  %v1756_v61 = vadd.f32 %v14061_v39, %v14187_v43  ;;  %v1791_v13 = vmax.f32 %v1689_v12, 0.0  ;;  %v12765_v62 = vld [vmem:[%s16774_s13 + $0x238] sm:$0xff]   ;;  %v12777_v51 = vld [vmem:[%s16774_s13 + $0x220] sm:$0xff]   ;;  %v12785_v44 = vld [vmem:[%s16774_s13 + $0x210] sm:$0xff]  }
 0xafa   : > { %11594 = vmatprep.subr.bf16.mxu0 %v12756_v10  ;;  %v1805_v33 = vpack.c.bf16 %v1785_v26, %v1781_v27  ;;  %v1793_v34 = vmax.f32 %v1760_v60, 0.0  ;;  %v1766_v38 = vadd.f32 %v14081_v0, %v14187_v43  ;;  %v16853_v9 = vmov 0   ;;  %v12780_v28 = vld [vmem:[%s16774_s13 + $0x2d8] sm:$0xff]   ;;  %v12788_v3 = vld [vmem:[%s16774_s13 + $0x2c8] sm:$0xff]   ;;  %v12791_v16 = vld [vmem:[%s16774_s13 + $0x240] sm:$0xff]  }
 0xafb   : > { %2423 = vmatmul.mubr.bf16.gmra.mxu1 %v2106_v41  ;;  %v1787_v6 = vmax.f32 %v1685_v57, 0.0  ;;  %v1789_v10 = vmax.f32 %v1756_v61, 0.0  ;;  %v12769_v41 = vld [vmem:[%s16774_s13 + $0x230] sm:$0xff]   ;;  %v12781_v29 = vld [vmem:[%s16774_s13 + $0x218] sm:$0xff]   ;;  %v12790_v26 = vld [vmem:[%s16774_s13 + $0x288] sm:$0xff]  }
 0xafc   : > { %2487 = vmatmul.mubr.bf16.gmra.mxu0 %v2108_v48  ;;  %11555 = vmatpush3.bf16.msra.mxu1 %v12757_v5  ;;  %v1797_v59 = vmax.f32 %v1766_v38, 0.0  ;;  %v1764_v5 = vadd.f32 %v14073_v22, %v14025_v58  ;;  %v12764_v58 = vld [vmem:[%s16774_s13 + $0x2f8] sm:$0xff]   ;;  %v12773_v48 = vld [vmem:[%s16774_s13 + $0x228] sm:$0xff]   ;;  %v12792_v27 = vld [vmem:[%s16774_s13 + $0x2c0] sm:$0xff]  }
 0xafd   : > { %2718 = vmatprep.mubr.bf16.mxu1 %v1799_v37  ;;  %11595 = vmatpush3.bf16.msra.mxu0 %v12758_v36  ;;  %v1807_v11 = vpack.c.bf16 %v1791_v13, %v1787_v6  ;;  %v12766_v22 = vld [vmem:[%s16774_s13 + $0x2b8] sm:$0xff]   ;;  %v12770_v36 = vld [vmem:[%s16774_s13 + $0x2b0] sm:$0xff]   ;;  %v12778_v37 = vld [vmem:[%s16774_s13 + $0x2a0] sm:$0xff]  }
 0xafe   : > { %2782 = vmatprep.mubr.bf16.mxu0 %v1801_v21  ;;  %11556 = vmatprep.subr.bf16.mxu1 %v12759_v55  ;;  %v12774_v55 = vld [vmem:[%s16774_s13 + $0x2a8] sm:$0xff]   ;;  %v12783_v21 = vld [vmem:[%s16774_s13 + $0x250] sm:$0xff]   ;;  %v12794_v12 = vld [vmem:[%s16774_s13 + $0x280] sm:$0xff]  }
 0xaff   : > { %11596 = vmatprep.subr.bf16.mxu0 %v12760_v19  ;;  %v12779_v19 = vld [vmem:[%s16774_s13 + $0x258] sm:$0xff]  }
 0xb00   : > { %11557 = vmatpush3.bf16.msra.mxu1 %v12761_v50  ;;  %v12784_v50 = vld [vmem:[%s16774_s13 + $0x2d0] sm:$0xff]   ;;  %v14413_v60 = vld [vmem:[%s16772_s11 + $0x38] sm:$0xff] }
 0xb01   : > { %11597 = vmatpush3.bf16.msra.mxu0 %v12762_v20  ;;  %2874 = vmatprep.subr.bf16.mxu1 %v10373_v30  ;;  %v12786_v20 = vld [vmem:[%s16774_s13 + $0x290] sm:$0xff]   ;;  %v12787_v30 = vld [vmem:[%s16774_s13 + $0x248] sm:$0xff]   ;;  %v14422_v61 = vld [vmem:[%s16772_s11 + $0x78] sm:$0xff] }
 0xb02   : > { %2945 = vmatprep.subr.bf16.mxu0 %v10375_v2  ;;  %v12789_v2 = vld [vmem:[%s16774_s13 + $0x208] sm:$0xff]   ;;  %v10418_v13 = vcombine.low %v14413_v60, %v14422_v61 }
 0xb03   : > { %2719 = vmatmul.mubr.bf16.vlgmr.msra.gmra.mxu1 %v14039_v1  ;;  %v1695_v1 = vadd.f32 %v14079_v63, %v14175_v7  ;;  %v1813_v7 = vpack.c.bf16 %v1797_v59, %v1797_v59 }
 0xb04   : > { %2783 = vmatmul.mubr.bf16.vlgmr.msra.gmra.mxu0 %v14041_v23  ;;  %2726 = vmatprep.mubr.bf16.mxu1 %v1803_v46  ;;  %v1809_v23 = vpack.c.bf16 %v1793_v34, %v1789_v10  ;;  %v14408_v46 = vld [vmem:[%s16772_s11 + $0x70] sm:$0xff]  ;;  %v10419_v34 = vcombine.high %v14413_v60, %v14422_v61 }
 0xb05   : > { %2790 = vmatprep.mubr.bf16.mxu0 %v1805_v33  ;;  %2875 = vmatpush1.bf16.msra.mxu1 %v10372_v35  ;;  %v1795_v39 = vmax.f32 %v1695_v1, 0.0  ;;  %v12793_v35 = vld [vmem:[%s16774_s13 + $0x200] sm:$0xff]  }
 0xb06   : > { %2946 = vmatpush1.bf16.msra.mxu0 %v10374_v40  ;;  %11622 = vmatprep.subr.bf16.mxu1 %v12763_v25  ;;  %v14403_v40 = vld [vmem:[%s16772_s11 + $0x30] sm:$0xff] }
 0xb07   : > { %v1811_v63 = vpack.c.bf16 %v1795_v39, %v1795_v39  ;;  %11662 = vmatprep.subr.bf16.mxu0 %v12764_v58  ;;  %v10416_v33 = vcombine.low %v14403_v40, %v14408_v46  ;;  %v10417_v57 = vcombine.high %v14403_v40, %v14408_v46 }
 0xb0b   : > { %2727 = vmatmul.mubr.bf16.gmra.mxu1 %v14055_v31  ;;  %v1794_v31 = vmax.f32 %v1693_v15, 0.0 }
 0xb0c   : > { %2791 = vmatmul.mubr.bf16.gmra.mxu0 %v14057_v32  ;;  %2734 = vmatprep.mubr.bf16.mxu1 %v1807_v11  ;;  %v1796_v32 = vmax.f32 %v1764_v5, 0.0 }
 0xb0d   : > { %2798 = vmatprep.mubr.bf16.mxu0 %v1809_v23  ;;  %v1810_v0 = vpack.c.bf16 %v1794_v31, %v1794_v31 }
 0xb0e   : > { %v1812_v43 = vpack.c.bf16 %v1796_v32, %v1796_v32 }
 0xb13   : > { %2735 = vmatmul.mubr.bf16.gmra.mxu1 %v14075_v53  ;;  %v12767_v53 = vld [vmem:[%s16774_s13 + $0x270] sm:$0xff]  }
 0xb14   : > { %2799 = vmatmul.mubr.bf16.gmra.mxu0 %v14077_v24  ;;  %2742 = vmatprep.mubr.bf16.mxu1 %v1811_v63  ;;  %v12768_v24 = vld [vmem:[%s16774_s13 + $0x2f0] sm:$0xff]  }
 0xb15   : > { %2806 = vmatprep.mubr.bf16.mxu0 %v1813_v7 }
 0xb1b   : > { %2743 = vmatmul.mubr.bf16.gmra.mxu1 %v1810_v0 }
 0xb1c   : > { %2807 = vmatmul.mubr.bf16.gmra.mxu0 %v1812_v43  ;;  %2892 = vmatprep.mubr.bf16.mxu1 %v16853_v9 }
 0xb1d   : > { %2963 = vmatprep.mubr.bf16.mxu0 %v16853_v9 }
 0xb23   : > { %10376 = vmatmul.mubr.msk.bf16.vlgmr.msra.gmra.mxu1 %vm566_vm0, %v13830_v45 }
 0xb24   : > { %10380 = vmatmul.mubr.msk.bf16.vlgmr.msra.gmra.mxu0 %vm566_vm0, %v13830_v45  ;;  %2902 = vmatprep.mubr.bf16.mxu1 %v16853_v9 }
 0xb25   : > { %2973 = vmatprep.mubr.bf16.mxu0 %v16853_v9  ;;  %11623 = vmatpush3.bf16.msra.mxu1 %v12765_v62 }
 0xb26   : > { %11663 = vmatpush3.bf16.msra.mxu0 %v12766_v22  ;;  %11624 = vmatprep.subr.bf16.mxu1 %v12767_v53 }
 0xb27   : > { %11664 = vmatprep.subr.bf16.mxu0 %v12768_v24 }
 0xb29   : > { %11625 = vmatpush3.bf16.msra.mxu1 %v12769_v41 }
 0xb2a   : > { %11665 = vmatpush3.bf16.msra.mxu0 %v12770_v36  ;;  %11626 = vmatprep.subr.bf16.mxu1 %v12771_v42 }
 0xb2b   : > { %10377 = vmatmul.mubr.msk.bf16.gmra.mxu1 %vm566_vm0, %v13846_v49  ;;  %11666 = vmatprep.subr.bf16.mxu0 %v12772_v54 }
 0xb2c   : > { %10381 = vmatmul.mubr.msk.bf16.gmra.mxu0 %vm566_vm0, %v13846_v49  ;;  %2912 = vmatprep.mubr.bf16.mxu1 %v16853_v9 }
 0xb2d   : > { %2983 = vmatprep.mubr.bf16.mxu0 %v16853_v9  ;;  %11627 = vmatpush3.bf16.msra.mxu1 %v12773_v48 }
 0xb2e   : > { %11667 = vmatpush3.bf16.msra.mxu0 %v12774_v55  ;;  %11628 = vmatprep.subr.bf16.mxu1 %v12775_v47 }
 0xb2f   : > { %11668 = vmatprep.subr.bf16.mxu0 %v12776_v14 }
 0xb31   : > { %11629 = vmatpush3.bf16.msra.mxu1 %v12777_v51 }
 0xb32   : > { %11669 = vmatpush3.bf16.msra.mxu0 %v12778_v37  ;;  %11630 = vmatprep.subr.bf16.mxu1 %v12779_v19 }
 0xb33   : > { %10378 = vmatmul.mubr.msk.bf16.gmra.mxu1 %vm566_vm0, %v13861_v56  ;;  %11670 = vmatprep.subr.bf16.mxu0 %v12780_v28 }
 0xb34   : > { %10382 = vmatmul.mubr.msk.bf16.gmra.mxu0 %vm566_vm0, %v13861_v56  ;;  %2922 = vmatprep.mubr.bf16.mxu1 %v16853_v9 }
 0xb35   : > { %2993 = vmatprep.mubr.bf16.mxu0 %v16853_v9  ;;  %11631 = vmatpush3.bf16.msra.mxu1 %v12781_v29 }
 0xb36   : > { %11671 = vmatpush3.bf16.msra.mxu0 %v12782_v52  ;;  %11632 = vmatprep.subr.bf16.mxu1 %v12783_v21 }
 0xb37   : > { %11672 = vmatprep.subr.bf16.mxu0 %v12784_v50 }
 0xb39   : > { %11633 = vmatpush3.bf16.msra.mxu1 %v12785_v44 }
 0xb3a   : > { %11673 = vmatpush3.bf16.msra.mxu0 %v12786_v20  ;;  %11634 = vmatprep.subr.bf16.mxu1 %v12787_v30 }
 0xb3b   : > { %10379 = vmatmul.mubr.msk.bf16.gmra.mxu1 %vm566_vm0, %v13873_v4  ;;  %11674 = vmatprep.subr.bf16.mxu0 %v12788_v3 }
 0xb3c   : > { %10383 = vmatmul.mubr.msk.bf16.gmra.mxu0 %vm566_vm0, %v13873_v4 }
 0xb3d   : > { %11635 = vmatpush3.bf16.msra.mxu1 %v12789_v2 }
 0xb3e   : > { %11675 = vmatpush3.bf16.msra.mxu0 %v12790_v26  ;;  %11636 = vmatprep.subr.bf16.mxu1 %v12791_v16 }
 0xb3f   : > { %11676 = vmatprep.subr.bf16.mxu0 %v12792_v27 }
 0xb41   : > { %11637 = vmatpush3.bf16.msra.mxu1 %v12793_v35 }
 0xb42   : > { %11677 = vmatpush3.bf16.msra.mxu0 %v12794_v12  ;;  %3497 = vmatprep.subr.bf16.mxu1 %v10417_v57 }
 0xb43   : > { %3568 = vmatprep.subr.bf16.mxu0 %v10419_v34 }
 0xba3   : > { %v11478_v6 = vpop.f32.mrf.mxu1  ;;  %v11518_v10 = vpop.f32.mrf.mxu0 }
 0xba5   : > { %v11479_v1 = vpop.f32.mrf.mxu1  ;;  %v11519_v11 = vpop.f32.mrf.mxu0 }
 0xba6   : > { %v11480_v38 = vadd.f32 %v11479_v1, %v11478_v6  ;;  %v11520_v23 = vadd.f32 %v11519_v11, %v11518_v10 }
 0xba7   : > { %v11481_v39 = vpop.f32.mrf.mxu1  ;;  %v11521_v59 = vpop.f32.mrf.mxu0 }
 0xba8   : > { %v2465_v15 = vadd.f32 %v11520_v23, %v11480_v38 }
 0xba9   : > { %v11482_v5 = vpop.f32.mrf.mxu1  ;;  %v11522_v63 = vpop.f32.mrf.mxu0 }
 0xbaa   : > { %v11483_v7 = vadd.f32 %v11482_v5, %v11481_v39  ;;  %v11523_v31 = vadd.f32 %v11522_v63, %v11521_v59 }
 0xbab   : > { %v11484_v32 = vpop.f32.mrf.mxu1  ;;  %v11524_v43 = vpop.f32.mrf.mxu0 }
 0xbac   : > { %v2468_v0 = vadd.f32 %v11523_v31, %v11483_v7 }
 0xbad   : > { %v11485_v25 = vpop.f32.mrf.mxu1  ;;  %v11525_v62 = vpop.f32.mrf.mxu0 }
 0xbae   : > { %v11486_v58 = vadd.f32 %v11485_v25, %v11484_v32  ;;  %v11526_v22 = vadd.f32 %v11525_v62, %v11524_v43 }
 0xbaf   : > { %v11487_v53 = vpop.f32.mrf.mxu1  ;;  %v11527_v24 = vpop.f32.mrf.mxu0 }
 0xbb0   : > { %v2473_v41 = vadd.f32 %v11526_v22, %v11486_v58 }
 0xbb1   : > { %v11488_v36 = vpop.f32.mrf.mxu1  ;;  %v11528_v54 = vpop.f32.mrf.mxu0 }
 0xbb2   : > { %v11489_v42 = vadd.f32 %v11488_v36, %v11487_v53  ;;  %v11529_v48 = vadd.f32 %v11528_v54, %v11527_v24 }
 0xbb3   : > { %v11490_v55 = vpop.f32.mrf.mxu1 }
 0xbb4   : > { %v11530_v47 = vpop.f32.mrf.mxu0  ;;  %v2476_v14 = vadd.f32 %v11529_v48, %v11489_v42 }
 0xbb5   : > { %v11491_v51 = vpop.f32.mrf.mxu1 }
 0xbb6   : > { %v11492_v37 = vadd.f32 %v11491_v51, %v11490_v55  ;;  %v11531_v19 = vpop.f32.mrf.mxu0 }
 0xbb7   : > { %v11532_v28 = vadd.f32 %v11531_v19, %v11530_v47  ;;  %v11493_v29 = vpop.f32.mrf.mxu1 }
 0xbb8   : > { %v11533_v52 = vpop.f32.mrf.mxu0 }
 0xbb9   : > { %v2481_v21 = vadd.f32 %v11532_v28, %v11492_v37  ;;  %v11494_v50 = vpop.f32.mrf.mxu1 }
 0xbba   : > { %v11495_v44 = vadd.f32 %v11494_v50, %v11493_v29  ;;  %v11534_v20 = vpop.f32.mrf.mxu0 }
 0xbbb   : > { %v11535_v30 = vadd.f32 %v11534_v20, %v11533_v52  ;;  %v11496_v3 = vpop.f32.mrf.mxu1 }
 0xbbc   : > { %v11536_v2 = vpop.f32.mrf.mxu0 }
 0xbbd   : > { %v2484_v26 = vadd.f32 %v11535_v30, %v11495_v44  ;;  %v11497_v16 = vpop.f32.mrf.mxu1 }
 0xbbe   : > { %v11498_v27 = vadd.f32 %v11497_v16, %v11496_v3  ;;  %v11537_v35 = vpop.f32.mrf.mxu0 }
 0xbbf   : > { %v11538_v12 = vadd.f32 %v11537_v35, %v11536_v2  ;;  %v11499_v57 = vpop.f32.mrf.mxu1 }
 0xbc0   : > { %v11539_v34 = vpop.f32.mrf.mxu0 }
 0xbc1   : > { %v2489_v6 = vadd.f32 %v11538_v12, %v11498_v27  ;;  %v11500_v10 = vpop.f32.mrf.mxu1 }
 0xbc2   : > { %v11540_v1 = vpop.f32.mrf.mxu0 }
 0xbc3   : > { %v11558_v11 = vpop.f32.mrf.mxu1 }
 0xbc4   : > { %v11598_v38 = vpop.f32.mrf.mxu0 }
 0xbc5   : > { %v11559_v23 = vpop.f32.mrf.mxu1 }
 0xbc6   : > { %v11560_v39 = vadd.f32 %v11559_v23, %v11558_v11  ;;  %v11599_v59 = vpop.f32.mrf.mxu0 }
 0xbc7   : > { %v11600_v5 = vadd.f32 %v11599_v59, %v11598_v38  ;;  %v11561_v63 = vpop.f32.mrf.mxu1 }
 0xbc8   : > { %v2721_v7 = vadd.f32 %v11560_v39, %v2465_v15  ;;  %v11601_v31 = vpop.f32.mrf.mxu0 }
 0xbc9   : > { %v11562_v32 = vpop.f32.mrf.mxu1 }
 0xbca   : > { %v14428_v43 = vadd.f32 %v11600_v5, %v2721_v7  ;;  %v11563_v25 = vadd.f32 %v11562_v32, %v11561_v63  ;;  %v11602_v58 = vpop.f32.mrf.mxu0 }
 0xbcb   : > { %v11564_v62 = vpop.f32.mrf.mxu1  ;;  %v11603_v53 = vadd.f32 %v11602_v58, %v11601_v31 }
 0xbcc   : > { %v2724_v22 = vadd.f32 %v11563_v25, %v2468_v0  ;;  %v11604_v24 = vpop.f32.mrf.mxu0 }
 0xbcd   : > { %v11565_v36 = vpop.f32.mrf.mxu1 }
 0xbce   : > { %v14430_v42 = vadd.f32 %v11603_v53, %v2724_v22  ;;  %v11566_v54 = vadd.f32 %v11565_v36, %v11564_v62  ;;  %v11605_v48 = vpop.f32.mrf.mxu0  ;;  %v2818_v62 = vld [vmem:[%s16773_s12 + $0x8] sm:$0xf] }
 0xbcf   : > { %v11606_v55 = vadd.f32 %v11605_v48, %v11604_v24  ;;  %v11567_v47 = vpop.f32.mrf.mxu1  ;;  %v14446_v53 = vrot.slane %v2818_v62, %v14084_v17  ;;  %v14449_v24 = vrot.slane %v2818_v62, %v14009_v8 }
 0xbd0   : > { %v2729_v51 = vadd.f32 %v11566_v54, %v2473_v41  ;;  %v11607_v37 = vpop.f32.mrf.mxu0  ;;  %v16854_v54 = vld [vmem:[#allocation21_spill] sm:$0xff] }
 0xbd1   : > { %v11568_v15 = vpop.f32.mrf.mxu1  ;;  %v14455_v48 = vrot.slane %v2818_v62, %v16854_v54 }
 0xbd2   : > { %v14432_v19 = vadd.f32 %v11606_v55, %v2729_v51  ;;  %v11569_v28 = vadd.f32 %v11568_v15, %v11567_v47  ;;  %v11608_v29 = vpop.f32.mrf.mxu0 }
 0xbd3   : > { %v11570_v52 = vpop.f32.mrf.mxu1  ;;  %v11609_v44 = vadd.f32 %v11608_v29, %v11607_v37 }
 0xbd4   : > { %v2732_v50 = vadd.f32 %v11569_v28, %v2476_v14  ;;  %v11610_v0 = vpop.f32.mrf.mxu0 }
 0xbd5   : > { %v11571_v20 = vpop.f32.mrf.mxu1 }
 0xbd6   : > { %v14434_v30 = vadd.f32 %v11609_v44, %v2732_v50  ;;  %v11572_v3 = vadd.f32 %v11571_v20, %v11570_v52  ;;  %v11611_v2 = vpop.f32.mrf.mxu0 }
 0xbd7   : > { %v11612_v16 = vadd.f32 %v11611_v2, %v11610_v0  ;;  %v11573_v27 = vpop.f32.mrf.mxu1 }
 0xbd8   : > { %v2737_v35 = vadd.f32 %v11572_v3, %v2481_v21  ;;  %v11613_v12 = vpop.f32.mrf.mxu0 }
 0xbd9   : > { %v11574_v41 = vpop.f32.mrf.mxu1 }
 0xbda   : > { %v14436_v57 = vadd.f32 %v11612_v16, %v2737_v35  ;;  %v11575_v34 = vadd.f32 %v11574_v41, %v11573_v27  ;;  %v11614_v10 = vpop.f32.mrf.mxu0 }
 0xbdb   : > { %v11576_v1 = vpop.f32.mrf.mxu1  ;;  %v11615_v38 = vadd.f32 %v11614_v10, %v11613_v12 }
 0xbdc   : > { %v2740_v11 = vadd.f32 %v11575_v34, %v2484_v26  ;;  %v11616_v14 = vpop.f32.mrf.mxu0 }
 0xbdd   : > { %v11577_v23 = vpop.f32.mrf.mxu1 }
 0xbde   : > { %v14438_v39 = vadd.f32 %v11615_v38, %v2740_v11  ;;  %v11578_v59 = vadd.f32 %v11577_v23, %v11576_v1  ;;  %v11617_v5 = vpop.f32.mrf.mxu0 }
 0xbdf   : > { %v11618_v63 = vadd.f32 %v11617_v5, %v11616_v14  ;;  %v11579_v7 = vpop.f32.mrf.mxu1 }
 0xbe0   : > { %v2745_v31 = vadd.f32 %v11578_v59, %v2489_v6  ;;  %v11619_v32 = vpop.f32.mrf.mxu0  ;;  %v14452_v6 = vrot.slane %v2818_v62, %v14087_v18 }
 0xbe1   : > { %v11580_v21 = vpop.f32.mrf.mxu1 }
 0xbe2   : > { %v14440_v25 = vadd.f32 %v11618_v63, %v2745_v31  ;;  %v11620_v58 = vpop.f32.mrf.mxu0 }
 0xbe3   : > { %v2894_v26 = vpop.f32.mrf.mxu1 }
 0xbe4   : > { %v2965_v22 = vpop.f32.mrf.mxu0  ;;  %v2895_v28 = vadd.f32 %v2894_v26, %v14449_v24 }
 0xbe5   : > { %v2896_v36 = vpop.f32.mrf.mxu1  ;;  %v2966_v44 = vadd.f32 %v2965_v22, %v14455_v48 }
 0xbe6   : > { %v2967_v55 = vpop.f32.mrf.mxu0  ;;  %v2897_v51 = vadd.f32 %v2896_v36, %v14446_v53  ;;  %v3002_v34 = vmax.f32 %v2895_v28, 0.0 }
 0xbe7   : > { %v2898_v47 = vpop.f32.mrf.mxu1  ;;  %v2968_v29 = vadd.f32 %v2967_v55, %v14452_v6  ;;  %v3004_v38 = vmax.f32 %v2966_v44, 0.0 }
 0xbe8   : > { %v2899_v37 = vadd.f32 %v2898_v47, %v14449_v24  ;;  %v2969_v15 = vpop.f32.mrf.mxu0  ;;  %v3003_v27 = vmax.f32 %v2897_v51, 0.0 }
 0xbe9   : > { %v2970_v52 = vadd.f32 %v2969_v15, %v14455_v48  ;;  %v2900_v50 = vpop.f32.mrf.mxu1  ;;  %v3005_v10 = vmax.f32 %v2968_v29, 0.0 }
 0xbea   : > { %v2901_v0 = vadd.f32 %v2900_v50, %v14446_v53  ;;  %v2971_v20 = vpop.f32.mrf.mxu0  ;;  %v3006_v3 = vmax.f32 %v2899_v37, 0.0 }
 0xbeb   : > { %v2972_v2 = vadd.f32 %v2971_v20, %v14452_v6  ;;  %v2904_v16 = vpop.f32.mrf.mxu1  ;;  %v3008_v35 = vmax.f32 %v2970_v52, 0.0 }
 0xbec   : > { %v3007_v12 = vmax.f32 %v2901_v0, 0.0  ;;  %v2975_v41 = vpop.f32.mrf.mxu0  ;;  %v3030_v59 = vpack.c.bf16 %v3006_v3, %v3002_v34  ;;  %v2905_v58 = vadd.f32 %v2904_v16, %v14449_v24 }
 0xbed   : > { %v3009_v1 = vmax.f32 %v2972_v2, 0.0  ;;  %v2906_v11 = vpop.f32.mrf.mxu1  ;;  %v3032_v7 = vpack.c.bf16 %v3008_v35, %v3004_v38  ;;  %v2976_v36 = vadd.f32 %v2975_v41, %v14455_v48 }
 0xbee   : > { %v2977_v14 = vpop.f32.mrf.mxu0  ;;  %v3031_v23 = vpack.c.bf16 %v3007_v12, %v3003_v27  ;;  %v2907_v31 = vadd.f32 %v2906_v11, %v14446_v53  ;;  %v3010_v44 = vmax.f32 %v2905_v58, 0.0 }
 0xbef   : > { %v2908_v5 = vpop.f32.mrf.mxu1  ;;  %v3033_v63 = vpack.c.bf16 %v3009_v1, %v3005_v10  ;;  %v2978_v62 = vadd.f32 %v2977_v14, %v14452_v6  ;;  %v3012_v2 = vmax.f32 %v2976_v36, 0.0 }
 0xbf0   : > { %v2909_v32 = vadd.f32 %v2908_v5, %v14449_v24  ;;  %v2979_v21 = vpop.f32.mrf.mxu0  ;;  %3334 = vmatprep.mubr.bf16.mxu1 %v3031_v23  ;;  %v3011_v28 = vmax.f32 %v2907_v31, 0.0 }
 0xbf1   : > { %v2980_v26 = vadd.f32 %v2979_v21, %v14455_v48  ;;  %3398 = vmatprep.mubr.bf16.mxu0 %v3033_v63  ;;  %v2910_v22 = vpop.f32.mrf.mxu1  ;;  %3335 = vmatmul.mubr.bf16.vlgmr.msra.gmra.mxu1 %v3030_v59  ;;  %v3013_v0 = vmax.f32 %v2978_v62, 0.0 }
 0xbf2   : > { %v2911_v55 = vadd.f32 %v2910_v22, %v14446_v53  ;;  %v2981_v47 = vpop.f32.mrf.mxu0  ;;  %3399 = vmatmul.mubr.bf16.vlgmr.msra.gmra.mxu0 %v3032_v7  ;;  %3498 = vmatpush1.bf16.msra.mxu1 %v10416_v33  ;;  %v3014_v51 = vmax.f32 %v2909_v32, 0.0 }
 0xbf3   : > { %v2982_v37 = vadd.f32 %v2981_v47, %v14452_v6  ;;  %3569 = vmatpush1.bf16.msra.mxu0 %v10418_v13  ;;  %v2914_v15 = vpop.f32.mrf.mxu1  ;;  %v3016_v29 = vmax.f32 %v2980_v26, 0.0 }
 0xbf4   : > { %v3015_v52 = vmax.f32 %v2911_v55, 0.0  ;;  %v2985_v50 = vpop.f32.mrf.mxu0  ;;  %v3034_v46 = vpack.c.bf16 %v3014_v51, %v3010_v44  ;;  %v2915_v13 = vadd.f32 %v2914_v15, %v14449_v24 }
 0xbf5   : > { %v3017_v20 = vmax.f32 %v2982_v37, 0.0  ;;  %v2916_v3 = vpop.f32.mrf.mxu1  ;;  %v3036_v35 = vpack.c.bf16 %v3016_v29, %v3012_v2  ;;  %v2986_v1 = vadd.f32 %v2985_v50, %v14455_v48 }
 0xbf6   : > { %v2987_v16 = vpop.f32.mrf.mxu0  ;;  %v3035_v40 = vpack.c.bf16 %v3015_v52, %v3011_v28  ;;  %v2917_v12 = vadd.f32 %v2916_v3, %v14446_v53  ;;  %v3018_v32 = vmax.f32 %v2915_v13, 0.0  ;;  %v12807_v13 = vld [vmem:[%s16774_s13 + $0x360] sm:$0xff]  }
 0xbf7   : > { %v2918_v33 = vpop.f32.mrf.mxu1  ;;  %v3037_v27 = vpack.c.bf16 %v3017_v20, %v3013_v0  ;;  %v2988_v41 = vadd.f32 %v2987_v16, %v14452_v6  ;;  %v3020_v26 = vmax.f32 %v2986_v1, 0.0  ;;  %v12811_v1 = vld [vmem:[%s16774_s13 + $0x358] sm:$0xff]  }
 0xbf8   : > { %v2919_v60 = vadd.f32 %v2918_v33, %v14449_v24  ;;  %v2989_v61 = vpop.f32.mrf.mxu0  ;;  %3342 = vmatprep.mubr.bf16.mxu1 %v3035_v40  ;;  %v3019_v5 = vmax.f32 %v2917_v12, 0.0  ;;  %v12801_v33 = vld [vmem:[%s16774_s13 + $0x330] sm:$0xff]   ;;  %v12804_v12 = vld [vmem:[%s16774_s13 + $0x3e8] sm:$0xff]  }
 0xbf9   : > { %v2990_v34 = vadd.f32 %v2989_v61, %v14455_v48  ;;  %3406 = vmatprep.mubr.bf16.mxu0 %v3037_v27  ;;  %v2920_v10 = vpop.f32.mrf.mxu1  ;;  %3343 = vmatmul.mubr.bf16.gmra.mxu1 %v3034_v46  ;;  %v3021_v21 = vmax.f32 %v2988_v41, 0.0  ;;  %v12800_v46 = vld [vmem:[%s16774_s13 + $0x3f0] sm:$0xff]   ;;  %v12806_v61 = vld [vmem:[%s16774_s13 + $0x3a8] sm:$0xff]   ;;  %v12808_v41 = vld [vmem:[%s16774_s13 + $0x3e0] sm:$0xff]  }
 0xbfa   : > { %v2921_v11 = vadd.f32 %v2920_v10, %v14446_v53  ;;  %v2991_v38 = vpop.f32.mrf.mxu0  ;;  %3407 = vmatmul.mubr.bf16.gmra.mxu0 %v3036_v35  ;;  %v3022_v14 = vmax.f32 %v2919_v60, 0.0  ;;  %v12802_v27 = vld [vmem:[%s16774_s13 + $0x3b0] sm:$0xff]   ;;  %v12803_v35 = vld [vmem:[%s16774_s13 + $0x368] sm:$0xff]   ;;  %v12810_v10 = vld [vmem:[%s16774_s13 + $0x3a0] sm:$0xff]  }
 0xbfb   : > { %v2992_v23 = vadd.f32 %v2991_v38, %v14452_v6  ;;  %v2924_v59 = vpop.f32.mrf.mxu1  ;;  %v3024_v63 = vmax.f32 %v2990_v34, 0.0  ;;  %v12805_v60 = vld [vmem:[%s16774_s13 + $0x328] sm:$0xff]   ;;  %v12809_v34 = vld [vmem:[%s16774_s13 + $0x320] sm:$0xff]   ;;  %v12813_v38 = vld [vmem:[%s16774_s13 + $0x318] sm:$0xff]  }
 0xbfc   : > { %v3023_v7 = vmax.f32 %v2921_v11, 0.0  ;;  %v2995_v31 = vpop.f32.mrf.mxu0  ;;  %v3038_v47 = vpack.c.bf16 %v3022_v14, %v3018_v32  ;;  %v2925_v51 = vadd.f32 %v2924_v59, %v14449_v24  ;;  %v12812_v11 = vld [vmem:[%s16774_s13 + $0x3d8] sm:$0xff]   ;;  %v12816_v59 = vld [vmem:[%s16774_s13 + $0x3d0] sm:$0xff]   ;;  %v12821_v32 = vld [vmem:[%s16774_s13 + $0x308] sm:$0xff]  }
 0xbfd   : > { %v3025_v58 = vmax.f32 %v2992_v23, 0.0  ;;  %v2926_v62 = vpop.f32.mrf.mxu1  ;;  %v3040_v29 = vpack.c.bf16 %v3024_v63, %v3020_v26  ;;  %v2996_v52 = vadd.f32 %v2995_v31, %v14455_v48  ;;  %v12798_v48 = vld [vmem:[%s16774_s13 + $0x3b8] sm:$0xff]   ;;  %v12815_v23 = vld [vmem:[%s16774_s13 + $0x350] sm:$0xff]   ;;  %v12820_v31 = vld [vmem:[%s16774_s13 + $0x3c8] sm:$0xff]  }
 0xbfe   : > { %v2927_v22 = vadd.f32 %v2926_v62, %v14446_v53  ;;  %v2997_v36 = vpop.f32.mrf.mxu0  ;;  %v3039_v55 = vpack.c.bf16 %v3023_v7, %v3019_v5  ;;  %v3026_v2 = vmax.f32 %v2925_v51, 0.0  ;;  %v12814_v14 = vld [vmem:[%s16774_s13 + $0x398] sm:$0xff]   ;;  %v12817_v5 = vld [vmem:[%s16774_s13 + $0x310] sm:$0xff]   ;;  %v12819_v7 = vld [vmem:[%s16774_s13 + $0x348] sm:$0xff]  }
 0xbff   : > { %v2998_v37 = vadd.f32 %v2997_v36, %v14452_v6  ;;  %v2928_v15 = vpop.f32.mrf.mxu1  ;;  %v3041_v28 = vpack.c.bf16 %v3025_v58, %v3021_v21  ;;  %v3028_v24 = vmax.f32 %v2996_v52, 0.0  ;;  %v12818_v63 = vld [vmem:[%s16774_s13 + $0x390] sm:$0xff]   ;;  %v12822_v21 = vld [vmem:[%s16774_s13 + $0x388] sm:$0xff]   ;;  %v12823_v58 = vld [vmem:[%s16774_s13 + $0x340] sm:$0xff]  }
 0xc00   : > { %v3027_v50 = vmax.f32 %v2927_v22, 0.0  ;;  %v2999_v44 = vpop.f32.mrf.mxu0  ;;  %3350 = vmatprep.mubr.bf16.mxu1 %v3039_v55  ;;  %v3042_v6 = vpack.c.bf16 %v3026_v2, %v3026_v2  ;;  %v12824_v62 = vld [vmem:[%s16774_s13 + $0x3c0] sm:$0xff]  }
 0xc01   : > { %v3029_v0 = vmax.f32 %v2998_v37, 0.0  ;;  %3414 = vmatprep.mubr.bf16.mxu0 %v3041_v28  ;;  %v2929_v20 = vpop.f32.mrf.mxu1  ;;  %3351 = vmatmul.mubr.bf16.gmra.mxu1 %v3038_v47  ;;  %v3044_v40 = vpack.c.bf16 %v3028_v24, %v3028_v24  ;;  %v12825_v26 = vld [vmem:[%s16774_s13 + $0x300] sm:$0xff]  }
 0xc02   : > { %v3043_v53 = vpack.c.bf16 %v3027_v50, %v3027_v50  ;;  %v3000_v3 = vpop.f32.mrf.mxu0  ;;  %3415 = vmatmul.mubr.bf16.gmra.mxu0 %v3040_v29  ;;  %v12826_v22 = vld [vmem:[%s16774_s13 + $0x380] sm:$0xff]  }
 0xc03   : > { %v3045_v16 = vpack.c.bf16 %v3029_v0, %v3029_v0 }
 0xc04   : > { %3358 = vmatprep.mubr.bf16.mxu1 %v3043_v53 }
 0xc05   : > { %3422 = vmatprep.mubr.bf16.mxu0 %v3045_v16 }
 0xc09   : > { %3359 = vmatmul.mubr.bf16.gmra.mxu1 %v3042_v6 }
 0xc0a   : > { %3423 = vmatmul.mubr.bf16.gmra.mxu0 %v3044_v40  ;;  %3515 = vmatprep.mubr.bf16.mxu1 %v16853_v9 }
 0xc0b   : > { %3586 = vmatprep.mubr.bf16.mxu0 %v16853_v9 }
 0xc11   : > { %10420 = vmatmul.mubr.msk.bf16.vlgmr.msra.gmra.mxu1 %vm566_vm0, %v13830_v45 }
 0xc12   : > { %10424 = vmatmul.mubr.msk.bf16.vlgmr.msra.gmra.mxu0 %vm566_vm0, %v13830_v45  ;;  %3525 = vmatprep.mubr.bf16.mxu1 %v16853_v9  ;;  %v12795_v45 = vld [vmem:[%s16774_s13 + $0x378] sm:$0xff]  }
 0xc13   : > { %3596 = vmatprep.mubr.bf16.mxu0 %v16853_v9  ;;  %11702 = vmatprep.subr.bf16.mxu1 %v12795_v45 }
 0xc19   : > { %10421 = vmatmul.mubr.msk.bf16.gmra.mxu1 %vm566_vm0, %v13846_v49 }
 0xc1a   : > { %10425 = vmatmul.mubr.msk.bf16.gmra.mxu0 %vm566_vm0, %v13846_v49  ;;  %3535 = vmatprep.mubr.bf16.mxu1 %v16853_v9  ;;  %v12796_v49 = vld [vmem:[%s16774_s13 + $0x3f8] sm:$0xff]  }
 0xc1b   : > { %3606 = vmatprep.mubr.bf16.mxu0 %v16853_v9  ;;  %11742 = vmatprep.subr.bf16.mxu0 %v12796_v49 }
 0xc1c   : > { %11743 = vmatpush3.bf16.msra.mxu0 %v12798_v48 }
 0xc1d   : > { %11744 = vmatprep.subr.bf16.mxu0 %v12800_v46 }
 0xc20   : > { %11745 = vmatpush3.bf16.msra.mxu0 %v12802_v27 }
 0xc21   : > { %10422 = vmatmul.mubr.msk.bf16.gmra.mxu1 %vm566_vm0, %v13861_v56  ;;  %11746 = vmatprep.subr.bf16.mxu0 %v12804_v12 }
 0xc22   : > { %10426 = vmatmul.mubr.msk.bf16.gmra.mxu0 %vm566_vm0, %v13861_v56  ;;  %3545 = vmatprep.mubr.bf16.mxu1 %v16853_v9  ;;  %v12797_v56 = vld [vmem:[%s16774_s13 + $0x338] sm:$0xff]  }
 0xc23   : > { %3616 = vmatprep.mubr.bf16.mxu0 %v16853_v9  ;;  %11703 = vmatpush3.bf16.msra.mxu1 %v12797_v56 }
 0xc24   : > { %11747 = vmatpush3.bf16.msra.mxu0 %v12806_v61 }
 0xc25   : > { %11748 = vmatprep.subr.bf16.mxu0 %v12808_v41 }
 0xc28   : > { %11749 = vmatpush3.bf16.msra.mxu0 %v12810_v10 }
 0xc29   : > { %10423 = vmatmul.mubr.msk.bf16.gmra.mxu1 %vm566_vm0, %v13873_v4  ;;  %11750 = vmatprep.subr.bf16.mxu0 %v12812_v11 }
 0xc2a   : > { %10427 = vmatmul.mubr.msk.bf16.gmra.mxu0 %vm566_vm0, %v13873_v4  ;;  %v12799_v4 = vld [vmem:[%s16774_s13 + $0x370] sm:$0xff]  }
 0xc2b   : > { %11704 = vmatprep.subr.bf16.mxu1 %v12799_v4 }
 0xc2c   : > { %11705 = vmatpush3.bf16.msra.mxu1 %v12801_v33  ;;  %11751 = vmatpush3.bf16.msra.mxu0 %v12814_v14 }
 0xc2d   : > { %11706 = vmatprep.subr.bf16.mxu1 %v12803_v35  ;;  %11752 = vmatprep.subr.bf16.mxu0 %v12816_v59 }
 0xc30   : > { %11707 = vmatpush3.bf16.msra.mxu1 %v12805_v60  ;;  %11753 = vmatpush3.bf16.msra.mxu0 %v12818_v63 }
 0xc31   : > { %11708 = vmatprep.subr.bf16.mxu1 %v12807_v13  ;;  %11754 = vmatprep.subr.bf16.mxu0 %v12820_v31 }
 0xc34   : > { %11709 = vmatpush3.bf16.msra.mxu1 %v12809_v34  ;;  %11755 = vmatpush3.bf16.msra.mxu0 %v12822_v21 }
 0xc35   : > { %11710 = vmatprep.subr.bf16.mxu1 %v12811_v1  ;;  %11756 = vmatprep.subr.bf16.mxu0 %v12824_v62 }
 0xc38   : > { %11711 = vmatpush3.bf16.msra.mxu1 %v12813_v38  ;;  %11757 = vmatpush3.bf16.msra.mxu0 %v12826_v22 }
 0xc39   : > { %11712 = vmatprep.subr.bf16.mxu1 %v12815_v23 }
 0xc3c   : > { %11713 = vmatpush3.bf16.msra.mxu1 %v12817_v5 }
 0xc3d   : > { %11714 = vmatprep.subr.bf16.mxu1 %v12819_v7 }
 0xc40   : > { %11715 = vmatpush3.bf16.msra.mxu1 %v12821_v32 }
 0xc41   : > { %11716 = vmatprep.subr.bf16.mxu1 %v12823_v58 }
 0xc44   : > { %11717 = vmatpush3.bf16.msra.mxu1 %v12825_v26 }
 0xcb1   : > { %v11638_v36 = vpop.f32.mrf.mxu1 }
 0xcb2   : > { %v11678_v55 = vpop.f32.mrf.mxu0 }
 0xcb3   : > { %v11639_v47 = vpop.f32.mrf.mxu1 }
 0xcb4   : > { %v11640_v51 = vadd.f32 %v11639_v47, %v11638_v36  ;;  %v11679_v37 = vpop.f32.mrf.mxu0 }
 0xcb5   : > { %v11680_v15 = vadd.f32 %v11679_v37, %v11678_v55  ;;  %v11641_v28 = vpop.f32.mrf.mxu1 }
 0xcb6   : > { %v11681_v29 = vpop.f32.mrf.mxu0 }
 0xcb7   : > { %v3401_v52 = vadd.f32 %v11680_v15, %v11640_v51  ;;  %v11642_v50 = vpop.f32.mrf.mxu1 }
 0xcb8   : > { %v11643_v44 = vadd.f32 %v11642_v50, %v11641_v28  ;;  %v11682_v0 = vpop.f32.mrf.mxu0 }
 0xcb9   : > { %v14612_v20 = vadd.f32 %v3401_v52, %v14428_v43  ;;  %v11683_v53 = vadd.f32 %v11682_v0, %v11681_v29  ;;  %v11644_v3 = vpop.f32.mrf.mxu1 }
 0xcba   : > { %v11684_v2 = vpop.f32.mrf.mxu0 }
 0xcbb   : > { %v3404_v16 = vadd.f32 %v11683_v53, %v11643_v44  ;;  %v11645_v24 = vpop.f32.mrf.mxu1 }
 0xcbc   : > { %v11646_v6 = vadd.f32 %v11645_v24, %v11644_v3  ;;  %v11685_v40 = vpop.f32.mrf.mxu0 }
 0xcbd   : > { %v14615_v45 = vadd.f32 %v3404_v16, %v14430_v42  ;;  %v11686_v49 = vadd.f32 %v11685_v40, %v11684_v2  ;;  %v11647_v56 = vpop.f32.mrf.mxu1 }
 0xcbe   : > { %v11687_v48 = vpop.f32.mrf.mxu0 }
 0xcbf   : > { %v3409_v4 = vadd.f32 %v11686_v49, %v11646_v6  ;;  %v11648_v46 = vpop.f32.mrf.mxu1 }
 0xcc0   : > { %v11649_v33 = vadd.f32 %v11648_v46, %v11647_v56  ;;  %v11688_v27 = vpop.f32.mrf.mxu0 }
 0xcc1   : > { %v14618_v43 = vadd.f32 %v3409_v4, %v14432_v19  ;;  %v11689_v35 = vadd.f32 %v11688_v27, %v11687_v48  ;;  %v11650_v12 = vpop.f32.mrf.mxu1 }
 0xcc2   : > { %v11690_v60 = vpop.f32.mrf.mxu0 }
 0xcc3   : > { %v3412_v61 = vadd.f32 %v11689_v35, %v11649_v33  ;;  %v11651_v13 = vpop.f32.mrf.mxu1 }
 0xcc4   : > { %v11652_v41 = vadd.f32 %v11651_v13, %v11650_v12  ;;  %v11691_v34 = vpop.f32.mrf.mxu0 }
 0xcc5   : > { %v14621_v42 = vadd.f32 %v3412_v61, %v14434_v30  ;;  %v11692_v10 = vadd.f32 %v11691_v34, %v11690_v60  ;;  %v11653_v1 = vpop.f32.mrf.mxu1 }
 0xcc6   : > { %v11693_v11 = vpop.f32.mrf.mxu0 }
 0xcc7   : > { %v3417_v38 = vadd.f32 %v11692_v10, %v11652_v41  ;;  %v11654_v14 = vpop.f32.mrf.mxu1 }
 0xcc8   : > { %v11655_v23 = vadd.f32 %v11654_v14, %v11653_v1  ;;  %v11694_v59 = vpop.f32.mrf.mxu0 }
 0xcc9   : > { %v14624_v19 = vadd.f32 %v3417_v38, %v14436_v57  ;;  %v11695_v5 = vadd.f32 %v11694_v59, %v11693_v11  ;;  %v11656_v63 = vpop.f32.mrf.mxu1  ;;  %v3441_v57 = vld [vmem:[%s16773_s12 + $0xc] sm:$0xf] }
 0xcca   : > { %v11696_v7 = vpop.f32.mrf.mxu0  ;;  %v14636_v28 = vrot.slane %v3441_v57, %v14084_v17  ;;  %v14642_v52 = vrot.slane %v3441_v57, %v14087_v18  ;;  %v14645_v50 = vrot.slane %v3441_v57, %v16854_v54 }
 0xccb   : > { %v3420_v31 = vadd.f32 %v11695_v5, %v11655_v23  ;;  %v11657_v32 = vpop.f32.mrf.mxu1 }
 0xccc   : > { %v11658_v21 = vadd.f32 %v11657_v32, %v11656_v63  ;;  %v11697_v58 = vpop.f32.mrf.mxu0 }
 0xccd   : > { %v14627_v30 = vadd.f32 %v3420_v31, %v14438_v39  ;;  %v11698_v62 = vadd.f32 %v11697_v58, %v11696_v7  ;;  %v11659_v26 = vpop.f32.mrf.mxu1  ;;  %v14639_v39 = vrot.slane %v3441_v57, %v14009_v8 }
 0xcce   : > { %v11699_v22 = vpop.f32.mrf.mxu0 }
 0xccf   : > { %v3425_v36 = vadd.f32 %v11698_v62, %v11658_v21  ;;  %v11660_v55 = vpop.f32.mrf.mxu1 }
 0xcd0   : > { %v11700_v47 = vpop.f32.mrf.mxu0 }
 0xcd1   : > { %v14633_v51 = vadd.f32 %v3425_v36, %v14440_v25  ;;  %v3517_v37 = vpop.f32.mrf.mxu1 }
 0xcd2   : > { %v3588_v15 = vpop.f32.mrf.mxu0  ;;  %v3518_v2 = vadd.f32 %v3517_v37, %v14639_v39 }
 0xcd3   : > { %v3519_v29 = vpop.f32.mrf.mxu1  ;;  %v3589_v40 = vadd.f32 %v3588_v15, %v14645_v50 }
 0xcd4   : > { %v3590_v44 = vpop.f32.mrf.mxu0  ;;  %v3520_v25 = vadd.f32 %v3519_v29, %v14636_v28  ;;  %v3625_v60 = vmax.f32 %v3518_v2, 0.0 }
 0xcd5   : > { %v3521_v0 = vpop.f32.mrf.mxu1  ;;  %v3591_v16 = vadd.f32 %v3590_v44, %v14642_v52  ;;  %v3627_v34 = vmax.f32 %v3589_v40, 0.0 }
 0xcd6   : > { %v3522_v53 = vadd.f32 %v3521_v0, %v14639_v39  ;;  %v3592_v3 = vpop.f32.mrf.mxu0  ;;  %v3626_v33 = vmax.f32 %v3520_v25, 0.0 }
 0xcd7   : > { %v3593_v24 = vadd.f32 %v3592_v3, %v14645_v50  ;;  %v3523_v6 = vpop.f32.mrf.mxu1  ;;  %v3628_v61 = vmax.f32 %v3591_v16, 0.0 }
 0xcd8   : > { %v3524_v49 = vadd.f32 %v3523_v6, %v14636_v28  ;;  %v3594_v56 = vpop.f32.mrf.mxu0  ;;  %v3629_v48 = vmax.f32 %v3522_v53, 0.0 }
 0xcd9   : > { %v3595_v4 = vadd.f32 %v3594_v56, %v14642_v52  ;;  %v3527_v46 = vpop.f32.mrf.mxu1  ;;  %v3631_v27 = vmax.f32 %v3593_v24, 0.0 }
 0xcda   : > { %v3630_v35 = vmax.f32 %v3524_v49, 0.0  ;;  %v3598_v12 = vpop.f32.mrf.mxu0  ;;  %v3653_v11 = vpack.c.bf16 %v3629_v48, %v3625_v60  ;;  %v3528_v7 = vadd.f32 %v3527_v46, %v14639_v39 }
 0xcdb   : > { %v3632_v13 = vmax.f32 %v3595_v4, 0.0  ;;  %v3529_v41 = vpop.f32.mrf.mxu1  ;;  %v3655_v23 = vpack.c.bf16 %v3631_v27, %v3627_v34  ;;  %v3599_v58 = vadd.f32 %v3598_v12, %v14645_v50 }
 0xcdc   : > { %v3600_v10 = vpop.f32.mrf.mxu0  ;;  %v3654_v1 = vpack.c.bf16 %v3630_v35, %v3626_v33  ;;  %v3530_v59 = vadd.f32 %v3529_v41, %v14636_v28  ;;  %v3633_v29 = vmax.f32 %v3528_v7, 0.0 }
 0xcdd   : > { %v3531_v38 = vpop.f32.mrf.mxu1  ;;  %v3656_v14 = vpack.c.bf16 %v3632_v13, %v3628_v61  ;;  %v3601_v31 = vadd.f32 %v3600_v10, %v14642_v52  ;;  %v3635_v53 = vmax.f32 %v3599_v58, 0.0 }
 0xcde   : > { %v3532_v5 = vadd.f32 %v3531_v38, %v14639_v39  ;;  %v3602_v63 = vpop.f32.mrf.mxu0  ;;  %3957 = vmatprep.mubr.bf16.mxu1 %v3654_v1  ;;  %v3634_v47 = vmax.f32 %v3530_v59, 0.0 }
 0xcdf   : > { %v3603_v32 = vadd.f32 %v3602_v63, %v14645_v50  ;;  %4021 = vmatprep.mubr.bf16.mxu0 %v3656_v14  ;;  %v3533_v21 = vpop.f32.mrf.mxu1  ;;  %3958 = vmatmul.mubr.bf16.vlgmr.msra.gmra.mxu1 %v3653_v11  ;;  %v3636_v44 = vmax.f32 %v3601_v31, 0.0 }
 0xce0   : > { %v3534_v62 = vadd.f32 %v3533_v21, %v14636_v28  ;;  %v3604_v26 = vpop.f32.mrf.mxu0  ;;  %4022 = vmatmul.mubr.bf16.vlgmr.msra.gmra.mxu0 %v3655_v23  ;;  %v3637_v22 = vmax.f32 %v3532_v5, 0.0 }
 0xce1   : > { %v3605_v36 = vadd.f32 %v3604_v26, %v14642_v52  ;;  %v3537_v55 = vpop.f32.mrf.mxu1  ;;  %v3639_v57 = vmax.f32 %v3603_v32, 0.0 }
 0xce2   : > { %v3638_v37 = vmax.f32 %v3534_v62, 0.0  ;;  %v3608_v15 = vpop.f32.mrf.mxu0  ;;  %v3657_v16 = vpack.c.bf16 %v3637_v22, %v3633_v29  ;;  %v3538_v4 = vadd.f32 %v3537_v55, %v14639_v39 }
 0xce3   : > { %v3640_v0 = vmax.f32 %v3605_v36, 0.0  ;;  %v3539_v25 = vpop.f32.mrf.mxu1  ;;  %v3659_v40 = vpack.c.bf16 %v3639_v57, %v3635_v53  ;;  %v3609_v35 = vadd.f32 %v3608_v15, %v14645_v50 }
 0xce4   : > { %v3610_v3 = vpop.f32.mrf.mxu0  ;;  %v3658_v2 = vpack.c.bf16 %v3638_v37, %v3634_v47  ;;  %v3540_v49 = vadd.f32 %v3539_v25, %v14636_v28  ;;  %v3641_v38 = vmax.f32 %v3538_v4, 0.0  ;;  %v14678_v4 = vld [vmem:[%s16775_s14] ss:$0 sm:$0xff] }
 0xce5   : > { %v3541_v24 = vpop.f32.mrf.mxu1  ;;  %v3660_v6 = vpack.c.bf16 %v3640_v0, %v3636_v44  ;;  %v3611_v46 = vadd.f32 %v3610_v3, %v14642_v52  ;;  %v3643_v5 = vmax.f32 %v3609_v35, 0.0 }
 0xce6   : > { %v3542_v56 = vadd.f32 %v3541_v24, %v14639_v39  ;;  %v3612_v48 = vpop.f32.mrf.mxu0  ;;  %3965 = vmatprep.mubr.bf16.mxu1 %v3658_v2  ;;  %v3642_v34 = vmax.f32 %v3540_v49, 0.0 }
 0xce7   : > { %v3613_v33 = vadd.f32 %v3612_v48, %v14645_v50  ;;  %4029 = vmatprep.mubr.bf16.mxu0 %v3660_v6  ;;  %v3543_v27 = vpop.f32.mrf.mxu1  ;;  %3966 = vmatmul.mubr.bf16.gmra.mxu1 %v3657_v16  ;;  %v3644_v14 = vmax.f32 %v3611_v46, 0.0 }
 0xce8   : > { %v3544_v12 = vadd.f32 %v3543_v27, %v14636_v28  ;;  %v3614_v60 = vpop.f32.mrf.mxu0  ;;  %4030 = vmatmul.mubr.bf16.gmra.mxu0 %v3659_v40  ;;  %v3645_v61 = vmax.f32 %v3542_v56, 0.0 }
 0xce9   : > { %v3615_v13 = vadd.f32 %v3614_v60, %v14642_v52  ;;  %v3547_v41 = vpop.f32.mrf.mxu1  ;;  %v3647_v10 = vmax.f32 %v3613_v33, 0.0 }
 0xcea   : > { %v3646_v1 = vmax.f32 %v3544_v12, 0.0  ;;  %v3618_v11 = vpop.f32.mrf.mxu0  ;;  %v3661_v32 = vpack.c.bf16 %v3645_v61, %v3641_v38  ;;  %v3548_v21 = vadd.f32 %v3547_v41, %v14639_v39 }
 0xceb   : > { %v3648_v23 = vmax.f32 %v3615_v13, 0.0  ;;  %v3549_v59 = vpop.f32.mrf.mxu1  ;;  %v3663_v22 = vpack.c.bf16 %v3647_v10, %v3643_v5  ;;  %v3619_v36 = vadd.f32 %v3618_v11, %v14645_v50  ;;  %v16855_v11 = vld [vmem:[#allocation13_spill] sm:$0xff] }
 0xcec   : > { %v3550_v63 = vadd.f32 %v3549_v59, %v14636_v28  ;;  %v3620_v7 = vpop.f32.mrf.mxu0  ;;  %v3662_v31 = vpack.c.bf16 %v3646_v1, %v3642_v34  ;;  %v3649_v29 = vmax.f32 %v3548_v21, 0.0  ;;  %v16856_v21 = vld [vmem:[#allocation14_spill] sm:$0xff] }
 0xced   : > { %v3621_v58 = vadd.f32 %v3620_v7, %v14642_v52  ;;  %v3551_v62 = vpop.f32.mrf.mxu1  ;;  %v3664_v26 = vpack.c.bf16 %v3648_v23, %v3644_v14  ;;  %v3651_v39 = vmax.f32 %v3619_v36, 0.0 }
 0xcee   : > { %v3650_v55 = vmax.f32 %v3550_v63, 0.0  ;;  %v3622_v47 = vpop.f32.mrf.mxu0  ;;  %3973 = vmatprep.mubr.bf16.mxu1 %v3662_v31  ;;  %v3665_v52 = vpack.c.bf16 %v3649_v29, %v3649_v29  ;;  %v16857_v29 = vld [vmem:[#allocation16_spill] sm:$0xff] }
 0xcef   : > { %v3652_v57 = vmax.f32 %v3621_v58, 0.0  ;;  %4037 = vmatprep.mubr.bf16.mxu0 %v3664_v26  ;;  %v3552_v37 = vpop.f32.mrf.mxu1  ;;  %3974 = vmatmul.mubr.bf16.gmra.mxu1 %v3661_v32  ;;  %v3667_v0 = vpack.c.bf16 %v3651_v39, %v3651_v39 }
 0xcf0   : > { %v3666_v28 = vpack.c.bf16 %v3650_v55, %v3650_v55  ;;  %v3623_v15 = vpop.f32.mrf.mxu0  ;;  %4038 = vmatmul.mubr.bf16.gmra.mxu0 %v3663_v22 }
 0xcf1   : > { %v3668_v44 = vpack.c.bf16 %v3652_v57, %v3652_v57 }
 0xcf2   : > { %3981 = vmatprep.mubr.bf16.mxu1 %v3666_v28 }
 0xcf3   : > { %4045 = vmatprep.mubr.bf16.mxu0 %v3668_v44 }
 0xcf7   : > { %3982 = vmatmul.mubr.bf16.gmra.mxu1 %v3665_v52 }
 0xcf8   : > { %4046 = vmatmul.mubr.bf16.gmra.mxu0 %v3667_v0 }
 0xd9f   : > { %v11718_v50 = vpop.f32.mrf.mxu1 }
 0xda0   : > { %v11758_v25 = vpop.f32.mrf.mxu0 }
 0xda1   : > { %v11719_v53 = vpop.f32.mrf.mxu1 }
 0xda2   : > { %v11720_v3 = vadd.f32 %v11719_v53, %v11718_v50  ;;  %v11759_v2 = vpop.f32.mrf.mxu0 }
 0xda3   : > { %v11760_v16 = vadd.f32 %v11759_v2, %v11758_v25  ;;  %v11721_v24 = vpop.f32.mrf.mxu1 }
 0xda4   : > { %v11761_v6 = vpop.f32.mrf.mxu0 }
 0xda5   : > { %v4024_v40 = vadd.f32 %v11760_v16, %v11720_v3  ;;  %v11722_v49 = vpop.f32.mrf.mxu1 }
 0xda6   : > { %v11723_v56 = vadd.f32 %v11722_v49, %v11721_v24  ;;  %v11762_v48 = vpop.f32.mrf.mxu0  ;;  %v16858_v24 = vld [vmem:[#allocation15_spill] sm:$0xff] }
 0xda7   : > { %v4053_v46 = vadd.f32 %v4024_v40, %v14612_v20  ;;  %v11763_v33 = vadd.f32 %v11762_v48, %v11761_v6  ;;  %v11724_v27 = vpop.f32.mrf.mxu1 }
 0xda8   : > { %v11764_v35 = vpop.f32.mrf.mxu0 }
 0xda9   : > { %v4027_v12 = vadd.f32 %v11763_v33, %v11723_v56  ;;  %v11725_v60 = vpop.f32.mrf.mxu1  ;;  %v4067_v61 = vadd.f32 %v14678_v4, %v4053_v46 }
 0xdaa   : > { %v11726_v13 = vadd.f32 %v11725_v60, %v11724_v27  ;;  %v11765_v41 = vpop.f32.mrf.mxu0  ;;  %v16859_v60 = vld [vmem:[#allocation18_spill] sm:$0xff] }
 0xdab   : > { %v4054_v34 = vadd.f32 %v4027_v12, %v14615_v45  ;;  %v11766_v10 = vadd.f32 %v11765_v41, %v11764_v35  ;;  %v11727_v1 = vpop.f32.mrf.mxu1  ;;  %v14684_v38 = vadd.f32 %v4067_v61, %v16855_v11 }
 0xdac   : > { %v11767_v14 = vpop.f32.mrf.mxu0 }
 0xdad   : > { %v4032_v23 = vadd.f32 %v11766_v10, %v11726_v13  ;;  %v11728_v59 = vpop.f32.mrf.mxu1  ;;  %v4083_v20 = vsel %vm566_vm0, %v14684_v38, 0.0  ;;  %v4068_v5 = vadd.f32 %v14678_v4, %v4054_v34 }
 0xdae   : > { %v11729_v63 = vadd.f32 %v11728_v59, %v11727_v1  ;;  %v11768_v7 = vpop.f32.mrf.mxu0  ;;  %4084 = vadd.xlane.f32.xlu1 %v4083_v20  ;;  %v16861_v20 = vld [vmem:[#allocation19_spill] sm:$0xff] }
 0xdaf   : > { %v4055_v31 = vadd.f32 %v4032_v23, %v14618_v43  ;;  %v11769_v32 = vadd.f32 %v11768_v7, %v11767_v14  ;;  %v11730_v45 = vpop.f32.mrf.mxu1  ;;  %v4075_v58 = vadd.f32 %v4068_v5, %v16856_v21  ;;  %v16860_v14 = vld [vmem:[#allocation17_spill] sm:$0xff] }
 0xdb0   : > { %v11770_v62 = vpop.f32.mrf.mxu0 }
 0xdb1   : > { %v4035_v26 = vadd.f32 %v11769_v32, %v11729_v63  ;;  %v11731_v22 = vpop.f32.mrf.mxu1  ;;  %v4086_v36 = vsel %vm566_vm0, %v4075_v58, 0.0  ;;  %v4069_v55 = vadd.f32 %v14678_v4, %v4055_v31 }
 0xdb2   : > { %v11732_v47 = vadd.f32 %v11731_v22, %v11730_v45  ;;  %v11771_v57 = vpop.f32.mrf.mxu0  ;;  %4087 = vadd.xlane.f32.xlu0 %v4086_v36 }
 0xdb3   : > { %v4056_v37 = vadd.f32 %v4035_v26, %v14621_v42  ;;  %v11772_v28 = vadd.f32 %v11771_v57, %v11770_v62  ;;  %v11733_v15 = vpop.f32.mrf.mxu1  ;;  %v4076_v43 = vadd.f32 %v4069_v55, %v16857_v29 }
 0xdb4   : > { %v11773_v44 = vpop.f32.mrf.mxu0 }
 0xdb5   : > { %v4040_v39 = vadd.f32 %v11772_v28, %v11732_v47  ;;  %v11734_v52 = vpop.f32.mrf.mxu1  ;;  %v4089_v0 = vsel %vm566_vm0, %v4076_v43, 0.0  ;;  %v4070_v50 = vadd.f32 %v14678_v4, %v4056_v37 }
 0xdb6   : > { %v11735_v25 = vadd.f32 %v11734_v52, %v11733_v15  ;;  %v11774_v53 = vpop.f32.mrf.mxu0  ;;  %4090 = vadd.xlane.f32.xlu1 %v4089_v0 }
 0xdb7   : > { %v4057_v3 = vadd.f32 %v4040_v39, %v14624_v19  ;;  %v11775_v2 = vadd.f32 %v11774_v53, %v11773_v44  ;;  %v11736_v16 = vpop.f32.mrf.mxu1  ;;  %v4077_v42 = vadd.f32 %v4070_v50, %v16858_v24 }
 0xdb8   : > { %v11776_v6 = vpop.f32.mrf.mxu0 }
 0xdb9   : > { %v4043_v40 = vadd.f32 %v11775_v2, %v11735_v25  ;;  %v11737_v49 = vpop.f32.mrf.mxu1  ;;  %v4092_v56 = vsel %vm566_vm0, %v4077_v42, 0.0  ;;  %v4071_v48 = vadd.f32 %v14678_v4, %v4057_v3 }
 0xdba   : > { %v11738_v46 = vadd.f32 %v11737_v49, %v11736_v16  ;;  %v11777_v33 = vpop.f32.mrf.mxu0  ;;  %4093 = vadd.xlane.f32.xlu0 %v4092_v56  ;;  %v12827_v49 = vld [vmem:[%s16764_s3 + $0x8] sm:$0xff]  }
 0xdbb   : > { %v4058_v27 = vadd.f32 %v4043_v40, %v14627_v30  ;;  %v11778_v35 = vadd.f32 %v11777_v33, %v11776_v6  ;;  %v11739_v12 = vpop.f32.mrf.mxu1  ;;  %v4078_v19 = vadd.f32 %v4071_v48, %v16859_v60  ;;  %12443 = vmatprep.subr.bf16.mxu1 %v12827_v49 }
 0xdbc   : > { %v11779_v61 = vpop.f32.mrf.mxu0  ;;  %12444 = vmatpush3.bf16.msra.mxu1 %v12827_v49  ;;  %v10466_v49 = vld [vmem:[%s16765_s4 + $0x1] ss:$0 sm:$0xff] }
 0xdbd   : > { %v4048_v13 = vadd.f32 %v11778_v35, %v11738_v46  ;;  %v11740_v41 = vpop.f32.mrf.mxu1  ;;  %v4095_v34 = vsel %vm566_vm0, %v4078_v19, 0.0  ;;  %v4072_v10 = vadd.f32 %v14678_v4, %v4058_v27 }
 0xdbe   : > { %v11780_v1 = vpop.f32.mrf.mxu0  ;;  %4096 = vadd.xlane.f32.xlu1 %v4095_v34 }
 0xdbf   : > { %v4059_v11 = vadd.f32 %v4048_v13, %v14633_v51  ;;  %v4079_v23 = vadd.f32 %v4072_v10, %v16860_v14 }
 0xdc1   : > { %v4098_v59 = vsel %vm566_vm0, %v4079_v23, 0.0  ;;  %v4073_v30 = vadd.f32 %v14678_v4, %v4059_v11 }
 0xdc2   : > { %4099 = vadd.xlane.f32.xlu0 %v4098_v59 }
 0xdc3   : > { %v4080_v5 = vadd.f32 %v4073_v30, %v16861_v20 }
 0xdc5   : > { %v4101_v63 = vsel %vm566_vm0, %v4080_v5, 0.0 }
 0xdc6   : > { %4102 = vadd.xlane.f32.xlu1 %v4101_v63 }
 0xe37   : > { %v4085_v7 = vpop.xlane.xlu1 %4084 }
 0xe38   : > { %v4104_v31 = vmul.f32 0.0625, %v4085_v7 }
 0xe3a   : > { %v14712_v32 = vsub.f32 %v14684_v38, %v4104_v31  ;;  %v10462_v31 = vld [vmem:[%s16771_s10] ss:$0 sm:$0xff] }
 0xe3b   : > { %v4088_v45 = vpop.xlane.xlu0 %4087 }
 0xe3c   : > { %v4105_v21 = vmul.f32 0.0625, %v4088_v45  ;;  %v4118_v51 = vmul.f32 %v14712_v32, %v14712_v32 }
 0xe3e   : > { %v14716_v62 = vsub.f32 %v4075_v58, %v4105_v21  ;;  %v4125_v4 = vsel %vm566_vm0, %v4118_v51, 0.0 }
 0xe3f   : > { %4126 = vadd.xlane.f32.xlu0 %v4125_v4  ;;  %v4091_v26 = vpop.xlane.xlu1 %4090 }
 0xe40   : > { %v4106_v22 = vmul.f32 0.0625, %v4091_v26  ;;  %v4119_v36 = vmul.f32 %v14716_v62, %v14716_v62 }
 0xe42   : > { %v14721_v55 = vsub.f32 %v4076_v43, %v4106_v22  ;;  %v4128_v38 = vsel %vm566_vm0, %v4119_v36, 0.0 }
 0xe43   : > { %v4094_v47 = vpop.xlane.xlu0 %4093  ;;  %4129 = vadd.xlane.f32.xlu1 %v4128_v38 }
 0xe44   : > { %v4107_v57 = vmul.f32 0.0625, %v4094_v47  ;;  %v4120_v37 = vmul.f32 %v14721_v55, %v14721_v55 }
 0xe46   : > { %v14726_v58 = vsub.f32 %v4077_v42, %v4107_v57  ;;  %v4131_v28 = vsel %vm566_vm0, %v4120_v37, 0.0 }
 0xe47   : > { %4132 = vadd.xlane.f32.xlu0 %v4131_v28  ;;  %v4097_v15 = vpop.xlane.xlu1 %4096 }
 0xe48   : > { %v4108_v29 = vmul.f32 0.0625, %v4097_v15  ;;  %v4121_v44 = vmul.f32 %v14726_v58, %v14726_v58 }
 0xe4a   : > { %v14731_v43 = vsub.f32 %v4078_v19, %v4108_v29  ;;  %v4134_v39 = vsel %vm566_vm0, %v4121_v44, 0.0 }
 0xe4b   : > { %v4100_v52 = vpop.xlane.xlu0 %4099  ;;  %4135 = vadd.xlane.f32.xlu1 %v4134_v39 }
 0xe4c   : > { %v4109_v0 = vmul.f32 0.0625, %v4100_v52  ;;  %v4122_v50 = vmul.f32 %v14731_v43, %v14731_v43 }
 0xe4e   : > { %v14736_v25 = vsub.f32 %v4079_v23, %v4109_v0  ;;  %v4137_v53 = vsel %vm566_vm0, %v4122_v50, 0.0  ;;  %v10461_v23 = vld [vmem:[%s16770_s9] ss:$0 sm:$0xff] }
 0xe4f   : > { %4138 = vadd.xlane.f32.xlu0 %v4137_v53  ;;  %v4103_v3 = vpop.xlane.xlu1 %4102 }
 0xe50   : > { %v4110_v2 = vmul.f32 0.0625, %v4103_v3  ;;  %v4123_v16 = vmul.f32 %v14736_v25, %v14736_v25 }
 0xe52   : > { %v14741_v24 = vsub.f32 %v4080_v5, %v4110_v2  ;;  %v4140_v42 = vsel %vm566_vm0, %v4123_v16, 0.0 }
 0xe53   : > { %4141 = vadd.xlane.f32.xlu1 %v4140_v42 }
 0xe54   : > { %v4124_v6 = vmul.f32 %v14741_v24, %v14741_v24 }
 0xe56   : > { %v4143_v40 = vsel %vm566_vm0, %v4124_v6, 0.0 }
 0xe57   : > { %4144 = vadd.xlane.f32.xlu0 %v4143_v40 }
 0xec8   : > { %v4127_v56 = vpop.xlane.xlu0 %4126 }
 0xec9   : > { %v4146_v48 = vmul.f32 0.0625, %v4127_v56 }
 0xecb   : > { %v4153_v46 = vadd.f32 1e-05, %v4146_v48 }
 0xecc   : > { %v4130_v33 = vpop.xlane.xlu1 %4129 }
 0xecd   : > { %13158 = vrsqrt.f32 %v4153_v46  ;;  %v4147_v27 = vmul.f32 0.0625, %v4130_v33 }
 0xecf   : > { %v4154_v35 = vadd.f32 1e-05, %v4147_v27 }
 0xed0   : > { %v4133_v12 = vpop.xlane.xlu0 %4132 }
 0xed1   : > { %13160 = vrsqrt.f32 %v4154_v35  ;;  %v4148_v60 = vmul.f32 0.0625, %v4133_v12 }
 0xed3   : > { %v4155_v19 = vadd.f32 1e-05, %v4148_v60 }
 0xed4   : > { %v4136_v61 = vpop.xlane.xlu1 %4135 }
 0xed5   : > { %13162 = vrsqrt.f32 %v4155_v19  ;;  %v4149_v13 = vmul.f32 0.0625, %v4136_v61 }
 0xed7   : > { %v4156_v41 = vadd.f32 1e-05, %v4149_v13 }
 0xed8   : > { %v4139_v34 = vpop.xlane.xlu0 %4138 }
 0xed9   : > { %13164 = vrsqrt.f32 %v4156_v41  ;;  %v4150_v10 = vmul.f32 0.0625, %v4139_v34 }
 0xeda   : > { %v13159_v1 = vpop.eup %13158 }
 0xedb   : > { %v4157_v11 = vadd.f32 1e-05, %v4150_v10  ;;  %v4167_v14 = vmul.f32 %v13159_v1, %v14712_v32 }
 0xedc   : > { %v4142_v59 = vpop.xlane.xlu1 %4141 }
 0xedd   : > { %13166 = vrsqrt.f32 %v4157_v11  ;;  %v4151_v30 = vmul.f32 0.0625, %v4142_v59  ;;  %v4180_v7 = vmul.f32 %v10461_v23, %v4167_v14 }
 0xede   : > { %v13161_v20 = vpop.eup %13160 }
 0xedf   : > { %v4158_v5 = vadd.f32 1e-05, %v4151_v30  ;;  %v4168_v63 = vmul.f32 %v13161_v20, %v14716_v62  ;;  %v14759_v22 = vadd.f32 %v10462_v31, %v4180_v7 }
 0xee0   : > { %v4145_v45 = vpop.xlane.xlu0 %4144 }
 0xee1   : > { %13168 = vrsqrt.f32 %v4158_v5  ;;  %v4152_v21 = vmul.f32 0.0625, %v4145_v45  ;;  %v4181_v32 = vmul.f32 %v10461_v23, %v4168_v63 }
 0xee2   : > { %v13163_v51 = vpop.eup %13162 }
 0xee3   : > { %v4169_v4 = vmul.f32 %v13163_v51, %v14721_v55  ;;  %v4159_v26 = vadd.f32 1e-05, %v4152_v21  ;;  %v14761_v36 = vadd.f32 %v10462_v31, %v4181_v32 }
 0xee5   : > { %13170 = vrsqrt.f32 %v4159_v26  ;;  %v4200_v62 = vpack.c.bf16 %v14761_v36, %v14759_v22  ;;  %v4182_v47 = vmul.f32 %v10461_v23, %v4169_v4 }
 0xee6   : > { %v13165_v38 = vpop.eup %13164 }
 0xee7   : > { %v4170_v57 = vmul.f32 %v13165_v38, %v14726_v58  ;;  %12445 = vmatprep.mubr.msk.bf16.mxu1 %vm566_vm0, %v4200_v62  ;;  %v14767_v15 = vadd.f32 %v10462_v31, %v4182_v47 }
 0xee9   : > { %v4183_v37 = vmul.f32 %v10461_v23, %v4170_v57 }
 0xeea   : > { %v13167_v28 = vpop.eup %13166 }
 0xeeb   : > { %v14769_v55 = vadd.f32 %v10462_v31, %v4183_v37  ;;  %v4171_v29 = vmul.f32 %v13167_v28, %v14731_v43 }
 0xeed   : > { %v4201_v44 = vpack.c.bf16 %v14769_v55, %v14767_v15  ;;  %v4184_v0 = vmul.f32 %v10461_v23, %v4171_v29 }
 0xeee   : > { %v13169_v39 = vpop.eup %13168 }
 0xeef   : > { %12446 = vmatmul.mubr.msk.bf16.vlgmr.msra.gmra.mxu1 %vm566_vm0, %v4201_v44  ;;  %v4172_v52 = vmul.f32 %v13169_v39, %v14736_v25  ;;  %v14777_v3 = vadd.f32 %v10462_v31, %v4184_v0  ;;  %v16866_v0 = vld [vmem:[#allocation12_spill] sm:$0xff] }
 0xef1   : > { %v4185_v58 = vmul.f32 %v10461_v23, %v4172_v52 }
 0xef2   : > { %v13171_v50 = vpop.eup %13170 }
 0xef3   : > { %v4173_v53 = vmul.f32 %v13171_v50, %v14741_v24  ;;  %v14779_v2 = vadd.f32 %v10462_v31, %v4185_v58 }
 0xef5   : > { %v4202_v43 = vpack.c.bf16 %v14779_v2, %v14777_v3  ;;  %v4186_v16 = vmul.f32 %v10461_v23, %v4173_v53 }
 0xef7   : > { %12449 = vmatprep.mubr.msk.bf16.mxu1 %vm566_vm0, %v4202_v43  ;;  %v14784_v42 = vadd.f32 %v10462_v31, %v4186_v16 }
 0xef9   : > { %v4203_v25 = vpack.c.bf16 %v14784_v42, %v14784_v42 }
 0xefb   : > { %12450 = vmatmul.mubr.msk.bf16.gmra.mxu1 %vm566_vm0, %v4203_v25 }
 0xfaf   : > { %v12447_v6 = vpop.f32.mrf.mxu1 }
 0xfb0   : > { %v4276_v13 = vadd.f32 %v12447_v6, %v10466_v49 }
 0xfb1   : > { %v4267_v40 = vpop.f32.mrf.mxu1 }
 0xfb2   : > { %v4268_v48 = vadd.f32 %v10466_v49, %v4267_v40 }
 0xfb3   : > { %v12448_v24 = vpop.f32.mrf.mxu1 }
 0xfb4   : > { %v4279_v60 = vadd.f32 %v12448_v24, %v10466_v49 }
 0xfb5   : > { %v4270_v56 = vpop.f32.mrf.mxu1 }
 0xfb6   : > { %v4271_v46 = vadd.f32 %v10466_v49, %v4270_v56  ;;  %v14800_v34 = vpack.c.bf16 %v4279_v60, %v4276_v13 }
 0xfb8   : > { %v14792_v33 = vpack.c.bf16 %v4271_v46, %v4268_v48 }
 0xfba   : > { %12461 = vmatprep.mubr.msk.bf16.mxu0 %vm772_vm1, %v14792_v33 }
 0xfbb   : > { %v12451_v27 = vpop.f32.mrf.mxu1 }
 0xfbc   : > { %v4292_v35 = vadd.f32 %v12451_v27, %v10466_v49 }
 0xfbd   : > { %v4283_v12 = vpop.f32.mrf.mxu1 }
 0xfbe   : > { %v14796_v19 = vpack.c.bf16 %v4292_v35, %v4292_v35  ;;  %v4284_v10 = vadd.f32 %v10466_v49, %v4283_v12 }
 0xfbf   : > { %v12452_v61 = vpop.f32.mrf.mxu1 }
 0xfc0   : > { %4311 = vrot.lane.b32.xlu1 %v14796_v19, %s16862_s18 }
 0xfc1   : > { %v4286_v41 = vpop.f32.mrf.mxu1 }
 0xfc2   : > { %v4287_v1 = vadd.f32 %v10466_v49, %v4286_v41 }
 0xfc4   : > { %v14802_v11 = vpack.c.bf16 %v4287_v1, %v4284_v10  ;;  %4307 = vrot.lane.b32.xlu1 %v14800_v34, %s16862_s18 }
 0xfc6   : > { %4309 = vrot.lane.b32.xlu0 %v14802_v11, %s16862_s18 }
 0xfc8   : > { %4305 = vrot.lane.b32.xlu1 %v14792_v33, %s16862_s18 }
 0xfca   : > { %4586 = vrot.lane.b32.xlu0 %v14796_v19, %s16863_s19 }
 0xfcc   : > { %4584 = vrot.lane.b32.xlu1 %v14802_v11, %s16863_s19 }
 0xfce   : > { %4582 = vrot.lane.b32.xlu0 %v14800_v34, %s16863_s19 }
 0xfd0   : > { %4580 = vrot.lane.b32.xlu1 %v14792_v33, %s16863_s19 }
 0xfd2   : > { %4572 = vrot.lane.b32.xlu0 %v14792_v33, %s16864_s23 }
 0xfd4   : > { %4574 = vrot.lane.b32.xlu1 %v14800_v34, %s16864_s23 }
 0xfd6   : > { %4576 = vrot.lane.b32.xlu0 %v14802_v11, %s16864_s23 }
 0xfd8   : > { %4578 = vrot.lane.b32.xlu1 %v14796_v19, %s16864_s23 }
 0xfda   : > { %4488 = vrot.lane.b32.xlu0 %v14796_v19, %s16865_s29 }
 0xfdc   : > { %4486 = vrot.lane.b32.xlu1 %v14802_v11, %s16865_s29 }
 0xfde   : > { %4484 = vrot.lane.b32.xlu0 %v14800_v34, %s16865_s29 }
0x1032   : > { %v4312_v14 = vpop.permute.xlu1 %4311 }
0x1033   : > { %12607 = vmatprep.subr.msk.bf16.mxu0 %vm772_vm1, %v4312_v14  ;;  %v4335_v23 = vsel %vm772_vm1, %v4312_v14, 0 }
0x1034   : > { %12454 = vmatpush3.bf16.xpose.msra.mxu0 %v4335_v23 }
0x1036   : > { %v4308_v59 = vpop.permute.xlu1 %4307 }
0x1037   : > { %v4329_v21 = vsel %vm772_vm1, %v4308_v59, 0 }
0x1038   : > { %v4310_v30 = vpop.permute.xlu0 %4309 }
0x1039   : > { %12608 = vmatprep.subr.msk.bf16.mxu0 %vm772_vm1, %v4310_v30  ;;  %v4332_v5 = vsel %vm772_vm1, %v4310_v30, 0 }
0x103a   : > { %v4306_v20 = vpop.permute.xlu1 %4305 }
0x103b   : > { %v4326_v62 = vsel %vm772_vm1, %v4306_v20, 0 }
0x103c   : > { %12456 = vmatpush3.bf16.xpose.msra.mxu0 %v4332_v5  ;;  %v4587_v63 = vpop.permute.xlu0 %4586 }
0x103d   : > { %12609 = vmatprep.subr.msk.bf16.mxu0 %vm772_vm1, %v4308_v59  ;;  %v4610_v28 = vsel %vm772_vm1, %v4587_v63, 0 }
0x103e   : > { %v4585_v7 = vpop.permute.xlu1 %4584 }
0x103f   : > { %v4607_v29 = vsel %vm772_vm1, %v4585_v7, 0 }
0x1040   : > { %v4583_v31 = vpop.permute.xlu0 %4582 }
0x1041   : > { %v4604_v44 = vsel %vm772_vm1, %v4583_v31, 0 }
0x1042   : > { %v4581_v45 = vpop.permute.xlu1 %4580 }
0x1043   : > { %v4601_v39 = vsel %vm772_vm1, %v4581_v45, 0 }
0x1044   : > { %12458 = vmatpush3.bf16.xpose.msra.mxu0 %v4329_v21  ;;  %v4573_v32 = vpop.permute.xlu0 %4572 }
0x1045   : > { %12610 = vmatprep.subr.msk.bf16.mxu0 %vm772_vm1, %v4306_v20 }
0x1046   : > { %v4575_v51 = vpop.permute.xlu1 %4574 }
0x1048   : > { %v4577_v4 = vpop.permute.xlu0 %4576 }
0x104a   : > { %v4579_v26 = vpop.permute.xlu1 %4578 }
0x104c   : > { %12460 = vmatpush3.bf16.xpose.msra.mxu0 %v4326_v62  ;;  %v4489_v38 = vpop.permute.xlu0 %4488 }
0x104d   : > { %v4506_v47 = vsel %vm966_vm4, %v4489_v38, 0  ;;  %12611 = vmatprep.subr.msk.bf16.mxu1 %vm966_vm4, %v4489_v38  ;;  %12612 = vmatprep.subr.msk.bf16.mxu0 %vm772_vm1, %v4587_v63 }
0x104e   : > { %v4487_v57 = vpop.permute.xlu1 %4486  ;;  %12470 = vmatpush3.bf16.msra.mxu1 %v4506_v47 }
0x104f   : > { %12471 = vmatprep.subr.bf16.mxu1 %v4487_v57 }
0x1050   : > { %v4485_v37 = vpop.permute.xlu0 %4484 }
0x1052   : > { %12472 = vmatpush3.bf16.msra.mxu1 %v4487_v57 }
0x1053   : > { %12462 = vmatmul.mubr.msk.bf16.vlgmr.msra.gmra.mxu0 %vm772_vm1, %v14800_v34  ;;  %12473 = vmatprep.subr.bf16.mxu1 %v4485_v37 }
0x1054   : > { %12465 = vmatprep.mubr.msk.bf16.mxu0 %vm772_vm1, %v14802_v11  ;;  %12486 = vmatpush3.bf16.xpose.msra.mxu0 %v4610_v28 }
0x1055   : > { %12613 = vmatprep.subr.msk.bf16.mxu0 %vm772_vm1, %v4585_v7 }
0x1056   : > { %12474 = vmatpush3.bf16.msra.mxu1 %v4485_v37 }
0x105b   : > { %12466 = vmatmul.mubr.msk.bf16.gmra.mxu0 %vm772_vm1, %v14796_v19 }
0x105c   : > { %12488 = vmatpush3.bf16.xpose.msra.mxu0 %v4607_v29  ;;  %12493 = vmatprep.mubr.msk.bf16.mxu0 %vm772_vm1, %v4573_v32 }
0x105d   : > { %12614 = vmatprep.subr.msk.bf16.mxu0 %vm772_vm1, %v4583_v31 }
0x1064   : > { %12490 = vmatpush3.bf16.xpose.msra.mxu0 %v4604_v44 }
0x1065   : > { %12615 = vmatprep.subr.msk.bf16.mxu0 %vm772_vm1, %v4581_v45 }
0x106c   : > { %12492 = vmatpush3.bf16.xpose.msra.mxu0 %v4601_v39 }
0x1073   : > { %12494 = vmatmul.mubr.msk.bf16.vlgmr.msra.gmra.mxu0 %vm772_vm1, %v4575_v51 }
0x1074   : > { %12497 = vmatprep.mubr.msk.bf16.mxu0 %vm772_vm1, %v4577_v4 }
0x107b   : > { %12498 = vmatmul.mubr.msk.bf16.gmra.mxu0 %vm772_vm1, %v4579_v26 }
0x107c   : > { %5203 = vmatprep.mubr.bf16.mxu0 %v16853_v9 }
0x1113   : > { %v12463_v52 = vpop.f32.mrf.mxu0 }
0x1114   : > { %v4380_v58 = vadd.f32 %v12463_v52, %v16866_v0 }
0x1115   : > { %v4371_v50 = vpop.f32.mrf.mxu0 }
0x1116   : > { %v14863_v53 = vadd.f32 %v4371_v50, %v16866_v0  ;;  %v4407_v43 = vsel %vm861_vm3, %v4380_v58, -inf }
0x1117   : > { %4408 = vmax.xlane.f32.xlu0 %v4407_v43  ;;  %v12464_v16 = vpop.f32.mrf.mxu0 }
0x1118   : > { %v14867_v6 = vadd.f32 %v12464_v16, %v16866_v0  ;;  %v4401_v24 = vsel %vm861_vm3, %v14863_v53, -inf }
0x1119   : > { %v4374_v25 = vpop.f32.mrf.mxu0 }
0x111a   : > { %v14870_v40 = vadd.f32 %v4374_v25, %v16866_v0  ;;  %v4410_v27 = vsel %vm861_vm3, %v14867_v6, -inf }
0x111b   : > { %v12467_v49 = vpop.f32.mrf.mxu0  ;;  %4402 = vmax.xlane.f32.xlu0 %v4401_v24 }
0x111c   : > { %v14875_v56 = vadd.f32 %v12467_v49, %v16866_v0  ;;  %v4404_v48 = vsel %vm861_vm3, %v14870_v40, -inf }
0x111d   : > { %v4387_v46 = vpop.f32.mrf.mxu0  ;;  %4405 = vmax.xlane.f32.xlu1 %v4404_v48 }
0x111e   : > { %v14882_v12 = vadd.f32 %v4387_v46, %v16866_v0  ;;  %v4419_v60 = vsel %vm861_vm3, %v14875_v56, -inf }
0x111f   : > { %v12468_v35 = vpop.f32.mrf.mxu0  ;;  %4411 = vmax.xlane.f32.xlu0 %v4410_v27 }
0x1120   : > { %v4413_v61 = vsel %vm861_vm3, %v14882_v12, -inf }
0x1121   : > { %4420 = vmax.xlane.f32.xlu1 %v4419_v60  ;;  %v4390_v13 = vpop.f32.mrf.mxu0 }
0x1122   : > { %v14906_v32 = vadd.f32 %v4390_v13, %v16866_v0 }
0x1124   : > { %v4416_v4 = vsel %vm861_vm3, %v14906_v32, -inf }
0x1125   : > { %4414 = vmax.xlane.f32.xlu1 %v4413_v61 }
0x1133   : > { %v12495_v41 = vpop.f32.mrf.mxu0 }
0x1134   : > { %v14909_v51 = vadd.f32 %v12495_v41, %v16866_v0 }
0x1135   : > { %4482 = vrot.lane.b32.xlu0 %v14792_v33, %s16865_s29  ;;  %v4646_v10 = vpop.f32.mrf.mxu0 }
0x1136   : > { %v14914_v26 = vadd.f32 %v4646_v10, %v16866_v0  ;;  %v4682_v62 = vsel %vm861_vm3, %v14909_v51, -inf }
0x1137   : > { %v12496_v1 = vpop.f32.mrf.mxu0 }
0x1138   : > { %v14891_v14 = vadd.f32 %v12496_v1, %v16866_v0  ;;  %v4676_v47 = vsel %vm861_vm3, %v14914_v26, -inf }
0x1139   : > { %v4649_v23 = vpop.f32.mrf.mxu0 }
0x113a   : > { %v14894_v59 = vadd.f32 %v4649_v23, %v16866_v0  ;;  %v4685_v30 = vsel %vm861_vm3, %v14891_v14, -inf }
0x113b   : > { %4686 = vmax.xlane.f32.xlu1 %v4685_v30  ;;  %v12499_v20 = vpop.f32.mrf.mxu0 }
0x113c   : > { %v4679_v63 = vsel %vm861_vm3, %v14894_v59, -inf  ;;  %v14919_v38 = vadd.f32 %v12499_v20, %v16866_v0 }
0x113d   : > { %v4662_v5 = vpop.f32.mrf.mxu0 }
0x113e   : > { %v14924_v57 = vadd.f32 %v4662_v5, %v16866_v0  ;;  %v4694_v37 = vsel %vm861_vm3, %v14919_v38, -inf }
0x113f   : > { %4680 = vmax.xlane.f32.xlu1 %v4679_v63  ;;  %v12500_v7 = vpop.f32.mrf.mxu0 }
0x1140   : > { %v4688_v28 = vsel %vm861_vm3, %v14924_v57, -inf }
0x1141   : > { %v4665_v31 = vpop.f32.mrf.mxu0 }
0x1142   : > { %v14901_v45 = vadd.f32 %v4665_v31, %v16866_v0 }
0x1144   : > { %v4691_v21 = vsel %vm861_vm3, %v14901_v45, -inf }
0x1145   : > { %4692 = vmax.xlane.f32.xlu1 %v4691_v21 }
0x1154   : > { %4417 = vmax.xlane.f32.xlu0 %v4416_v4 }
0x1158   : > { %4683 = vmax.xlane.f32.xlu0 %v4682_v62 }
0x115c   : > { %4677 = vmax.xlane.f32.xlu0 %v4676_v47 }
0x1160   : > { %4695 = vmax.xlane.f32.xlu0 %v4694_v37 }
0x1164   : > { %4689 = vmax.xlane.f32.xlu0 %v4688_v28 }
0x117a   : > { %4763 = vrot.lane.b32.xlu0 %v14796_v19, %s16867_s21 }
0x11a0   : > { %v4409_v29 = vpop.xlane.xlu0 %4408 }
0x11a1   : > { %v4424_v44 = vsub.f32 %v4380_v58, %v4409_v29 }
0x11a3   : > { %v4433_v39 = vmul.f32 1.442695, %v4424_v44 }
0x11a4   : > { %v4403_v52 = vpop.xlane.xlu0 %4402 }
0x11a5   : > { %13172 = vpow2.f32 %v4433_v39  ;;  %v4422_v50 = vsub.f32 %v14863_v53, %v4403_v52 }
0x11a6   : > { %v4406_v43 = vpop.xlane.xlu1 %4405 }
0x11a7   : > { %v4429_v16 = vmul.f32 1.442695, %v4422_v50  ;;  %v4423_v25 = vsub.f32 %v14870_v40, %v4406_v43 }
0x11a8   : > { %v4412_v24 = vpop.xlane.xlu0 %4411 }
0x11a9   : > { %13174 = vpow2.f32 %v4429_v16  ;;  %v4425_v49 = vsub.f32 %v14867_v6, %v4412_v24  ;;  %v4431_v48 = vmul.f32 1.442695, %v4423_v25 }
0x11aa   : > { %v4421_v46 = vpop.xlane.xlu1 %4420 }
0x11ab   : > { %v4435_v27 = vmul.f32 1.442695, %v4425_v49  ;;  %v4428_v19 = vsub.f32 %v14875_v56, %v4421_v46 }
0x11ac   : > { %v4483_v35 = vpop.permute.xlu0 %4482 }
0x11ad   : > { %13176 = vpow2.f32 %v4435_v27  ;;  %v4441_v58 = vmul.f32 1.442695, %v4428_v19  ;;  %12475 = vmatprep.subr.bf16.mxu1 %v4483_v35 }
0x11ae   : > { %13178 = vpow2.f32 %v4431_v48  ;;  %v4415_v60 = vpop.xlane.xlu1 %4414  ;;  %12476 = vmatpush3.bf16.msra.mxu1 %v4483_v35 }
0x11af   : > { %13180 = vpow2.f32 %v4441_v58  ;;  %v4426_v53 = vsub.f32 %v14882_v12, %v4415_v60 }
0x11b1   : > { %v4437_v40 = vmul.f32 1.442695, %v4426_v53 }
0x11b2   : > { %v14937_v61 = vpop.eup %13172 }
0x11b3   : > { %13182 = vpow2.f32 %v4437_v40  ;;  %v4449_v6 = vsel %vm861_vm3, %v14937_v61, 0.0 }
0x11b4   : > { %4450 = vadd.xlane.f32.xlu1 %v4449_v6 }
0x11b6   : > { %v14941_v13 = vpop.eup %13174 }
0x11b7   : > { %v4443_v56 = vsel %vm861_vm3, %v14941_v13, 0.0 }
0x11b8   : > { %4444 = vadd.xlane.f32.xlu1 %v4443_v56 }
0x11ba   : > { %v14945_v41 = vpop.eup %13176 }
0x11bb   : > { %v14947_v10 = vpop.eup %13178  ;;  %v4452_v12 = vsel %vm861_vm3, %v14945_v41, 0.0 }
0x11bc   : > { %v14951_v1 = vpop.eup %13180  ;;  %4453 = vadd.xlane.f32.xlu0 %v4452_v12  ;;  %v4446_v30 = vsel %vm861_vm3, %v14947_v10, 0.0 }
0x11bd   : > { %v4461_v23 = vsel %vm861_vm3, %v14951_v1, 0.0 }
0x11be   : > { %4462 = vadd.xlane.f32.xlu1 %v4461_v23 }
0x11c0   : > { %v14957_v20 = vpop.eup %13182  ;;  %4447 = vadd.xlane.f32.xlu0 %v4446_v30 }
0x11c1   : > { %v4455_v5 = vsel %vm861_vm3, %v14957_v20, 0.0 }
0x11c2   : > { %4456 = vadd.xlane.f32.xlu1 %v4455_v5 }
0x11c4   : > { %v4687_v31 = vpop.xlane.xlu1 %4686 }
0x11c5   : > { %v4700_v47 = vsub.f32 %v14891_v14, %v4687_v31 }
0x11c7   : > { %v4710_v39 = vmul.f32 1.442695, %v4700_v47 }
0x11c8   : > { %v4681_v28 = vpop.xlane.xlu1 %4680 }
0x11c9   : > { %v4698_v52 = vsub.f32 %v14894_v59, %v4681_v28 }
0x11cb   : > { %v4706_v16 = vmul.f32 1.442695, %v4698_v52 }
0x11ce   : > { %v4693_v56 = vpop.xlane.xlu1 %4692 }
0x11cf   : > { %v4702_v12 = vsub.f32 %v14901_v45, %v4693_v56 }
0x11d1   : > { %v4714_v23 = vmul.f32 1.442695, %v4702_v12 }
0x11dd   : > { %v4418_v63 = vpop.xlane.xlu0 %4417 }
0x11de   : > { %v4427_v7 = vsub.f32 %v14906_v32, %v4418_v63 }
0x11e0   : > { %v4439_v21 = vmul.f32 1.442695, %v4427_v7 }
0x11e1   : > { %v4684_v4 = vpop.xlane.xlu0 %4683 }
0x11e2   : > { %13184 = vpow2.f32 %v4439_v21  ;;  %v4699_v62 = vsub.f32 %v14909_v51, %v4684_v4 }
0x11e4   : > { %v4708_v37 = vmul.f32 1.442695, %v4699_v62 }
0x11e5   : > { %v4678_v29 = vpop.xlane.xlu0 %4677 }
0x11e6   : > { %13186 = vpow2.f32 %v4708_v37  ;;  %v4697_v44 = vsub.f32 %v14914_v26, %v4678_v29 }
0x11e8   : > { %v4704_v50 = vmul.f32 1.442695, %v4697_v44 }
0x11e9   : > { %v4696_v43 = vpop.xlane.xlu0 %4695 }
0x11ea   : > { %13188 = vpow2.f32 %v4704_v50  ;;  %v4703_v32 = vsub.f32 %v14919_v38, %v4696_v43 }
0x11eb   : > { %13190 = vpow2.f32 %v4710_v39 }
0x11ec   : > { %v4716_v25 = vmul.f32 1.442695, %v4703_v32 }
0x11ed   : > { %v4690_v51 = vpop.xlane.xlu0 %4689 }
0x11ee   : > { %13192 = vpow2.f32 %v4716_v25  ;;  %v4701_v14 = vsub.f32 %v14924_v57, %v4690_v51 }
0x11ef   : > { %v14968_v24 = vpop.eup %13184  ;;  %13194 = vpow2.f32 %v4706_v16 }
0x11f0   : > { %v4712_v49 = vmul.f32 1.442695, %v4701_v14  ;;  %v4458_v26 = vsel %vm861_vm3, %v14968_v24, 0.0 }
0x11f1   : > { %4459 = vadd.xlane.f32.xlu0 %v4458_v26  ;;  %v4764_v59 = vpop.permute.xlu0 %4763 }
0x11f2   : > { %13196 = vpow2.f32 %v4712_v49  ;;  %12616 = vmatprep.subr.msk.bf16.mxu1 %vm966_vm4, %v4764_v59 }
0x11f3   : > { %v14973_v38 = vpop.eup %13186  ;;  %13198 = vpow2.f32 %v4714_v23 }
0x11f4   : > { %v4724_v48 = vsel %vm861_vm3, %v14973_v38, 0.0 }
0x11f5   : > { %4725 = vadd.xlane.f32.xlu1 %v4724_v48 }
0x11f7   : > { %v14977_v46 = vpop.eup %13188 }
0x11f8   : > { %v4718_v57 = vsel %vm861_vm3, %v14977_v46, 0.0  ;;  %v14981_v27 = vpop.eup %13190 }
0x11f9   : > { %4719 = vadd.xlane.f32.xlu1 %v4718_v57  ;;  %v4727_v35 = vsel %vm861_vm3, %v14981_v27, 0.0 }
0x11fb   : > { %v14983_v19 = vpop.eup %13192 }
0x11fc   : > { %v4736_v58 = vsel %vm861_vm3, %v14983_v19, 0.0  ;;  %v14989_v60 = vpop.eup %13194 }
0x11fd   : > { %4728 = vadd.xlane.f32.xlu1 %v4727_v35  ;;  %4737 = vadd.xlane.f32.xlu0 %v4736_v58  ;;  %v4721_v40 = vsel %vm861_vm3, %v14989_v60, 0.0 }
0x11ff   : > { %v14991_v53 = vpop.eup %13196 }
0x1200   : > { %v4730_v6 = vsel %vm861_vm3, %v14991_v53, 0.0  ;;  %v15002_v30 = vpop.eup %13198 }
0x1201   : > { %4722 = vadd.xlane.f32.xlu1 %v4721_v40  ;;  %4731 = vadd.xlane.f32.xlu0 %v4730_v6  ;;  %v4733_v5 = vsel %vm861_vm3, %v15002_v30, 0.0 }
0x1212   : > { %4759 = vrot.lane.b32.xlu1 %v14800_v34, %s16867_s21 }
0x1217   : > { %4761 = vrot.lane.b32.xlu0 %v14802_v11, %s16867_s21 }
0x1236   : > { %4734 = vadd.xlane.f32.xlu1 %v4733_v5 }
0x123d   : > { %v4451_v63 = vpop.xlane.xlu1 %4450 }
0x1241   : > { %v4445_v7 = vpop.xlane.xlu1 %4444 }
0x1245   : > { %v4454_v31 = vpop.xlane.xlu0 %4453 }
0x1246   : > { %13200 = vrcp.f32 %v4454_v31 }
0x1247   : > { %4757 = vrot.lane.b32.xlu1 %v14792_v33, %s16867_s21  ;;  %13202 = vrcp.f32 %v4445_v7  ;;  %v4781_v33 = vsel %vm966_vm4, %v4764_v59, 0  ;;  %v4463_v39 = vpop.xlane.xlu1 %4462 }
0x1248   : > { %13204 = vrcp.f32 %v4451_v63 }
0x1249   : > { %v4448_v34 = vpop.xlane.xlu0 %4447 }
0x124a   : > { %13206 = vrcp.f32 %v4448_v34 }
0x124b   : > { %v4457_v52 = vpop.xlane.xlu1 %4456  ;;  %13208 = vrcp.f32 %v4463_v39 }
0x124c   : > { %13210 = vrcp.f32 %v4457_v52 }
0x1253   : > { %v13201_v11 = vpop.eup %13200 }
0x1254   : > { %v13203_v45 = vpop.eup %13202  ;;  %v4474_v62 = vmul.f32 %v13201_v11, %v14945_v41 }
0x1255   : > { %v13205_v21 = vpop.eup %13204  ;;  %v4471_v47 = vmul.f32 %v13203_v45, %v14941_v13 }
0x1256   : > { %v4473_v28 = vmul.f32 %v13205_v21, %v14937_v61 }
0x1257   : > { %v13207_v4 = vpop.eup %13206 }
0x1258   : > { %v4472_v37 = vmul.f32 %v13207_v4, %v14947_v10  ;;  %v4479_v44 = vpack.c.bf16 %v4474_v62, %v4473_v28  ;;  %v13209_v10 = vpop.eup %13208 }
0x1259   : > { %v13211_v43 = vpop.eup %13210  ;;  %v4477_v25 = vmul.f32 %v13209_v10, %v14951_v1 }
0x125a   : > { %v4478_v29 = vpack.c.bf16 %v4472_v37, %v4471_v47  ;;  %v4475_v51 = vmul.f32 %v13211_v43, %v14957_v20 }
0x125b   : > { %v4481_v48 = vpack.c.bf16 %v4477_v25, %v4477_v25 }
0x125c   : > { %12477 = vmatprep.mubr.msk.bf16.mxu1 %vm861_vm3, %v4478_v29 }
0x125d   : > { %12478 = vmatmul.mubr.msk.bf16.vlgmr.msra.gmra.mxu1 %vm861_vm3, %v4479_v44 }
0x125e   : > { %12502 = vmatpush3.bf16.msra.mxu1 %v4781_v33 }
0x127a   : > { %v4460_v41 = vpop.xlane.xlu0 %4459 }
0x127b   : > { %13212 = vrcp.f32 %v4460_v41 }
0x127e   : > { %v4726_v13 = vpop.xlane.xlu1 %4725 }
0x1282   : > { %v4720_v50 = vpop.xlane.xlu1 %4719 }
0x1283   : > { %13214 = vrcp.f32 %v4720_v50 }
0x1286   : > { %v4729_v61 = vpop.xlane.xlu1 %4728  ;;  %v4738_v32 = vpop.xlane.xlu0 %4737 }
0x1288   : > { %v13213_v16 = vpop.eup %13212 }
0x1289   : > { %v4476_v14 = vmul.f32 %v13213_v16, %v14968_v24 }
0x128a   : > { %v4723_v49 = vpop.xlane.xlu1 %4722  ;;  %v4732_v26 = vpop.xlane.xlu0 %4731 }
0x128b   : > { %13216 = vrcp.f32 %v4723_v49  ;;  %v4480_v59 = vpack.c.bf16 %v4476_v14, %v4475_v51 }
0x128c   : > { %13218 = vrcp.f32 %v4729_v61 }
0x128d   : > { %12481 = vmatprep.mubr.msk.bf16.mxu1 %vm861_vm3, %v4480_v59  ;;  %13220 = vrcp.f32 %v4726_v13 }
0x128e   : > { %12482 = vmatmul.mubr.msk.bf16.gmra.mxu1 %vm861_vm3, %v4481_v48  ;;  %v4762_v57 = vpop.permute.xlu0 %4761  ;;  %v4760_v35 = vpop.permute.xlu1 %4759  ;;  %13222 = vrcp.f32 %v4738_v32 }
0x128f   : > { %12503 = vmatprep.subr.bf16.mxu1 %v4762_v57  ;;  %13224 = vrcp.f32 %v4732_v26 }
0x1290   : > { %12504 = vmatpush3.bf16.msra.mxu1 %v4762_v57  ;;  %v13215_v1 = vpop.eup %13214 }
0x1291   : > { %12505 = vmatprep.subr.bf16.mxu1 %v4760_v35  ;;  %v4746_v20 = vmul.f32 %v13215_v1, %v14977_v46 }
0x1294   : > { %12506 = vmatpush3.bf16.msra.mxu1 %v4760_v35 }
0x1298   : > { %v13217_v58 = vpop.eup %13216 }
0x1299   : > { %v4747_v24 = vmul.f32 %v13217_v58, %v14989_v60  ;;  %v13219_v6 = vpop.eup %13218 }
0x129a   : > { %v13221_v12 = vpop.eup %13220  ;;  %v4749_v23 = vmul.f32 %v13219_v6, %v14981_v27 }
0x129b   : > { %v4753_v40 = vpack.c.bf16 %v4747_v24, %v4746_v20  ;;  %v4748_v63 = vmul.f32 %v13221_v12, %v14973_v38  ;;  %v13223_v60 = vpop.eup %13222  ;;  %v12828_v38 = vld [vmem:[%s16766_s5 + $0x8] sm:$0xff]  }
0x129c   : > { %v13225_v7 = vpop.eup %13224  ;;  %v4752_v34 = vmul.f32 %v13223_v60, %v14983_v19 }
0x129d   : > { %12509 = vmatprep.mubr.msk.bf16.mxu1 %vm861_vm3, %v4753_v40  ;;  %v4754_v46 = vpack.c.bf16 %v4749_v23, %v4748_v63  ;;  %v4750_v11 = vmul.f32 %v13225_v7, %v14991_v53 }
0x129e   : > { %v4756_v4 = vpack.c.bf16 %v4752_v34, %v4752_v34 }
0x12bf   : > { %v4735_v56 = vpop.xlane.xlu1 %4734 }
0x12c0   : > { %13226 = vrcp.f32 %v4735_v56 }
0x12c3   : > { %v4758_v5 = vpop.permute.xlu1 %4757 }
0x12c4   : > { %12507 = vmatprep.subr.bf16.mxu1 %v4758_v5 }
0x12c5   : > { %12508 = vmatpush3.bf16.msra.mxu1 %v4758_v5 }
0x12c6   : > { %12517 = vmatprep.subr.bf16.mxu1 %v12828_v38 }
0x12c8   : > { %12510 = vmatmul.mubr.msk.bf16.vlgmr.msra.gmra.mxu1 %vm861_vm3, %v4754_v46  ;;  %v10491_v46 = vld [vmem:[%s16767_s6 + $0x1] ss:$0 sm:$0xff] }
0x12c9   : > { %12518 = vmatpush3.bf16.msra.mxu1 %v12828_v38 }
0x12cd   : > { %v13227_v31 = vpop.eup %13226 }
0x12ce   : > { %v4751_v45 = vmul.f32 %v13227_v31, %v15002_v30 }
0x12d0   : > { %v4755_v21 = vpack.c.bf16 %v4751_v45, %v4750_v11 }
0x12d2   : > { %12513 = vmatprep.mubr.msk.bf16.mxu1 %vm861_vm3, %v4755_v21 }
0x12d3   : > { %12514 = vmatmul.mubr.msk.bf16.gmra.mxu1 %vm861_vm3, %v4756_v4 }
0x131d   : > { %v12479_v27 = vpop.f32.mrf.mxu1 }
0x131f   : > { %v4542_v62 = vpop.f32.mrf.mxu1 }
0x1321   : > { %v12480_v47 = vpop.f32.mrf.mxu1 }
0x1323   : > { %v4545_v19 = vpop.f32.mrf.mxu1 }
0x134e   : > { %v12483_v37 = vpop.f32.mrf.mxu1 }
0x1350   : > { %v4558_v53 = vpop.f32.mrf.mxu1 }
0x1352   : > { %v12484_v28 = vpop.f32.mrf.mxu1 }
0x1354   : > { %v4561_v30 = vpop.f32.mrf.mxu1 }
0x1388   : > { %v12511_v29 = vpop.f32.mrf.mxu1 }
0x138a   : > { %v4817_v44 = vpop.f32.mrf.mxu1 }
0x138c   : > { %v12512_v33 = vpop.f32.mrf.mxu1 }
0x138d   : > { %v12686_v39 = vpack.i.bf16 %v12512_v33, %v12511_v29 }
0x138e   : > { %v4820_v52 = vpop.f32.mrf.mxu1 }
0x138f   : > { %v12681_v41 = vpack.i.bf16 %v4820_v52, %v4817_v44  ;;  %12687 = vrot.lane.b32.xlu1 %v12686_v39, %s16868_s22 }
0x1391   : > { %12682 = vrot.lane.b32.xlu0 %v12681_v41, %s16868_s22 }
0x1393   : > { %v12515_v13 = vpop.f32.mrf.mxu1 }
0x1394   : > { %4866 = vrot.lane.b32.xlu1 %v12515_v13, %s16868_s22 }
0x1395   : > { %v4833_v50 = vpop.f32.mrf.mxu1 }
0x1397   : > { %v12516_v10 = vpop.f32.mrf.mxu1 }
0x1399   : > { %v4836_v43 = vpop.f32.mrf.mxu1 }
0x139a   : > { %v12691_v61 = vpack.i.bf16 %v4836_v43, %v4833_v50 }
0x139c   : > { %12692 = vrot.lane.b32.xlu0 %v12691_v61, %s16868_s22 }
0x1401   : > { %v12688_v32 = vpop.permute.xlu1 %12687 }
0x1402   : > { %v12690_v16 = vunpack.i.h.bf16 %v12688_v32  ;;  %v12689_v25 = vunpack.i.l.bf16 %v12688_v32 }
0x1403   : > { %v12683_v51 = vpop.permute.xlu0 %12682 }
0x1404   : > { %v12685_v14 = vunpack.i.h.bf16 %v12683_v51  ;;  %v12684_v49 = vunpack.i.l.bf16 %v12683_v51  ;;  %v4878_v26 = vsel %vm772_vm1, %v12480_v47, %v12690_v16  ;;  %v4877_v59 = vsel %vm772_vm1, %v12479_v27, %v12689_v25 }
0x1405   : > { %v4883_v1 = vpack.c.bf16 %v4878_v26, %v4877_v59 }
0x1406   : > { %v4876_v48 = vsel %vm772_vm1, %v4545_v19, %v12685_v14  ;;  %v4875_v57 = vsel %vm772_vm1, %v4542_v62, %v12684_v49  ;;  %v4867_v58 = vpop.permute.xlu1 %4866 }
0x1407   : > { %v4882_v35 = vpack.c.bf16 %v4876_v48, %v4875_v57  ;;  %v4881_v6 = vsel %vm772_vm1, %v12483_v37, %v4867_v58 }
0x1408   : > { %v4885_v5 = vpack.c.bf16 %v4881_v6, %v4881_v6 }
0x1409   : > { %12519 = vmatprep.mubr.msk.bf16.mxu1 %vm566_vm0, %v4882_v35 }
0x140a   : > { %12520 = vmatmul.mubr.msk.bf16.vlgmr.msra.gmra.mxu1 %vm566_vm0, %v4883_v1 }
0x140e   : > { %v12693_v20 = vpop.permute.xlu0 %12692 }
0x140f   : > { %v12695_v24 = vunpack.i.h.bf16 %v12693_v20  ;;  %v12694_v40 = vunpack.i.l.bf16 %v12693_v20 }
0x1411   : > { %v4880_v56 = vsel %vm772_vm1, %v4561_v30, %v12695_v24  ;;  %v4879_v12 = vsel %vm772_vm1, %v4558_v53, %v12694_v40 }
0x1412   : > { %v4884_v23 = vpack.c.bf16 %v4880_v56, %v4879_v12 }
0x1414   : > { %12523 = vmatprep.mubr.msk.bf16.mxu1 %vm566_vm0, %v4884_v23 }
0x1415   : > { %12524 = vmatmul.mubr.msk.bf16.gmra.mxu1 %vm566_vm0, %v4885_v5 }
0x1416   : > { %5274 = vmatprep.mubr.bf16.mxu1 %v16853_v9 }
0x14ca   : > { %v12521_v63 = vpop.f32.mrf.mxu1 }
0x14cb   : > { %v4958_v7 = vadd.f32 %v12521_v63, %v10491_v46 }
0x14cc   : > { %v4949_v60 = vpop.f32.mrf.mxu1 }
0x14cd   : > { %v4950_v31 = vadd.f32 %v10491_v46, %v4949_v60  ;;  %v4981_v21 = vadd.f32 %v4958_v7, %v14767_v15 }
0x14ce   : > { %v12522_v34 = vpop.f32.mrf.mxu1 }
0x14cf   : > { %v4979_v11 = vadd.f32 %v4950_v31, %v14759_v22  ;;  %v4961_v4 = vadd.f32 %v12522_v34, %v10491_v46  ;;  %v4996_v53 = vsel %vm566_vm0, %v4981_v21, 0.0 }
0x14d0   : > { %v4952_v45 = vpop.f32.mrf.mxu1 }
0x14d1   : > { %v4953_v38 = vadd.f32 %v10491_v46, %v4952_v45  ;;  %v4990_v27 = vsel %vm566_vm0, %v4979_v11, 0.0  ;;  %v4982_v47 = vadd.f32 %v4961_v4, %v14769_v55  ;;  %v10501_v45 = vld [vmem:[%s16772_s11 + $0x80] sm:$0xff]  ;;  %v10502_v4 = vld [vmem:[%s16772_s11 + $0x88] sm:$0xff] }
0x14d2   : > { %4991 = vadd.xlane.f32.xlu0 %v4990_v27  ;;  %v10504_v27 = vld [vmem:[%s16772_s11 + $0xc8] sm:$0xff] }
0x14d3   : > { %v4980_v62 = vadd.f32 %v4953_v38, %v14761_v36  ;;  %v4999_v29 = vsel %vm566_vm0, %v4982_v47, 0.0 }
0x14d5   : > { %v12525_v19 = vpop.f32.mrf.mxu1  ;;  %v4993_v37 = vsel %vm566_vm0, %v4980_v62, 0.0 }
0x14d6   : > { %4994 = vadd.xlane.f32.xlu1 %v4993_v37  ;;  %4997 = vadd.xlane.f32.xlu0 %v4996_v53  ;;  %v4974_v28 = vadd.f32 %v12525_v19, %v10491_v46  ;;  %v10509_v19 = vcombine.high %v10502_v4, %v10504_v27  ;;  %v10582_v37 = vld [vmem:[%s16772_s11 + $0x90] sm:$0xff] }
0x14d7   : > { %v4965_v22 = vpop.f32.mrf.mxu1  ;;  %v10584_v53 = vld [vmem:[%s16772_s11 + $0xd0] sm:$0xff] }
0x14d8   : > { %v4966_v30 = vadd.f32 %v10491_v46, %v4965_v22  ;;  %v4985_v36 = vadd.f32 %v4974_v28, %v14784_v42  ;;  %5256 = vmatprep.subr.bf16.mxu1 %v10509_v19  ;;  %v10583_v22 = vld [vmem:[%s16772_s11 + $0x98] sm:$0xff]  ;;  %v10587_v28 = vcombine.low %v10582_v37, %v10584_v53 }
0x14d9   : > { %v12526_v15 = vpop.f32.mrf.mxu1 }
0x14da   : > { %v4983_v44 = vadd.f32 %v4966_v30, %v14777_v3  ;;  %5000 = vadd.xlane.f32.xlu0 %v4999_v29  ;;  %v5008_v41 = vsel %vm566_vm0, %v4985_v36, 0.0  ;;  %v10588_v30 = vcombine.high %v10582_v37, %v10584_v53  ;;  %v10585_v15 = vld [vmem:[%s16772_s11 + $0xd8] sm:$0xff] }
0x14db   : > { %v4968_v33 = vpop.f32.mrf.mxu1  ;;  %v10589_v29 = vcombine.low %v10583_v22, %v10585_v15 }
0x14dc   : > { %v4969_v55 = vadd.f32 %v10491_v46, %v4968_v33  ;;  %v5002_v39 = vsel %vm566_vm0, %v4983_v44, 0.0 }
0x14dd   : > { %5003 = vadd.xlane.f32.xlu1 %v5002_v39 }
0x14de   : > { %v4984_v52 = vadd.f32 %v4969_v55, %v14779_v2 }
0x14e0   : > { %v5005_v13 = vsel %vm566_vm0, %v4984_v52, 0.0 }
0x14e1   : > { %5009 = vadd.xlane.f32.xlu1 %v5008_v41  ;;  %5006 = vadd.xlane.f32.xlu0 %v5005_v13 }
0x155b   : > { %v4992_v50 = vpop.xlane.xlu0 %4991 }
0x155c   : > { %v5011_v10 = vmul.f32 0.0625, %v4992_v50 }
0x155e   : > { %v15067_v43 = vsub.f32 %v4979_v11, %v5011_v10 }
0x155f   : > { %v4995_v3 = vpop.xlane.xlu1 %4994  ;;  %v4998_v61 = vpop.xlane.xlu0 %4997 }
0x1560   : > { %v5012_v32 = vmul.f32 0.0625, %v4995_v3  ;;  %v5013_v42 = vmul.f32 0.0625, %v4998_v61  ;;  %v5025_v16 = vmul.f32 %v15067_v43, %v15067_v43 }
0x1562   : > { %v15071_v25 = vsub.f32 %v4980_v62, %v5012_v32  ;;  %v15073_v2 = vsub.f32 %v4981_v21, %v5013_v42  ;;  %v5032_v51 = vsel %vm566_vm0, %v5025_v16, 0.0  ;;  %v10503_v21 = vld [vmem:[%s16772_s11 + $0xc0] sm:$0xff] }
0x1563   : > { %5033 = vadd.xlane.f32.xlu0 %v5032_v51  ;;  %v5001_v14 = vpop.xlane.xlu0 %5000  ;;  %v10507_v38 = vcombine.high %v10501_v45, %v10503_v21  ;;  %v10506_v62 = vcombine.low %v10501_v45, %v10503_v21 }
0x1564   : > { %v5014_v49 = vmul.f32 0.0625, %v5001_v14  ;;  %v5026_v26 = vmul.f32 %v15071_v25, %v15071_v25  ;;  %v5027_v59 = vmul.f32 %v15073_v2, %v15073_v2 }
0x1565   : > { %5185 = vmatprep.subr.bf16.mxu0 %v10507_v38 }
0x1566   : > { %v15080_v48 = vsub.f32 %v4982_v47, %v5014_v49  ;;  %v5004_v57 = vpop.xlane.xlu1 %5003  ;;  %v5035_v35 = vsel %vm566_vm0, %v5026_v26, 0.0  ;;  %v5038_v1 = vsel %vm566_vm0, %v5027_v59, 0.0  ;;  %v10508_v47 = vcombine.low %v10502_v4, %v10504_v27  ;;  %5186 = vmatpush1.bf16.msra.mxu0 %v10506_v62 }
0x1567   : > { %v5015_v58 = vmul.f32 0.0625, %v5004_v57  ;;  %5036 = vadd.xlane.f32.xlu1 %v5035_v35  ;;  %5039 = vadd.xlane.f32.xlu0 %v5038_v1 }
0x1568   : > { %v5028_v20 = vmul.f32 %v15080_v48, %v15080_v48  ;;  %5257 = vmatpush1.bf16.msra.mxu1 %v10508_v47  ;;  %5482 = vmatprep.subr.bf16.mxu0 %v10588_v30 }
0x1569   : > { %v15086_v24 = vsub.f32 %v4983_v44, %v5015_v58  ;;  %v10590_v44 = vcombine.high %v10583_v22, %v10585_v15  ;;  %v10499_v58 = vld [vmem:[%s16768_s7 + $0x1] ss:$0 sm:$0xff]  ;;  %v12829_v15 = vld [vmem:[%s16774_s13 + $0x578] sm:$0xff]  }
0x156a   : > { %v5010_v40 = vpop.xlane.xlu1 %5009  ;;  %v5007_v6 = vpop.xlane.xlu0 %5006  ;;  %v5041_v56 = vsel %vm566_vm0, %v5028_v20, 0.0 }
0x156b   : > { %v5017_v12 = vmul.f32 0.0625, %v5010_v40  ;;  %v5016_v23 = vmul.f32 0.0625, %v5007_v6  ;;  %5042 = vadd.xlane.f32.xlu1 %v5041_v56  ;;  %v5029_v5 = vmul.f32 %v15086_v24, %v15086_v24  ;;  %5553 = vmatprep.subr.bf16.mxu1 %v10590_v44  ;;  %v12831_v44 = vld [vmem:[%s16774_s13 + $0x538] sm:$0xff]  }
0x156d   : > { %v15091_v63 = vsub.f32 %v4985_v36, %v5017_v12  ;;  %v15093_v46 = vsub.f32 %v4984_v52, %v5016_v23  ;;  %v5044_v60 = vsel %vm566_vm0, %v5029_v5, 0.0  ;;  %v10500_v23 = vld [vmem:[%s16769_s8 + $0x1] ss:$0 sm:$0xff] }
0x156e   : > { %5045 = vadd.xlane.f32.xlu0 %v5044_v60 }
0x156f   : > { %v5031_v7 = vmul.f32 %v15091_v63, %v15091_v63  ;;  %v5030_v31 = vmul.f32 %v15093_v46, %v15093_v46 }
0x1571   : > { %v5050_v34 = vsel %vm566_vm0, %v5031_v7, 0.0  ;;  %v5047_v11 = vsel %vm566_vm0, %v5030_v31, 0.0 }
0x1572   : > { %5051 = vadd.xlane.f32.xlu0 %v5050_v34  ;;  %5048 = vadd.xlane.f32.xlu1 %v5047_v11 }
0x15ec   : > { %v5034_v33 = vpop.xlane.xlu0 %5033 }
0x15ed   : > { %v5053_v36 = vmul.f32 0.0625, %v5034_v33  ;;  %v12832_v33 = vld [vmem:[%s16774_s13 + $0x5b8] sm:$0xff]  }
0x15ef   : > { %v5060_v55 = vadd.f32 1e-05, %v5053_v36  ;;  %v12833_v36 = vld [vmem:[%s16774_s13 + $0x570] sm:$0xff]  }
0x15f0   : > { %v5037_v39 = vpop.xlane.xlu1 %5036  ;;  %v5040_v52 = vpop.xlane.xlu0 %5039 }
0x15f1   : > { %13228 = vrsqrt.f32 %v5060_v55  ;;  %v5054_v41 = vmul.f32 0.0625, %v5037_v39  ;;  %v5055_v13 = vmul.f32 0.0625, %v5040_v52  ;;  %v12834_v55 = vld [vmem:[%s16774_s13 + $0x5f0] sm:$0xff]  }
0x15f2   : > { %v12835_v39 = vld [vmem:[%s16774_s13 + $0x530] sm:$0xff]  }
0x15f3   : > { %v5061_v50 = vadd.f32 1e-05, %v5054_v41  ;;  %v5062_v10 = vadd.f32 1e-05, %v5055_v13  ;;  %v12836_v52 = vld [vmem:[%s16774_s13 + $0x5b0] sm:$0xff]   ;;  %v12837_v41 = vld [vmem:[%s16774_s13 + $0x568] sm:$0xff]  }
0x15f4   : > { %v5043_v3 = vpop.xlane.xlu1 %5042  ;;  %v12838_v13 = vld [vmem:[%s16774_s13 + $0x5e8] sm:$0xff]  }
0x15f5   : > { %13230 = vrsqrt.f32 %v5061_v50  ;;  %v5056_v61 = vmul.f32 0.0625, %v5043_v3  ;;  %v12839_v50 = vld [vmem:[%s16774_s13 + $0x528] sm:$0xff]   ;;  %v12841_v3 = vld [vmem:[%s16774_s13 + $0x560] sm:$0xff]  }
0x15f6   : > { %13232 = vrsqrt.f32 %v5062_v10  ;;  %v12840_v10 = vld [vmem:[%s16774_s13 + $0x5a8] sm:$0xff]  }
0x15f7   : > { %v5063_v32 = vadd.f32 1e-05, %v5056_v61  ;;  %v5046_v42 = vpop.xlane.xlu0 %5045  ;;  %v12842_v61 = vld [vmem:[%s16774_s13 + $0x5e0] sm:$0xff]  }
0x15f8   : > { %v5057_v16 = vmul.f32 0.0625, %v5046_v42  ;;  %v12844_v42 = vld [vmem:[%s16774_s13 + $0x5a0] sm:$0xff]  }
0x15f9   : > { %13234 = vrsqrt.f32 %v5063_v32  ;;  %v12843_v32 = vld [vmem:[%s16774_s13 + $0x520] sm:$0xff]  }
0x15fa   : > { %v5064_v51 = vadd.f32 1e-05, %v5057_v16  ;;  %v12845_v16 = vld [vmem:[%s16774_s13 + $0x558] sm:$0xff]  }
0x15fb   : > { %v5049_v14 = vpop.xlane.xlu1 %5048  ;;  %v5052_v49 = vpop.xlane.xlu0 %5051 }
0x15fc   : > { %v5058_v26 = vmul.f32 0.0625, %v5049_v14  ;;  %v5059_v59 = vmul.f32 0.0625, %v5052_v49  ;;  %13236 = vrsqrt.f32 %v5064_v51  ;;  %v12846_v51 = vld [vmem:[%s16774_s13 + $0x5d8] sm:$0xff]  }
0x15fd   : > { %v12847_v14 = vld [vmem:[%s16774_s13 + $0x518] sm:$0xff]  }
0x15fe   : > { %v13229_v57 = vpop.eup %13228  ;;  %v5065_v35 = vadd.f32 1e-05, %v5058_v26  ;;  %v5066_v20 = vadd.f32 1e-05, %v5059_v59  ;;  %v12848_v49 = vld [vmem:[%s16774_s13 + $0x598] sm:$0xff]   ;;  %v12849_v26 = vld [vmem:[%s16774_s13 + $0x550] sm:$0xff]  }
0x15ff   : > { %v5074_v1 = vmul.f32 %v13229_v57, %v15067_v43  ;;  %v12850_v59 = vld [vmem:[%s16774_s13 + $0x5d0] sm:$0xff]  }
0x1600   : > { %13238 = vrsqrt.f32 %v5065_v35  ;;  %v12851_v57 = vld [vmem:[%s16774_s13 + $0x510] sm:$0xff]  }
0x1601   : > { %v5087_v6 = vmul.f32 %v10499_v58, %v5074_v1  ;;  %13240 = vrsqrt.f32 %v5066_v20  ;;  %v12852_v35 = vld [vmem:[%s16774_s13 + $0x590] sm:$0xff]   ;;  %v12853_v1 = vld [vmem:[%s16774_s13 + $0x548] sm:$0xff]  }
0x1602   : > { %v13231_v40 = vpop.eup %13230  ;;  %v12855_v20 = vld [vmem:[%s16774_s13 + $0x508] sm:$0xff]  }
0x1603   : > { %v5075_v56 = vmul.f32 %v13231_v40, %v15071_v25  ;;  %v13233_v12 = vpop.eup %13232  ;;  %v15134_v43 = vadd.f32 %v10500_v23, %v5087_v6  ;;  %v12856_v40 = vld [vmem:[%s16774_s13 + $0x588] sm:$0xff]   ;;  %v12857_v6 = vld [vmem:[%s16774_s13 + $0x540] sm:$0xff]  }
0x1604   : > { %v5076_v31 = vmul.f32 %v13233_v12, %v15073_v2  ;;  %v12859_v12 = vld [vmem:[%s16774_s13 + $0x500] sm:$0xff]  }
0x1605   : > { %v5088_v5 = vmul.f32 %v10499_v58, %v5075_v56  ;;  %16869 = vst [vmem:[#allocation13_spill] sm:$0xff] %v15134_v43  ;;  %v12858_v56 = vld [vmem:[%s16774_s13 + $0x5c0] sm:$0xff]  }
0x1606   : > { %v13235_v60 = vpop.eup %13234  ;;  %v5089_v45 = vmul.f32 %v10499_v58, %v5076_v31  ;;  %v15320_v31 = vld [vmem:[%s16773_s12 + $0x10] sm:$0xf] }
0x1607   : > { %v15136_v7 = vadd.f32 %v10500_v23, %v5088_v5  ;;  %v5077_v34 = vmul.f32 %v13235_v60, %v15080_v48  ;;  %v12861_v5 = vld [vmem:[%s16774_s13 + $0x478] sm:$0xff]  }
0x1608   : > { %v15153_v48 = vadd.f32 %v10500_v23, %v5089_v45  ;;  %v12862_v60 = vld [vmem:[%s16774_s13 + $0x4f8] sm:$0xff]  }
0x1609   : > { %16870 = vst [vmem:[#allocation14_spill] sm:$0xff] %v15136_v7  ;;  %v15142_v11 = vpack.c.bf16 %v15136_v7, %v15134_v43  ;;  %v5090_v25 = vmul.f32 %v10499_v58, %v5077_v34  ;;  %v13237_v21 = vpop.eup %13236  ;;  %v15324_v34 = vrot.slane %v15320_v31, %v14009_v8 }
0x160a   : > { %16872 = vst [vmem:[#allocation15_spill] sm:$0xff] %v15153_v48  ;;  %v5078_v27 = vmul.f32 %v13237_v21, %v15086_v24 }
0x160b   : > { %10510 = vmatmul.mubr.msk.bf16.vlgmr.msra.gmra.mxu0 %vm566_vm0, %v15142_v11  ;;  %10514 = vmatmul.mubr.msk.bf16.vlgmr.msra.gmra.mxu1 %vm566_vm0, %v15142_v11  ;;  %v15148_v38 = vadd.f32 %v10500_v23, %v5090_v25  ;;  %v15328_v25 = vrot.slane %v15320_v31, %v16854_v54 }
0x160c   : > { %5483 = vmatpush1.bf16.msra.mxu0 %v10587_v28  ;;  %5554 = vmatpush1.bf16.msra.mxu1 %v10589_v29  ;;  %v5091_v37 = vmul.f32 %v10499_v58, %v5078_v27  ;;  %v12830_v29 = vld [vmem:[%s16774_s13 + $0x5f8] sm:$0xff]  }
0x160d   : > { %v13239_v4 = vpop.eup %13238  ;;  %16871 = vst [vmem:[#allocation16_spill] sm:$0xff] %v15148_v38  ;;  %5213 = vmatprep.mubr.bf16.mxu0 %v16853_v9  ;;  %5284 = vmatprep.mubr.bf16.mxu1 %v16853_v9  ;;  %v15158_v62 = vpack.c.bf16 %v15148_v38, %v15153_v48 }
0x160e   : > { %v5079_v2 = vmul.f32 %v13239_v4, %v15093_v46  ;;  %v13241_v19 = vpop.eup %13240  ;;  %v15169_v53 = vadd.f32 %v10500_v23, %v5091_v37  ;;  %11824 = vmatprep.subr.bf16.mxu0 %v12829_v15  ;;  %11864 = vmatprep.subr.bf16.mxu1 %v12830_v29 }
0x160f   : > { %v5080_v24 = vmul.f32 %v13241_v19, %v15091_v63 }
0x1610   : > { %v5092_v47 = vmul.f32 %v10499_v58, %v5079_v2  ;;  %16874 = vst [vmem:[#allocation17_spill] sm:$0xff] %v15169_v53 }
0x1611   : > { %v5093_v28 = vmul.f32 %v10499_v58, %v5080_v24  ;;  %v12854_v58 = vld [vmem:[%s16774_s13 + $0x5c8] sm:$0xff]  }
0x1612   : > { %v15166_v46 = vadd.f32 %v10500_v23, %v5092_v47 }
0x1613   : > { %10511 = vmatmul.mubr.msk.bf16.gmra.mxu0 %vm566_vm0, %v15158_v62  ;;  %10515 = vmatmul.mubr.msk.bf16.gmra.mxu1 %vm566_vm0, %v15158_v62  ;;  %v15181_v30 = vadd.f32 %v10500_v23, %v5093_v28  ;;  %v12860_v23 = vld [vmem:[%s16774_s13 + $0x580] sm:$0xff]  }
0x1614   : > { %5223 = vmatprep.mubr.bf16.mxu0 %v16853_v9  ;;  %5294 = vmatprep.mubr.bf16.mxu1 %v16853_v9  ;;  %16873 = vst [vmem:[#allocation18_spill] sm:$0xff] %v15166_v46  ;;  %v15173_v22 = vpack.c.bf16 %v15166_v46, %v15169_v53 }
0x1615   : > { %16875 = vst [vmem:[#allocation19_spill] sm:$0xff] %v15181_v30  ;;  %v15185_v63 = vpack.c.bf16 %v15181_v30, %v15181_v30 }
0x161b   : > { %10512 = vmatmul.mubr.msk.bf16.gmra.mxu0 %vm566_vm0, %v15173_v22  ;;  %10516 = vmatmul.mubr.msk.bf16.gmra.mxu1 %vm566_vm0, %v15173_v22 }
0x161c   : > { %5233 = vmatprep.mubr.bf16.mxu0 %v16853_v9  ;;  %5304 = vmatprep.mubr.bf16.mxu1 %v16853_v9 }
0x1623   : > { %10513 = vmatmul.mubr.msk.bf16.gmra.mxu0 %vm566_vm0, %v15185_v63  ;;  %10517 = vmatmul.mubr.msk.bf16.gmra.mxu1 %vm566_vm0, %v15185_v63 }
0x1624   : > { %5500 = vmatprep.mubr.bf16.mxu0 %v16853_v9  ;;  %5571 = vmatprep.mubr.bf16.mxu1 %v16853_v9 }
0x162b   : > { %10591 = vmatmul.mubr.msk.bf16.vlgmr.msra.gmra.mxu0 %vm566_vm0, %v15142_v11  ;;  %10595 = vmatmul.mubr.msk.bf16.vlgmr.msra.gmra.mxu1 %vm566_vm0, %v15142_v11 }
0x162c   : > { %5510 = vmatprep.mubr.bf16.mxu0 %v16853_v9  ;;  %5581 = vmatprep.mubr.bf16.mxu1 %v16853_v9 }
0x162d   : > { %11825 = vmatpush3.bf16.msra.mxu0 %v12831_v44  ;;  %11865 = vmatpush3.bf16.msra.mxu1 %v12832_v33 }
0x162e   : > { %11826 = vmatprep.subr.bf16.mxu0 %v12833_v36  ;;  %11866 = vmatprep.subr.bf16.mxu1 %v12834_v55 }
0x1631   : > { %11827 = vmatpush3.bf16.msra.mxu0 %v12835_v39  ;;  %11867 = vmatpush3.bf16.msra.mxu1 %v12836_v52 }
0x1632   : > { %11828 = vmatprep.subr.bf16.mxu0 %v12837_v41  ;;  %11868 = vmatprep.subr.bf16.mxu1 %v12838_v13 }
0x1633   : > { %10592 = vmatmul.mubr.msk.bf16.gmra.mxu0 %vm566_vm0, %v15158_v62  ;;  %10596 = vmatmul.mubr.msk.bf16.gmra.mxu1 %vm566_vm0, %v15158_v62 }
0x1634   : > { %5520 = vmatprep.mubr.bf16.mxu0 %v16853_v9  ;;  %5591 = vmatprep.mubr.bf16.mxu1 %v16853_v9 }
0x1635   : > { %11829 = vmatpush3.bf16.msra.mxu0 %v12839_v50  ;;  %11869 = vmatpush3.bf16.msra.mxu1 %v12840_v10 }
0x1636   : > { %11830 = vmatprep.subr.bf16.mxu0 %v12841_v3  ;;  %11870 = vmatprep.subr.bf16.mxu1 %v12842_v61 }
0x1639   : > { %11831 = vmatpush3.bf16.msra.mxu0 %v12843_v32  ;;  %11871 = vmatpush3.bf16.msra.mxu1 %v12844_v42 }
0x163a   : > { %11832 = vmatprep.subr.bf16.mxu0 %v12845_v16  ;;  %11872 = vmatprep.subr.bf16.mxu1 %v12846_v51 }
0x163b   : > { %10593 = vmatmul.mubr.msk.bf16.gmra.mxu0 %vm566_vm0, %v15173_v22  ;;  %10597 = vmatmul.mubr.msk.bf16.gmra.mxu1 %vm566_vm0, %v15173_v22 }
0x163c   : > { %5530 = vmatprep.mubr.bf16.mxu0 %v16853_v9  ;;  %5601 = vmatprep.mubr.bf16.mxu1 %v16853_v9 }
0x163d   : > { %11833 = vmatpush3.bf16.msra.mxu0 %v12847_v14  ;;  %11873 = vmatpush3.bf16.msra.mxu1 %v12848_v49 }
0x163e   : > { %11834 = vmatprep.subr.bf16.mxu0 %v12849_v26  ;;  %11874 = vmatprep.subr.bf16.mxu1 %v12850_v59 }
0x1641   : > { %11835 = vmatpush3.bf16.msra.mxu0 %v12851_v57  ;;  %11875 = vmatpush3.bf16.msra.mxu1 %v12852_v35 }
0x1642   : > { %11836 = vmatprep.subr.bf16.mxu0 %v12853_v1  ;;  %11876 = vmatprep.subr.bf16.mxu1 %v12854_v58 }
0x1643   : > { %10594 = vmatmul.mubr.msk.bf16.gmra.mxu0 %vm566_vm0, %v15185_v63  ;;  %10598 = vmatmul.mubr.msk.bf16.gmra.mxu1 %vm566_vm0, %v15185_v63 }
0x1645   : > { %11837 = vmatpush3.bf16.msra.mxu0 %v12855_v20  ;;  %11877 = vmatpush3.bf16.msra.mxu1 %v12856_v40 }
0x1646   : > { %11838 = vmatprep.subr.bf16.mxu0 %v12857_v6  ;;  %11878 = vmatprep.subr.bf16.mxu1 %v12858_v56 }
0x1649   : > { %11839 = vmatpush3.bf16.msra.mxu0 %v12859_v12  ;;  %11879 = vmatpush3.bf16.msra.mxu1 %v12860_v23 }
0x164a   : > { %11904 = vmatprep.subr.bf16.mxu0 %v12861_v5  ;;  %11944 = vmatprep.subr.bf16.mxu1 %v12862_v60 }
0x16cb   : > { %v5205_v45 = vpop.f32.mrf.mxu0  ;;  %v5276_v21 = vpop.f32.mrf.mxu1 }
0x16cc   : > { %v5206_v27 = vadd.f32 %v5205_v45, %v15324_v34  ;;  %v5277_v47 = vadd.f32 %v5276_v21, %v15328_v25 }
0x16cd   : > { %v15330_v4 = vpop.f32.mrf.mxu0  ;;  %v15332_v2 = vpop.f32.mrf.mxu1 }
0x16ce   : > { %v5313_v44 = vmax.f32 %v5206_v27, 0.0  ;;  %v5315_v33 = vmax.f32 %v5277_v47, 0.0 }
0x16cf   : > { %v5209_v19 = vpop.f32.mrf.mxu0  ;;  %v5280_v37 = vpop.f32.mrf.mxu1 }
0x16d0   : > { %v5210_v24 = vadd.f32 %v5209_v19, %v15324_v34  ;;  %v5281_v28 = vadd.f32 %v5280_v37, %v15328_v25 }
0x16d1   : > { %v15338_v15 = vpop.f32.mrf.mxu0  ;;  %v15340_v29 = vpop.f32.mrf.mxu1 }
0x16d2   : > { %v5317_v36 = vmax.f32 %v5210_v24, 0.0  ;;  %v5319_v55 = vmax.f32 %v5281_v28, 0.0 }
0x16d3   : > { %v5215_v39 = vpop.f32.mrf.mxu0  ;;  %v5286_v52 = vpop.f32.mrf.mxu1 }
0x16d4   : > { %v15342_v41 = vpack.c.bf16 %v5317_v36, %v5313_v44  ;;  %v15344_v13 = vpack.c.bf16 %v5319_v55, %v5315_v33  ;;  %v5216_v3 = vadd.f32 %v5215_v39, %v15324_v34  ;;  %v5287_v61 = vadd.f32 %v5286_v52, %v15328_v25 }
0x16d5   : > { %v15346_v50 = vpop.f32.mrf.mxu0  ;;  %v15348_v10 = vpop.f32.mrf.mxu1 }
0x16d6   : > { %v5321_v26 = vmax.f32 %v5216_v3, 0.0  ;;  %v5323_v59 = vmax.f32 %v5287_v61, 0.0 }
0x16d7   : > { %v5219_v32 = vpop.f32.mrf.mxu0  ;;  %v5290_v42 = vpop.f32.mrf.mxu1 }
0x16d8   : > { %v5220_v16 = vadd.f32 %v5219_v32, %v15324_v34  ;;  %v5291_v51 = vadd.f32 %v5290_v42, %v15328_v25 }
0x16d9   : > { %v15354_v14 = vpop.f32.mrf.mxu0  ;;  %v15356_v49 = vpop.f32.mrf.mxu1 }
0x16da   : > { %v5325_v57 = vmax.f32 %v5220_v16, 0.0  ;;  %v5327_v35 = vmax.f32 %v5291_v51, 0.0  ;;  %v10586_v16 = vld [vmem:[%s16773_s12 + $0x14] sm:$0xf] }
0x16db   : > { %v5225_v1 = vpop.f32.mrf.mxu0  ;;  %v5296_v58 = vpop.f32.mrf.mxu1 }
0x16dc   : > { %v15358_v20 = vpack.c.bf16 %v5325_v57, %v5321_v26  ;;  %v15360_v40 = vpack.c.bf16 %v5327_v35, %v5323_v59  ;;  %v5226_v12 = vadd.f32 %v5225_v1, %v15324_v34  ;;  %v5297_v23 = vadd.f32 %v5296_v58, %v15328_v25 }
0x16dd   : > { %v15362_v6 = vpop.f32.mrf.mxu0  ;;  %v15364_v56 = vpop.f32.mrf.mxu1  ;;  %v15390_v59 = vrot.slane %v10586_v16, %v14084_v17  ;;  %v15393_v57 = vrot.slane %v10586_v16, %v14087_v18  ;;  %v15396_v35 = vrot.slane %v10586_v16, %v14009_v8  ;;  %v15399_v1 = vrot.slane %v10586_v16, %v16854_v54 }
0x16de   : > { %v5329_v19 = vmax.f32 %v5226_v12, 0.0  ;;  %v5331_v37 = vmax.f32 %v5297_v23, 0.0 }
0x16df   : > { %v5229_v5 = vpop.f32.mrf.mxu0  ;;  %v5300_v60 = vpop.f32.mrf.mxu1 }
0x16e0   : > { %v5230_v45 = vadd.f32 %v5229_v5, %v15324_v34  ;;  %v5301_v21 = vadd.f32 %v5300_v60, %v15328_v25 }
0x16e1   : > { %v15370_v27 = vpop.f32.mrf.mxu0  ;;  %v15372_v47 = vpop.f32.mrf.mxu1 }
0x16e2   : > { %v5333_v24 = vmax.f32 %v5230_v45, 0.0  ;;  %v5335_v28 = vmax.f32 %v5301_v21, 0.0 }
0x16e3   : > { %v15374_v44 = vpop.f32.mrf.mxu0  ;;  %v15376_v33 = vpop.f32.mrf.mxu1 }
0x16e4   : > { %v15378_v36 = vpack.c.bf16 %v5333_v24, %v5329_v19  ;;  %v15380_v55 = vpack.c.bf16 %v5335_v28, %v5331_v37 }
0x16e5   : > { %v15382_v39 = vpop.f32.mrf.mxu0  ;;  %v15384_v52 = vpop.f32.mrf.mxu1 }
0x16e7   : > { %v5239_v3 = vpop.f32.mrf.mxu0  ;;  %v5310_v61 = vpop.f32.mrf.mxu1 }
0x16e9   : > { %v5240_v32 = vpop.f32.mrf.mxu0  ;;  %v5311_v42 = vpop.f32.mrf.mxu1 }
0x16eb   : > { %v5502_v51 = vpop.f32.mrf.mxu0  ;;  %v5573_v26 = vpop.f32.mrf.mxu1 }
0x16ec   : > { %v5503_v37 = vadd.f32 %v5502_v51, %v15396_v35  ;;  %v5574_v24 = vadd.f32 %v5573_v26, %v15399_v1 }
0x16ed   : > { %v5504_v58 = vpop.f32.mrf.mxu0  ;;  %v5575_v12 = vpop.f32.mrf.mxu1 }
0x16ee   : > { %v5505_v60 = vadd.f32 %v5504_v58, %v15390_v59  ;;  %v5576_v45 = vadd.f32 %v5575_v12, %v15393_v57  ;;  %v5610_v53 = vmax.f32 %v5503_v37, 0.0  ;;  %v12865_v37 = vld [vmem:[%s16774_s13 + $0x470] sm:$0xff]  }
0x16ef   : > { %v5506_v23 = vpop.f32.mrf.mxu0  ;;  %v5577_v5 = vpop.f32.mrf.mxu1 }
0x16f0   : > { %v5507_v21 = vadd.f32 %v5506_v23, %v15396_v35  ;;  %v5578_v19 = vadd.f32 %v5577_v5, %v15399_v1  ;;  %v5611_v30 = vmax.f32 %v5505_v60, 0.0  ;;  %v5613_v12 = vmax.f32 %v5576_v45, 0.0 }
0x16f1   : > { %v5508_v28 = vpop.f32.mrf.mxu0  ;;  %v5579_v3 = vpop.f32.mrf.mxu1  ;;  %v5612_v5 = vmax.f32 %v5574_v24, 0.0 }
0x16f2   : > { %v5509_v61 = vadd.f32 %v5508_v28, %v15390_v59  ;;  %v5580_v32 = vadd.f32 %v5579_v3, %v15393_v57  ;;  %v5614_v42 = vmax.f32 %v5507_v21, 0.0  ;;  %v5616_v16 = vmax.f32 %v5578_v19, 0.0  ;;  %v12863_v28 = vld [vmem:[%s16774_s13 + $0x438] sm:$0xff]  }
0x16f3   : > { %v5512_v0 = vpop.f32.mrf.mxu0  ;;  %v5583_v58 = vpop.f32.mrf.mxu1  ;;  %v12864_v21 = vld [vmem:[%s16774_s13 + $0x4b8] sm:$0xff]  }
0x16f4   : > { %v5615_v46 = vmax.f32 %v5509_v61, 0.0  ;;  %v5617_v23 = vmax.f32 %v5580_v32, 0.0  ;;  %v5638_v19 = vpack.c.bf16 %v5614_v42, %v5610_v53  ;;  %v5640_v3 = vpack.c.bf16 %v5616_v16, %v5612_v5 }
0x16f5   : > { %v5514_v38 = vpop.f32.mrf.mxu0  ;;  %v5585_v51 = vpop.f32.mrf.mxu1  ;;  %v5513_v53 = vadd.f32 %v5512_v0, %v15396_v35  ;;  %v12868_v0 = vld [vmem:[%s16774_s13 + $0x4b0] sm:$0xff]  }
0x16f6   : > { %v5639_v48 = vpack.c.bf16 %v5615_v46, %v5611_v30  ;;  %v5641_v26 = vpack.c.bf16 %v5617_v23, %v5613_v12  ;;  %v12866_v46 = vld [vmem:[%s16774_s13 + $0x4f0] sm:$0xff]   ;;  %v5515_v30 = vadd.f32 %v5514_v38, %v15390_v59  ;;  %v5586_v32 = vadd.f32 %v5585_v51, %v15393_v57 }
0x16f7   : > { %v5516_v60 = vpop.f32.mrf.mxu0  ;;  %v5587_v45 = vpop.f32.mrf.mxu1  ;;  %v5584_v12 = vadd.f32 %v5583_v58, %v15399_v1  ;;  %v12869_v58 = vld [vmem:[%s16774_s13 + $0x468] sm:$0xff]  }
0x16f8   : > { %v5517_v24 = vadd.f32 %v5516_v60, %v15396_v35  ;;  %v5588_v61 = vadd.f32 %v5587_v45, %v15399_v1  ;;  %5942 = vmatprep.mubr.bf16.mxu0 %v5639_v48  ;;  %6006 = vmatprep.mubr.bf16.mxu1 %v5641_v26  ;;  %v12867_v48 = vld [vmem:[%s16774_s13 + $0x430] sm:$0xff]   ;;  %v5618_v45 = vmax.f32 %v5513_v53, 0.0  ;;  %v12872_v53 = vld [vmem:[%s16774_s13 + $0x4a8] sm:$0xff]  }
0x16f9   : > { %v5518_v42 = vpop.f32.mrf.mxu0  ;;  %v5589_v16 = vpop.f32.mrf.mxu1  ;;  %5943 = vmatmul.mubr.bf16.vlgmr.msra.gmra.mxu0 %v5638_v19  ;;  %6007 = vmatmul.mubr.bf16.vlgmr.msra.gmra.mxu1 %v5640_v3  ;;  %v5620_v7 = vmax.f32 %v5584_v12, 0.0 }
0x16fa   : > { %v5519_v23 = vadd.f32 %v5518_v42, %v15390_v59  ;;  %v5590_v38 = vadd.f32 %v5589_v16, %v15393_v57  ;;  %11905 = vmatpush3.bf16.msra.mxu0 %v12863_v28  ;;  %11945 = vmatpush3.bf16.msra.mxu1 %v12864_v21  ;;  %v5622_v5 = vmax.f32 %v5517_v24, 0.0  ;;  %v12870_v28 = vld [vmem:[%s16774_s13 + $0x4e8] sm:$0xff]   ;;  %v5619_v21 = vmax.f32 %v5515_v30, 0.0 }
0x16fb   : > { %v5522_v51 = vpop.f32.mrf.mxu0  ;;  %v5593_v26 = vpop.f32.mrf.mxu1  ;;  %11906 = vmatprep.subr.bf16.mxu0 %v12865_v37  ;;  %11946 = vmatprep.subr.bf16.mxu1 %v12866_v46  ;;  %v5624_v19 = vmax.f32 %v5588_v61, 0.0  ;;  %v5621_v42 = vmax.f32 %v5586_v32, 0.0  ;;  %v12871_v46 = vld [vmem:[%s16774_s13 + $0x428] sm:$0xff]   ;;  %v12873_v32 = vld [vmem:[%s16774_s13 + $0x460] sm:$0xff]  }
0x16fc   : > { %v5623_v3 = vmax.f32 %v5519_v23, 0.0  ;;  %v5625_v60 = vmax.f32 %v5590_v38, 0.0  ;;  %v5642_v43 = vpack.c.bf16 %v5622_v5, %v5618_v45  ;;  %v5523_v5 = vadd.f32 %v5522_v51, %v15396_v35 }
0x16fd   : > { %v5524_v16 = vpop.f32.mrf.mxu0  ;;  %v5595_v24 = vpop.f32.mrf.mxu1  ;;  %v5644_v12 = vpack.c.bf16 %v5624_v19, %v5620_v7 }
0x16fe   : > { %11907 = vmatpush3.bf16.msra.mxu0 %v12867_v48  ;;  %11947 = vmatpush3.bf16.msra.mxu1 %v12868_v0  ;;  %v5643_v37 = vpack.c.bf16 %v5623_v3, %v5619_v21  ;;  %v5525_v54 = vadd.f32 %v5524_v16, %v15390_v59  ;;  %v5645_v61 = vpack.c.bf16 %v5625_v60, %v5621_v42  ;;  %v12874_v0 = vld [vmem:[%s16774_s13 + $0x4e0] sm:$0xff]  }
0x16ff   : > { %v5526_v8 = vpop.f32.mrf.mxu0  ;;  %v5597_v30 = vpop.f32.mrf.mxu1  ;;  %11908 = vmatprep.subr.bf16.mxu0 %v12869_v58  ;;  %11948 = vmatprep.subr.bf16.mxu1 %v12870_v28  ;;  %v5596_v23 = vadd.f32 %v5595_v24, %v15393_v57  ;;  %v5594_v58 = vadd.f32 %v5593_v26, %v15399_v1  ;;  %v12877_v26 = vld [vmem:[%s16774_s13 + $0x458] sm:$0xff]  }
0x1700   : > { %v5527_v38 = vadd.f32 %v5526_v8, %v15396_v35  ;;  %v5598_v48 = vadd.f32 %v5597_v30, %v15399_v1  ;;  %5950 = vmatprep.mubr.bf16.mxu0 %v5643_v37  ;;  %6014 = vmatprep.mubr.bf16.mxu1 %v5645_v61  ;;  %v12875_v8 = vld [vmem:[%s16774_s13 + $0x420] sm:$0xff]   ;;  %v5627_v3 = vmax.f32 %v5525_v54, 0.0  ;;  %v15472_v54 = vrot.slane %v15320_v31, %v14084_v17 }
0x1701   : > { %v5528_v28 = vpop.f32.mrf.mxu0  ;;  %v5599_v21 = vpop.f32.mrf.mxu1  ;;  %5951 = vmatmul.mubr.bf16.gmra.mxu0 %v5642_v43  ;;  %6015 = vmatmul.mubr.bf16.gmra.mxu1 %v5644_v12  ;;  %v12876_v43 = vld [vmem:[%s16774_s13 + $0x4a0] sm:$0xff]   ;;  %v5629_v42 = vmax.f32 %v5596_v23, 0.0  ;;  %v5628_v30 = vmax.f32 %v5594_v58, 0.0 }
0x1702   : > { %v5529_v7 = vadd.f32 %v5528_v28, %v15390_v59  ;;  %v5600_v19 = vadd.f32 %v5599_v21, %v15393_v57  ;;  %11909 = vmatpush3.bf16.msra.mxu0 %v12871_v46  ;;  %v5630_v60 = vmax.f32 %v5527_v38, 0.0  ;;  %11949 = vmatpush3.bf16.msra.mxu1 %v12872_v53  ;;  %v5632_v16 = vmax.f32 %v5598_v48, 0.0 }
0x1703   : > { %v5532_v51 = vpop.f32.mrf.mxu0  ;;  %v5603_v45 = vpop.f32.mrf.mxu1  ;;  %11910 = vmatprep.subr.bf16.mxu0 %v12873_v32  ;;  %11950 = vmatprep.subr.bf16.mxu1 %v12874_v0  ;;  %v5626_v46 = vmax.f32 %v5523_v5, 0.0  ;;  %v12878_v32 = vld [vmem:[%s16774_s13 + $0x4d8] sm:$0xff]   ;;  %v15484_v5 = vrot.slane %v15320_v31, %v14087_v18 }
0x1704   : > { %v5631_v24 = vmax.f32 %v5529_v7, 0.0  ;;  %v5633_v37 = vmax.f32 %v5600_v19, 0.0  ;;  %v12879_v0 = vld [vmem:[%s16774_s13 + $0x418] sm:$0xff]   ;;  %v5533_v28 = vadd.f32 %v5532_v51, %v15396_v35  ;;  %v5648_v19 = vpack.c.bf16 %v5632_v16, %v5628_v30 }
0x1705   : > { %v5534_v61 = vpop.f32.mrf.mxu0  ;;  %v5605_v53 = vpop.f32.mrf.mxu1  ;;  %v5646_v58 = vpack.c.bf16 %v5630_v60, %v5626_v46  ;;  %v5212_v35 = vadd.f32 %v15338_v15, %v15472_v54  ;;  %v5208_v15 = vadd.f32 %v15330_v4, %v15472_v54  ;;  %v12886_v4 = vld [vmem:[%s16774_s13 + $0x4c8] sm:$0xff]  }
0x1706   : > { %v5535_v12 = vadd.f32 %v5534_v61, %v15390_v59  ;;  %v5606_v23 = vadd.f32 %v5605_v53, %v15393_v57  ;;  %11911 = vmatpush3.bf16.msra.mxu0 %v12875_v8  ;;  %v5647_v38 = vpack.c.bf16 %v5631_v24, %v5627_v3  ;;  %v5649_v48 = vpack.c.bf16 %v5633_v37, %v5629_v42  ;;  %v12880_v59 = vld [vmem:[%s16774_s13 + $0x498] sm:$0xff]   ;;  %v12881_v57 = vld [vmem:[%s16774_s13 + $0x450] sm:$0xff]   ;;  %v12887_v53 = vld [vmem:[%s16774_s13 + $0x408] sm:$0xff]  }
0x1707   : > { %11951 = vmatpush3.bf16.msra.mxu1 %v12876_v43  ;;  %v5536_v21 = vpop.f32.mrf.mxu0  ;;  %v5607_v7 = vpop.f32.mrf.mxu1  ;;  %11912 = vmatprep.subr.bf16.mxu0 %v12877_v26  ;;  %v5604_v8 = vadd.f32 %v5603_v45, %v15399_v1  ;;  %v12882_v43 = vld [vmem:[%s16774_s13 + $0x4d0] sm:$0xff]   ;;  %v5283_v26 = vadd.f32 %v15340_v29, %v15484_v5  ;;  %v5634_v16 = vmax.f32 %v5533_v28, 0.0  ;;  %v12885_v29 = vld [vmem:[%s16774_s13 + $0x448] sm:$0xff]   ;;  %v5279_v37 = vadd.f32 %v15332_v2, %v15484_v5  ;;  %v10729_v28 = vld [vmem:[%s16772_s11 + $0xe0] sm:$0xff] }
0x1708   : > { %v5635_v31 = vmax.f32 %v5535_v12, 0.0  ;;  %v5637_v3 = vmax.f32 %v5606_v23, 0.0  ;;  %5958 = vmatprep.mubr.bf16.mxu0 %v5647_v38  ;;  %6022 = vmatprep.mubr.bf16.mxu1 %v5649_v48  ;;  %v12883_v45 = vld [vmem:[%s16774_s13 + $0x410] sm:$0xff]   ;;  %v5318_v30 = vmax.f32 %v5212_v35, 0.0  ;;  %v12888_v2 = vld [vmem:[%s16774_s13 + $0x488] sm:$0xff]   ;;  %v5222_v38 = vadd.f32 %v15354_v14, %v15472_v54  ;;  %v12890_v14 = vld [vmem:[%s16774_s13 + $0x4c0] sm:$0xff]  }
0x1709   : > { %v5537_v60 = vpop.f32.mrf.mxu0  ;;  %v5608_v51 = vpop.f32.mrf.mxu1  ;;  %5959 = vmatmul.mubr.bf16.gmra.mxu0 %v5646_v58  ;;  %11952 = vmatprep.subr.bf16.mxu1 %v12878_v32  ;;  %v12884_v24 = vld [vmem:[%s16774_s13 + $0x490] sm:$0xff]   ;;  %v5636_v46 = vmax.f32 %v5604_v8, 0.0  ;;  %v5320_v61 = vmax.f32 %v5283_v26, 0.0  ;;  %v5314_v32 = vmax.f32 %v5208_v15, 0.0  ;;  %v5650_v12 = vpack.c.bf16 %v5634_v16, %v5634_v16  ;;  %v10727_v58 = vld [vmem:[%s16772_s11 + $0xa0] sm:$0xff] }
0x170a   : > { %v5651_v42 = vpack.c.bf16 %v5635_v31, %v5635_v31  ;;  %v5653_v1 = vpack.c.bf16 %v5637_v3, %v5637_v3  ;;  %6023 = vmatmul.mubr.bf16.gmra.mxu1 %v5648_v19  ;;  %11913 = vmatpush3.bf16.msra.mxu0 %v12879_v0  ;;  %v5316_v23 = vmax.f32 %v5279_v37, 0.0  ;;  %v12889_v0 = vld [vmem:[%s16774_s13 + $0x440] sm:$0xff]   ;;  %v5293_v21 = vadd.f32 %v15356_v49, %v15484_v5 }
0x170b   : > { %11953 = vmatpush3.bf16.msra.mxu1 %v12880_v59  ;;  %11914 = vmatprep.subr.bf16.mxu0 %v12881_v57  ;;  %v5652_v48 = vpack.c.bf16 %v5636_v46, %v5636_v46  ;;  %v5342_v7 = vpack.c.bf16 %v5318_v30, %v5314_v32  ;;  %v10728_v59 = vld [vmem:[%s16772_s11 + $0xa8] sm:$0xff]  ;;  %v5218_v19 = vadd.f32 %v15346_v50, %v15472_v54  ;;  %v12891_v8 = vld [vmem:[%s16774_s13 + $0x400] sm:$0xff]   ;;  %v5326_v60 = vmax.f32 %v5222_v38, 0.0  ;;  %v12899_v32 = vld [vmem:[%s16774_s13 + $0x630] sm:$0xff]  }
0x170c   : > { %5966 = vmatprep.mubr.bf16.mxu0 %v5651_v42  ;;  %6030 = vmatprep.mubr.bf16.mxu1 %v5653_v1  ;;  %v10730_v57 = vld [vmem:[%s16772_s11 + $0xe8] sm:$0xff]  ;;  %v5344_v49 = vpack.c.bf16 %v5320_v61, %v5316_v23  ;;  %v5289_v31 = vadd.f32 %v15348_v10, %v15484_v5  ;;  %v12892_v3 = vld [vmem:[%s16774_s13 + $0x480] sm:$0xff]   ;;  %v10733_v35 = vcombine.high %v10727_v58, %v10729_v28  ;;  %v5328_v51 = vmax.f32 %v5293_v21, 0.0 }
0x170d   : > { %11954 = vmatprep.subr.bf16.mxu1 %v12882_v43  ;;  %v10735_v50 = vcombine.high %v10728_v59, %v10730_v57  ;;  %v5322_v43 = vmax.f32 %v5218_v19, 0.0  ;;  %v10732_v42 = vcombine.low %v10727_v58, %v10729_v28  ;;  %v5232_v10 = vadd.f32 %v15370_v27, %v15472_v54  ;;  %v12902_v23 = vld [vmem:[%s16774_s13 + $0x6e8] sm:$0xff]   ;;  %v12906_v58 = vld [vmem:[%s16774_s13 + $0x6e0] sm:$0xff]   ;;  %v12913_v19 = vld [vmem:[%s16774_s13 + $0x650] sm:$0xff]  }
0x170e   : > { %11915 = vmatpush3.bf16.msra.mxu0 %v12883_v45  ;;  %v5324_v26 = vmax.f32 %v5289_v31, 0.0  ;;  %v10734_v1 = vcombine.low %v10728_v59, %v10730_v57  ;;  %v5303_v15 = vadd.f32 %v15372_v47, %v15484_v5  ;;  %v5236_v61 = vadd.f32 %v15374_v44, %v15324_v34  ;;  %v12893_v34 = vld [vmem:[%s16774_s13 + $0x678] sm:$0xff]   ;;  %v12903_v38 = vld [vmem:[%s16774_s13 + $0x628] sm:$0xff]   ;;  %v12907_v28 = vld [vmem:[%s16774_s13 + $0x620] sm:$0xff]  }
0x170f   : > { %11955 = vmatpush3.bf16.msra.mxu1 %v12884_v24  ;;  %11916 = vmatprep.subr.bf16.mxu0 %v12885_v29  ;;  %v5346_v45 = vpack.c.bf16 %v5326_v60, %v5322_v43  ;;  %v5228_v24 = vadd.f32 %v15362_v6, %v15472_v54  ;;  %v5299_v29 = vadd.f32 %v15364_v56, %v15484_v5  ;;  %v5334_v27 = vmax.f32 %v5232_v10, 0.0  ;;  %v12895_v44 = vld [vmem:[%s16774_s13 + $0x638] sm:$0xff]   ;;  %v12908_v21 = vld [vmem:[%s16774_s13 + $0x6a0] sm:$0xff]   ;;  %v12916_v31 = vld [vmem:[%s16774_s13 + $0x690] sm:$0xff]  }
0x1710   : > { %11956 = vmatprep.subr.bf16.mxu1 %v12886_v4  ;;  %v5348_v16 = vpack.c.bf16 %v5328_v51, %v5324_v26  ;;  %v5336_v37 = vmax.f32 %v5303_v15, 0.0  ;;  %v5309_v6 = vadd.f32 %v15384_v52, %v15484_v5  ;;  %v12911_v59 = vld [vmem:[%s16774_s13 + $0x618] sm:$0xff]   ;;  %v12919_v60 = vld [vmem:[%s16774_s13 + $0x608] sm:$0xff]   ;;  %v12921_v51 = vld [vmem:[%s16774_s13 + $0x640] sm:$0xff]  }
0x1711   : > { %5967 = vmatmul.mubr.bf16.gmra.mxu0 %v5650_v12  ;;  %v5330_v46 = vmax.f32 %v5228_v24, 0.0  ;;  %v5332_v4 = vmax.f32 %v5299_v29, 0.0  ;;  %v12900_v12 = vld [vmem:[%s16774_s13 + $0x6b0] sm:$0xff]   ;;  %v12912_v57 = vld [vmem:[%s16774_s13 + $0x698] sm:$0xff]   ;;  %v12922_v43 = vld [vmem:[%s16774_s13 + $0x6c0] sm:$0xff]  }
0x1712   : > { %6031 = vmatmul.mubr.bf16.gmra.mxu1 %v5652_v48  ;;  %11917 = vmatpush3.bf16.msra.mxu0 %v12887_v53  ;;  %v5340_v30 = vmax.f32 %v5309_v6, 0.0  ;;  %v5307_v53 = vadd.f32 %v15376_v33, %v15328_v25  ;;  %v12894_v25 = vld [vmem:[%s16774_s13 + $0x6f8] sm:$0xff]   ;;  %v12904_v48 = vld [vmem:[%s16774_s13 + $0x6a8] sm:$0xff]   ;;  %v12923_v26 = vld [vmem:[%s16774_s13 + $0x600] sm:$0xff]  }
0x1713   : > { %6262 = vmatprep.mubr.bf16.mxu0 %v5342_v7  ;;  %11957 = vmatpush3.bf16.msra.mxu1 %v12888_v2  ;;  %v5350_v47 = vpack.c.bf16 %v5334_v27, %v5330_v46  ;;  %v12896_v33 = vld [vmem:[%s16774_s13 + $0x6b8] sm:$0xff]   ;;  %v12901_v2 = vld [vmem:[%s16774_s13 + $0x668] sm:$0xff]   ;;  %v15700_v10 = vld [vmem:[%s16772_s11 + $0xb0] sm:$0xff] }
0x1714   : > { %6326 = vmatprep.mubr.bf16.mxu1 %v5344_v49  ;;  %11918 = vmatprep.subr.bf16.mxu0 %v12889_v0  ;;  %v12905_v0 = vld [vmem:[%s16774_s13 + $0x660] sm:$0xff]   ;;  %v12909_v7 = vld [vmem:[%s16774_s13 + $0x658] sm:$0xff]   ;;  %v12914_v49 = vld [vmem:[%s16774_s13 + $0x6d0] sm:$0xff]  }
0x1715   : > { %11958 = vmatprep.subr.bf16.mxu1 %v12890_v14  ;;  %v12910_v14 = vld [vmem:[%s16774_s13 + $0x6d8] sm:$0xff]  }
0x1716   : > { %11919 = vmatpush3.bf16.msra.mxu0 %v12891_v8  ;;  %v12915_v8 = vld [vmem:[%s16774_s13 + $0x610] sm:$0xff]   ;;  %v15719_v24 = vld [vmem:[%s16772_s11 + $0xf8] sm:$0xff] }
0x1717   : > { %11959 = vmatpush3.bf16.msra.mxu1 %v12892_v3  ;;  %6418 = vmatprep.subr.bf16.mxu0 %v10733_v35  ;;  %v12917_v3 = vld [vmem:[%s16774_s13 + $0x648] sm:$0xff]  }
0x1718   : > { %6489 = vmatprep.subr.bf16.mxu1 %v10735_v50  ;;  %v12918_v35 = vld [vmem:[%s16774_s13 + $0x6c8] sm:$0xff]  }
0x1719   : > { %6263 = vmatmul.mubr.bf16.vlgmr.msra.gmra.mxu0 %v15342_v41  ;;  %v5238_v41 = vadd.f32 %v15382_v39, %v15472_v54  ;;  %v5356_v54 = vpack.c.bf16 %v5340_v30, %v5340_v30  ;;  %v12920_v50 = vld [vmem:[%s16774_s13 + $0x688] sm:$0xff]  }
0x171a   : > { %6327 = vmatmul.mubr.bf16.vlgmr.msra.gmra.mxu1 %v15344_v13  ;;  %6270 = vmatprep.mubr.bf16.mxu0 %v5346_v45  ;;  %v5352_v13 = vpack.c.bf16 %v5336_v37, %v5332_v4  ;;  %v15710_v45 = vld [vmem:[%s16772_s11 + $0xb8] sm:$0xff] }
0x171b   : > { %6334 = vmatprep.mubr.bf16.mxu1 %v5348_v16  ;;  %6419 = vmatpush1.bf16.msra.mxu0 %v10732_v42  ;;  %v5338_v56 = vmax.f32 %v5238_v41, 0.0  ;;  %v12924_v42 = vld [vmem:[%s16774_s13 + $0x680] sm:$0xff]   ;;  %v10847_v29 = vcombine.low %v15710_v45, %v15719_v24  ;;  %v10848_v27 = vcombine.high %v15710_v45, %v15719_v24 }
0x171c   : > { %6490 = vmatpush1.bf16.msra.mxu1 %v10734_v1  ;;  %11984 = vmatprep.subr.bf16.mxu0 %v12893_v34  ;;  %v15705_v1 = vld [vmem:[%s16772_s11 + $0xf0] sm:$0xff] }
0x171d   : > { %v5354_v39 = vpack.c.bf16 %v5338_v56, %v5338_v56  ;;  %12024 = vmatprep.subr.bf16.mxu1 %v12894_v25  ;;  %v10845_v15 = vcombine.low %v15700_v10, %v15705_v1  ;;  %v10846_v16 = vcombine.high %v15700_v10, %v15705_v1 }
0x1721   : > { %6271 = vmatmul.mubr.bf16.gmra.mxu0 %v15358_v20  ;;  %v5337_v20 = vmax.f32 %v5236_v61, 0.0 }
0x1722   : > { %6335 = vmatmul.mubr.bf16.gmra.mxu1 %v15360_v40  ;;  %6278 = vmatprep.mubr.bf16.mxu0 %v5350_v47  ;;  %v5339_v40 = vmax.f32 %v5307_v53, 0.0 }
0x1723   : > { %6342 = vmatprep.mubr.bf16.mxu1 %v5352_v13  ;;  %v5353_v52 = vpack.c.bf16 %v5337_v20, %v5337_v20 }
0x1724   : > { %v5355_v5 = vpack.c.bf16 %v5339_v40, %v5339_v40 }
0x1729   : > { %6279 = vmatmul.mubr.bf16.gmra.mxu0 %v15378_v36  ;;  %v12897_v36 = vld [vmem:[%s16774_s13 + $0x670] sm:$0xff]  }
0x172a   : > { %6343 = vmatmul.mubr.bf16.gmra.mxu1 %v15380_v55  ;;  %6286 = vmatprep.mubr.bf16.mxu0 %v5354_v39  ;;  %v12898_v55 = vld [vmem:[%s16774_s13 + $0x6f0] sm:$0xff]  }
0x172b   : > { %6350 = vmatprep.mubr.bf16.mxu1 %v5356_v54 }
0x1731   : > { %6287 = vmatmul.mubr.bf16.gmra.mxu0 %v5353_v52 }
0x1732   : > { %6351 = vmatmul.mubr.bf16.gmra.mxu1 %v5355_v5  ;;  %6436 = vmatprep.mubr.bf16.mxu0 %v16853_v9 }
0x1733   : > { %6507 = vmatprep.mubr.bf16.mxu1 %v16853_v9 }
0x1739   : > { %10736 = vmatmul.mubr.msk.bf16.vlgmr.msra.gmra.mxu0 %vm566_vm0, %v15142_v11 }
0x173a   : > { %10740 = vmatmul.mubr.msk.bf16.vlgmr.msra.gmra.mxu1 %vm566_vm0, %v15142_v11  ;;  %6446 = vmatprep.mubr.bf16.mxu0 %v16853_v9 }
0x173b   : > { %6517 = vmatprep.mubr.bf16.mxu1 %v16853_v9  ;;  %11985 = vmatpush3.bf16.msra.mxu0 %v12895_v44 }
0x173c   : > { %12025 = vmatpush3.bf16.msra.mxu1 %v12896_v33  ;;  %11986 = vmatprep.subr.bf16.mxu0 %v12897_v36 }
0x173d   : > { %12026 = vmatprep.subr.bf16.mxu1 %v12898_v55 }
0x173f   : > { %11987 = vmatpush3.bf16.msra.mxu0 %v12899_v32 }
0x1740   : > { %12027 = vmatpush3.bf16.msra.mxu1 %v12900_v12  ;;  %11988 = vmatprep.subr.bf16.mxu0 %v12901_v2 }
0x1741   : > { %10737 = vmatmul.mubr.msk.bf16.gmra.mxu0 %vm566_vm0, %v15158_v62  ;;  %12028 = vmatprep.subr.bf16.mxu1 %v12902_v23 }
0x1742   : > { %10741 = vmatmul.mubr.msk.bf16.gmra.mxu1 %vm566_vm0, %v15158_v62  ;;  %6456 = vmatprep.mubr.bf16.mxu0 %v16853_v9 }
0x1743   : > { %6527 = vmatprep.mubr.bf16.mxu1 %v16853_v9  ;;  %11989 = vmatpush3.bf16.msra.mxu0 %v12903_v38 }
0x1744   : > { %12029 = vmatpush3.bf16.msra.mxu1 %v12904_v48  ;;  %11990 = vmatprep.subr.bf16.mxu0 %v12905_v0 }
0x1745   : > { %12030 = vmatprep.subr.bf16.mxu1 %v12906_v58 }
0x1747   : > { %11991 = vmatpush3.bf16.msra.mxu0 %v12907_v28 }
0x1748   : > { %12031 = vmatpush3.bf16.msra.mxu1 %v12908_v21  ;;  %11992 = vmatprep.subr.bf16.mxu0 %v12909_v7 }
0x1749   : > { %10738 = vmatmul.mubr.msk.bf16.gmra.mxu0 %vm566_vm0, %v15173_v22  ;;  %12032 = vmatprep.subr.bf16.mxu1 %v12910_v14 }
0x174a   : > { %10742 = vmatmul.mubr.msk.bf16.gmra.mxu1 %vm566_vm0, %v15173_v22  ;;  %6466 = vmatprep.mubr.bf16.mxu0 %v16853_v9 }
0x174b   : > { %6537 = vmatprep.mubr.bf16.mxu1 %v16853_v9  ;;  %11993 = vmatpush3.bf16.msra.mxu0 %v12911_v59 }
0x174c   : > { %12033 = vmatpush3.bf16.msra.mxu1 %v12912_v57  ;;  %11994 = vmatprep.subr.bf16.mxu0 %v12913_v19 }
0x174d   : > { %12034 = vmatprep.subr.bf16.mxu1 %v12914_v49 }
0x174f   : > { %11995 = vmatpush3.bf16.msra.mxu0 %v12915_v8 }
0x1750   : > { %12035 = vmatpush3.bf16.msra.mxu1 %v12916_v31  ;;  %11996 = vmatprep.subr.bf16.mxu0 %v12917_v3 }
0x1751   : > { %10739 = vmatmul.mubr.msk.bf16.gmra.mxu0 %vm566_vm0, %v15185_v63  ;;  %12036 = vmatprep.subr.bf16.mxu1 %v12918_v35 }
0x1752   : > { %10743 = vmatmul.mubr.msk.bf16.gmra.mxu1 %vm566_vm0, %v15185_v63 }
0x1753   : > { %11997 = vmatpush3.bf16.msra.mxu0 %v12919_v60 }
0x1754   : > { %12037 = vmatpush3.bf16.msra.mxu1 %v12920_v50  ;;  %11998 = vmatprep.subr.bf16.mxu0 %v12921_v51 }
0x1755   : > { %12038 = vmatprep.subr.bf16.mxu1 %v12922_v43 }
0x1757   : > { %11999 = vmatpush3.bf16.msra.mxu0 %v12923_v26 }
0x1758   : > { %12039 = vmatpush3.bf16.msra.mxu1 %v12924_v42  ;;  %7041 = vmatprep.subr.bf16.mxu0 %v10846_v16 }
0x1759   : > { %7112 = vmatprep.subr.bf16.mxu1 %v10848_v27 }
0x17b9   : > { %v11840_v37 = vpop.f32.mrf.mxu0  ;;  %v11880_v46 = vpop.f32.mrf.mxu1 }
0x17bb   : > { %v11841_v4 = vpop.f32.mrf.mxu0  ;;  %v11881_v41 = vpop.f32.mrf.mxu1 }
0x17bc   : > { %v11842_v47 = vadd.f32 %v11841_v4, %v11840_v37  ;;  %v11882_v6 = vadd.f32 %v11881_v41, %v11880_v46 }
0x17bd   : > { %v11843_v13 = vpop.f32.mrf.mxu0  ;;  %v11883_v56 = vpop.f32.mrf.mxu1 }
0x17be   : > { %v6009_v30 = vadd.f32 %v11882_v6, %v11842_v47 }
0x17bf   : > { %v11844_v61 = vpop.f32.mrf.mxu0  ;;  %v11884_v53 = vpop.f32.mrf.mxu1 }
0x17c0   : > { %v11845_v39 = vadd.f32 %v11844_v61, %v11843_v13  ;;  %v11885_v54 = vadd.f32 %v11884_v53, %v11883_v56 }
0x17c1   : > { %v11846_v20 = vpop.f32.mrf.mxu0  ;;  %v11886_v52 = vpop.f32.mrf.mxu1 }
0x17c2   : > { %v6012_v40 = vadd.f32 %v11885_v54, %v11845_v39 }
0x17c3   : > { %v11847_v5 = vpop.f32.mrf.mxu0  ;;  %v11887_v25 = vpop.f32.mrf.mxu1 }
0x17c4   : > { %v11848_v34 = vadd.f32 %v11847_v5, %v11846_v20  ;;  %v11888_v44 = vadd.f32 %v11887_v25, %v11886_v52 }
0x17c5   : > { %v11849_v33 = vpop.f32.mrf.mxu0  ;;  %v11889_v36 = vpop.f32.mrf.mxu1 }
0x17c6   : > { %v6017_v55 = vadd.f32 %v11888_v44, %v11848_v34 }
0x17c7   : > { %v11850_v32 = vpop.f32.mrf.mxu0  ;;  %v11890_v2 = vpop.f32.mrf.mxu1 }
0x17c8   : > { %v11851_v12 = vadd.f32 %v11850_v32, %v11849_v33  ;;  %v11891_v23 = vadd.f32 %v11890_v2, %v11889_v36 }
0x17c9   : > { %v11852_v38 = vpop.f32.mrf.mxu0 }
0x17ca   : > { %v11892_v48 = vpop.f32.mrf.mxu1  ;;  %v6020_v0 = vadd.f32 %v11891_v23, %v11851_v12 }
0x17cb   : > { %v11853_v58 = vpop.f32.mrf.mxu0 }
0x17cc   : > { %v11854_v28 = vadd.f32 %v11853_v58, %v11852_v38  ;;  %v11893_v21 = vpop.f32.mrf.mxu1 }
0x17cd   : > { %v11894_v7 = vadd.f32 %v11893_v21, %v11892_v48  ;;  %v11855_v14 = vpop.f32.mrf.mxu0 }
0x17ce   : > { %v11895_v59 = vpop.f32.mrf.mxu1 }
0x17cf   : > { %v6025_v57 = vadd.f32 %v11894_v7, %v11854_v28  ;;  %v11856_v19 = vpop.f32.mrf.mxu0 }
0x17d0   : > { %v11857_v49 = vadd.f32 %v11856_v19, %v11855_v14  ;;  %v11896_v8 = vpop.f32.mrf.mxu1 }
0x17d1   : > { %v11897_v31 = vadd.f32 %v11896_v8, %v11895_v59  ;;  %v11858_v3 = vpop.f32.mrf.mxu0 }
0x17d2   : > { %v11898_v35 = vpop.f32.mrf.mxu1 }
0x17d3   : > { %v6028_v60 = vadd.f32 %v11897_v31, %v11857_v49  ;;  %v11859_v50 = vpop.f32.mrf.mxu0 }
0x17d4   : > { %v11860_v51 = vadd.f32 %v11859_v50, %v11858_v3  ;;  %v11899_v43 = vpop.f32.mrf.mxu1 }
0x17d5   : > { %v11900_v26 = vadd.f32 %v11899_v43, %v11898_v35  ;;  %v11861_v42 = vpop.f32.mrf.mxu0 }
0x17d6   : > { %v11901_v16 = vpop.f32.mrf.mxu1 }
0x17d7   : > { %v6033_v27 = vadd.f32 %v11900_v26, %v11860_v51  ;;  %v11862_v37 = vpop.f32.mrf.mxu0 }
0x17d8   : > { %v11902_v46 = vpop.f32.mrf.mxu1 }
0x17d9   : > { %v11920_v4 = vpop.f32.mrf.mxu0 }
0x17da   : > { %v11960_v41 = vpop.f32.mrf.mxu1 }
0x17db   : > { %v11921_v47 = vpop.f32.mrf.mxu0 }
0x17dc   : > { %v11922_v6 = vadd.f32 %v11921_v47, %v11920_v4  ;;  %v11961_v13 = vpop.f32.mrf.mxu1 }
0x17dd   : > { %v11962_v56 = vadd.f32 %v11961_v13, %v11960_v41  ;;  %v11923_v61 = vpop.f32.mrf.mxu0 }
0x17de   : > { %v6265_v53 = vadd.f32 %v11922_v6, %v6009_v30  ;;  %v11963_v39 = vpop.f32.mrf.mxu1 }
0x17df   : > { %v11924_v54 = vpop.f32.mrf.mxu0 }
0x17e0   : > { %v15725_v20 = vadd.f32 %v11962_v56, %v6265_v53  ;;  %v11925_v52 = vadd.f32 %v11924_v54, %v11923_v61  ;;  %v11964_v5 = vpop.f32.mrf.mxu1 }
0x17e1   : > { %v11926_v34 = vpop.f32.mrf.mxu0  ;;  %v11965_v44 = vadd.f32 %v11964_v5, %v11963_v39  ;;  %v10731_v5 = vld [vmem:[%s16773_s12 + $0x18] sm:$0xf] }
0x17e2   : > { %v6268_v25 = vadd.f32 %v11925_v52, %v6012_v40  ;;  %v11966_v33 = vpop.f32.mrf.mxu1 }
0x17e3   : > { %v11927_v36 = vpop.f32.mrf.mxu0 }
0x17e4   : > { %v15727_v32 = vadd.f32 %v11965_v44, %v6268_v25  ;;  %v11928_v12 = vadd.f32 %v11927_v36, %v11926_v34  ;;  %v11967_v2 = vpop.f32.mrf.mxu1  ;;  %v15743_v25 = vrot.slane %v10731_v5, %v14084_v17  ;;  %v16876_v44 = vld [vmem:[#allocation20_spill] sm:$0xff] }
0x17e5   : > { %v11968_v23 = vadd.f32 %v11967_v2, %v11966_v33  ;;  %v11929_v38 = vpop.f32.mrf.mxu0  ;;  %v15746_v33 = vrot.slane %v10731_v5, %v16876_v44 }
0x17e6   : > { %v6273_v48 = vadd.f32 %v11928_v12, %v6017_v55  ;;  %v11969_v58 = vpop.f32.mrf.mxu1  ;;  %v16877_v12 = vld [vmem:[#allocation21_spill] sm:$0xff] }
0x17e7   : > { %v11930_v30 = vpop.f32.mrf.mxu0  ;;  %v15752_v2 = vrot.slane %v10731_v5, %v16877_v12 }
0x17e8   : > { %v15729_v28 = vadd.f32 %v11968_v23, %v6273_v48  ;;  %v11931_v21 = vadd.f32 %v11930_v30, %v11929_v38  ;;  %v11970_v7 = vpop.f32.mrf.mxu1 }
0x17e9   : > { %v11932_v14 = vpop.f32.mrf.mxu0  ;;  %v11971_v19 = vadd.f32 %v11970_v7, %v11969_v58 }
0x17ea   : > { %v6276_v59 = vadd.f32 %v11931_v21, %v6020_v0  ;;  %v11972_v40 = vpop.f32.mrf.mxu1 }
0x17eb   : > { %v11933_v49 = vpop.f32.mrf.mxu0 }
0x17ec   : > { %v15731_v8 = vadd.f32 %v11971_v19, %v6276_v59  ;;  %v11934_v31 = vadd.f32 %v11933_v49, %v11932_v14  ;;  %v11973_v3 = vpop.f32.mrf.mxu1 }
0x17ed   : > { %v11974_v35 = vadd.f32 %v11973_v3, %v11972_v40  ;;  %v11935_v50 = vpop.f32.mrf.mxu0 }
0x17ee   : > { %v6281_v51 = vadd.f32 %v11934_v31, %v6025_v57  ;;  %v11975_v43 = vpop.f32.mrf.mxu1 }
0x17ef   : > { %v11936_v55 = vpop.f32.mrf.mxu0 }
0x17f0   : > { %v15733_v26 = vadd.f32 %v11974_v35, %v6281_v51  ;;  %v11937_v42 = vadd.f32 %v11936_v55, %v11935_v50  ;;  %v11976_v16 = vpop.f32.mrf.mxu1 }
0x17f1   : > { %v11938_v37 = vpop.f32.mrf.mxu0  ;;  %v11977_v4 = vadd.f32 %v11976_v16, %v11975_v43 }
0x17f2   : > { %v6284_v46 = vadd.f32 %v11937_v42, %v6028_v60  ;;  %v11978_v0 = vpop.f32.mrf.mxu1 }
0x17f3   : > { %v11939_v41 = vpop.f32.mrf.mxu0 }
0x17f4   : > { %v15735_v47 = vadd.f32 %v11977_v4, %v6284_v46  ;;  %v11940_v6 = vadd.f32 %v11939_v41, %v11938_v37  ;;  %v11979_v13 = vpop.f32.mrf.mxu1 }
0x17f5   : > { %v11980_v56 = vadd.f32 %v11979_v13, %v11978_v0  ;;  %v11941_v61 = vpop.f32.mrf.mxu0 }
0x17f6   : > { %v6289_v53 = vadd.f32 %v11940_v6, %v6033_v27  ;;  %v11981_v39 = vpop.f32.mrf.mxu1  ;;  %v15749_v27 = vrot.slane %v10731_v5, %v14087_v18 }
0x17f7   : > { %v11942_v57 = vpop.f32.mrf.mxu0 }
0x17f8   : > { %v15737_v54 = vadd.f32 %v11980_v56, %v6289_v53  ;;  %v11982_v52 = vpop.f32.mrf.mxu1 }
0x17f9   : > { %v6438_v60 = vpop.f32.mrf.mxu0 }
0x17fa   : > { %v6509_v34 = vpop.f32.mrf.mxu1  ;;  %v6439_v21 = vadd.f32 %v6438_v60, %v15746_v33 }
0x17fb   : > { %v6440_v36 = vpop.f32.mrf.mxu0  ;;  %v6510_v19 = vadd.f32 %v6509_v34, %v15752_v2 }
0x17fc   : > { %v6511_v23 = vpop.f32.mrf.mxu1  ;;  %v6441_v48 = vadd.f32 %v6440_v36, %v15743_v25  ;;  %v6546_v42 = vmax.f32 %v6439_v21, 0.0 }
0x17fd   : > { %v6442_v38 = vpop.f32.mrf.mxu0  ;;  %v6512_v7 = vadd.f32 %v6511_v23, %v15749_v27  ;;  %v6548_v4 = vmax.f32 %v6510_v19, 0.0 }
0x17fe   : > { %v6443_v58 = vadd.f32 %v6442_v38, %v15746_v33  ;;  %v6513_v30 = vpop.f32.mrf.mxu1  ;;  %v6547_v50 = vmax.f32 %v6441_v48, 0.0 }
0x17ff   : > { %v6514_v14 = vadd.f32 %v6513_v30, %v15752_v2  ;;  %v6444_v59 = vpop.f32.mrf.mxu0  ;;  %v6549_v16 = vmax.f32 %v6512_v7, 0.0 }
0x1800   : > { %v6445_v40 = vadd.f32 %v6444_v59, %v15743_v25  ;;  %v6515_v49 = vpop.f32.mrf.mxu1  ;;  %v6550_v31 = vmax.f32 %v6443_v58, 0.0 }
0x1801   : > { %v6516_v3 = vadd.f32 %v6515_v49, %v15749_v27  ;;  %v6448_v35 = vpop.f32.mrf.mxu0  ;;  %v6552_v51 = vmax.f32 %v6514_v14, 0.0 }
0x1802   : > { %v6551_v43 = vmax.f32 %v6445_v40, 0.0  ;;  %v6519_v55 = vpop.f32.mrf.mxu1  ;;  %v6574_v6 = vpack.c.bf16 %v6550_v31, %v6546_v42  ;;  %v6449_v52 = vadd.f32 %v6448_v35, %v15746_v33 }
0x1803   : > { %v6553_v37 = vmax.f32 %v6516_v3, 0.0  ;;  %v6450_v46 = vpop.f32.mrf.mxu0  ;;  %v6576_v61 = vpack.c.bf16 %v6552_v51, %v6548_v4  ;;  %v6520_v36 = vadd.f32 %v6519_v55, %v15752_v2 }
0x1804   : > { %v6521_v0 = vpop.f32.mrf.mxu1  ;;  %v6575_v41 = vpack.c.bf16 %v6551_v43, %v6547_v50  ;;  %v6451_v53 = vadd.f32 %v6450_v46, %v15743_v25  ;;  %v6554_v19 = vmax.f32 %v6449_v52, 0.0 }
0x1805   : > { %v6577_v13 = vpack.c.bf16 %v6553_v37, %v6549_v16  ;;  %v6452_v56 = vpop.f32.mrf.mxu0  ;;  %v6522_v5 = vadd.f32 %v6521_v0, %v15749_v27  ;;  %v6556_v3 = vmax.f32 %v6520_v36, 0.0 }
0x1806   : > { %v6453_v39 = vadd.f32 %v6452_v56, %v15746_v33  ;;  %v6523_v57 = vpop.f32.mrf.mxu1  ;;  %6878 = vmatprep.mubr.bf16.mxu0 %v6575_v41  ;;  %v6555_v21 = vmax.f32 %v6451_v53, 0.0 }
0x1807   : > { %v6524_v60 = vadd.f32 %v6523_v57, %v15752_v2  ;;  %6942 = vmatprep.mubr.bf16.mxu1 %v6577_v13  ;;  %v6454_v34 = vpop.f32.mrf.mxu0  ;;  %6879 = vmatmul.mubr.bf16.vlgmr.msra.gmra.mxu0 %v6574_v6  ;;  %v6557_v40 = vmax.f32 %v6522_v5, 0.0 }
0x1808   : > { %v6455_v23 = vadd.f32 %v6454_v34, %v15743_v25  ;;  %v6525_v38 = vpop.f32.mrf.mxu1  ;;  %6943 = vmatmul.mubr.bf16.vlgmr.msra.gmra.mxu1 %v6576_v61  ;;  %7042 = vmatpush1.bf16.msra.mxu0 %v10845_v15  ;;  %v6558_v48 = vmax.f32 %v6453_v39, 0.0 }
0x1809   : > { %v6526_v58 = vadd.f32 %v6525_v38, %v15749_v27  ;;  %7113 = vmatpush1.bf16.msra.mxu1 %v10847_v29  ;;  %v6458_v30 = vpop.f32.mrf.mxu0  ;;  %v6560_v7 = vmax.f32 %v6524_v60, 0.0 }
0x180a   : > { %v6559_v14 = vmax.f32 %v6455_v23, 0.0  ;;  %v6529_v59 = vpop.f32.mrf.mxu1  ;;  %v6578_v1 = vpack.c.bf16 %v6558_v48, %v6554_v19  ;;  %v6459_v29 = vadd.f32 %v6458_v30, %v15746_v33 }
0x180b   : > { %v6561_v49 = vmax.f32 %v6526_v58, 0.0  ;;  %v6460_v31 = vpop.f32.mrf.mxu0  ;;  %v6580_v51 = vpack.c.bf16 %v6560_v7, %v6556_v3  ;;  %v6530_v37 = vadd.f32 %v6529_v59, %v15752_v2 }
0x180c   : > { %v6579_v35 = vpack.c.bf16 %v6559_v14, %v6555_v21  ;;  %v6531_v10 = vpop.f32.mrf.mxu1  ;;  %v6461_v43 = vadd.f32 %v6460_v31, %v15743_v25  ;;  %v6562_v39 = vmax.f32 %v6459_v29, 0.0  ;;  %v12937_v29 = vld [vmem:[%s16774_s13 + $0x760] sm:$0xff]  }
0x180d   : > { %v6581_v15 = vpack.c.bf16 %v6561_v49, %v6557_v40  ;;  %v6462_v50 = vpop.f32.mrf.mxu0  ;;  %v6532_v55 = vadd.f32 %v6531_v10, %v15749_v27  ;;  %v6564_v60 = vmax.f32 %v6530_v37, 0.0  ;;  %v12941_v37 = vld [vmem:[%s16774_s13 + $0x758] sm:$0xff]  }
0x180e   : > { %v6463_v45 = vadd.f32 %v6462_v50, %v15746_v33  ;;  %v6533_v24 = vpop.f32.mrf.mxu1  ;;  %6886 = vmatprep.mubr.bf16.mxu0 %v6579_v35  ;;  %v6563_v13 = vmax.f32 %v6461_v43, 0.0  ;;  %v12932_v50 = vld [vmem:[%s16774_s13 + $0x7b0] sm:$0xff]   ;;  %v12934_v43 = vld [vmem:[%s16774_s13 + $0x7e8] sm:$0xff]  }
0x180f   : > { %v6534_v42 = vadd.f32 %v6533_v24, %v15752_v2  ;;  %6950 = vmatprep.mubr.bf16.mxu1 %v6581_v15  ;;  %v6464_v16 = vpop.f32.mrf.mxu0  ;;  %6887 = vmatmul.mubr.bf16.gmra.mxu0 %v6578_v1  ;;  %v6565_v57 = vmax.f32 %v6532_v55, 0.0  ;;  %v12930_v1 = vld [vmem:[%s16774_s13 + $0x7f0] sm:$0xff]   ;;  %v12936_v24 = vld [vmem:[%s16774_s13 + $0x7a8] sm:$0xff]   ;;  %v12938_v55 = vld [vmem:[%s16774_s13 + $0x7e0] sm:$0xff]  }
0x1810   : > { %v6465_v46 = vadd.f32 %v6464_v16, %v15743_v25  ;;  %v6535_v4 = vpop.f32.mrf.mxu1  ;;  %6951 = vmatmul.mubr.bf16.gmra.mxu1 %v6580_v51  ;;  %v6566_v0 = vmax.f32 %v6463_v45, 0.0  ;;  %v12931_v15 = vld [vmem:[%s16774_s13 + $0x730] sm:$0xff]   ;;  %v12933_v51 = vld [vmem:[%s16774_s13 + $0x768] sm:$0xff]   ;;  %v12940_v16 = vld [vmem:[%s16774_s13 + $0x7a0] sm:$0xff]  }
0x1811   : > { %v6536_v41 = vadd.f32 %v6535_v4, %v15749_v27  ;;  %v6468_v6 = vpop.f32.mrf.mxu0  ;;  %v6568_v56 = vmax.f32 %v6534_v42, 0.0  ;;  %v12935_v45 = vld [vmem:[%s16774_s13 + $0x728] sm:$0xff]   ;;  %v12939_v42 = vld [vmem:[%s16774_s13 + $0x720] sm:$0xff]   ;;  %v12943_v4 = vld [vmem:[%s16774_s13 + $0x718] sm:$0xff]  }
0x1812   : > { %v6567_v61 = vmax.f32 %v6465_v46, 0.0  ;;  %v6539_v53 = vpop.f32.mrf.mxu1  ;;  %v6582_v38 = vpack.c.bf16 %v6566_v0, %v6562_v39  ;;  %v6469_v58 = vadd.f32 %v6468_v6, %v15746_v33  ;;  %v12942_v46 = vld [vmem:[%s16774_s13 + $0x7d8] sm:$0xff]   ;;  %v12946_v6 = vld [vmem:[%s16774_s13 + $0x7d0] sm:$0xff]   ;;  %v12951_v39 = vld [vmem:[%s16774_s13 + $0x708] sm:$0xff]  }
0x1813   : > { %v6569_v52 = vmax.f32 %v6536_v41, 0.0  ;;  %v6470_v5 = vpop.f32.mrf.mxu0  ;;  %v6584_v7 = vpack.c.bf16 %v6568_v56, %v6564_v60  ;;  %v6540_v14 = vadd.f32 %v6539_v53, %v15752_v2  ;;  %v12928_v2 = vld [vmem:[%s16774_s13 + $0x7b8] sm:$0xff]   ;;  %v12945_v41 = vld [vmem:[%s16774_s13 + $0x750] sm:$0xff]   ;;  %v12950_v53 = vld [vmem:[%s16774_s13 + $0x7c8] sm:$0xff]  }
0x1814   : > { %v6583_v34 = vpack.c.bf16 %v6567_v61, %v6563_v13  ;;  %v6471_v36 = vadd.f32 %v6470_v5, %v15743_v25  ;;  %v6541_v23 = vpop.f32.mrf.mxu1  ;;  %v6570_v3 = vmax.f32 %v6469_v58, 0.0  ;;  %v12944_v0 = vld [vmem:[%s16774_s13 + $0x798] sm:$0xff]   ;;  %v12947_v13 = vld [vmem:[%s16774_s13 + $0x710] sm:$0xff]   ;;  %v12949_v61 = vld [vmem:[%s16774_s13 + $0x748] sm:$0xff]  }
0x1815   : > { %v6585_v48 = vpack.c.bf16 %v6569_v52, %v6565_v57  ;;  %v6542_v30 = vadd.f32 %v6541_v23, %v15749_v27  ;;  %v6472_v21 = vpop.f32.mrf.mxu0  ;;  %v6572_v10 = vmax.f32 %v6540_v14, 0.0  ;;  %v12948_v56 = vld [vmem:[%s16774_s13 + $0x790] sm:$0xff]   ;;  %v12952_v57 = vld [vmem:[%s16774_s13 + $0x788] sm:$0xff]   ;;  %v12953_v52 = vld [vmem:[%s16774_s13 + $0x740] sm:$0xff]  }
0x1816   : > { %v6571_v59 = vmax.f32 %v6471_v36, 0.0  ;;  %v6543_v19 = vpop.f32.mrf.mxu1  ;;  %6894 = vmatprep.mubr.bf16.mxu0 %v6583_v34  ;;  %v6586_v33 = vpack.c.bf16 %v6570_v3, %v6570_v3  ;;  %v12954_v5 = vld [vmem:[%s16774_s13 + $0x7c0] sm:$0xff]   ;;  %v16878_v36 = vmov 0.0  }
0x1817   : > { %v6573_v40 = vmax.f32 %v6542_v30, 0.0  ;;  %6958 = vmatprep.mubr.bf16.mxu1 %v6585_v48  ;;  %v6473_v49 = vpop.f32.mrf.mxu0  ;;  %6895 = vmatmul.mubr.bf16.gmra.mxu0 %v6582_v38  ;;  %v6588_v27 = vpack.c.bf16 %v6572_v10, %v6572_v10  ;;  %v12955_v60 = vld [vmem:[%s16774_s13 + $0x700] sm:$0xff]  }
0x1818   : > { %v6587_v31 = vpack.c.bf16 %v6571_v59, %v6571_v59  ;;  %v6544_v25 = vpop.f32.mrf.mxu1  ;;  %6959 = vmatmul.mubr.bf16.gmra.mxu1 %v6584_v7  ;;  %v12956_v34 = vld [vmem:[%s16774_s13 + $0x780] sm:$0xff]  }
0x1819   : > { %v6589_v35 = vpack.c.bf16 %v6573_v40, %v6573_v40 }
0x181a   : > { %6902 = vmatprep.mubr.bf16.mxu0 %v6587_v31 }
0x181b   : > { %6966 = vmatprep.mubr.bf16.mxu1 %v6589_v35 }
0x181f   : > { %6903 = vmatmul.mubr.bf16.gmra.mxu0 %v6586_v33 }
0x1820   : > { %6967 = vmatmul.mubr.bf16.gmra.mxu1 %v6588_v27  ;;  %7059 = vmatprep.mubr.bf16.mxu0 %v16853_v9 }
0x1821   : > { %7130 = vmatprep.mubr.bf16.mxu1 %v16853_v9 }
0x1827   : > { %10849 = vmatmul.mubr.msk.bf16.vlgmr.msra.gmra.mxu0 %vm566_vm0, %v15142_v11 }
0x1828   : > { %10853 = vmatmul.mubr.msk.bf16.vlgmr.msra.gmra.mxu1 %vm566_vm0, %v15142_v11  ;;  %7069 = vmatprep.mubr.bf16.mxu0 %v16853_v9  ;;  %v12925_v11 = vld [vmem:[%s16774_s13 + $0x778] sm:$0xff]  }
0x1829   : > { %7140 = vmatprep.mubr.bf16.mxu1 %v16853_v9  ;;  %12064 = vmatprep.subr.bf16.mxu0 %v12925_v11 }
0x182f   : > { %10850 = vmatmul.mubr.msk.bf16.gmra.mxu0 %vm566_vm0, %v15158_v62 }
0x1830   : > { %10854 = vmatmul.mubr.msk.bf16.gmra.mxu1 %vm566_vm0, %v15158_v62  ;;  %7079 = vmatprep.mubr.bf16.mxu0 %v16853_v9  ;;  %v12926_v62 = vld [vmem:[%s16774_s13 + $0x7f8] sm:$0xff]  }
0x1831   : > { %7150 = vmatprep.mubr.bf16.mxu1 %v16853_v9  ;;  %12104 = vmatprep.subr.bf16.mxu1 %v12926_v62 }
0x1832   : > { %12105 = vmatpush3.bf16.msra.mxu1 %v12928_v2 }
0x1833   : > { %12106 = vmatprep.subr.bf16.mxu1 %v12930_v1 }
0x1836   : > { %12107 = vmatpush3.bf16.msra.mxu1 %v12932_v50 }
0x1837   : > { %10851 = vmatmul.mubr.msk.bf16.gmra.mxu0 %vm566_vm0, %v15173_v22  ;;  %12108 = vmatprep.subr.bf16.mxu1 %v12934_v43 }
0x1838   : > { %10855 = vmatmul.mubr.msk.bf16.gmra.mxu1 %vm566_vm0, %v15173_v22  ;;  %7089 = vmatprep.mubr.bf16.mxu0 %v16853_v9  ;;  %v12927_v22 = vld [vmem:[%s16774_s13 + $0x738] sm:$0xff]  }
0x1839   : > { %7160 = vmatprep.mubr.bf16.mxu1 %v16853_v9  ;;  %12065 = vmatpush3.bf16.msra.mxu0 %v12927_v22 }
0x183a   : > { %12109 = vmatpush3.bf16.msra.mxu1 %v12936_v24 }
0x183b   : > { %12110 = vmatprep.subr.bf16.mxu1 %v12938_v55 }
0x183e   : > { %12111 = vmatpush3.bf16.msra.mxu1 %v12940_v16 }
0x183f   : > { %10852 = vmatmul.mubr.msk.bf16.gmra.mxu0 %vm566_vm0, %v15185_v63  ;;  %12112 = vmatprep.subr.bf16.mxu1 %v12942_v46 }
0x1840   : > { %10856 = vmatmul.mubr.msk.bf16.gmra.mxu1 %vm566_vm0, %v15185_v63  ;;  %v12929_v63 = vld [vmem:[%s16774_s13 + $0x770] sm:$0xff]  }
0x1841   : > { %12066 = vmatprep.subr.bf16.mxu0 %v12929_v63 }
0x1842   : > { %12067 = vmatpush3.bf16.msra.mxu0 %v12931_v15  ;;  %12113 = vmatpush3.bf16.msra.mxu1 %v12944_v0 }
0x1843   : > { %12068 = vmatprep.subr.bf16.mxu0 %v12933_v51  ;;  %12114 = vmatprep.subr.bf16.mxu1 %v12946_v6 }
0x1846   : > { %12069 = vmatpush3.bf16.msra.mxu0 %v12935_v45  ;;  %12115 = vmatpush3.bf16.msra.mxu1 %v12948_v56 }
0x1847   : > { %12070 = vmatprep.subr.bf16.mxu0 %v12937_v29  ;;  %12116 = vmatprep.subr.bf16.mxu1 %v12950_v53 }
0x184a   : > { %12071 = vmatpush3.bf16.msra.mxu0 %v12939_v42  ;;  %12117 = vmatpush3.bf16.msra.mxu1 %v12952_v57 }
0x184b   : > { %12072 = vmatprep.subr.bf16.mxu0 %v12941_v37  ;;  %12118 = vmatprep.subr.bf16.mxu1 %v12954_v5 }
0x184e   : > { %12073 = vmatpush3.bf16.msra.mxu0 %v12943_v4  ;;  %12119 = vmatpush3.bf16.msra.mxu1 %v12956_v34 }
0x184f   : > { %12074 = vmatprep.subr.bf16.mxu0 %v12945_v41  ;;  %12537 = vmatprep.subr.bf16.mxu1 %v16878_v36 }
0x1852   : > { %12075 = vmatpush3.bf16.msra.mxu0 %v12947_v13 }
0x1853   : > { %12076 = vmatprep.subr.bf16.mxu0 %v12949_v61 }
0x1856   : > { %12077 = vmatpush3.bf16.msra.mxu0 %v12951_v39 }
0x1857   : > { %12078 = vmatprep.subr.bf16.mxu0 %v12953_v52 }
0x185a   : > { %12079 = vmatpush3.bf16.msra.mxu0 %v12955_v60 }
0x18c7   : > { %v12000_v23 = vpop.f32.mrf.mxu0 }
0x18c8   : > { %v12040_v38 = vpop.f32.mrf.mxu1 }
0x18c9   : > { %v12001_v48 = vpop.f32.mrf.mxu0 }
0x18ca   : > { %v12002_v58 = vadd.f32 %v12001_v48, %v12000_v23  ;;  %v12041_v30 = vpop.f32.mrf.mxu1 }
0x18cb   : > { %v12042_v21 = vadd.f32 %v12041_v30, %v12040_v38  ;;  %v12003_v7 = vpop.f32.mrf.mxu0 }
0x18cc   : > { %v12043_v14 = vpop.f32.mrf.mxu1 }
0x18cd   : > { %v6945_v59 = vadd.f32 %v12042_v21, %v12002_v58  ;;  %v12004_v19 = vpop.f32.mrf.mxu0 }
0x18ce   : > { %v12005_v40 = vadd.f32 %v12004_v19, %v12003_v7  ;;  %v12044_v49 = vpop.f32.mrf.mxu1 }
0x18cf   : > { %v15910_v31 = vadd.f32 %v6945_v59, %v15725_v20  ;;  %v12045_v25 = vadd.f32 %v12044_v49, %v12043_v14  ;;  %v12006_v3 = vpop.f32.mrf.mxu0 }
0x18d0   : > { %v12046_v35 = vpop.f32.mrf.mxu1 }
0x18d1   : > { %v6948_v10 = vadd.f32 %v12045_v25, %v12005_v40  ;;  %v12007_v33 = vpop.f32.mrf.mxu0 }
0x18d2   : > { %v12008_v27 = vadd.f32 %v12007_v33, %v12006_v3  ;;  %v12047_v11 = vpop.f32.mrf.mxu1 }
0x18d3   : > { %v15913_v62 = vadd.f32 %v6948_v10, %v15727_v32  ;;  %v12048_v22 = vadd.f32 %v12047_v11, %v12046_v35  ;;  %v12009_v2 = vpop.f32.mrf.mxu0 }
0x18d4   : > { %v12049_v63 = vpop.f32.mrf.mxu1 }
0x18d5   : > { %v6953_v1 = vadd.f32 %v12048_v22, %v12008_v27  ;;  %v12010_v15 = vpop.f32.mrf.mxu0 }
0x18d6   : > { %v12011_v50 = vadd.f32 %v12010_v15, %v12009_v2  ;;  %v12050_v51 = vpop.f32.mrf.mxu1 }
0x18d7   : > { %v15916_v20 = vadd.f32 %v6953_v1, %v15729_v28  ;;  %v12051_v43 = vadd.f32 %v12050_v51, %v12049_v63  ;;  %v12012_v45 = vpop.f32.mrf.mxu0 }
0x18d8   : > { %v12052_v24 = vpop.f32.mrf.mxu1 }
0x18d9   : > { %v6956_v29 = vadd.f32 %v12051_v43, %v12011_v50  ;;  %v12013_v55 = vpop.f32.mrf.mxu0 }
0x18da   : > { %v12014_v42 = vadd.f32 %v12013_v55, %v12012_v45  ;;  %v12053_v16 = vpop.f32.mrf.mxu1 }
0x18db   : > { %v15919_v32 = vadd.f32 %v6956_v29, %v15731_v8  ;;  %v12054_v37 = vadd.f32 %v12053_v16, %v12052_v24  ;;  %v12015_v46 = vpop.f32.mrf.mxu0 }
0x18dc   : > { %v12055_v4 = vpop.f32.mrf.mxu1 }
0x18dd   : > { %v6961_v0 = vadd.f32 %v12054_v37, %v12014_v42  ;;  %v12016_v41 = vpop.f32.mrf.mxu0 }
0x18de   : > { %v12017_v6 = vadd.f32 %v12016_v41, %v12015_v46  ;;  %v12056_v13 = vpop.f32.mrf.mxu1 }
0x18df   : > { %v15922_v28 = vadd.f32 %v6961_v0, %v15733_v26  ;;  %v12057_v56 = vadd.f32 %v12056_v13, %v12055_v4  ;;  %v12018_v61 = vpop.f32.mrf.mxu0  ;;  %v10844_v26 = vld [vmem:[%s16773_s12 + $0x1c] sm:$0xf] }
0x18e0   : > { %v12058_v53 = vpop.f32.mrf.mxu1  ;;  %v15934_v14 = vrot.slane %v10844_v26, %v14084_v17  ;;  %v15940_v19 = vrot.slane %v10844_v26, %v14087_v18  ;;  %v15943_v40 = vrot.slane %v10844_v26, %v16877_v12 }
0x18e1   : > { %v6964_v39 = vadd.f32 %v12057_v56, %v12017_v6  ;;  %v12019_v57 = vpop.f32.mrf.mxu0 }
0x18e2   : > { %v12020_v52 = vadd.f32 %v12019_v57, %v12018_v61  ;;  %v12059_v5 = vpop.f32.mrf.mxu1 }
0x18e3   : > { %v15925_v8 = vadd.f32 %v6964_v39, %v15735_v47  ;;  %v12060_v60 = vadd.f32 %v12059_v5, %v12058_v53  ;;  %v12021_v34 = vpop.f32.mrf.mxu0  ;;  %v15937_v47 = vrot.slane %v10844_v26, %v16876_v44 }
0x18e4   : > { %v12061_v23 = vpop.f32.mrf.mxu1 }
0x18e5   : > { %v6969_v38 = vadd.f32 %v12060_v60, %v12020_v52  ;;  %v12022_v48 = vpop.f32.mrf.mxu0 }
0x18e6   : > { %v12062_v58 = vpop.f32.mrf.mxu1 }
0x18e7   : > { %v15931_v30 = vadd.f32 %v6969_v38, %v15737_v54  ;;  %v7061_v21 = vpop.f32.mrf.mxu0 }
0x18e8   : > { %v7132_v7 = vpop.f32.mrf.mxu1  ;;  %v7062_v10 = vadd.f32 %v7061_v21, %v15937_v47 }
0x18e9   : > { %v7063_v59 = vpop.f32.mrf.mxu0  ;;  %v7133_v22 = vadd.f32 %v7132_v7, %v15943_v40 }
0x18ea   : > { %v7134_v49 = vpop.f32.mrf.mxu1  ;;  %v7064_v54 = vadd.f32 %v7063_v59, %v15934_v14  ;;  %v7169_v29 = vmax.f32 %v7062_v10, 0.0 }
0x18eb   : > { %v7065_v25 = vpop.f32.mrf.mxu0  ;;  %v7135_v33 = vadd.f32 %v7134_v49, %v15940_v19  ;;  %v7171_v37 = vmax.f32 %v7133_v22, 0.0 }
0x18ec   : > { %v7066_v3 = vadd.f32 %v7065_v25, %v15937_v47  ;;  %v7136_v35 = vpop.f32.mrf.mxu1  ;;  %v7170_v51 = vmax.f32 %v7064_v54, 0.0 }
0x18ed   : > { %v7137_v27 = vadd.f32 %v7136_v35, %v15943_v40  ;;  %v7067_v11 = vpop.f32.mrf.mxu0  ;;  %v7172_v55 = vmax.f32 %v7135_v33, 0.0 }
0x18ee   : > { %v7068_v2 = vadd.f32 %v7067_v11, %v15934_v14  ;;  %v7138_v63 = vpop.f32.mrf.mxu1  ;;  %v7173_v1 = vmax.f32 %v7066_v3, 0.0 }
0x18ef   : > { %v7139_v15 = vadd.f32 %v7138_v63, %v15940_v19  ;;  %v7071_v50 = vpop.f32.mrf.mxu0  ;;  %v7175_v43 = vmax.f32 %v7137_v27, 0.0 }
0x18f0   : > { %v7174_v45 = vmax.f32 %v7068_v2, 0.0  ;;  %v7142_v24 = vpop.f32.mrf.mxu1  ;;  %v7197_v0 = vpack.c.bf16 %v7173_v1, %v7169_v29  ;;  %v7072_v39 = vadd.f32 %v7071_v50, %v15937_v47 }
0x18f1   : > { %v7176_v42 = vmax.f32 %v7139_v15, 0.0  ;;  %v7073_v16 = vpop.f32.mrf.mxu0  ;;  %v7199_v13 = vpack.c.bf16 %v7175_v43, %v7171_v37  ;;  %v7143_v60 = vadd.f32 %v7142_v24, %v15943_v40 }
0x18f2   : > { %v7198_v46 = vpack.c.bf16 %v7174_v45, %v7170_v51  ;;  %v7144_v4 = vpop.f32.mrf.mxu1  ;;  %v7074_v56 = vadd.f32 %v7073_v16, %v15934_v14  ;;  %v7177_v49 = vmax.f32 %v7072_v39, 0.0 }
0x18f3   : > { %v7200_v41 = vpack.c.bf16 %v7176_v42, %v7172_v55  ;;  %v7075_v6 = vpop.f32.mrf.mxu0  ;;  %v7145_v57 = vadd.f32 %v7144_v4, %v15940_v19  ;;  %v7179_v35 = vmax.f32 %v7143_v60, 0.0 }
0x18f4   : > { %v7076_v61 = vadd.f32 %v7075_v6, %v15937_v47  ;;  %v7146_v53 = vpop.f32.mrf.mxu1  ;;  %7501 = vmatprep.mubr.bf16.mxu0 %v7198_v46  ;;  %v7178_v26 = vmax.f32 %v7074_v56, 0.0 }
0x18f5   : > { %v7147_v52 = vadd.f32 %v7146_v53, %v15943_v40  ;;  %7565 = vmatprep.mubr.bf16.mxu1 %v7200_v41  ;;  %v7077_v5 = vpop.f32.mrf.mxu0  ;;  %7502 = vmatmul.mubr.bf16.vlgmr.msra.gmra.mxu0 %v7197_v0  ;;  %v7180_v25 = vmax.f32 %v7145_v57, 0.0 }
0x18f6   : > { %v7078_v34 = vadd.f32 %v7077_v5, %v15934_v14  ;;  %v7148_v23 = vpop.f32.mrf.mxu1  ;;  %7566 = vmatmul.mubr.bf16.vlgmr.msra.gmra.mxu1 %v7199_v13  ;;  %v7181_v38 = vmax.f32 %v7076_v61, 0.0 }
0x18f7   : > { %v7149_v48 = vadd.f32 %v7148_v23, %v15940_v19  ;;  %v7081_v58 = vpop.f32.mrf.mxu0  ;;  %v7183_v21 = vmax.f32 %v7147_v52, 0.0 }
0x18f8   : > { %v7182_v7 = vmax.f32 %v7078_v34, 0.0  ;;  %v7152_v59 = vpop.f32.mrf.mxu1  ;;  %v7201_v27 = vpack.c.bf16 %v7181_v38, %v7177_v49  ;;  %v7082_v50 = vadd.f32 %v7081_v58, %v15937_v47 }
0x18f9   : > { %v7184_v54 = vmax.f32 %v7149_v48, 0.0  ;;  %v7083_v3 = vpop.f32.mrf.mxu0  ;;  %v7203_v2 = vpack.c.bf16 %v7183_v21, %v7179_v35  ;;  %v7153_v24 = vadd.f32 %v7152_v59, %v15943_v40 }
0x18fa   : > { %v7202_v10 = vpack.c.bf16 %v7182_v7, %v7178_v26  ;;  %v7154_v33 = vpop.f32.mrf.mxu1  ;;  %v7084_v63 = vadd.f32 %v7083_v3, %v15934_v14  ;;  %v7185_v6 = vmax.f32 %v7082_v50, 0.0 }
0x18fb   : > { %v7204_v11 = vpack.c.bf16 %v7184_v54, %v7180_v25  ;;  %v7085_v22 = vpop.f32.mrf.mxu0  ;;  %v7155_v51 = vadd.f32 %v7154_v33, %v15940_v19  ;;  %v7187_v53 = vmax.f32 %v7153_v24, 0.0 }
0x18fc   : > { %v7086_v1 = vadd.f32 %v7085_v22, %v15937_v47  ;;  %v7156_v15 = vpop.f32.mrf.mxu1  ;;  %7509 = vmatprep.mubr.bf16.mxu0 %v7202_v10  ;;  %v7186_v46 = vmax.f32 %v7084_v63, 0.0 }
0x18fd   : > { %v7157_v43 = vadd.f32 %v7156_v15, %v15943_v40  ;;  %7573 = vmatprep.mubr.bf16.mxu1 %v7204_v11  ;;  %v7087_v45 = vpop.f32.mrf.mxu0  ;;  %7510 = vmatmul.mubr.bf16.gmra.mxu0 %v7201_v27  ;;  %v7188_v13 = vmax.f32 %v7155_v51, 0.0  ;;  %v15976_v51 = vld [vmem:[%s16775_s14 + $0x1] ss:$0 sm:$0xff] }
0x18fe   : > { %v7088_v29 = vadd.f32 %v7087_v45, %v15934_v14  ;;  %v7158_v55 = vpop.f32.mrf.mxu1  ;;  %7574 = vmatmul.mubr.bf16.gmra.mxu1 %v7203_v2  ;;  %v7189_v42 = vmax.f32 %v7086_v1, 0.0 }
0x18ff   : > { %v7159_v16 = vadd.f32 %v7158_v55, %v15940_v19  ;;  %v7091_v37 = vpop.f32.mrf.mxu0  ;;  %v7191_v4 = vmax.f32 %v7157_v43, 0.0 }
0x1900   : > { %v7190_v0 = vmax.f32 %v7088_v29, 0.0  ;;  %v7162_v41 = vpop.f32.mrf.mxu1  ;;  %v7205_v5 = vpack.c.bf16 %v7189_v42, %v7185_v6  ;;  %v7092_v34 = vadd.f32 %v7091_v37, %v15937_v47  ;;  %v16879_v6 = vld [vmem:[#allocation13_spill] sm:$0xff] }
0x1901   : > { %v7192_v56 = vmax.f32 %v7159_v16, 0.0  ;;  %v7093_v61 = vpop.f32.mrf.mxu0  ;;  %v7207_v48 = vpack.c.bf16 %v7191_v4, %v7187_v53  ;;  %v7163_v58 = vadd.f32 %v7162_v41, %v15943_v40 }
0x1902   : > { %v7206_v39 = vpack.c.bf16 %v7190_v0, %v7186_v46  ;;  %v7094_v57 = vadd.f32 %v7093_v61, %v15934_v14  ;;  %v7164_v52 = vpop.f32.mrf.mxu1  ;;  %v7193_v25 = vmax.f32 %v7092_v34, 0.0  ;;  %v16880_v34 = vld [vmem:[#allocation14_spill] sm:$0xff] }
0x1903   : > { %v7208_v60 = vpack.c.bf16 %v7192_v56, %v7188_v13  ;;  %v7165_v23 = vadd.f32 %v7164_v52, %v15940_v19  ;;  %v7095_v38 = vpop.f32.mrf.mxu0  ;;  %v7195_v3 = vmax.f32 %v7163_v58, 0.0 }
0x1904   : > { %v7194_v26 = vmax.f32 %v7094_v57, 0.0  ;;  %v7166_v21 = vpop.f32.mrf.mxu1  ;;  %7517 = vmatprep.mubr.bf16.mxu0 %v7206_v39  ;;  %v7209_v47 = vpack.c.bf16 %v7193_v25, %v7193_v25 }
0x1905   : > { %v7196_v7 = vmax.f32 %v7165_v23, 0.0  ;;  %7581 = vmatprep.mubr.bf16.mxu1 %v7208_v60  ;;  %v7096_v59 = vpop.f32.mrf.mxu0  ;;  %7518 = vmatmul.mubr.bf16.gmra.mxu0 %v7205_v5  ;;  %v7211_v19 = vpack.c.bf16 %v7195_v3, %v7195_v3 }
0x1906   : > { %v7210_v49 = vpack.c.bf16 %v7194_v26, %v7194_v26  ;;  %v7167_v14 = vpop.f32.mrf.mxu1  ;;  %7582 = vmatmul.mubr.bf16.gmra.mxu1 %v7207_v48 }
0x1907   : > { %v7212_v54 = vpack.c.bf16 %v7196_v7, %v7196_v7 }
0x1908   : > { %7525 = vmatprep.mubr.bf16.mxu0 %v7210_v49 }
0x1909   : > { %7589 = vmatprep.mubr.bf16.mxu1 %v7212_v54  ;;  %v16881_v54 = vld [vmem:[#allocation15_spill] sm:$0xff] }
0x190d   : > { %7526 = vmatmul.mubr.bf16.gmra.mxu0 %v7209_v47 }
0x190e   : > { %7590 = vmatmul.mubr.bf16.gmra.mxu1 %v7211_v19 }
0x190f   : > { %12545 = vmatprep.mubr.msk.bf16.mxu1 %vm13338_vm5, %v16878_v36 }
0x19b5   : > { %v12080_v40 = vpop.f32.mrf.mxu0 }
0x19b6   : > { %v12120_v35 = vpop.f32.mrf.mxu1 }
0x19b7   : > { %v12081_v10 = vpop.f32.mrf.mxu0 }
0x19b8   : > { %v12082_v33 = vadd.f32 %v12081_v10, %v12080_v40  ;;  %v12121_v27 = vpop.f32.mrf.mxu1 }
0x19b9   : > { %v12122_v11 = vadd.f32 %v12121_v27, %v12120_v35  ;;  %v12083_v22 = vpop.f32.mrf.mxu0 }
0x19ba   : > { %v12123_v2 = vpop.f32.mrf.mxu1 }
0x19bb   : > { %v7568_v63 = vadd.f32 %v12122_v11, %v12082_v33  ;;  %v12084_v1 = vpop.f32.mrf.mxu0 }
0x19bc   : > { %v12085_v15 = vadd.f32 %v12084_v1, %v12083_v22  ;;  %v12124_v50 = vpop.f32.mrf.mxu1 }
0x19bd   : > { %v7597_v43 = vadd.f32 %v7568_v63, %v15910_v31  ;;  %v12125_v45 = vadd.f32 %v12124_v50, %v12123_v2  ;;  %v12086_v24 = vpop.f32.mrf.mxu0  ;;  %v16882_v2 = vld [vmem:[#allocation16_spill] sm:$0xff] }
0x19be   : > { %v12126_v29 = vpop.f32.mrf.mxu1 }
0x19bf   : > { %v7571_v55 = vadd.f32 %v12125_v45, %v12085_v15  ;;  %v12087_v42 = vpop.f32.mrf.mxu0  ;;  %v7612_v16 = vadd.f32 %v15976_v51, %v7597_v43 }
0x19c0   : > { %v12088_v37 = vadd.f32 %v12087_v42, %v12086_v24  ;;  %v12127_v46 = vpop.f32.mrf.mxu1 }
0x19c1   : > { %v7598_v4 = vadd.f32 %v7571_v55, %v15913_v62  ;;  %v12128_v0 = vadd.f32 %v12127_v46, %v12126_v29  ;;  %v12089_v41 = vpop.f32.mrf.mxu0  ;;  %v15982_v13 = vadd.f32 %v7612_v16, %v16879_v6  ;;  %v16883_v16 = vld [vmem:[#allocation17_spill] sm:$0xff] }
0x19c2   : > { %v12129_v56 = vpop.f32.mrf.mxu1 }
0x19c3   : > { %v7576_v61 = vadd.f32 %v12128_v0, %v12088_v37  ;;  %v12090_v53 = vpop.f32.mrf.mxu0  ;;  %v7630_v31 = vsel %vm566_vm0, %v15982_v13, 0.0  ;;  %v7613_v39 = vadd.f32 %v15976_v51, %v7598_v4 }
0x19c4   : > { %v12091_v57 = vadd.f32 %v12090_v53, %v12089_v41  ;;  %v12130_v52 = vpop.f32.mrf.mxu1  ;;  %7631 = vadd.xlane.f32.xlu1 %v7630_v31 }
0x19c5   : > { %v7599_v5 = vadd.f32 %v7576_v61, %v15916_v20  ;;  %v12131_v60 = vadd.f32 %v12130_v52, %v12129_v56  ;;  %v12092_v62 = vpop.f32.mrf.mxu0  ;;  %v7620_v23 = vadd.f32 %v7613_v39, %v16880_v34  ;;  %v16884_v61 = vld [vmem:[#allocation18_spill] sm:$0xff]  ;;  %v16885_v39 = vld [vmem:[#allocation19_spill] sm:$0xff] }
0x19c6   : > { %v12132_v38 = vpop.f32.mrf.mxu1 }
0x19c7   : > { %v7579_v48 = vadd.f32 %v12131_v60, %v12091_v57  ;;  %v12093_v58 = vpop.f32.mrf.mxu0  ;;  %v7633_v26 = vsel %vm566_vm0, %v7620_v23, 0.0  ;;  %v7614_v21 = vadd.f32 %v15976_v51, %v7599_v5 }
0x19c8   : > { %v12094_v7 = vadd.f32 %v12093_v58, %v12092_v62  ;;  %v12133_v59 = vpop.f32.mrf.mxu1  ;;  %7634 = vadd.xlane.f32.xlu0 %v7633_v26 }
0x19c9   : > { %v7600_v49 = vadd.f32 %v7579_v48, %v15919_v32  ;;  %v12134_v14 = vadd.f32 %v12133_v59, %v12132_v38  ;;  %v12095_v25 = vpop.f32.mrf.mxu0  ;;  %v7621_v20 = vadd.f32 %v7614_v21, %v16881_v54 }
0x19ca   : > { %v12135_v3 = vpop.f32.mrf.mxu1 }
0x19cb   : > { %v7584_v47 = vadd.f32 %v12134_v14, %v12094_v7  ;;  %v12096_v19 = vpop.f32.mrf.mxu0  ;;  %v7636_v40 = vsel %vm566_vm0, %v7621_v20, 0.0  ;;  %v7615_v35 = vadd.f32 %v15976_v51, %v7600_v49 }
0x19cc   : > { %v12097_v10 = vadd.f32 %v12096_v19, %v12095_v25  ;;  %v12136_v33 = vpop.f32.mrf.mxu1  ;;  %7637 = vadd.xlane.f32.xlu1 %v7636_v40 }
0x19cd   : > { %v7601_v27 = vadd.f32 %v7584_v47, %v15922_v28  ;;  %v12137_v11 = vadd.f32 %v12136_v33, %v12135_v3  ;;  %v12098_v22 = vpop.f32.mrf.mxu0  ;;  %v7622_v32 = vadd.f32 %v7615_v35, %v16882_v2 }
0x19ce   : > { %v12138_v63 = vpop.f32.mrf.mxu1 }
0x19cf   : > { %v7587_v1 = vadd.f32 %v12137_v11, %v12097_v10  ;;  %v12099_v15 = vpop.f32.mrf.mxu0  ;;  %v7639_v50 = vsel %vm566_vm0, %v7622_v32, 0.0  ;;  %v7616_v43 = vadd.f32 %v15976_v51, %v7601_v27 }
0x19d0   : > { %v12100_v45 = vadd.f32 %v12099_v15, %v12098_v22  ;;  %v12139_v24 = vpop.f32.mrf.mxu1  ;;  %7640 = vadd.xlane.f32.xlu0 %v7639_v50  ;;  %v12957_v50 = vld [vmem:[%s16764_s3 + $0x10] sm:$0xff]  }
0x19d1   : > { %v7602_v29 = vadd.f32 %v7587_v1, %v15925_v8  ;;  %v12140_v55 = vadd.f32 %v12139_v24, %v12138_v63  ;;  %v12101_v42 = vpop.f32.mrf.mxu0  ;;  %v7623_v28 = vadd.f32 %v7616_v43, %v16883_v16  ;;  %12527 = vmatprep.subr.bf16.mxu0 %v12957_v50 }
0x19d2   : > { %v12141_v37 = vpop.f32.mrf.mxu1  ;;  %12528 = vmatpush3.bf16.msra.mxu0 %v12957_v50 }
0x19d3   : > { %v7592_v46 = vadd.f32 %v12140_v55, %v12100_v45  ;;  %v12102_v4 = vpop.f32.mrf.mxu0  ;;  %v7642_v0 = vsel %vm566_vm0, %v7623_v28, 0.0  ;;  %v7617_v41 = vadd.f32 %v15976_v51, %v7602_v29  ;;  %12549 = vmatprep.subr.bf16.mxu0 %v16878_v36 }
0x19d4   : > { %v12142_v6 = vpop.f32.mrf.mxu1  ;;  %7643 = vadd.xlane.f32.xlu1 %v7642_v0 }
0x19d5   : > { %v7603_v56 = vadd.f32 %v7592_v46, %v15931_v30  ;;  %v7624_v53 = vadd.f32 %v7617_v41, %v16884_v61 }
0x19d7   : > { %v7645_v31 = vsel %vm566_vm0, %v7624_v53, 0.0  ;;  %v7618_v8 = vadd.f32 %v15976_v51, %v7603_v56 }
0x19d8   : > { %7646 = vadd.xlane.f32.xlu0 %v7645_v31  ;;  %v10957_v31 = vld [vmem:[%s16770_s9 + $0x1] ss:$0 sm:$0xff] }
0x19d9   : > { %v7625_v57 = vadd.f32 %v7618_v8, %v16885_v39 }
0x19db   : > { %v7648_v52 = vsel %vm566_vm0, %v7625_v57, 0.0 }
0x19dc   : > { %7649 = vadd.xlane.f32.xlu1 %v7648_v52 }
0x1a4d   : > { %v7632_v5 = vpop.xlane.xlu1 %7631 }
0x1a4e   : > { %v7651_v60 = vmul.f32 0.0625, %v7632_v5 }
0x1a50   : > { %v16010_v62 = vsub.f32 %v15982_v13, %v7651_v60 }
0x1a51   : > { %v7635_v34 = vpop.xlane.xlu0 %7634 }
0x1a52   : > { %v7652_v38 = vmul.f32 0.0625, %v7635_v34  ;;  %v7665_v30 = vmul.f32 %v16010_v62, %v16010_v62  ;;  %v10958_v34 = vld [vmem:[%s16771_s10 + $0x1] ss:$0 sm:$0xff] }
0x1a54   : > { %v16014_v48 = vsub.f32 %v7620_v23, %v7652_v38  ;;  %v7672_v51 = vsel %vm566_vm0, %v7665_v30, 0.0 }
0x1a55   : > { %7673 = vadd.xlane.f32.xlu0 %v7672_v51  ;;  %v7638_v58 = vpop.xlane.xlu1 %7637 }
0x1a56   : > { %v7653_v26 = vmul.f32 0.0625, %v7638_v58  ;;  %v7666_v21 = vmul.f32 %v16014_v48, %v16014_v48 }
0x1a58   : > { %v16019_v7 = vsub.f32 %v7621_v20, %v7653_v26  ;;  %v7675_v13 = vsel %vm566_vm0, %v7666_v21, 0.0 }
0x1a59   : > { %v7641_v59 = vpop.xlane.xlu0 %7640  ;;  %7676 = vadd.xlane.f32.xlu1 %v7675_v13 }
0x1a5a   : > { %v7654_v49 = vmul.f32 0.0625, %v7641_v59  ;;  %v7667_v14 = vmul.f32 %v16019_v7, %v16019_v7 }
0x1a5c   : > { %v16024_v23 = vsub.f32 %v7622_v32, %v7654_v49  ;;  %v7678_v25 = vsel %vm566_vm0, %v7667_v14, 0.0 }
0x1a5d   : > { %7679 = vadd.xlane.f32.xlu0 %v7678_v25  ;;  %v7644_v54 = vpop.xlane.xlu1 %7643 }
0x1a5e   : > { %v7655_v3 = vmul.f32 0.0625, %v7644_v54  ;;  %v7668_v47 = vmul.f32 %v16024_v23, %v16024_v23 }
0x1a60   : > { %v16029_v20 = vsub.f32 %v7623_v28, %v7655_v3  ;;  %v7681_v19 = vsel %vm566_vm0, %v7668_v47, 0.0 }
0x1a61   : > { %v7647_v40 = vpop.xlane.xlu0 %7646  ;;  %7682 = vadd.xlane.f32.xlu1 %v7681_v19 }
0x1a62   : > { %v7656_v35 = vmul.f32 0.0625, %v7647_v40  ;;  %v7669_v10 = vmul.f32 %v16029_v20, %v16029_v20 }
0x1a64   : > { %v16034_v33 = vsub.f32 %v7624_v53, %v7656_v35  ;;  %v7684_v27 = vsel %vm566_vm0, %v7669_v10, 0.0 }
0x1a65   : > { %7685 = vadd.xlane.f32.xlu0 %v7684_v27  ;;  %v7650_v11 = vpop.xlane.xlu1 %7649 }
0x1a66   : > { %v7657_v22 = vmul.f32 0.0625, %v7650_v11  ;;  %v7670_v2 = vmul.f32 %v16034_v33, %v16034_v33 }
0x1a68   : > { %v16039_v32 = vsub.f32 %v7625_v57, %v7657_v22  ;;  %v7687_v63 = vsel %vm566_vm0, %v7670_v2, 0.0 }
0x1a69   : > { %7688 = vadd.xlane.f32.xlu1 %v7687_v63 }
0x1a6a   : > { %v7671_v1 = vmul.f32 %v16039_v32, %v16039_v32 }
0x1a6c   : > { %v7690_v15 = vsel %vm566_vm0, %v7671_v1, 0.0 }
0x1a6d   : > { %7691 = vadd.xlane.f32.xlu0 %v7690_v15 }
0x1ade   : > { %v7674_v43 = vpop.xlane.xlu0 %7673 }
0x1adf   : > { %v7693_v45 = vmul.f32 0.0625, %v7674_v43 }
0x1ae1   : > { %v7700_v24 = vadd.f32 1e-05, %v7693_v45 }
0x1ae2   : > { %v7677_v29 = vpop.xlane.xlu1 %7676 }
0x1ae3   : > { %13242 = vrsqrt.f32 %v7700_v24  ;;  %v7694_v55 = vmul.f32 0.0625, %v7677_v29 }
0x1ae5   : > { %v7701_v42 = vadd.f32 1e-05, %v7694_v55 }
0x1ae6   : > { %v7680_v16 = vpop.xlane.xlu0 %7679 }
0x1ae7   : > { %13244 = vrsqrt.f32 %v7701_v42  ;;  %v7695_v28 = vmul.f32 0.0625, %v7680_v16 }
0x1ae9   : > { %v7702_v37 = vadd.f32 1e-05, %v7695_v28 }
0x1aea   : > { %v7683_v46 = vpop.xlane.xlu1 %7682 }
0x1aeb   : > { %13246 = vrsqrt.f32 %v7702_v37  ;;  %v7696_v4 = vmul.f32 0.0625, %v7683_v46 }
0x1aed   : > { %v7703_v0 = vadd.f32 1e-05, %v7696_v4 }
0x1aee   : > { %v7686_v41 = vpop.xlane.xlu0 %7685 }
0x1aef   : > { %13248 = vrsqrt.f32 %v7703_v0  ;;  %v7697_v6 = vmul.f32 0.0625, %v7686_v41 }
0x1af0   : > { %v13243_v56 = vpop.eup %13242 }
0x1af1   : > { %v7704_v61 = vadd.f32 1e-05, %v7697_v6  ;;  %v7714_v53 = vmul.f32 %v13243_v56, %v16010_v62 }
0x1af2   : > { %v7689_v8 = vpop.xlane.xlu1 %7688 }
0x1af3   : > { %13250 = vrsqrt.f32 %v7704_v61  ;;  %v7698_v39 = vmul.f32 0.0625, %v7689_v8  ;;  %v7727_v60 = vmul.f32 %v10957_v31, %v7714_v53 }
0x1af4   : > { %v13245_v57 = vpop.eup %13244 }
0x1af5   : > { %v7705_v52 = vadd.f32 1e-05, %v7698_v39  ;;  %v7715_v5 = vmul.f32 %v13245_v57, %v16014_v48  ;;  %v16058_v21 = vadd.f32 %v10958_v34, %v7727_v60 }
0x1af6   : > { %v7692_v38 = vpop.xlane.xlu0 %7691 }
0x1af7   : > { %13252 = vrsqrt.f32 %v7705_v52  ;;  %v7699_v30 = vmul.f32 0.0625, %v7692_v38  ;;  %v7728_v62 = vmul.f32 %v10957_v31, %v7715_v5 }
0x1af8   : > { %v13247_v51 = vpop.eup %13246 }
0x1af9   : > { %v7716_v58 = vmul.f32 %v13247_v51, %v16019_v7  ;;  %v7706_v26 = vadd.f32 1e-05, %v7699_v30  ;;  %v7741_v13 = vadd.f32 %v10958_v34, %v7728_v62 }
0x1afb   : > { %13254 = vrsqrt.f32 %v7706_v26  ;;  %v7747_v59 = vpack.c.bf16 %v7741_v13, %v16058_v21  ;;  %v7729_v49 = vmul.f32 %v10957_v31, %v7716_v58 }
0x1afc   : > { %v13249_v48 = vpop.eup %13248 }
0x1afd   : > { %v7717_v14 = vmul.f32 %v13249_v48, %v16024_v23  ;;  %12529 = vmatprep.mubr.msk.bf16.mxu0 %vm566_vm0, %v7747_v59  ;;  %v7742_v3 = vadd.f32 %v10958_v34, %v7729_v49 }
0x1aff   : > { %v7730_v25 = vmul.f32 %v10957_v31, %v7717_v14 }
0x1b00   : > { %v13251_v54 = vpop.eup %13250 }
0x1b01   : > { %v7743_v47 = vadd.f32 %v10958_v34, %v7730_v25  ;;  %v7718_v19 = vmul.f32 %v13251_v54, %v16029_v20  ;;  %v16886_v25 = vld [vmem:[#allocation12_spill] sm:$0xff] }
0x1b03   : > { %v7748_v7 = vpack.c.bf16 %v7743_v47, %v7742_v3  ;;  %v7731_v10 = vmul.f32 %v10957_v31, %v7718_v19 }
0x1b04   : > { %v13253_v40 = vpop.eup %13252 }
0x1b05   : > { %12530 = vmatmul.mubr.msk.bf16.vlgmr.msra.gmra.mxu0 %vm566_vm0, %v7748_v7  ;;  %v7719_v35 = vmul.f32 %v13253_v40, %v16034_v33  ;;  %v7744_v23 = vadd.f32 %v10958_v34, %v7731_v10  ;;  %v10962_v33 = vld [vmem:[%s16765_s4 + $0x2] ss:$0 sm:$0xff] }
0x1b07   : > { %v7732_v27 = vmul.f32 %v10957_v31, %v7719_v35 }
0x1b08   : > { %v13255_v11 = vpop.eup %13254 }
0x1b09   : > { %v7720_v22 = vmul.f32 %v13255_v11, %v16039_v32  ;;  %v7745_v2 = vadd.f32 %v10958_v34, %v7732_v27 }
0x1b0b   : > { %v7749_v63 = vpack.c.bf16 %v7745_v2, %v7744_v23  ;;  %v7733_v1 = vmul.f32 %v10957_v31, %v7720_v22 }
0x1b0d   : > { %12533 = vmatprep.mubr.msk.bf16.mxu0 %vm566_vm0, %v7749_v63  ;;  %v7746_v15 = vadd.f32 %v10958_v34, %v7733_v1 }
0x1b0f   : > { %v7750_v50 = vpack.c.bf16 %v7746_v15, %v7746_v15 }
0x1b11   : > { %12534 = vmatmul.mubr.msk.bf16.gmra.mxu0 %vm566_vm0, %v7750_v50 }
0x1b12   : > { %12557 = vmatprep.mubr.msk.bf16.mxu0 %vm13338_vm5, %v16878_v36 }
0x1bc5   : > { %v12531_v20 = vpop.f32.mrf.mxu0 }
0x1bc6   : > { %v7823_v37 = vadd.f32 %v12531_v20, %v10962_v33 }
0x1bc7   : > { %v7814_v43 = vpop.f32.mrf.mxu0 }
0x1bc8   : > { %v7815_v56 = vadd.f32 %v10962_v33, %v7814_v43 }
0x1bc9   : > { %v12532_v45 = vpop.f32.mrf.mxu0 }
0x1bca   : > { %v7826_v42 = vadd.f32 %v12532_v45, %v10962_v33  ;;  %v7844_v31 = vpack.c.bf16 %v7815_v56, %v7815_v56 }
0x1bcb   : > { %v7817_v24 = vpop.f32.mrf.mxu0 }
0x1bcc   : > { %v16076_v4 = vpack.c.bf16 %v7826_v42, %v7823_v37  ;;  %v7818_v0 = vadd.f32 %v10962_v33, %v7817_v24 }
0x1bce   : > { %v16082_v53 = vpack.c.bf16 %v7818_v0, %v7815_v56 }
0x1bd1   : > { %v12535_v29 = vpop.f32.mrf.mxu0 }
0x1bd2   : > { %v7839_v32 = vadd.f32 %v12535_v29, %v10962_v33 }
0x1bd3   : > { %v7830_v55 = vpop.f32.mrf.mxu0 }
0x1bd4   : > { %v16072_v16 = vpack.c.bf16 %v7839_v32, %v7839_v32  ;;  %v7831_v41 = vadd.f32 %v10962_v33, %v7830_v55 }
0x1bd5   : > { %v12536_v28 = vpop.f32.mrf.mxu0 }
0x1bd6   : > { %7859 = vrot.lane.b32.xlu1 %v16072_v16, %s16862_s18 }
0x1bd7   : > { %v7833_v46 = vpop.f32.mrf.mxu0 }
0x1bd8   : > { %v7834_v6 = vadd.f32 %v10962_v33, %v7833_v46 }
0x1bda   : > { %v16078_v61 = vpack.c.bf16 %v7834_v6, %v7831_v41  ;;  %7855 = vrot.lane.b32.xlu1 %v16076_v4, %s16862_s18 }
0x1bdc   : > { %7857 = vrot.lane.b32.xlu0 %v16078_v61, %s16862_s18 }
0x1bde   : > { %7853 = vrot.lane.b32.xlu1 %v16082_v53, %s16862_s18 }
0x1be0   : > { %7995 = vrot.lane.b32.xlu0 %v16072_v16, %s16863_s19 }
0x1be2   : > { %7993 = vrot.lane.b32.xlu1 %v16078_v61, %s16863_s19 }
0x1be4   : > { %7991 = vrot.lane.b32.xlu0 %v16076_v4, %s16863_s19 }
0x1be6   : > { %7989 = vrot.lane.b32.xlu1 %v16082_v53, %s16863_s19 }
0x1be8   : > { %7987 = vrot.lane.b32.xlu0 %v7844_v31, %s16864_s23  ;;  %s16889_s23 = sld [smem:[#allocation26_spill]] }
0x1c48   : > { %v7860_v8 = vpop.permute.xlu1 %7859 }
0x1c49   : > { %v7874_v39 = vsel %vm772_vm1, %v7860_v8, 0 }
0x1c4a   : > { %12538 = vmatpush3.bf16.xpose.msra.mxu1 %v7874_v39  ;;  %v12958_v39 = vld [vmem:[%s16766_s5 + $0x10] sm:$0xff]  }
0x1c4b   : > { %12539 = vmatprep.subr.bf16.mxu1 %v16878_v36 }
0x1c4c   : > { %v7856_v5 = vpop.permute.xlu1 %7855 }
0x1c4d   : > { %v7868_v60 = vsel %vm772_vm1, %v7856_v5, 0 }
0x1c4e   : > { %v7858_v57 = vpop.permute.xlu0 %7857 }
0x1c4f   : > { %v7871_v52 = vsel %vm772_vm1, %v7858_v57, 0 }
0x1c50   : > { %v7854_v34 = vpop.permute.xlu1 %7853 }
0x1c51   : > { %v7865_v38 = vsel %vm772_vm1, %v7854_v34, 0 }
0x1c52   : > { %12540 = vmatpush3.bf16.xpose.msra.mxu1 %v7871_v52  ;;  %v7996_v30 = vpop.permute.xlu0 %7995 }
0x1c53   : > { %12541 = vmatprep.subr.bf16.mxu1 %v16878_v36  ;;  %v8010_v62 = vsel %vm772_vm1, %v7996_v30, 0 }
0x1c54   : > { %v7994_v51 = vpop.permute.xlu1 %7993 }
0x1c55   : > { %v8007_v58 = vsel %vm772_vm1, %v7994_v51, 0 }
0x1c56   : > { %v7992_v26 = vpop.permute.xlu0 %7991 }
0x1c57   : > { %v8004_v13 = vsel %vm772_vm1, %v7992_v26, 0 }
0x1c58   : > { %v7990_v59 = vpop.permute.xlu1 %7989 }
0x1c59   : > { %v8001_v48 = vsel %vm772_vm1, %v7990_v59, 0 }
0x1c5a   : > { %12542 = vmatpush3.bf16.xpose.msra.mxu1 %v7868_v60  ;;  %v7988_v49 = vpop.permute.xlu0 %7987 }
0x1c5b   : > { %12543 = vmatprep.subr.bf16.mxu1 %v16878_v36 }
0x1c62   : > { %12544 = vmatpush3.bf16.xpose.msra.mxu1 %v7865_v38 }
0x1c63   : > { %12561 = vmatprep.subr.bf16.mxu1 %v16878_v36 }
0x1c69   : > { %12546 = vmatmul.mubr.msk.bf16.vlgmr.msra.gmra.mxu1 %vm772_vm1, %v7844_v31 }
0x1c6a   : > { %12562 = vmatpush3.bf16.xpose.msra.mxu1 %v8010_v62  ;;  %12569 = vmatprep.mubr.msk.bf16.mxu1 %vm13338_vm5, %v16878_v36 }
0x1c6b   : > { %12563 = vmatprep.subr.bf16.mxu1 %v16878_v36 }
0x1c72   : > { %12564 = vmatpush3.bf16.xpose.msra.mxu1 %v8007_v58 }
0x1c73   : > { %12565 = vmatprep.subr.bf16.mxu1 %v16878_v36 }
0x1c7a   : > { %12566 = vmatpush3.bf16.xpose.msra.mxu1 %v8004_v13  ;;  %v10974_v13 = vld [vmem:[%s16767_s6 + $0x2] sm:$0x1] }
0x1c7b   : > { %12567 = vmatprep.subr.bf16.mxu1 %v16878_v36 }
0x1c82   : > { %12568 = vmatpush3.bf16.xpose.msra.mxu1 %v8001_v48 }
0x1c89   : > { %12570 = vmatmul.mubr.msk.bf16.vlgmr.msra.gmra.mxu1 %vm772_vm1, %v7988_v49 }
0x1c8a   : > { %8286 = vmatprep.mubr.bf16.mxu1 %v16853_v9 }
0x1d29   : > { %v7910_v14 = vpop.f32.mrf.mxu1 }
0x1d2a   : > { %v7911_v54 = vadd.f32 %v7910_v14, %v16886_v25 }
0x1d2b   : > { %v12547_v3 = vpop.f32.mrf.mxu1 }
0x1d2c   : > { %v7917_v47 = vsel %vm7916_vm6, %v7911_v54, -inf }
0x1d2d   : > { %7918 = vmax.xlane.f32.xlu1 %v7917_v47  ;;  %v7913_v19 = vpop.f32.mrf.mxu1 }
0x1d2f   : > { %v12548_v7 = vpop.f32.mrf.mxu1 }
0x1d3e   : > { %7935 = vrot.lane.b32.xlu1 %v16072_v16, %s16865_s29 }
0x1d42   : > { %7931 = vrot.lane.b32.xlu1 %v16076_v4, %s16865_s29 }
0x1d46   : > { %7929 = vrot.lane.b32.xlu1 %v16082_v53, %s16865_s29 }
0x1d49   : > { %v8046_v40 = vpop.f32.mrf.mxu1 }
0x1d4a   : > { %v8047_v35 = vadd.f32 %v8046_v40, %v16886_v25  ;;  %8070 = vrot.lane.b32.xlu1 %v16072_v16, %s16867_s21 }
0x1d4b   : > { %v12571_v10 = vpop.f32.mrf.mxu1 }
0x1d4c   : > { %v8052_v27 = vsel %vm7916_vm6, %v8047_v35, -inf  ;;  %v10979_v10 = vld [vmem:[%s16772_s11 + $0x100] sm:$0xff] }
0x1d4d   : > { %8053 = vmax.xlane.f32.xlu0 %v8052_v27  ;;  %v8049_v11 = vpop.f32.mrf.mxu1  ;;  %v10980_v27 = vld [vmem:[%s16772_s11 + $0x108] sm:$0xff] }
0x1d4e   : > { %8066 = vrot.lane.b32.xlu1 %v16076_v4, %s16867_s21 }
0x1d4f   : > { %v12572_v22 = vpop.f32.mrf.mxu1 }
0x1d50   : > { %v10982_v22 = vld [vmem:[%s16772_s11 + $0x148] sm:$0xff] }
0x1d63   : > { %7933 = vrot.lane.b32.xlu0 %v16078_v61, %s16865_s29  ;;  %s16720_s29 = scalar_lea.hbm %s16889_s23, %s11412_s26 }
0x1db6   : > { %v7919_v23 = vpop.xlane.xlu1 %7918 }
0x1db7   : > { %v7920_v2 = vsub.f32 %v7911_v54, %v7919_v23 }
0x1db9   : > { %v7921_v63 = vmul.f32 1.442695, %v7920_v2  ;;  %v10986_v2 = vcombine.low %v10980_v27, %v10982_v22 }
0x1dba   : > { %v7936_v1 = vpop.permute.xlu1 %7935 }
0x1dbb   : > { %13256 = vpow2.f32 %v7921_v63  ;;  %v7944_v15 = vsel %vm966_vm4, %v7936_v1, 0  ;;  %v10987_v63 = vcombine.high %v10980_v27, %v10982_v22  ;;  %v11054_v1 = vld [vmem:[%s16772_s11 + $0x110] sm:$0xff] }
0x1dbc   : > { %12550 = vmatpush3.bf16.msra.mxu0 %v7944_v15  ;;  %v11056_v15 = vld [vmem:[%s16772_s11 + $0x150] sm:$0xff] }
0x1dbd   : > { %12551 = vmatprep.subr.bf16.mxu0 %v16878_v36 }
0x1dbe   : > { %v7932_v24 = vpop.permute.xlu1 %7931 }
0x1dc2   : > { %v7930_v33 = vpop.permute.xlu1 %7929 }
0x1dc6   : > { %v8071_v46 = vpop.permute.xlu1 %8070 }
0x1dc7   : > { %v8079_v0 = vsel %vm966_vm4, %v8071_v46, 0 }
0x1dc8   : > { %v13257_v50 = vpop.eup %13256 }
0x1dc9   : > { %v7923_v20 = vsel %vm7916_vm6, %v13257_v50, 0.0 }
0x1dca   : > { %7924 = vadd.xlane.f32.xlu0 %v7923_v20  ;;  %v8067_v6 = vpop.permute.xlu1 %8066  ;;  %v11059_v20 = vcombine.low %v11054_v1, %v11056_v15 }
0x1dd6   : > { %v8054_v43 = vpop.xlane.xlu0 %8053 }
0x1dd7   : > { %v8055_v29 = vsub.f32 %v8047_v35, %v8054_v43  ;;  %v11060_v43 = vcombine.high %v11054_v1, %v11056_v15  ;;  %v16330_v15 = vld [vmem:[%s16773_s12 + $0x20] sm:$0xf] }
0x1dd9   : > { %v8056_v32 = vmul.f32 1.442695, %v8055_v29 }
0x1dda   : > { %v7934_v45 = vpop.permute.xlu0 %7933 }
0x1ddb   : > { %12552 = vmatpush3.bf16.msra.mxu0 %v7934_v45  ;;  %13258 = vpow2.f32 %v8056_v32  ;;  %v11057_v45 = vld [vmem:[%s16772_s11 + $0x158] sm:$0xff] }
0x1ddc   : > { %12553 = vmatprep.subr.bf16.mxu0 %v16878_v36 }
0x1ddf   : > { %12554 = vmatpush3.bf16.msra.mxu0 %v7932_v24 }
0x1de0   : > { %8068 = vrot.lane.b32.xlu0 %v16078_v61, %s16867_s21  ;;  %12555 = vmatprep.subr.bf16.mxu0 %v16878_v36 }
0x1de3   : > { %12556 = vmatpush3.bf16.msra.mxu0 %v7930_v33 }
0x1de4   : > { %12573 = vmatprep.subr.bf16.mxu0 %v16878_v36 }
0x1de8   : > { %v13259_v55 = vpop.eup %13258 }
0x1de9   : > { %v8058_v42 = vsel %vm7916_vm6, %v13259_v55, 0.0 }
0x1dff   : > { %8059 = vadd.xlane.f32.xlu0 %v8058_v42 }
0x1e15   : > { %8064 = vrot.lane.b32.xlu0 %v16082_v53, %s16867_s21  ;;  %s10177_s21 = scalar_lea.sflag [#allocation3], %s539_s27 }
0x1e53   : > { %v7925_v16 = vpop.xlane.xlu0 %7924 }
0x1e54   : > { %13260 = vrcp.f32 %v7925_v16  ;;  %v10977_v16 = vld [vmem:[%s16768_s7 + $0x2] sm:$0x1] }
0x1e57   : > { %v8069_v41 = vpop.permute.xlu0 %8068 }
0x1e61   : > { %v13261_v28 = vpop.eup %13260 }
0x1e62   : > { %v7927_v37 = vmul.f32 %v13261_v28, %v13257_v50  ;;  %v11055_v50 = vld [vmem:[%s16772_s11 + $0x118] sm:$0xff] }
0x1e63   : > { %v11061_v24 = vcombine.low %v11055_v50, %v11057_v45  ;;  %v11062_v33 = vcombine.high %v11055_v50, %v11057_v45  ;;  %v8246_v45 = vrot.slane %v16330_v15, %v14087_v18 }
0x1e64   : > { %v7928_v4 = vpack.c.bf16 %v7927_v37, %v7927_v37  ;;  %v10978_v37 = vld [vmem:[%s16769_s8 + $0x2] sm:$0x1] }
0x1e66   : > { %12558 = vmatmul.mubr.msk.bf16.vlgmr.msra.gmra.mxu0 %vm861_vm3, %v7928_v4 }
0x1e67   : > { %12574 = vmatpush3.bf16.msra.mxu0 %v8079_v0  ;;  %12581 = vmatprep.mubr.msk.bf16.mxu0 %vm13338_vm5, %v16878_v36 }
0x1e68   : > { %12575 = vmatprep.subr.bf16.mxu0 %v16878_v36 }
0x1e6b   : > { %12576 = vmatpush3.bf16.msra.mxu0 %v8069_v41  ;;  %v12959_v41 = vld [vmem:[%s16774_s13 + $0x978] sm:$0xff]  }
0x1e6c   : > { %12577 = vmatprep.subr.bf16.mxu0 %v16878_v36 }
0x1e6f   : > { %12578 = vmatpush3.bf16.msra.mxu0 %v8067_v6  ;;  %v12960_v6 = vld [vmem:[%s16774_s13 + $0x9f8] sm:$0xff]  }
0x1e70   : > { %12579 = vmatprep.subr.bf16.mxu0 %v16878_v36 }
0x1e88   : > { %v8060_v56 = vpop.xlane.xlu0 %8059 }
0x1e89   : > { %13262 = vrcp.f32 %v8060_v56  ;;  %v12961_v56 = vld [vmem:[%s16774_s13 + $0x938] sm:$0xff]  }
0x1e8c   : > { %v8065_v61 = vpop.permute.xlu0 %8064 }
0x1e8d   : > { %12580 = vmatpush3.bf16.msra.mxu0 %v8065_v61  ;;  %v12962_v61 = vld [vmem:[%s16774_s13 + $0x9b8] sm:$0xff]  }
0x1e8e   : > { %12585 = vmatprep.subr.bf16.mxu0 %v16878_v36 }
0x1e96   : > { %v13263_v53 = vpop.eup %13262 }
0x1e97   : > { %v8062_v31 = vmul.f32 %v13263_v53, %v13259_v55  ;;  %v12963_v53 = vld [vmem:[%s16774_s13 + $0x970] sm:$0xff]  }
0x1e99   : > { %v8063_v8 = vpack.c.bf16 %v8062_v31, %v8062_v31  ;;  %v12964_v31 = vld [vmem:[%s16774_s13 + $0x9f0] sm:$0xff]  }
0x1e9b   : > { %12582 = vmatmul.mubr.msk.bf16.vlgmr.msra.gmra.mxu0 %vm861_vm3, %v8063_v8  ;;  %v12965_v8 = vld [vmem:[%s16774_s13 + $0x930] sm:$0xff]  }
0x1e9c   : > { %12587 = vmatprep.mubr.msk.bf16.mxu0 %vm13338_vm5, %v16878_v36  ;;  %12586 = vmatpush3.bf16.msra.mxu0 %v12958_v39  ;;  %v12966_v39 = vld [vmem:[%s16774_s13 + $0x9b0] sm:$0xff]  }
0x1e9d   : > { %8309 = vmatprep.subr.bf16.mxu0 %v10987_v63 }
0x1f26   : > { %v7980_v57 = vpop.f32.mrf.mxu0 }
0x1f28   : > { %v12559_v52 = vpop.f32.mrf.mxu0 }
0x1f29   : > { %v12968_v52 = vld [vmem:[%s16774_s13 + $0x9e8] sm:$0xff]  }
0x1f2a   : > { %v7983_v5 = vpop.f32.mrf.mxu0 }
0x1f2b   : > { %v12969_v5 = vld [vmem:[%s16774_s13 + $0x928] sm:$0xff]  }
0x1f2c   : > { %v12560_v60 = vpop.f32.mrf.mxu0 }
0x1f2d   : > { %v12970_v60 = vld [vmem:[%s16774_s13 + $0x9a8] sm:$0xff]  }
0x1f5b   : > { %v8115_v34 = vpop.f32.mrf.mxu0 }
0x1f5c   : > { %8122 = vrot.lane.b32.xlu1 %v8115_v34, %s16868_s22  ;;  %v12971_v34 = vld [vmem:[%s16774_s13 + $0x960] sm:$0xff]   ;;  %s13268_s22 = scalar_lea.vmem %s16722_s1, 16 }
0x1f5d   : > { %v12583_v38 = vpop.f32.mrf.mxu0  ;;  %p13269_p11 = scmp.ne.s32.totalorder %s16722_s1, %s13268_s22  ;;  %p13276_p1 = scmp.lt.s32.totalorder %s13274_s24, %s13268_s22 }
0x1f5e   : > { %v12972_v38 = vld [vmem:[%s16774_s13 + $0x9e0] sm:$0xff]  }
0x1f5f   : > { %v8118_v30 = vpop.f32.mrf.mxu0  ;;  %p13270_p12 = pnand %p13269_p11, %p13468_p5  ;;  %p13277_p2 = por %p13276_p1, %p13275_p0 }
0x1f60   : > { %v12973_v30 = vld [vmem:[%s16774_s13 + $0x920] sm:$0xff]  }
0x1f61   : > { %v12584_v62 = vpop.f32.mrf.mxu0  ;;  %p13271_p13 = pneg %p13270_p12 }
0x1f62   : > { %v12974_v62 = vld [vmem:[%s16774_s13 + $0x9a0] sm:$0xff]  }
0x1f63   : > { %p13278_p3 = pnand %p13277_p2, %p13271_p13 }
0x1fce   : > { %v8123_v51 = vpop.permute.xlu1 %8122 }
0x1fcf   : > { %v8125_v58 = vsel %vm772_vm1, %v7980_v57, %v8123_v51  ;;  %v12967_v57 = vld [vmem:[%s16774_s13 + $0x968] sm:$0xff]   ;;  %v12975_v51 = vld [vmem:[%s16774_s13 + $0x958] sm:$0xff]  }
0x1fd0   : > { %v8126_v26 = vpack.c.bf16 %v8125_v58, %v8125_v58  ;;  %v12976_v58 = vld [vmem:[%s16774_s13 + $0x9d8] sm:$0xff]  }
0x1fd2   : > { %12588 = vmatmul.mubr.msk.bf16.vlgmr.msra.gmra.mxu0 %vm566_vm0, %v8126_v26  ;;  %v12977_v26 = vld [vmem:[%s16774_s13 + $0x918] sm:$0xff]  }
0x1fd3   : > { %8327 = vmatprep.mubr.bf16.mxu0 %v16853_v9  ;;  %8310 = vmatpush1.bf16.msra.mxu0 %v10986_v2  ;;  %v11058_v2 = vld [vmem:[%s16773_s12 + $0x24] sm:$0xf] }
0x1fd4   : > { %8510 = vmatprep.subr.bf16.mxu0 %v11062_v33  ;;  %v8438_v50 = vrot.slane %v11058_v2, %v16876_v44 }
0x2092   : > { %v8175_v59 = vpop.f32.mrf.mxu0 }
0x2093   : > { %v8176_v48 = vadd.f32 %v10974_v13, %v8175_v59  ;;  %v12978_v13 = vld [vmem:[%s16774_s13 + $0x998] sm:$0xff]   ;;  %v12979_v59 = vld [vmem:[%s16774_s13 + $0x950] sm:$0xff]  }
0x2094   : > { %v12589_v49 = vpop.f32.mrf.mxu0 }
0x2095   : > { %v8181_v14 = vadd.f32 %v8176_v48, %v16058_v21  ;;  %v10981_v21 = vld [vmem:[%s16772_s11 + $0x140] sm:$0xff]  ;;  %v12980_v48 = vld [vmem:[%s16774_s13 + $0x9d0] sm:$0xff]  }
0x2096   : > { %v8178_v25 = vpop.f32.mrf.mxu0  ;;  %v10985_v11 = vcombine.high %v10979_v10, %v10981_v21  ;;  %v10984_v23 = vcombine.low %v10979_v10, %v10981_v21  ;;  %v12981_v49 = vld [vmem:[%s16774_s13 + $0x910] sm:$0xff]   ;;  %v12991_v10 = vld [vmem:[%s16774_s13 + $0x878] sm:$0xff]  }
0x2097   : > { %v8187_v54 = vsel %vm8186_vm7, %v8181_v14, 0.0  ;;  %v12983_v25 = vld [vmem:[%s16774_s13 + $0x948] sm:$0xff]   ;;  %v12992_v21 = vld [vmem:[%s16774_s13 + $0x8f8] sm:$0xff]  }
0x2098   : > { %8188 = vadd.xlane.f32.xlu0 %v8187_v54  ;;  %v12590_v3 = vpop.f32.mrf.mxu0  ;;  %8268 = vmatprep.subr.bf16.mxu1 %v10985_v11  ;;  %v12984_v54 = vld [vmem:[%s16774_s13 + $0x9c8] sm:$0xff]  }
0x2099   : > { %8269 = vmatpush1.bf16.msra.mxu1 %v10984_v23  ;;  %v12985_v3 = vld [vmem:[%s16774_s13 + $0x908] sm:$0xff]  }
0x209a   : > { %8469 = vmatprep.subr.bf16.mxu1 %v11060_v43  ;;  %v8238_v43 = vrot.slane %v16330_v15, %v14084_v17 }
0x2121   : > { %v8189_v47 = vpop.xlane.xlu0 %8188 }
0x2122   : > { %v8190_v19 = vmul.f32 0.0625, %v8189_v47  ;;  %v12986_v47 = vld [vmem:[%s16774_s13 + $0x988] sm:$0xff]  }
0x2124   : > { %v8191_v7 = vsub.f32 %v8181_v14, %v8190_v19  ;;  %v12982_v14 = vld [vmem:[%s16774_s13 + $0x990] sm:$0xff]   ;;  %v12987_v19 = vld [vmem:[%s16774_s13 + $0x940] sm:$0xff]  }
0x2126   : > { %v8192_v40 = vmul.f32 %v8191_v7, %v8191_v7 }
0x2128   : > { %v8193_v35 = vsel %vm8186_vm7, %v8192_v40, 0.0  ;;  %v12989_v40 = vld [vmem:[%s16774_s13 + $0x900] sm:$0xff]  }
0x2129   : > { %8194 = vadd.xlane.f32.xlu1 %v8193_v35  ;;  %v12990_v35 = vld [vmem:[%s16774_s13 + $0x980] sm:$0xff]  }
0x21b2   : > { %v8195_v29 = vpop.xlane.xlu1 %8194 }
0x21b3   : > { %v8196_v32 = vmul.f32 0.0625, %v8195_v29  ;;  %v8442_v29 = vrot.slane %v11058_v2, %v14084_v17 }
0x21b5   : > { %v8197_v55 = vadd.f32 1e-05, %v8196_v32  ;;  %v8450_v32 = vrot.slane %v11058_v2, %v14087_v18 }
0x21b7   : > { %13264 = vrsqrt.f32 %v8197_v55 }
0x21c4   : > { %v13265_v42 = vpop.eup %13264 }
0x21c5   : > { %v8199_v28 = vmul.f32 %v13265_v42, %v8191_v7  ;;  %v12988_v7 = vld [vmem:[%s16774_s13 + $0x9c0] sm:$0xff]  }
0x21c7   : > { %v8200_v46 = vmul.f32 %v10977_v16, %v8199_v28 }
0x21c9   : > { %v16202_v4 = vadd.f32 %v10978_v37, %v8200_v46 }
0x21cb   : > { %v16206_v0 = vpack.c.bf16 %v16202_v4, %v16202_v4 }
0x21cd   : > { %10988 = vmatmul.mubr.msk.bf16.vlgmr.msra.gmra.mxu1 %vm566_vm0, %v16206_v0  ;;  %10989 = vmatmul.mubr.msk.bf16.vlgmr.msra.gmra.mxu0 %vm566_vm0, %v16206_v0 }
0x21ce   : > { %8470 = vmatpush1.bf16.msra.mxu1 %v11059_v20  ;;  %8511 = vmatpush1.bf16.msra.mxu0 %v11061_v24  ;;  %v8446_v20 = vrot.slane %v11058_v2, %v16877_v12  ;;  %v13009_v2 = vld [vmem:[%s16774_s13 + $0x818] sm:$0xff]  }
0x21cf   : > { %8487 = vmatprep.mubr.bf16.mxu1 %v16853_v9  ;;  %8528 = vmatprep.mubr.bf16.mxu0 %v16853_v9 }
0x21d0   : > { %12171 = vmatprep.subr.bf16.mxu1 %v12959_v41  ;;  %12193 = vmatprep.subr.bf16.mxu0 %v12960_v6 }
0x21d5   : > { %11063 = vmatmul.mubr.msk.bf16.vlgmr.msra.gmra.mxu1 %vm566_vm0, %v16206_v0  ;;  %11064 = vmatmul.mubr.msk.bf16.vlgmr.msra.gmra.mxu0 %vm566_vm0, %v16206_v0 }
0x21d6   : > { %12172 = vmatpush3.bf16.msra.mxu1 %v12961_v56  ;;  %12194 = vmatpush3.bf16.msra.mxu0 %v12962_v61 }
0x21d7   : > { %12173 = vmatprep.subr.bf16.mxu1 %v12963_v53  ;;  %12195 = vmatprep.subr.bf16.mxu0 %v12964_v31 }
0x21da   : > { %12174 = vmatpush3.bf16.msra.mxu1 %v12965_v8  ;;  %12196 = vmatpush3.bf16.msra.mxu0 %v12966_v39 }
0x21db   : > { %12175 = vmatprep.subr.bf16.mxu1 %v12967_v57  ;;  %12197 = vmatprep.subr.bf16.mxu0 %v12968_v52 }
0x21de   : > { %12176 = vmatpush3.bf16.msra.mxu1 %v12969_v5  ;;  %12198 = vmatpush3.bf16.msra.mxu0 %v12970_v60 }
0x21df   : > { %12177 = vmatprep.subr.bf16.mxu1 %v12971_v34  ;;  %12199 = vmatprep.subr.bf16.mxu0 %v12972_v38 }
0x21e2   : > { %12178 = vmatpush3.bf16.msra.mxu1 %v12973_v30  ;;  %12200 = vmatpush3.bf16.msra.mxu0 %v12974_v62 }
0x21e3   : > { %12179 = vmatprep.subr.bf16.mxu1 %v12975_v51  ;;  %12201 = vmatprep.subr.bf16.mxu0 %v12976_v58  ;;  %v12993_v51 = vld [vmem:[%s16774_s13 + $0x838] sm:$0xff]  }
0x21e4   : > { %v12994_v58 = vld [vmem:[%s16774_s13 + $0x8b8] sm:$0xff]  }
0x21e6   : > { %12180 = vmatpush3.bf16.msra.mxu1 %v12977_v26  ;;  %12202 = vmatpush3.bf16.msra.mxu0 %v12978_v13 }
0x21e7   : > { %12181 = vmatprep.subr.bf16.mxu1 %v12979_v59  ;;  %12203 = vmatprep.subr.bf16.mxu0 %v12980_v48  ;;  %v12995_v59 = vld [vmem:[%s16774_s13 + $0x870] sm:$0xff]  }
0x21e8   : > { %v12996_v48 = vld [vmem:[%s16774_s13 + $0x8f0] sm:$0xff]  }
0x21ea   : > { %12182 = vmatpush3.bf16.msra.mxu1 %v12981_v49  ;;  %12204 = vmatpush3.bf16.msra.mxu0 %v12982_v14 }
0x21eb   : > { %12183 = vmatprep.subr.bf16.mxu1 %v12983_v25  ;;  %12205 = vmatprep.subr.bf16.mxu0 %v12984_v54  ;;  %v12997_v25 = vld [vmem:[%s16774_s13 + $0x830] sm:$0xff]  }
0x21ec   : > { %v12998_v54 = vld [vmem:[%s16774_s13 + $0x8b0] sm:$0xff]  }
0x21ee   : > { %12184 = vmatpush3.bf16.msra.mxu1 %v12985_v3  ;;  %12206 = vmatpush3.bf16.msra.mxu0 %v12986_v47  ;;  %v12999_v3 = vld [vmem:[%s16774_s13 + $0x868] sm:$0xff]  }
0x21ef   : > { %12185 = vmatprep.subr.bf16.mxu1 %v12987_v19  ;;  %12207 = vmatprep.subr.bf16.mxu0 %v12988_v7  ;;  %v13000_v47 = vld [vmem:[%s16774_s13 + $0x8e8] sm:$0xff]  }
0x21f0   : > { %v13001_v19 = vld [vmem:[%s16774_s13 + $0x828] sm:$0xff]  }
0x21f1   : > { %v13002_v7 = vld [vmem:[%s16774_s13 + $0x8a8] sm:$0xff]  }
0x21f2   : > { %12186 = vmatpush3.bf16.msra.mxu1 %v12989_v40  ;;  %12208 = vmatpush3.bf16.msra.mxu0 %v12990_v35  ;;  %v13003_v40 = vld [vmem:[%s16774_s13 + $0x860] sm:$0xff]  }
0x21f3   : > { %12215 = vmatprep.subr.bf16.mxu1 %v12991_v10  ;;  %12237 = vmatprep.subr.bf16.mxu0 %v12992_v21  ;;  %v13004_v35 = vld [vmem:[%s16774_s13 + $0x8e0] sm:$0xff]  }
0x21f4   : > { %v13005_v10 = vld [vmem:[%s16774_s13 + $0x820] sm:$0xff]  }
0x21f5   : > { %v13006_v21 = vld [vmem:[%s16774_s13 + $0x8a0] sm:$0xff]  }
0x228d   : > { %v16320_v27 = vpop.f32.mrf.mxu1  ;;  %v16322_v11 = vpop.f32.mrf.mxu0 }
0x228f   : > { %v8290_v22 = vpop.f32.mrf.mxu1  ;;  %v8331_v23 = vpop.f32.mrf.mxu0 }
0x2290   : > { %v8291_v37 = vadd.f32 %v8290_v22, %v8238_v43  ;;  %v8332_v46 = vadd.f32 %v8331_v23, %v8246_v45  ;;  %v13007_v22 = vld [vmem:[%s16774_s13 + $0x858] sm:$0xff]   ;;  %v13014_v43 = vld [vmem:[%s16774_s13 + $0x890] sm:$0xff]   ;;  %v8234_v45 = vrot.slane %v16330_v15, %v16876_v44 }
0x2291   : > { %v8292_v63 = vpop.f32.mrf.mxu1  ;;  %v8333_v1 = vpop.f32.mrf.mxu0  ;;  %v13008_v23 = vld [vmem:[%s16774_s13 + $0x8d8] sm:$0xff]  }
0x2292   : > { %v8337_v5 = vmax.f32 %v8291_v37, 0.0  ;;  %v8339_v60 = vmax.f32 %v8332_v46, 0.0  ;;  %v13010_v63 = vld [vmem:[%s16774_s13 + $0x898] sm:$0xff]   ;;  %v13011_v1 = vld [vmem:[%s16774_s13 + $0x850] sm:$0xff]   ;;  %v11193_v37 = vld [vmem:[%s16772_s11 + $0x120] sm:$0xff] }
0x2293   : > { %v8293_v24 = vpop.f32.mrf.mxu1  ;;  %v8334_v33 = vpop.f32.mrf.mxu0  ;;  %v11196_v46 = vld [vmem:[%s16772_s11 + $0x168] sm:$0xff] }
0x2294   : > { %v8341_v49 = vpack.c.bf16 %v8337_v5, %v8337_v5  ;;  %v8343_v14 = vpack.c.bf16 %v8339_v60, %v8339_v60  ;;  %v8242_v24 = vrot.slane %v16330_v15, %v16877_v12  ;;  %v13015_v33 = vld [vmem:[%s16774_s13 + $0x848] sm:$0xff]   ;;  %v13023_v5 = vld [vmem:[%s16774_s13 + $0xa78] sm:$0xff]  }
0x2295   : > { %v8489_v55 = vpop.f32.mrf.mxu1  ;;  %v8530_v42 = vpop.f32.mrf.mxu0  ;;  %v13018_v15 = vld [vmem:[%s16774_s13 + $0x888] sm:$0xff]   ;;  %v13024_v60 = vld [vmem:[%s16774_s13 + $0xaf8] sm:$0xff]  }
0x2296   : > { %v8490_v16 = vadd.f32 %v8489_v55, %v8438_v50  ;;  %v8531_v28 = vadd.f32 %v8530_v42, %v8446_v20  ;;  %v13012_v50 = vld [vmem:[%s16774_s13 + $0x8d0] sm:$0xff]   ;;  %v8289_v55 = vadd.f32 %v16320_v27, %v8234_v45  ;;  %v8330_v42 = vadd.f32 %v16322_v11, %v8242_v24  ;;  %v11195_v27 = vld [vmem:[%s16772_s11 + $0x160] sm:$0xff]  ;;  %v11194_v11 = vld [vmem:[%s16772_s11 + $0x128] sm:$0xff] }
0x2297   : > { %v8491_v41 = vpop.f32.mrf.mxu1  ;;  %v8532_v6 = vpop.f32.mrf.mxu0  ;;  %v13013_v20 = vld [vmem:[%s16774_s13 + $0x810] sm:$0xff]  }
0x2298   : > { %v8492_v56 = vadd.f32 %v8491_v41, %v8442_v29  ;;  %v8533_v61 = vadd.f32 %v8532_v6, %v8450_v32  ;;  %v8537_v53 = vmax.f32 %v8490_v16, 0.0  ;;  %v8539_v31 = vmax.f32 %v8531_v28, 0.0  ;;  %v13016_v29 = vld [vmem:[%s16774_s13 + $0x8c8] sm:$0xff]   ;;  %v13019_v16 = vld [vmem:[%s16774_s13 + $0x840] sm:$0xff]   ;;  %v16553_v45 = vld [vmem:[%s16772_s11 + $0x130] sm:$0xff] }
0x2299   : > { %v8493_v8 = vpop.f32.mrf.mxu1  ;;  %v8534_v39 = vpop.f32.mrf.mxu0  ;;  %v13017_v32 = vld [vmem:[%s16774_s13 + $0x808] sm:$0xff]   ;;  %v13020_v28 = vld [vmem:[%s16774_s13 + $0x8c0] sm:$0xff]   ;;  %v16558_v24 = vld [vmem:[%s16772_s11 + $0x170] sm:$0xff] }
0x229a   : > { %v8538_v57 = vmax.f32 %v8492_v56, 0.0  ;;  %v8540_v52 = vmax.f32 %v8533_v61, 0.0  ;;  %v8541_v26 = vpack.c.bf16 %v8537_v53, %v8537_v53  ;;  %v8543_v13 = vpack.c.bf16 %v8539_v31, %v8539_v31  ;;  %v13021_v41 = vld [vmem:[%s16774_s13 + $0x800] sm:$0xff]  }
0x229b   : > { %v8494_v34 = vpop.f32.mrf.mxu1  ;;  %v8535_v38 = vpop.f32.mrf.mxu0  ;;  %v13022_v6 = vld [vmem:[%s16774_s13 + $0x880] sm:$0xff]   ;;  %v8336_v56 = vmax.f32 %v8289_v55, 0.0  ;;  %v8338_v61 = vmax.f32 %v8330_v42, 0.0  ;;  %v11199_v53 = vcombine.high %v11193_v37, %v11195_v27  ;;  %v11201_v31 = vcombine.high %v11194_v11, %v11196_v46 }
0x229c   : > { %v8542_v30 = vpack.c.bf16 %v8538_v57, %v8538_v57  ;;  %v8544_v62 = vpack.c.bf16 %v8540_v52, %v8540_v52  ;;  %v11198_v8 = vcombine.low %v11193_v37, %v11195_v27  ;;  %v11200_v39 = vcombine.low %v11194_v11, %v11196_v46  ;;  %v13025_v34 = vld [vmem:[%s16774_s13 + $0xa38] sm:$0xff]  }
0x229d   : > { %v8340_v57 = vpack.c.bf16 %v8336_v56, %v8336_v56  ;;  %v8342_v52 = vpack.c.bf16 %v8338_v61, %v8338_v61  ;;  %v13026_v38 = vld [vmem:[%s16774_s13 + $0xab8] sm:$0xff]  }
0x229e   : > { %8833 = vmatprep.mubr.bf16.mxu1 %v8542_v30  ;;  %8873 = vmatprep.mubr.bf16.mxu0 %v8544_v62  ;;  %v13027_v30 = vld [vmem:[%s16774_s13 + $0xa70] sm:$0xff]  }
0x229f   : > { %8834 = vmatmul.mubr.bf16.vlgmr.msra.gmra.mxu1 %v8541_v26  ;;  %8874 = vmatmul.mubr.bf16.vlgmr.msra.gmra.mxu0 %v8543_v13  ;;  %v13028_v62 = vld [vmem:[%s16774_s13 + $0xaf0] sm:$0xff]   ;;  %v13031_v26 = vld [vmem:[%s16774_s13 + $0xa68] sm:$0xff]  }
0x22a0   : > { %12216 = vmatpush3.bf16.msra.mxu1 %v12993_v51  ;;  %12238 = vmatpush3.bf16.msra.mxu0 %v12994_v58  ;;  %v13029_v51 = vld [vmem:[%s16774_s13 + $0xa30] sm:$0xff]   ;;  %v13032_v13 = vld [vmem:[%s16774_s13 + $0xae8] sm:$0xff]  }
0x22a1   : > { %9105 = vmatprep.mubr.bf16.mxu1 %v8341_v49  ;;  %9145 = vmatprep.mubr.bf16.mxu0 %v8343_v14  ;;  %v13030_v58 = vld [vmem:[%s16774_s13 + $0xab0] sm:$0xff]   ;;  %v13035_v49 = vld [vmem:[%s16774_s13 + $0xa60] sm:$0xff]  }
0x22a2   : > { %12217 = vmatprep.subr.bf16.mxu1 %v12995_v59  ;;  %12239 = vmatprep.subr.bf16.mxu0 %v12996_v48  ;;  %v13033_v59 = vld [vmem:[%s16774_s13 + $0xa28] sm:$0xff]   ;;  %v13036_v14 = vld [vmem:[%s16774_s13 + $0xae0] sm:$0xff]  }
0x22a3   : > { %v13034_v48 = vld [vmem:[%s16774_s13 + $0xaa8] sm:$0xff]  }
0x22a4   : > { %12218 = vmatpush3.bf16.msra.mxu1 %v12997_v25  ;;  %12240 = vmatpush3.bf16.msra.mxu0 %v12998_v54  ;;  %v13037_v25 = vld [vmem:[%s16774_s13 + $0xa20] sm:$0xff]  }
0x22a5   : > { %12219 = vmatprep.subr.bf16.mxu1 %v12999_v3  ;;  %12241 = vmatprep.subr.bf16.mxu0 %v13000_v47  ;;  %v13038_v54 = vld [vmem:[%s16774_s13 + $0xaa0] sm:$0xff]   ;;  %v13039_v3 = vld [vmem:[%s16774_s13 + $0xa58] sm:$0xff]  }
0x22a6   : > { %v13040_v47 = vld [vmem:[%s16774_s13 + $0xad8] sm:$0xff]  }
0x22a8   : > { %12220 = vmatpush3.bf16.msra.mxu1 %v13001_v19  ;;  %12242 = vmatpush3.bf16.msra.mxu0 %v13002_v7  ;;  %v13041_v19 = vld [vmem:[%s16774_s13 + $0xa18] sm:$0xff]  }
0x22a9   : > { %12221 = vmatprep.subr.bf16.mxu1 %v13003_v40  ;;  %12243 = vmatprep.subr.bf16.mxu0 %v13004_v35  ;;  %v13042_v7 = vld [vmem:[%s16774_s13 + $0xa98] sm:$0xff]   ;;  %v13043_v40 = vld [vmem:[%s16774_s13 + $0xa50] sm:$0xff]  }
0x22aa   : > { %v13044_v35 = vld [vmem:[%s16774_s13 + $0xad0] sm:$0xff]  }
0x22ac   : > { %12222 = vmatpush3.bf16.msra.mxu1 %v13005_v10  ;;  %12244 = vmatpush3.bf16.msra.mxu0 %v13006_v21  ;;  %v13045_v10 = vld [vmem:[%s16774_s13 + $0xa10] sm:$0xff]  }
0x22ad   : > { %12223 = vmatprep.subr.bf16.mxu1 %v13007_v22  ;;  %12245 = vmatprep.subr.bf16.mxu0 %v13008_v23  ;;  %v13046_v21 = vld [vmem:[%s16774_s13 + $0xa90] sm:$0xff]   ;;  %v13047_v22 = vld [vmem:[%s16774_s13 + $0xa48] sm:$0xff]  }
0x22ae   : > { %v13048_v23 = vld [vmem:[%s16774_s13 + $0xac8] sm:$0xff]  }
0x22b0   : > { %12224 = vmatpush3.bf16.msra.mxu1 %v13009_v2  ;;  %12246 = vmatpush3.bf16.msra.mxu0 %v13010_v63  ;;  %v13049_v2 = vld [vmem:[%s16774_s13 + $0xa08] sm:$0xff]  }
0x22b1   : > { %12225 = vmatprep.subr.bf16.mxu1 %v13011_v1  ;;  %12247 = vmatprep.subr.bf16.mxu0 %v13012_v50  ;;  %v13050_v63 = vld [vmem:[%s16774_s13 + $0xa88] sm:$0xff]   ;;  %v13051_v1 = vld [vmem:[%s16774_s13 + $0xa40] sm:$0xff]  }
0x22b2   : > { %v13052_v50 = vld [vmem:[%s16774_s13 + $0xac0] sm:$0xff]  }
0x22b4   : > { %12226 = vmatpush3.bf16.msra.mxu1 %v13013_v20  ;;  %12248 = vmatpush3.bf16.msra.mxu0 %v13014_v43  ;;  %v13053_v20 = vld [vmem:[%s16774_s13 + $0xa00] sm:$0xff]  }
0x22b5   : > { %12227 = vmatprep.subr.bf16.mxu1 %v13015_v33  ;;  %12249 = vmatprep.subr.bf16.mxu0 %v13016_v29  ;;  %v13054_v43 = vld [vmem:[%s16774_s13 + $0xa80] sm:$0xff]   ;;  %v16563_v33 = vld [vmem:[%s16772_s11 + $0x138] sm:$0xff]  ;;  %v11305_v29 = vcombine.low %v16553_v45, %v16558_v24 }
0x22b8   : > { %12228 = vmatpush3.bf16.msra.mxu1 %v13017_v32  ;;  %12250 = vmatpush3.bf16.msra.mxu0 %v13018_v15  ;;  %v11306_v32 = vcombine.high %v16553_v45, %v16558_v24  ;;  %v11303_v15 = vld [vmem:[%s16772_s11 + $0x178] sm:$0xff] }
0x22b9   : > { %12229 = vmatprep.subr.bf16.mxu1 %v13019_v16  ;;  %12251 = vmatprep.subr.bf16.mxu0 %v13020_v28  ;;  %v11307_v55 = vcombine.low %v16563_v33, %v11303_v15  ;;  %v11308_v42 = vcombine.high %v16563_v33, %v11303_v15  ;;  %v13055_v45 = vld [vmem:[%s16774_s13 + $0xb78] sm:$0xff]   ;;  %v13059_v15 = vld [vmem:[%s16774_s13 + $0xb70] sm:$0xff]  }
0x22ba   : > { %v13056_v24 = vld [vmem:[%s16774_s13 + $0xbf8] sm:$0xff]  }
0x22bb   : > { %v13057_v33 = vld [vmem:[%s16774_s13 + $0xb38] sm:$0xff]  }
0x22bc   : > { %12230 = vmatpush3.bf16.msra.mxu1 %v13021_v41  ;;  %12252 = vmatpush3.bf16.msra.mxu0 %v13022_v6 }
0x22bd   : > { %9213 = vmatprep.subr.bf16.mxu1 %v11199_v53  ;;  %9254 = vmatprep.subr.bf16.mxu0 %v11201_v31 }
0x22bf   : > { %9106 = vmatmul.mubr.bf16.vlgmr.msra.gmra.mxu1 %v8340_v57  ;;  %9146 = vmatmul.mubr.bf16.vlgmr.msra.gmra.mxu0 %v8342_v52  ;;  %v11197_v52 = vld [vmem:[%s16773_s12 + $0x28] sm:$0xf] }
0x22c0   : > { %9214 = vmatpush1.bf16.msra.mxu1 %v11198_v8  ;;  %9255 = vmatpush1.bf16.msra.mxu0 %v11200_v39 }
0x22c1   : > { %9231 = vmatprep.mubr.bf16.mxu1 %v16853_v9  ;;  %9272 = vmatprep.mubr.bf16.mxu0 %v16853_v9 }
0x22c2   : > { %12259 = vmatprep.subr.bf16.mxu1 %v13023_v5  ;;  %12281 = vmatprep.subr.bf16.mxu0 %v13024_v60 }
0x22c7   : > { %11202 = vmatmul.mubr.msk.bf16.vlgmr.msra.gmra.mxu1 %vm566_vm0, %v16206_v0  ;;  %11203 = vmatmul.mubr.msk.bf16.vlgmr.msra.gmra.mxu0 %vm566_vm0, %v16206_v0 }
0x22c8   : > { %12260 = vmatpush3.bf16.msra.mxu1 %v13025_v34  ;;  %12282 = vmatpush3.bf16.msra.mxu0 %v13026_v38 }
0x22c9   : > { %12261 = vmatprep.subr.bf16.mxu1 %v13027_v30  ;;  %12283 = vmatprep.subr.bf16.mxu0 %v13028_v62  ;;  %v9182_v62 = vrot.slane %v11197_v52, %v16876_v44 }
0x22cc   : > { %12262 = vmatpush3.bf16.msra.mxu1 %v13029_v51  ;;  %12284 = vmatpush3.bf16.msra.mxu0 %v13030_v58  ;;  %v9190_v51 = vrot.slane %v11197_v52, %v16877_v12 }
0x22cd   : > { %12263 = vmatprep.subr.bf16.mxu1 %v13031_v26  ;;  %12285 = vmatprep.subr.bf16.mxu0 %v13032_v13 }
0x22d0   : > { %12264 = vmatpush3.bf16.msra.mxu1 %v13033_v59  ;;  %12286 = vmatpush3.bf16.msra.mxu0 %v13034_v48  ;;  %v9186_v59 = vrot.slane %v11197_v52, %v14084_v17  ;;  %v9194_v48 = vrot.slane %v11197_v52, %v14087_v18  ;;  %v13080_v52 = vld [vmem:[%s16774_s13 + $0xbc8] sm:$0xff]  }
0x22d1   : > { %12265 = vmatprep.subr.bf16.mxu1 %v13035_v49  ;;  %12287 = vmatprep.subr.bf16.mxu0 %v13036_v14 }
0x22d4   : > { %12266 = vmatpush3.bf16.msra.mxu1 %v13037_v25  ;;  %12288 = vmatpush3.bf16.msra.mxu0 %v13038_v54 }
0x22d5   : > { %12267 = vmatprep.subr.bf16.mxu1 %v13039_v3  ;;  %12289 = vmatprep.subr.bf16.mxu0 %v13040_v47 }
0x22d8   : > { %12268 = vmatpush3.bf16.msra.mxu1 %v13041_v19  ;;  %12290 = vmatpush3.bf16.msra.mxu0 %v13042_v7 }
0x22d9   : > { %12269 = vmatprep.subr.bf16.mxu1 %v13043_v40  ;;  %12291 = vmatprep.subr.bf16.mxu0 %v13044_v35 }
0x22dc   : > { %12270 = vmatpush3.bf16.msra.mxu1 %v13045_v10  ;;  %12292 = vmatpush3.bf16.msra.mxu0 %v13046_v21 }
0x22dd   : > { %12271 = vmatprep.subr.bf16.mxu1 %v13047_v22  ;;  %12293 = vmatprep.subr.bf16.mxu0 %v13048_v23 }
0x22e0   : > { %12272 = vmatpush3.bf16.msra.mxu1 %v13049_v2  ;;  %12294 = vmatpush3.bf16.msra.mxu0 %v13050_v63 }
0x22e1   : > { %12273 = vmatprep.subr.bf16.mxu1 %v13051_v1  ;;  %12295 = vmatprep.subr.bf16.mxu0 %v13052_v50 }
0x22e4   : > { %12274 = vmatpush3.bf16.msra.mxu1 %v13053_v20  ;;  %12296 = vmatpush3.bf16.msra.mxu0 %v13054_v43 }
0x22e5   : > { %9686 = vmatprep.subr.bf16.mxu1 %v11306_v32  ;;  %9727 = vmatprep.subr.bf16.mxu0 %v11308_v42  ;;  %v13058_v32 = vld [vmem:[%s16774_s13 + $0xbb8] sm:$0xff]   ;;  %v13063_v42 = vld [vmem:[%s16774_s13 + $0xb68] sm:$0xff]  }
0x235f   : > { %v12187_v16 = vpop.f32.mrf.mxu1  ;;  %v12209_v28 = vpop.f32.mrf.mxu0 }
0x2361   : > { %v12188_v37 = vpop.f32.mrf.mxu1  ;;  %v12210_v27 = vpop.f32.mrf.mxu0 }
0x2362   : > { %v12189_v11 = vadd.f32 %v12188_v37, %v12187_v16  ;;  %v12211_v46 = vadd.f32 %v12210_v27, %v12209_v28  ;;  %v13065_v16 = vld [vmem:[%s16774_s13 + $0xb28] sm:$0xff]   ;;  %v13067_v37 = vld [vmem:[%s16774_s13 + $0xb60] sm:$0xff]  }
0x2363   : > { %v12190_v41 = vpop.f32.mrf.mxu1  ;;  %v12212_v6 = vpop.f32.mrf.mxu0  ;;  %v13066_v28 = vld [vmem:[%s16774_s13 + $0xba8] sm:$0xff]   ;;  %v13068_v27 = vld [vmem:[%s16774_s13 + $0xbe0] sm:$0xff]  }
0x2364   : > { %v8876_v56 = vadd.f32 %v12211_v46, %v12189_v11  ;;  %v13069_v11 = vld [vmem:[%s16774_s13 + $0xb20] sm:$0xff]   ;;  %v13071_v41 = vld [vmem:[%s16774_s13 + $0xb58] sm:$0xff]  }
0x2365   : > { %v12191_v61 = vpop.f32.mrf.mxu1  ;;  %v12213_v53 = vpop.f32.mrf.mxu0  ;;  %v13070_v46 = vld [vmem:[%s16774_s13 + $0xba0] sm:$0xff]   ;;  %v13072_v6 = vld [vmem:[%s16774_s13 + $0xbd8] sm:$0xff]  }
0x2366   : > { %v13074_v61 = vld [vmem:[%s16774_s13 + $0xb98] sm:$0xff]   ;;  %v13075_v53 = vld [vmem:[%s16774_s13 + $0xb50] sm:$0xff]  }
0x237f   : > { %v12231_v31 = vpop.f32.mrf.mxu1  ;;  %v12253_v8 = vpop.f32.mrf.mxu0 }
0x2381   : > { %v12232_v39 = vpop.f32.mrf.mxu1  ;;  %v12254_v57 = vpop.f32.mrf.mxu0 }
0x2382   : > { %v12233_v5 = vadd.f32 %v12232_v39, %v12231_v31  ;;  %v12255_v60 = vadd.f32 %v12254_v57, %v12253_v8  ;;  %v13076_v31 = vld [vmem:[%s16774_s13 + $0xbd0] sm:$0xff]   ;;  %v13079_v57 = vld [vmem:[%s16774_s13 + $0xb48] sm:$0xff]  }
0x2383   : > { %v12234_v34 = vpop.f32.mrf.mxu1  ;;  %v12256_v38 = vpop.f32.mrf.mxu0  ;;  %v13077_v8 = vld [vmem:[%s16774_s13 + $0xb10] sm:$0xff]  }
0x2384   : > { %v9108_v30 = vadd.f32 %v12233_v5, %v8876_v56  ;;  %v13073_v56 = vld [vmem:[%s16774_s13 + $0xb18] sm:$0xff]   ;;  %v13078_v39 = vld [vmem:[%s16774_s13 + $0xb90] sm:$0xff]   ;;  %v13081_v5 = vld [vmem:[%s16774_s13 + $0xb08] sm:$0xff]  }
0x2385   : > { %v12235_v58 = vpop.f32.mrf.mxu1  ;;  %v12257_v26 = vpop.f32.mrf.mxu0  ;;  %v13083_v34 = vld [vmem:[%s16774_s13 + $0xb40] sm:$0xff]  }
0x2386   : > { %v16579_v13 = vadd.f32 %v12255_v60, %v9108_v30  ;;  %v13082_v60 = vld [vmem:[%s16774_s13 + $0xb88] sm:$0xff]   ;;  %v13084_v38 = vld [vmem:[%s16774_s13 + $0xbc0] sm:$0xff]  }
0x2387   : > { %v9233_v49 = vpop.f32.mrf.mxu1  ;;  %v9274_v14 = vpop.f32.mrf.mxu0  ;;  %v13085_v30 = vld [vmem:[%s16774_s13 + $0xb00] sm:$0xff]  }
0x2388   : > { %v9234_v25 = vadd.f32 %v9233_v49, %v9182_v62  ;;  %v9275_v54 = vadd.f32 %v9274_v14, %v9190_v51  ;;  %v13086_v62 = vld [vmem:[%s16774_s13 + $0xb80] sm:$0xff]  }
0x2389   : > { %v9235_v3 = vpop.f32.mrf.mxu1  ;;  %v9276_v47 = vpop.f32.mrf.mxu0 }
0x238a   : > { %v9236_v19 = vadd.f32 %v9235_v3, %v9186_v59  ;;  %v9277_v7 = vadd.f32 %v9276_v47, %v9194_v48  ;;  %v9281_v40 = vmax.f32 %v9234_v25, 0.0  ;;  %v9283_v35 = vmax.f32 %v9275_v54, 0.0  ;;  %v11304_v48 = vld [vmem:[%s16773_s12 + $0x2c] sm:$0xf] }
0x238b   : > { %v9237_v10 = vpop.f32.mrf.mxu1  ;;  %v9278_v21 = vpop.f32.mrf.mxu0  ;;  %v9655_v47 = vrot.slane %v11304_v48, %v16876_v44 }
0x238c   : > { %v9282_v22 = vmax.f32 %v9236_v19, 0.0  ;;  %v9284_v23 = vmax.f32 %v9277_v7, 0.0  ;;  %v9285_v20 = vpack.c.bf16 %v9281_v40, %v9281_v40  ;;  %v9287_v43 = vpack.c.bf16 %v9283_v35, %v9283_v35 }
0x238d   : > { %v9238_v2 = vpop.f32.mrf.mxu1  ;;  %v9279_v63 = vpop.f32.mrf.mxu0  ;;  %v9663_v19 = vrot.slane %v11304_v48, %v16877_v12  ;;  %v9659_v10 = vrot.slane %v11304_v48, %v14084_v17  ;;  %v9667_v21 = vrot.slane %v11304_v48, %v14087_v18 }
0x238e   : > { %v9286_v1 = vpack.c.bf16 %v9282_v22, %v9282_v22  ;;  %v9288_v50 = vpack.c.bf16 %v9284_v23, %v9284_v23 }
0x2390   : > { %9577 = vmatprep.mubr.bf16.mxu1 %v9286_v1  ;;  %9617 = vmatprep.mubr.bf16.mxu0 %v9288_v50 }
0x2391   : > { %9578 = vmatmul.mubr.bf16.vlgmr.msra.gmra.mxu1 %v9285_v20  ;;  %9618 = vmatmul.mubr.bf16.vlgmr.msra.gmra.mxu0 %v9287_v43 }
0x2392   : > { %9687 = vmatpush1.bf16.msra.mxu1 %v11305_v29  ;;  %9728 = vmatpush1.bf16.msra.mxu0 %v11307_v55  ;;  %v13060_v29 = vld [vmem:[%s16774_s13 + $0xbf0] sm:$0xff]  }
0x2393   : > { %9704 = vmatprep.mubr.bf16.mxu1 %v16853_v9  ;;  %9745 = vmatprep.mubr.bf16.mxu0 %v16853_v9  ;;  %v13061_v9 = vld [vmem:[%s16774_s13 + $0xb30] sm:$0xff]  }
0x2394   : > { %12303 = vmatprep.subr.bf16.mxu1 %v13055_v45  ;;  %12325 = vmatprep.subr.bf16.mxu0 %v13056_v24  ;;  %v13062_v55 = vld [vmem:[%s16774_s13 + $0xbb0] sm:$0xff]  }
0x2399   : > { %11309 = vmatmul.mubr.msk.bf16.vlgmr.msra.gmra.mxu1 %vm566_vm0, %v16206_v0  ;;  %11310 = vmatmul.mubr.msk.bf16.vlgmr.msra.gmra.mxu0 %vm566_vm0, %v16206_v0  ;;  %v13064_v0 = vld [vmem:[%s16774_s13 + $0xbe8] sm:$0xff]  }
0x239a   : > { %12304 = vmatpush3.bf16.msra.mxu1 %v13057_v33  ;;  %12326 = vmatpush3.bf16.msra.mxu0 %v13058_v32 }
0x239b   : > { %12305 = vmatprep.subr.bf16.mxu1 %v13059_v15  ;;  %12327 = vmatprep.subr.bf16.mxu0 %v13060_v29 }
0x239e   : > { %12306 = vmatpush3.bf16.msra.mxu1 %v13061_v9  ;;  %12328 = vmatpush3.bf16.msra.mxu0 %v13062_v55 }
0x239f   : > { %12307 = vmatprep.subr.bf16.mxu1 %v13063_v42  ;;  %12329 = vmatprep.subr.bf16.mxu0 %v13064_v0 }
0x23a2   : > { %12308 = vmatpush3.bf16.msra.mxu1 %v13065_v16  ;;  %12330 = vmatpush3.bf16.msra.mxu0 %v13066_v28 }
0x23a3   : > { %12309 = vmatprep.subr.bf16.mxu1 %v13067_v37  ;;  %12331 = vmatprep.subr.bf16.mxu0 %v13068_v27 }
0x23a6   : > { %12310 = vmatpush3.bf16.msra.mxu1 %v13069_v11  ;;  %12332 = vmatpush3.bf16.msra.mxu0 %v13070_v46 }
0x23a7   : > { %12311 = vmatprep.subr.bf16.mxu1 %v13071_v41  ;;  %12333 = vmatprep.subr.bf16.mxu0 %v13072_v6 }
0x23aa   : > { %12312 = vmatpush3.bf16.msra.mxu1 %v13073_v56  ;;  %12334 = vmatpush3.bf16.msra.mxu0 %v13074_v61  ;;  %v11407_v56 = vld [vmem:[%s16775_s14 + $0x2] sm:$0x1] }
0x23ab   : > { %12313 = vmatprep.subr.bf16.mxu1 %v13075_v53  ;;  %12335 = vmatprep.subr.bf16.mxu0 %v13076_v31 }
0x23ae   : > { %12314 = vmatpush3.bf16.msra.mxu1 %v13077_v8  ;;  %12336 = vmatpush3.bf16.msra.mxu0 %v13078_v39 }
0x23af   : > { %12315 = vmatprep.subr.bf16.mxu1 %v13079_v57  ;;  %12337 = vmatprep.subr.bf16.mxu0 %v13080_v52 }
0x23b2   : > { %12316 = vmatpush3.bf16.msra.mxu1 %v13081_v5  ;;  %12338 = vmatpush3.bf16.msra.mxu0 %v13082_v60  ;;  %v13087_v60 = vld [vmem:[%s16776_s15] sm:$0xff]  }
0x23b3   : > { %12317 = vmatprep.subr.bf16.mxu1 %v13083_v34  ;;  %12339 = vmatprep.subr.bf16.mxu0 %v13084_v38 }
0x23b6   : > { %12318 = vmatpush3.bf16.msra.mxu1 %v13085_v30  ;;  %12340 = vmatpush3.bf16.msra.mxu0 %v13086_v62  ;;  %v11408_v62 = vld [vmem:[%s16770_s9 + $0x2] sm:$0x1] }
0x23b7   : > { %12591 = vmatprep.subr.bf16.mxu1 %v16878_v36 }
0x2451   : > { %v12275_v51 = vpop.f32.mrf.mxu1  ;;  %v12297_v58 = vpop.f32.mrf.mxu0 }
0x2453   : > { %v12276_v26 = vpop.f32.mrf.mxu1  ;;  %v12298_v59 = vpop.f32.mrf.mxu0 }
0x2454   : > { %v12277_v49 = vadd.f32 %v12276_v26, %v12275_v51  ;;  %v12299_v14 = vadd.f32 %v12298_v59, %v12297_v58  ;;  %v11409_v58 = vld [vmem:[%s16771_s10 + $0x2] sm:$0x1] }
0x2455   : > { %v12278_v25 = vpop.f32.mrf.mxu1  ;;  %v12300_v54 = vpop.f32.mrf.mxu0 }
0x2456   : > { %v9620_v3 = vadd.f32 %v12299_v14, %v12277_v49  ;;  %v10125_v49 = vld [vmem:[%s16888_s30] sm:$0x1] }
0x2457   : > { %v12279_v7 = vpop.f32.mrf.mxu1  ;;  %v12301_v40 = vpop.f32.mrf.mxu0 }
0x2458   : > { %v9625_v35 = vadd.f32 %v9620_v3, %v16579_v13 }
0x2459   : > { %v9706_v22 = vpop.f32.mrf.mxu1  ;;  %v9747_v23 = vpop.f32.mrf.mxu0 }
0x245a   : > { %v9707_v2 = vadd.f32 %v9706_v22, %v9655_v47  ;;  %v9748_v63 = vadd.f32 %v9747_v23, %v9663_v19 }
0x245b   : > { %v9708_v1 = vpop.f32.mrf.mxu1  ;;  %v9749_v50 = vpop.f32.mrf.mxu0 }
0x245c   : > { %v9709_v20 = vadd.f32 %v9708_v1, %v9659_v10  ;;  %v9750_v43 = vadd.f32 %v9749_v50, %v9667_v21  ;;  %v9754_v45 = vmax.f32 %v9707_v2, 0.0  ;;  %v9756_v44 = vmax.f32 %v9748_v63, 0.0 }
0x245d   : > { %v9710_v24 = vpop.f32.mrf.mxu1  ;;  %v9751_v12 = vpop.f32.mrf.mxu0 }
0x245e   : > { %v9755_v33 = vmax.f32 %v9709_v20, 0.0  ;;  %v9757_v32 = vmax.f32 %v9750_v43, 0.0  ;;  %v9758_v9 = vpack.c.bf16 %v9754_v45, %v9754_v45  ;;  %v9760_v18 = vpack.c.bf16 %v9756_v44, %v9756_v44 }
0x245f   : > { %v9711_v15 = vpop.f32.mrf.mxu1  ;;  %v9752_v13 = vpop.f32.mrf.mxu0 }
0x2460   : > { %v9759_v29 = vpack.c.bf16 %v9755_v33, %v9755_v33  ;;  %v9761_v17 = vpack.c.bf16 %v9757_v32, %v9757_v32 }
0x2462   : > { %10050 = vmatprep.mubr.bf16.mxu1 %v9759_v29  ;;  %10090 = vmatprep.mubr.bf16.mxu0 %v9761_v17 }
0x2463   : > { %10051 = vmatmul.mubr.bf16.vlgmr.msra.gmra.mxu1 %v9758_v9  ;;  %10091 = vmatmul.mubr.bf16.vlgmr.msra.gmra.mxu0 %v9760_v18 }
0x2464   : > { %12593 = vmatprep.mubr.msk.bf16.mxu1 %vm13338_vm5, %v16878_v36  ;;  %12592 = vmatpush3.bf16.msra.mxu1 %v13087_v60 }
0x2523   : > { %v12319_v55 = vpop.f32.mrf.mxu1  ;;  %v12341_v42 = vpop.f32.mrf.mxu0 }
0x2525   : > { %v12320_v0 = vpop.f32.mrf.mxu1  ;;  %v12342_v16 = vpop.f32.mrf.mxu0 }
0x2526   : > { %v12321_v28 = vadd.f32 %v12320_v0, %v12319_v55  ;;  %v12343_v37 = vadd.f32 %v12342_v16, %v12341_v42 }
0x2527   : > { %v12322_v27 = vpop.f32.mrf.mxu1  ;;  %v12344_v11 = vpop.f32.mrf.mxu0 }
0x2528   : > { %v10093_v46 = vadd.f32 %v12343_v37, %v12321_v28 }
0x2529   : > { %v12323_v41 = vpop.f32.mrf.mxu1  ;;  %v12345_v6 = vpop.f32.mrf.mxu0 }
0x252a   : > { %v10098_v61 = vadd.f32 %v10093_v46, %v9625_v35 }
0x252c   : > { %v10101_v53 = vadd.f32 %v11407_v56, %v10098_v61 }
0x252e   : > { %v10102_v31 = vadd.f32 %v10101_v53, %v16202_v4 }
0x2530   : > { %v10107_v36 = vsel %vm8186_vm7, %v10102_v31, 0.0 }
0x2531   : > { %10108 = vadd.xlane.f32.xlu0 %v10107_v36 }
0x25ba   : > { %v10109_v8 = vpop.xlane.xlu0 %10108 }
0x25bb   : > { %v10110_v39 = vmul.f32 0.0625, %v10109_v8 }
0x25bd   : > { %v10111_v57 = vsub.f32 %v10102_v31, %v10110_v39 }
0x25bf   : > { %v10112_v52 = vmul.f32 %v10111_v57, %v10111_v57 }
0x25c1   : > { %v10113_v5 = vsel %vm8186_vm7, %v10112_v52, 0.0 }
0x25c2   : > { %10114 = vadd.xlane.f32.xlu0 %v10113_v5 }
0x264b   : > { %v10115_v34 = vpop.xlane.xlu0 %10114 }
0x264c   : > { %v10116_v38 = vmul.f32 0.0625, %v10115_v34 }
0x264e   : > { %v10117_v4 = vadd.f32 1e-05, %v10116_v38 }
0x2650   : > { %13266 = vrsqrt.f32 %v10117_v4 }
0x265d   : > { %v13267_v30 = vpop.eup %13266 }
0x265e   : > { %v10119_v51 = vmul.f32 %v13267_v30, %v10111_v57 }
0x2660   : > { %v10120_v26 = vmul.f32 %v11408_v62, %v10119_v51 }
0x2662   : > { %v10121_v59 = vadd.f32 %v11409_v58, %v10120_v26 }
0x2664   : > { %v10122_v48 = vpack.c.bf16 %v10121_v59, %v10121_v59 }
0x2666   : > { %12594 = vmatmul.mubr.msk.bf16.vlgmr.msra.gmra.mxu1 %vm566_vm0, %v10122_v48 }
0x2726   : > { %v10169_v14 = vpop.f32.mrf.mxu1 }
0x2727   : > { %v10170_v25 = vadd.f32 %v10169_v14, %v10125_v49 }
0x2728   : > { %v12595_v54 = vpop.f32.mrf.mxu1 }
0x2729   : > { %10175 = vst [vmem:[%s540_s16] sm:$0x1] %v10170_v25 }
0x272a   : > { %v10172_v3 = vpop.f32.mrf.mxu1 }
0x272b   : > { %13281 = shalt.err (!%p13278_p3)
}
0x272c   : > { %s13282_s20 = scalar_lea.hbm %s16720_s29, 16  ;;  %s13286_s30 = scalar_lea.hbm %s16889_s23, 32 }
0x272d   : > { %p13283_p4 = scmp.ne.s32.totalorder %s16720_s29, %s13282_s20  ;;  %p13287_p9 = scmp.lt.s32.totalorder %s16720_s29, %s16889_s23 }
0x272e   : > { %p13288_p10 = scmp.lt.s32.totalorder %s13286_s30, %s13282_s20 }
0x272f   : > { %p13284_p7 = pnand %p13283_p4, %p13468_p5 }
0x2730   : > { %p13289_p11 = por %p13288_p10, %p13287_p9 }
0x2731   : > { %p13285_p8 = pneg %p13284_p7 }
0x2733   : > { %p13290_p12 = pnand %p13289_p11, %p13285_p8 }
0x2735   : > { %13293 = shalt.err (!%p13290_p12)
}
0x2736   : > { %12618 = dma.vmem_to_hbm [thread:$0]  (%p13468_p5), %s16722_s1, 16, %s16720_s29, %s10177_s21   ;;  %v12596_v47 = vpop.f32.mrf.mxu1 }
0x2737 PF: > { %s16890_s18 = sld [smem:[#allocation7_spill]] }
0x2738   : > { %s16891_s19 = sld [smem:[#allocation5_spill]] }
0x273d   : > { %p12624_p13 = scmp.ge.s32.totalorder %s16890_s18, 2 }
0x273e   : > { %s10201_s28 = sand.u32 1, %s16891_s19  }
0x273f   : > { %p12621_p0 = pnand %p12624_p13, %p13472_p6  ;;  %s10202_s2 = scalar_lea.sflag [#allocation3], %s10201_s28 }
0x2741   : > { %p12622_p1 = pneg %p12621_p0 }
0x2743   : > { %13311 = dma.done.wait (%p12622_p1), %s10202_s2, 16  }
0x2744   : > { %13313 = vsyncadd (%p12622_p1), %s10202_s2, 4294967280  ;;  %s16893_s27 = sld [smem:[#allocation8_spill]]  ;;  %s16896_s24 = smov %s13320_s25 }
0x2745   : > { %s16894_s20 = sld [smem:[#allocation6_spill]] }
0x2746   : > { %s16895_s26 = sld [smem:[#allocation9_spill]] }
0x274a   : > { %p27_p2 = scmp.ge.s32.totalorder %s16893_s27, 4  }
0x274b   : > { %s16897_s25 = smov %s16894_s20 }
0x274c   :  { %29 = sbr.rel (!%p27_p2) target bundleno = 9 (0x9), region = 147 }
0x2751   :  { %10206 = vsyncpa [#allocation3], 1 }
0x2752   :  { %10208 = vsyncpa [#allocation3 + $0x1], 1 }

</bundles_post_ra>
